<compile_context>
chip_gen: v7x
topology: tpu7x:2x2x1
jax: 0.10.0
libtpu: 0.0.40
codegen_flags: <defaults>
</compile_context>

<pallas_src>
import functools

import numpy as np
import jax
import jax.numpy as jnp
from jax.experimental import pallas as pl
from jax.experimental.pallas import tpu as pltpu


# ----------------------------- mask helpers ------------------------------- #

def make_mask(mask_type, K):
    m = np.zeros((K, K), dtype=np.float32)
    m[: K // 2, :] = 1.0
    m[K // 2, : K // 2 + 1] = 1.0
    if mask_type == "A":
        m[K // 2, K // 2] = 0.0
    return m


def active_taps(mask_type, K):
    m = make_mask(mask_type, K)
    return tuple((dy, dx) for dy in range(K) for dx in range(K) if m[dy, dx] > 0)


CIN0_PAD = 8       # first-layer Cin=1 padded to 8 (layout-friendly contraction)
OUT_CHUNK = 128    # lane-dense chunking of the 256-wide output store


# ------------------------------ fused kernel ------------------------------ #

def _pixelcnn_kernel(x_ref, *refs, num_residual, H, W, taps7, taps3):
    # refs = [packed weights/biases ...] + [o_ref] + [patch7, pad3, patch3]
    nw = 2 + 6 * num_residual + 6
    wrefs = refs[:nw]
    o_ref = refs[nw]
    patch7_ref, pad3_ref, patch3_ref = refs[nw + 1:]

    HW = H * W
    Cin0 = x_ref.shape[-1]          # 8 (padded)
    Ch = pad3_ref.shape[-1]         # C // 2
    bf16 = jnp.bfloat16
    it = iter(wrefs)

    # ---- layer 0: masked 7x7 'A' conv (Cin padded to 8), out = relu(conv(x)) --
    w0, b0 = next(it), next(it)
    for t, (dy, dx) in enumerate(taps7):
        patch7_ref[:, t * Cin0:(t + 1) * Cin0] = (
            x_ref[dy:dy + H, dx:dx + W, :].reshape(HW, Cin0))
    out = jnp.dot(patch7_ref[...].astype(bf16), w0[...],
                  preferred_element_type=jnp.float32)
    out = jnp.maximum(out + b0[...], 0.0)                       # (HW, C) f32

    # zero the 3x3 padding scratch once per image; border stays zero because
    # only the interior is overwritten inside the residual blocks.
    pad3_ref[...] = jnp.zeros_like(pad3_ref)

    # ---- residual blocks (NOTE: reference code never adds the skip input) ----
    for _ in range(num_residual):
        wc1, bc1, wc3, bc3, wc2, bc2 = (next(it) for _ in range(6))
        a = jnp.maximum(out, 0.0)                               # relu(input)
        h = jnp.dot(a.astype(bf16), wc1[...], preferred_element_type=jnp.float32)
        h = jnp.maximum(h + bc1[...], 0.0)                      # (HW, Ch)
        # masked 3x3 'B' conv: pad in VMEM, fuse the 5 unmasked taps into K.
        pad3_ref[1:H + 1, 1:W + 1, :] = h.reshape(H, W, Ch)
        for t, (dy, dx) in enumerate(taps3):
            patch3_ref[:, t * Ch:(t + 1) * Ch] = (
                pad3_ref[dy:dy + H, dx:dx + W, :].reshape(HW, Ch))
        h = jnp.dot(patch3_ref[...].astype(bf16), wc3[...],
                    preferred_element_type=jnp.float32)
        h = jnp.maximum(h + bc3[...], 0.0)                      # (HW, Ch)
        out = jnp.dot(h.astype(bf16), wc2[...],
                      preferred_element_type=jnp.float32) + bc2[...]   # no relu

    # ---- two masked 1x1 'B' convs with relu -----------------------------------
    for _ in range(2):
        w, b = next(it), next(it)
        out = jnp.maximum(
            jnp.dot(out.astype(bf16), w[...], preferred_element_type=jnp.float32)
            + b[...], 0.0)

    # ---- output 1x1 conv to 256 logits, chunked for lane-dense stores ---------
    wout, bout = next(it), next(it)
    ob = out.astype(bf16)
    Cout = o_ref.shape[-1]
    for j in range(Cout // OUT_CHUNK):
        lo, hi = j * OUT_CHUNK, (j + 1) * OUT_CHUNK
        chunk = jnp.dot(ob, wout[:, lo:hi], preferred_element_type=jnp.float32)
        chunk = chunk + bout[:, lo:hi]
        o_ref[:, :, lo:hi] = chunk.reshape(H, W, OUT_CHUNK)


# -------------------------- weight packing (once) -------------------------- #

def pack_params(params, num_residual):
    """Pack masked-conv weights into (K_fused, Cout) bf16 matmul operands."""
    taps7 = active_taps("A", 7)
    taps3 = active_taps("B", 3)
    packed = []

    def as_bias(b):
        return jnp.asarray(b, jnp.float32).reshape(1, -1)

    # 7x7 'A' conv, Cin=1 padded to CIN0_PAD with zero weights.
    w0, b0 = params["in"]
    w0 = np.asarray(w0)                         # (C, 1, 7, 7)
    C, Cin0 = w0.shape[0], w0.shape[1]
    w0p = np.zeros((len(taps7) * CIN0_PAD, C), np.float32)
    for t, (dy, dx) in enumerate(taps7):
        w0p[t * CIN0_PAD:t * CIN0_PAD + Cin0, :] = w0[:, :, dy, dx].T
    packed += [jnp.asarray(w0p, jnp.bfloat16), as_bias(b0)]

    def pack1x1(w, b):                          # (Cout, Cin, 1, 1)
        wm = np.asarray(w)[:, :, 0, 0].T        # (Cin, Cout)
        return [jnp.asarray(wm, jnp.bfloat16), as_bias(b)]

    def pack3x3(w, b):                          # (Cout, Cin, 3, 3), mask 'B'
        w = np.asarray(w)
        wm = np.concatenate([w[:, :, dy, dx].T for dy, dx in taps3], axis=0)
        return [jnp.asarray(wm, jnp.bfloat16), as_bias(b)]    # (5*Cin, Cout)

    for i in range(num_residual):
        r = params["res"][i]
        packed += pack1x1(*r["c1"]) + pack3x3(*r["c3"]) + pack1x1(*r["c2"])
    packed += pack1x1(*params["b1"]) + pack1x1(*params["b2"])
    packed += pack1x1(*params["out"])           # unmasked 1x1 == 'B' 1x1
    return packed


# -------------------------- parameters & forward --------------------------- #

def init_conv_params(key, Cout, Cin, K):
    kw, kb = jax.random.split(key)
    bound = 1.0 / np.sqrt(Cin * K * K)
    w = jax.random.uniform(kw, (Cout, Cin, K, K), jnp.float32, -bound, bound)
    b = jax.random.uniform(kb, (Cout,), jnp.float32, -bound, bound)
    return w, b


def init_pixelcnn_params(key, num_kernels, num_residual):
    C = 2 * num_kernels
    keys = jax.random.split(key, 4 + num_residual)
    p = {"in": init_conv_params(keys[0], C, 1, 7), "res": []}
    for i in range(num_residual):
        k1, k2, k3 = jax.random.split(keys[1 + i], 3)
        p["res"].append({
            "c1": init_conv_params(k1, C // 2, C, 1),
            "c3": init_conv_params(k2, C // 2, C // 2, 3),
            "c2": init_conv_params(k3, C, C // 2, 1),
        })
    p["b1"] = init_conv_params(keys[1 + num_residual], C, C, 1)
    p["b2"] = init_conv_params(keys[2 + num_residual], C, C, 1)
    p["out"] = init_conv_params(keys[3 + num_residual], 256, C, 1)
    return p


def pixelcnn_forward(x, packed, num_residual):
    """x: (N, H, W, 1) f32; packed: output of pack_params. Returns (N,H,W,256)."""
    N, H, W, Cin = x.shape
    pad = 3
    # single tiny host-side pad of the network input (spatial + channel->8)
    xp = jnp.pad(x, ((0, 0), (pad, pad), (pad, pad), (0, CIN0_PAD - Cin)))
    Hp, Wp = H + 2 * pad, W + 2 * pad

    taps7 = active_taps("A", 7)
    taps3 = active_taps("B", 3)
    C = packed[0].shape[1]        # 2 * num_kernels
    Ch = C // 2
    Cout = packed[-2].shape[1]    # 256

    kern = functools.partial(_pixelcnn_kernel, num_residual=num_residual,
                             H=H, W=W, taps7=taps7, taps3=taps3)

    in_specs = [pl.BlockSpec((None, Hp, Wp, CIN0_PAD), lambda n: (n, 0, 0, 0))]
    # weights/biases: full-array blocks with constant index maps -> VMEM-resident
    in_specs += [pl.BlockSpec(a.shape, lambda n: (0, 0)) for a in packed]

    return pl.pallas_call(
        kern,
        out_shape=jax.ShapeDtypeStruct((N, H, W, Cout), jnp.float32),
        grid=(N,),
        in_specs=in_specs,
        out_specs=pl.BlockSpec((None, H, W, Cout), lambda n: (n, 0, 0, 0)),
        scratch_shapes=[
            pltpu.VMEM((H * W, len(taps7) * CIN0_PAD), jnp.float32),  # 7x7 im2col
            pltpu.VMEM((H + 2, W + 2, Ch), jnp.float32),              # 3x3 zero-pad
            pltpu.VMEM((H * W, len(taps3) * Ch), jnp.float32),        # 3x3 im2col
        ],
        compiler_params=pltpu.CompilerParams(dimension_semantics=("parallel",)),
    )(xp, *packed)


# ----------------------------- pure-JAX reference --------------------------- #

def ref_conv(x, w, b, *, mask_type, K, pad, relu_in=False, relu_out=False):
    if relu_in:
        x = jnp.maximum(x, 0.0)
    m = jnp.asarray(make_mask(mask_type, K))
    wm = w * m[None, None, :, :]
    wh = jnp.transpose(wm, (2, 3, 1, 0))  # (K, K, Cin, Cout)
    y = jax.lax.conv_general_dilated(
        x, wh, window_strides=(1, 1), padding=[(pad, pad), (pad, pad)],
        dimension_numbers=("NHWC", "HWIO", "NHWC"),
        precision=jax.lax.Precision.HIGHEST)
    y = y + b[None, None, None, :]
    if relu_out:
        y = jnp.maximum(y, 0.0)
    return y


def ref_forward(x, params, num_residual):
    out = ref_conv(x, *params["in"], mask_type="A", K=7, pad=3, relu_out=True)
    for i in range(num_residual):
        r = params["res"][i]
        h = ref_conv(out, *r["c1"], mask_type="B", K=1, pad=0,
                     relu_in=True, relu_out=True)
        h = ref_conv(h, *r["c3"], mask_type="B", K=3, pad=1, relu_out=True)
        out = ref_conv(h, *r["c2"], mask_type="B", K=1, pad=0)
    out = ref_conv(out, *params["b1"], mask_type="B", K=1, pad=0, relu_out=True)
    out = ref_conv(out, *params["b2"], mask_type="B", K=1, pad=0, relu_out=True)
    out = ref_conv(out, *params["out"], mask_type="B", K=1, pad=0)
    return out


# ----------------------------------- main ----------------------------------- #

if __name__ == "__main__":
    num_kernels = 32   # hidden width = 2 * num_kernels = 64 channels
    num_residual = 2   # same structure as the module (default is 10), kept small

    key = jax.random.PRNGKey(0)
    kx, kp = jax.random.split(key)
    # NHWC input; corresponds to PyTorch x of shape (2, 1, 16, 16).
    x = jax.random.uniform(kx, (2, 16, 16, 1), jnp.float32)
    params = init_pixelcnn_params(kp, num_kernels, num_residual)
    packed = pack_params(params, num_residual)   # done once, outside the kernel

    fwd = jax.jit(functools.partial(pixelcnn_forward, num_residual=num_residual))
    out = jax.block_until_ready(fwd(x, packed))
    assert out.shape == (2, 16, 16, 256), out.shape

    # Reference is f32 HIGHEST; kernel uses the bf16 MXU with f32 accumulation,
    # so the tolerance is loosened accordingly (per the perf review).
    ref = ref_forward(x, params, num_residual)
    np.testing.assert_allclose(np.asarray(out), np.asarray(ref),
                               rtol=2e-2, atol=2e-2)
    print("KERNEL_OK")
</pallas_src>

<mosaic_0001>
module attributes {stable_mosaic.version = 11 : i64} {
  func.func @_pixelcnn_kernel(%arg0: i32, %arg1: memref<1x22x22x8xf32, #tpu.memory_space<vmem>>, %arg2: memref<192x64xbf16, #tpu.memory_space<vmem>>, %arg3: memref<1x64xf32, #tpu.memory_space<vmem>>, %arg4: memref<64x32xbf16, #tpu.memory_space<vmem>>, %arg5: memref<1x32xf32, #tpu.memory_space<vmem>>, %arg6: memref<160x32xbf16, #tpu.memory_space<vmem>>, %arg7: memref<1x32xf32, #tpu.memory_space<vmem>>, %arg8: memref<32x64xbf16, #tpu.memory_space<vmem>>, %arg9: memref<1x64xf32, #tpu.memory_space<vmem>>, %arg10: memref<64x32xbf16, #tpu.memory_space<vmem>>, %arg11: memref<1x32xf32, #tpu.memory_space<vmem>>, %arg12: memref<160x32xbf16, #tpu.memory_space<vmem>>, %arg13: memref<1x32xf32, #tpu.memory_space<vmem>>, %arg14: memref<32x64xbf16, #tpu.memory_space<vmem>>, %arg15: memref<1x64xf32, #tpu.memory_space<vmem>>, %arg16: memref<64x64xbf16, #tpu.memory_space<vmem>>, %arg17: memref<1x64xf32, #tpu.memory_space<vmem>>, %arg18: memref<64x64xbf16, #tpu.memory_space<vmem>>, %arg19: memref<1x64xf32, #tpu.memory_space<vmem>>, %arg20: memref<64x256xbf16, #tpu.memory_space<vmem>>, %arg21: memref<1x256xf32, #tpu.memory_space<vmem>>, %arg22: memref<1x16x16x256xf32, #tpu.memory_space<vmem>>, %arg23: memref<256x192xf32, #tpu.memory_space<vmem>>, %arg24: memref<18x18x32xf32, #tpu.memory_space<vmem>>, %arg25: memref<256x160xf32, #tpu.memory_space<vmem>>) attributes {dimension_semantics = [#tpu.dimension_semantics<parallel>], iteration_bounds = array<i64: 2>, scalar_prefetch = 0 : i64, scratch_operands = 3 : i64, tpu.core_type = #tpu.core_type<tc>, window_params = [{transform_indices = @transform_0, window_bounds = array<i64: 1, 22, 22, 8>}, {pipeline_mode = #tpu.pipeline_mode<synchronous>, transform_indices = @transform_1, window_bounds = array<i64: 192, 64>}, {pipeline_mode = #tpu.pipeline_mode<synchronous>, transform_indices = @transform_2, window_bounds = array<i64: 1, 64>}, {pipeline_mode = #tpu.pipeline_mode<synchronous>, transform_indices = @transform_3, window_bounds = array<i64: 64, 32>}, {pipeline_mode = #tpu.pipeline_mode<synchronous>, transform_indices = @transform_4, window_bounds = array<i64: 1, 32>}, {pipeline_mode = #tpu.pipeline_mode<synchronous>, transform_indices = @transform_5, window_bounds = array<i64: 160, 32>}, {pipeline_mode = #tpu.pipeline_mode<synchronous>, transform_indices = @transform_6, window_bounds = array<i64: 1, 32>}, {pipeline_mode = #tpu.pipeline_mode<synchronous>, transform_indices = @transform_7, window_bounds = array<i64: 32, 64>}, {pipeline_mode = #tpu.pipeline_mode<synchronous>, transform_indices = @transform_8, window_bounds = array<i64: 1, 64>}, {pipeline_mode = #tpu.pipeline_mode<synchronous>, transform_indices = @transform_9, window_bounds = array<i64: 64, 32>}, {pipeline_mode = #tpu.pipeline_mode<synchronous>, transform_indices = @transform_10, window_bounds = array<i64: 1, 32>}, {pipeline_mode = #tpu.pipeline_mode<synchronous>, transform_indices = @transform_11, window_bounds = array<i64: 160, 32>}, {pipeline_mode = #tpu.pipeline_mode<synchronous>, transform_indices = @transform_12, window_bounds = array<i64: 1, 32>}, {pipeline_mode = #tpu.pipeline_mode<synchronous>, transform_indices = @transform_13, window_bounds = array<i64: 32, 64>}, {pipeline_mode = #tpu.pipeline_mode<synchronous>, transform_indices = @transform_14, window_bounds = array<i64: 1, 64>}, {pipeline_mode = #tpu.pipeline_mode<synchronous>, transform_indices = @transform_15, window_bounds = array<i64: 64, 64>}, {pipeline_mode = #tpu.pipeline_mode<synchronous>, transform_indices = @transform_16, window_bounds = array<i64: 1, 64>}, {pipeline_mode = #tpu.pipeline_mode<synchronous>, transform_indices = @transform_17, window_bounds = array<i64: 64, 64>}, {pipeline_mode = #tpu.pipeline_mode<synchronous>, transform_indices = @transform_18, window_bounds = array<i64: 1, 64>}, {pipeline_mode = #tpu.pipeline_mode<synchronous>, transform_indices = @transform_19, window_bounds = array<i64: 64, 256>}, {pipeline_mode = #tpu.pipeline_mode<synchronous>, transform_indices = @transform_20, window_bounds = array<i64: 1, 256>}, {transform_indices = @transform_21, window_bounds = array<i64: 1, 16, 16, 256>}]} {
    %c0 = arith.constant 0 : index
    %c0_0 = arith.constant 0 : index
    %c0_1 = arith.constant 0 : index
    %c0_2 = arith.constant 0 : index
    %0 = vector.load %arg1[%c0, %c0_0, %c0_1, %c0_2] : memref<1x22x22x8xf32, #tpu.memory_space<vmem>>, vector<1x16x16x8xf32>
    %1 = vector.shape_cast %0 : vector<1x16x16x8xf32> to vector<16x16x8xf32>
    %2 = vector.shape_cast %1 : vector<16x16x8xf32> to vector<256x8xf32>
    %c0_3 = arith.constant 0 : index
    %c0_4 = arith.constant 0 : index
    %3 = vector.load %arg23[%c0_3, %c0_4] : memref<256x192xf32, #tpu.memory_space<vmem>>, vector<256x8xf32>
    tpu.vector_store %arg23[%c0_3, %c0_4], %2 {strides = array<i32>} : memref<256x192xf32, #tpu.memory_space<vmem>>, vector<256x8xf32>,
    %c0_5 = arith.constant 0 : index
    %c0_6 = arith.constant 0 : index
    %c1 = arith.constant 1 : index
    %c0_7 = arith.constant 0 : index
    %4 = vector.load %arg1[%c0_5, %c0_6, %c1, %c0_7] : memref<1x22x22x8xf32, #tpu.memory_space<vmem>>, vector<1x16x16x8xf32>
    %5 = vector.shape_cast %4 : vector<1x16x16x8xf32> to vector<16x16x8xf32>
    %6 = vector.shape_cast %5 : vector<16x16x8xf32> to vector<256x8xf32>
    %c0_8 = arith.constant 0 : index
    %c8 = arith.constant 8 : index
    %7 = vector.load %arg23[%c0_8, %c8] : memref<256x192xf32, #tpu.memory_space<vmem>>, vector<256x8xf32>
    tpu.vector_store %arg23[%c0_8, %c8], %6 {strides = array<i32>} : memref<256x192xf32, #tpu.memory_space<vmem>>, vector<256x8xf32>,
    %c0_9 = arith.constant 0 : index
    %c0_10 = arith.constant 0 : index
    %c2 = arith.constant 2 : index
    %c0_11 = arith.constant 0 : index
    %8 = vector.load %arg1[%c0_9, %c0_10, %c2, %c0_11] : memref<1x22x22x8xf32, #tpu.memory_space<vmem>>, vector<1x16x16x8xf32>
    %9 = vector.shape_cast %8 : vector<1x16x16x8xf32> to vector<16x16x8xf32>
    %10 = vector.shape_cast %9 : vector<16x16x8xf32> to vector<256x8xf32>
    %c0_12 = arith.constant 0 : index
    %c16 = arith.constant 16 : index
    %11 = vector.load %arg23[%c0_12, %c16] : memref<256x192xf32, #tpu.memory_space<vmem>>, vector<256x8xf32>
    tpu.vector_store %arg23[%c0_12, %c16], %10 {strides = array<i32>} : memref<256x192xf32, #tpu.memory_space<vmem>>, vector<256x8xf32>,
    %c0_13 = arith.constant 0 : index
    %c0_14 = arith.constant 0 : index
    %c3 = arith.constant 3 : index
    %c0_15 = arith.constant 0 : index
    %12 = vector.load %arg1[%c0_13, %c0_14, %c3, %c0_15] : memref<1x22x22x8xf32, #tpu.memory_space<vmem>>, vector<1x16x16x8xf32>
    %13 = vector.shape_cast %12 : vector<1x16x16x8xf32> to vector<16x16x8xf32>
    %14 = vector.shape_cast %13 : vector<16x16x8xf32> to vector<256x8xf32>
    %c0_16 = arith.constant 0 : index
    %c24 = arith.constant 24 : index
    %15 = vector.load %arg23[%c0_16, %c24] : memref<256x192xf32, #tpu.memory_space<vmem>>, vector<256x8xf32>
    tpu.vector_store %arg23[%c0_16, %c24], %14 {strides = array<i32>} : memref<256x192xf32, #tpu.memory_space<vmem>>, vector<256x8xf32>,
    %c0_17 = arith.constant 0 : index
    %c0_18 = arith.constant 0 : index
    %c4 = arith.constant 4 : index
    %c0_19 = arith.constant 0 : index
    %16 = vector.load %arg1[%c0_17, %c0_18, %c4, %c0_19] : memref<1x22x22x8xf32, #tpu.memory_space<vmem>>, vector<1x16x16x8xf32>
    %17 = vector.shape_cast %16 : vector<1x16x16x8xf32> to vector<16x16x8xf32>
    %18 = vector.shape_cast %17 : vector<16x16x8xf32> to vector<256x8xf32>
    %c0_20 = arith.constant 0 : index
    %c32 = arith.constant 32 : index
    %19 = vector.load %arg23[%c0_20, %c32] : memref<256x192xf32, #tpu.memory_space<vmem>>, vector<256x8xf32>
    tpu.vector_store %arg23[%c0_20, %c32], %18 {strides = array<i32>} : memref<256x192xf32, #tpu.memory_space<vmem>>, vector<256x8xf32>,
    %c0_21 = arith.constant 0 : index
    %c0_22 = arith.constant 0 : index
    %c5 = arith.constant 5 : index
    %c0_23 = arith.constant 0 : index
    %20 = vector.load %arg1[%c0_21, %c0_22, %c5, %c0_23] : memref<1x22x22x8xf32, #tpu.memory_space<vmem>>, vector<1x16x16x8xf32>
    %21 = vector.shape_cast %20 : vector<1x16x16x8xf32> to vector<16x16x8xf32>
    %22 = vector.shape_cast %21 : vector<16x16x8xf32> to vector<256x8xf32>
    %c0_24 = arith.constant 0 : index
    %c40 = arith.constant 40 : index
    %23 = vector.load %arg23[%c0_24, %c40] : memref<256x192xf32, #tpu.memory_space<vmem>>, vector<256x8xf32>
    tpu.vector_store %arg23[%c0_24, %c40], %22 {strides = array<i32>} : memref<256x192xf32, #tpu.memory_space<vmem>>, vector<256x8xf32>,
    %c0_25 = arith.constant 0 : index
    %c0_26 = arith.constant 0 : index
    %c6 = arith.constant 6 : index
    %c0_27 = arith.constant 0 : index
    %24 = vector.load %arg1[%c0_25, %c0_26, %c6, %c0_27] : memref<1x22x22x8xf32, #tpu.memory_space<vmem>>, vector<1x16x16x8xf32>
    %25 = vector.shape_cast %24 : vector<1x16x16x8xf32> to vector<16x16x8xf32>
    %26 = vector.shape_cast %25 : vector<16x16x8xf32> to vector<256x8xf32>
    %c0_28 = arith.constant 0 : index
    %c48 = arith.constant 48 : index
    %27 = vector.load %arg23[%c0_28, %c48] : memref<256x192xf32, #tpu.memory_space<vmem>>, vector<256x8xf32>
    tpu.vector_store %arg23[%c0_28, %c48], %26 {strides = array<i32>} : memref<256x192xf32, #tpu.memory_space<vmem>>, vector<256x8xf32>,
    %c0_29 = arith.constant 0 : index
    %c1_30 = arith.constant 1 : index
    %c0_31 = arith.constant 0 : index
    %c0_32 = arith.constant 0 : index
    %28 = vector.load %arg1[%c0_29, %c1_30, %c0_31, %c0_32] : memref<1x22x22x8xf32, #tpu.memory_space<vmem>>, vector<1x16x16x8xf32>
    %29 = vector.shape_cast %28 : vector<1x16x16x8xf32> to vector<16x16x8xf32>
    %30 = vector.shape_cast %29 : vector<16x16x8xf32> to vector<256x8xf32>
    %c0_33 = arith.constant 0 : index
    %c56 = arith.constant 56 : index
    %31 = vector.load %arg23[%c0_33, %c56] : memref<256x192xf32, #tpu.memory_space<vmem>>, vector<256x8xf32>
    tpu.vector_store %arg23[%c0_33, %c56], %30 {strides = array<i32>} : memref<256x192xf32, #tpu.memory_space<vmem>>, vector<256x8xf32>,
    %c0_34 = arith.constant 0 : index
    %c1_35 = arith.constant 1 : index
    %c1_36 = arith.constant 1 : index
    %c0_37 = arith.constant 0 : index
    %32 = vector.load %arg1[%c0_34, %c1_35, %c1_36, %c0_37] : memref<1x22x22x8xf32, #tpu.memory_space<vmem>>, vector<1x16x16x8xf32>
    %33 = vector.shape_cast %32 : vector<1x16x16x8xf32> to vector<16x16x8xf32>
    %34 = vector.shape_cast %33 : vector<16x16x8xf32> to vector<256x8xf32>
    %c0_38 = arith.constant 0 : index
    %c64 = arith.constant 64 : index
    %35 = vector.load %arg23[%c0_38, %c64] : memref<256x192xf32, #tpu.memory_space<vmem>>, vector<256x8xf32>
    tpu.vector_store %arg23[%c0_38, %c64], %34 {strides = array<i32>} : memref<256x192xf32, #tpu.memory_space<vmem>>, vector<256x8xf32>,
    %c0_39 = arith.constant 0 : index
    %c1_40 = arith.constant 1 : index
    %c2_41 = arith.constant 2 : index
    %c0_42 = arith.constant 0 : index
    %36 = vector.load %arg1[%c0_39, %c1_40, %c2_41, %c0_42] : memref<1x22x22x8xf32, #tpu.memory_space<vmem>>, vector<1x16x16x8xf32>
    %37 = vector.shape_cast %36 : vector<1x16x16x8xf32> to vector<16x16x8xf32>
    %38 = vector.shape_cast %37 : vector<16x16x8xf32> to vector<256x8xf32>
    %c0_43 = arith.constant 0 : index
    %c72 = arith.constant 72 : index
    %39 = vector.load %arg23[%c0_43, %c72] : memref<256x192xf32, #tpu.memory_space<vmem>>, vector<256x8xf32>
    tpu.vector_store %arg23[%c0_43, %c72], %38 {strides = array<i32>} : memref<256x192xf32, #tpu.memory_space<vmem>>, vector<256x8xf32>,
    %c0_44 = arith.constant 0 : index
    %c1_45 = arith.constant 1 : index
    %c3_46 = arith.constant 3 : index
    %c0_47 = arith.constant 0 : index
    %40 = vector.load %arg1[%c0_44, %c1_45, %c3_46, %c0_47] : memref<1x22x22x8xf32, #tpu.memory_space<vmem>>, vector<1x16x16x8xf32>
    %41 = vector.shape_cast %40 : vector<1x16x16x8xf32> to vector<16x16x8xf32>
    %42 = vector.shape_cast %41 : vector<16x16x8xf32> to vector<256x8xf32>
    %c0_48 = arith.constant 0 : index
    %c80 = arith.constant 80 : index
    %43 = vector.load %arg23[%c0_48, %c80] : memref<256x192xf32, #tpu.memory_space<vmem>>, vector<256x8xf32>
    tpu.vector_store %arg23[%c0_48, %c80], %42 {strides = array<i32>} : memref<256x192xf32, #tpu.memory_space<vmem>>, vector<256x8xf32>,
    %c0_49 = arith.constant 0 : index
    %c1_50 = arith.constant 1 : index
    %c4_51 = arith.constant 4 : index
    %c0_52 = arith.constant 0 : index
    %44 = vector.load %arg1[%c0_49, %c1_50, %c4_51, %c0_52] : memref<1x22x22x8xf32, #tpu.memory_space<vmem>>, vector<1x16x16x8xf32>
    %45 = vector.shape_cast %44 : vector<1x16x16x8xf32> to vector<16x16x8xf32>
    %46 = vector.shape_cast %45 : vector<16x16x8xf32> to vector<256x8xf32>
    %c0_53 = arith.constant 0 : index
    %c88 = arith.constant 88 : index
    %47 = vector.load %arg23[%c0_53, %c88] : memref<256x192xf32, #tpu.memory_space<vmem>>, vector<256x8xf32>
    tpu.vector_store %arg23[%c0_53, %c88], %46 {strides = array<i32>} : memref<256x192xf32, #tpu.memory_space<vmem>>, vector<256x8xf32>,
    %c0_54 = arith.constant 0 : index
    %c1_55 = arith.constant 1 : index
    %c5_56 = arith.constant 5 : index
    %c0_57 = arith.constant 0 : index
    %48 = vector.load %arg1[%c0_54, %c1_55, %c5_56, %c0_57] : memref<1x22x22x8xf32, #tpu.memory_space<vmem>>, vector<1x16x16x8xf32>
    %49 = vector.shape_cast %48 : vector<1x16x16x8xf32> to vector<16x16x8xf32>
    %50 = vector.shape_cast %49 : vector<16x16x8xf32> to vector<256x8xf32>
    %c0_58 = arith.constant 0 : index
    %c96 = arith.constant 96 : index
    %51 = vector.load %arg23[%c0_58, %c96] : memref<256x192xf32, #tpu.memory_space<vmem>>, vector<256x8xf32>
    tpu.vector_store %arg23[%c0_58, %c96], %50 {strides = array<i32>} : memref<256x192xf32, #tpu.memory_space<vmem>>, vector<256x8xf32>,
    %c0_59 = arith.constant 0 : index
    %c1_60 = arith.constant 1 : index
    %c6_61 = arith.constant 6 : index
    %c0_62 = arith.constant 0 : index
    %52 = vector.load %arg1[%c0_59, %c1_60, %c6_61, %c0_62] : memref<1x22x22x8xf32, #tpu.memory_space<vmem>>, vector<1x16x16x8xf32>
    %53 = vector.shape_cast %52 : vector<1x16x16x8xf32> to vector<16x16x8xf32>
    %54 = vector.shape_cast %53 : vector<16x16x8xf32> to vector<256x8xf32>
    %c0_63 = arith.constant 0 : index
    %c104 = arith.constant 104 : index
    %55 = vector.load %arg23[%c0_63, %c104] : memref<256x192xf32, #tpu.memory_space<vmem>>, vector<256x8xf32>
    tpu.vector_store %arg23[%c0_63, %c104], %54 {strides = array<i32>} : memref<256x192xf32, #tpu.memory_space<vmem>>, vector<256x8xf32>,
    %c0_64 = arith.constant 0 : index
    %c2_65 = arith.constant 2 : index
    %c0_66 = arith.constant 0 : index
    %c0_67 = arith.constant 0 : index
    %56 = vector.load %arg1[%c0_64, %c2_65, %c0_66, %c0_67] : memref<1x22x22x8xf32, #tpu.memory_space<vmem>>, vector<1x16x16x8xf32>
    %57 = vector.shape_cast %56 : vector<1x16x16x8xf32> to vector<16x16x8xf32>
    %58 = vector.shape_cast %57 : vector<16x16x8xf32> to vector<256x8xf32>
    %c0_68 = arith.constant 0 : index
    %c112 = arith.constant 112 : index
    %59 = vector.load %arg23[%c0_68, %c112] : memref<256x192xf32, #tpu.memory_space<vmem>>, vector<256x8xf32>
    tpu.vector_store %arg23[%c0_68, %c112], %58 {strides = array<i32>} : memref<256x192xf32, #tpu.memory_space<vmem>>, vector<256x8xf32>,
    %c0_69 = arith.constant 0 : index
    %c2_70 = arith.constant 2 : index
    %c1_71 = arith.constant 1 : index
    %c0_72 = arith.constant 0 : index
    %60 = vector.load %arg1[%c0_69, %c2_70, %c1_71, %c0_72] : memref<1x22x22x8xf32, #tpu.memory_space<vmem>>, vector<1x16x16x8xf32>
    %61 = vector.shape_cast %60 : vector<1x16x16x8xf32> to vector<16x16x8xf32>
    %62 = vector.shape_cast %61 : vector<16x16x8xf32> to vector<256x8xf32>
    %c0_73 = arith.constant 0 : index
    %c120 = arith.constant 120 : index
    %63 = vector.load %arg23[%c0_73, %c120] : memref<256x192xf32, #tpu.memory_space<vmem>>, vector<256x8xf32>
    tpu.vector_store %arg23[%c0_73, %c120], %62 {strides = array<i32>} : memref<256x192xf32, #tpu.memory_space<vmem>>, vector<256x8xf32>,
    %c0_74 = arith.constant 0 : index
    %c2_75 = arith.constant 2 : index
    %c2_76 = arith.constant 2 : index
    %c0_77 = arith.constant 0 : index
    %64 = vector.load %arg1[%c0_74, %c2_75, %c2_76, %c0_77] : memref<1x22x22x8xf32, #tpu.memory_space<vmem>>, vector<1x16x16x8xf32>
    %65 = vector.shape_cast %64 : vector<1x16x16x8xf32> to vector<16x16x8xf32>
    %66 = vector.shape_cast %65 : vector<16x16x8xf32> to vector<256x8xf32>
    %c0_78 = arith.constant 0 : index
    %c128 = arith.constant 128 : index
    %67 = vector.load %arg23[%c0_78, %c128] : memref<256x192xf32, #tpu.memory_space<vmem>>, vector<256x8xf32>
    tpu.vector_store %arg23[%c0_78, %c128], %66 {strides = array<i32>} : memref<256x192xf32, #tpu.memory_space<vmem>>, vector<256x8xf32>,
    %c0_79 = arith.constant 0 : index
    %c2_80 = arith.constant 2 : index
    %c3_81 = arith.constant 3 : index
    %c0_82 = arith.constant 0 : index
    %68 = vector.load %arg1[%c0_79, %c2_80, %c3_81, %c0_82] : memref<1x22x22x8xf32, #tpu.memory_space<vmem>>, vector<1x16x16x8xf32>
    %69 = vector.shape_cast %68 : vector<1x16x16x8xf32> to vector<16x16x8xf32>
    %70 = vector.shape_cast %69 : vector<16x16x8xf32> to vector<256x8xf32>
    %c0_83 = arith.constant 0 : index
    %c136 = arith.constant 136 : index
    %71 = vector.load %arg23[%c0_83, %c136] : memref<256x192xf32, #tpu.memory_space<vmem>>, vector<256x8xf32>
    tpu.vector_store %arg23[%c0_83, %c136], %70 {strides = array<i32>} : memref<256x192xf32, #tpu.memory_space<vmem>>, vector<256x8xf32>,
    %c0_84 = arith.constant 0 : index
    %c2_85 = arith.constant 2 : index
    %c4_86 = arith.constant 4 : index
    %c0_87 = arith.constant 0 : index
    %72 = vector.load %arg1[%c0_84, %c2_85, %c4_86, %c0_87] : memref<1x22x22x8xf32, #tpu.memory_space<vmem>>, vector<1x16x16x8xf32>
    %73 = vector.shape_cast %72 : vector<1x16x16x8xf32> to vector<16x16x8xf32>
    %74 = vector.shape_cast %73 : vector<16x16x8xf32> to vector<256x8xf32>
    %c0_88 = arith.constant 0 : index
    %c144 = arith.constant 144 : index
    %75 = vector.load %arg23[%c0_88, %c144] : memref<256x192xf32, #tpu.memory_space<vmem>>, vector<256x8xf32>
    tpu.vector_store %arg23[%c0_88, %c144], %74 {strides = array<i32>} : memref<256x192xf32, #tpu.memory_space<vmem>>, vector<256x8xf32>,
    %c0_89 = arith.constant 0 : index
    %c2_90 = arith.constant 2 : index
    %c5_91 = arith.constant 5 : index
    %c0_92 = arith.constant 0 : index
    %76 = vector.load %arg1[%c0_89, %c2_90, %c5_91, %c0_92] : memref<1x22x22x8xf32, #tpu.memory_space<vmem>>, vector<1x16x16x8xf32>
    %77 = vector.shape_cast %76 : vector<1x16x16x8xf32> to vector<16x16x8xf32>
    %78 = vector.shape_cast %77 : vector<16x16x8xf32> to vector<256x8xf32>
    %c0_93 = arith.constant 0 : index
    %c152 = arith.constant 152 : index
    %79 = vector.load %arg23[%c0_93, %c152] : memref<256x192xf32, #tpu.memory_space<vmem>>, vector<256x8xf32>
    tpu.vector_store %arg23[%c0_93, %c152], %78 {strides = array<i32>} : memref<256x192xf32, #tpu.memory_space<vmem>>, vector<256x8xf32>,
    %c0_94 = arith.constant 0 : index
    %c2_95 = arith.constant 2 : index
    %c6_96 = arith.constant 6 : index
    %c0_97 = arith.constant 0 : index
    %80 = vector.load %arg1[%c0_94, %c2_95, %c6_96, %c0_97] : memref<1x22x22x8xf32, #tpu.memory_space<vmem>>, vector<1x16x16x8xf32>
    %81 = vector.shape_cast %80 : vector<1x16x16x8xf32> to vector<16x16x8xf32>
    %82 = vector.shape_cast %81 : vector<16x16x8xf32> to vector<256x8xf32>
    %c0_98 = arith.constant 0 : index
    %c160 = arith.constant 160 : index
    %83 = vector.load %arg23[%c0_98, %c160] : memref<256x192xf32, #tpu.memory_space<vmem>>, vector<256x8xf32>
    tpu.vector_store %arg23[%c0_98, %c160], %82 {strides = array<i32>} : memref<256x192xf32, #tpu.memory_space<vmem>>, vector<256x8xf32>,
    %c0_99 = arith.constant 0 : index
    %c3_100 = arith.constant 3 : index
    %c0_101 = arith.constant 0 : index
    %c0_102 = arith.constant 0 : index
    %84 = vector.load %arg1[%c0_99, %c3_100, %c0_101, %c0_102] : memref<1x22x22x8xf32, #tpu.memory_space<vmem>>, vector<1x16x16x8xf32>
    %85 = vector.shape_cast %84 : vector<1x16x16x8xf32> to vector<16x16x8xf32>
    %86 = vector.shape_cast %85 : vector<16x16x8xf32> to vector<256x8xf32>
    %c0_103 = arith.constant 0 : index
    %c168 = arith.constant 168 : index
    %87 = vector.load %arg23[%c0_103, %c168] : memref<256x192xf32, #tpu.memory_space<vmem>>, vector<256x8xf32>
    tpu.vector_store %arg23[%c0_103, %c168], %86 {strides = array<i32>} : memref<256x192xf32, #tpu.memory_space<vmem>>, vector<256x8xf32>,
    %c0_104 = arith.constant 0 : index
    %c3_105 = arith.constant 3 : index
    %c1_106 = arith.constant 1 : index
    %c0_107 = arith.constant 0 : index
    %88 = vector.load %arg1[%c0_104, %c3_105, %c1_106, %c0_107] : memref<1x22x22x8xf32, #tpu.memory_space<vmem>>, vector<1x16x16x8xf32>
    %89 = vector.shape_cast %88 : vector<1x16x16x8xf32> to vector<16x16x8xf32>
    %90 = vector.shape_cast %89 : vector<16x16x8xf32> to vector<256x8xf32>
    %c0_108 = arith.constant 0 : index
    %c176 = arith.constant 176 : index
    %91 = vector.load %arg23[%c0_108, %c176] : memref<256x192xf32, #tpu.memory_space<vmem>>, vector<256x8xf32>
    tpu.vector_store %arg23[%c0_108, %c176], %90 {strides = array<i32>} : memref<256x192xf32, #tpu.memory_space<vmem>>, vector<256x8xf32>,
    %c0_109 = arith.constant 0 : index
    %c3_110 = arith.constant 3 : index
    %c2_111 = arith.constant 2 : index
    %c0_112 = arith.constant 0 : index
    %92 = vector.load %arg1[%c0_109, %c3_110, %c2_111, %c0_112] : memref<1x22x22x8xf32, #tpu.memory_space<vmem>>, vector<1x16x16x8xf32>
    %93 = vector.shape_cast %92 : vector<1x16x16x8xf32> to vector<16x16x8xf32>
    %94 = vector.shape_cast %93 : vector<16x16x8xf32> to vector<256x8xf32>
    %c0_113 = arith.constant 0 : index
    %c184 = arith.constant 184 : index
    %95 = vector.load %arg23[%c0_113, %c184] : memref<256x192xf32, #tpu.memory_space<vmem>>, vector<256x8xf32>
    tpu.vector_store %arg23[%c0_113, %c184], %94 {strides = array<i32>} : memref<256x192xf32, #tpu.memory_space<vmem>>, vector<256x8xf32>,
    %c0_114 = arith.constant 0 : index
    %c0_115 = arith.constant 0 : index
    %96 = vector.load %arg23[%c0_114, %c0_115] : memref<256x192xf32, #tpu.memory_space<vmem>>, vector<256x192xf32>
    %97 = arith.truncf %96 : vector<256x192xf32> to vector<256x192xbf16>
    %c0_116 = arith.constant 0 : index
    %c0_117 = arith.constant 0 : index
    %98 = vector.load %arg2[%c0_116, %c0_117] : memref<192x64xbf16, #tpu.memory_space<vmem>>, vector<192x64xbf16>
    %cst = arith.constant dense<0.000000e+00> : vector<256x64xf32>
    %99 = tpu.matmul %97, %98, %cst {dimension_numbers = #tpu.dot_dimension_numbers<[1], [0], [0], [1], [0, 0, 1, 1], [], []>} : vector<256x192xbf16>, vector<192x64xbf16>, vector<256x64xf32> -> vector<256x64xf32>
    %c0_118 = arith.constant 0 : index
    %c0_119 = arith.constant 0 : index
    %100 = vector.load %arg3[%c0_118, %c0_119] : memref<1x64xf32, #tpu.memory_space<vmem>>, vector<1x64xf32>
    %101 = vector.broadcast %100 : vector<1x64xf32> to vector<256x64xf32>
    %102 = arith.addf %99, %101 : vector<256x64xf32>
    %cst_120 = arith.constant 0.000000e+00 : f32
    %103 = vector.broadcast %cst_120 : f32 to vector<256x64xf32>
    %104 = arith.maximumf %102, %103 : vector<256x64xf32>
    %cst_121 = arith.constant 0.000000e+00 : f32
    %105 = vector.broadcast %cst_121 : f32 to vector<18x18x32xf32>
    %c0_122 = arith.constant 0 : index
    %c0_123 = arith.constant 0 : index
    %c0_124 = arith.constant 0 : index
    %106 = vector.load %arg24[%c0_122, %c0_123, %c0_124] : memref<18x18x32xf32, #tpu.memory_space<vmem>>, vector<18x18x32xf32>
    tpu.vector_store %arg24[%c0_122, %c0_123, %c0_124], %105 {strides = array<i32>} : memref<18x18x32xf32, #tpu.memory_space<vmem>>, vector<18x18x32xf32>,
    %cst_125 = arith.constant 0.000000e+00 : f32
    %107 = vector.broadcast %cst_125 : f32 to vector<256x64xf32>
    %108 = arith.maximumf %104, %107 : vector<256x64xf32>
    %109 = arith.truncf %108 : vector<256x64xf32> to vector<256x64xbf16>
    %c0_126 = arith.constant 0 : index
    %c0_127 = arith.constant 0 : index
    %110 = vector.load %arg4[%c0_126, %c0_127] : memref<64x32xbf16, #tpu.memory_space<vmem>>, vector<64x32xbf16>
    %cst_128 = arith.constant dense<0.000000e+00> : vector<256x32xf32>
    %111 = tpu.matmul %109, %110, %cst_128 {dimension_numbers = #tpu.dot_dimension_numbers<[1], [0], [0], [1], [0, 0, 1, 1], [], []>} : vector<256x64xbf16>, vector<64x32xbf16>, vector<256x32xf32> -> vector<256x32xf32>
    %c0_129 = arith.constant 0 : index
    %c0_130 = arith.constant 0 : index
    %112 = vector.load %arg5[%c0_129, %c0_130] : memref<1x32xf32, #tpu.memory_space<vmem>>, vector<1x32xf32>
    %113 = vector.broadcast %112 : vector<1x32xf32> to vector<256x32xf32>
    %114 = arith.addf %111, %113 : vector<256x32xf32>
    %cst_131 = arith.constant 0.000000e+00 : f32
    %115 = vector.broadcast %cst_131 : f32 to vector<256x32xf32>
    %116 = arith.maximumf %114, %115 : vector<256x32xf32>
    %117 = vector.shape_cast %116 : vector<256x32xf32> to vector<16x16x32xf32>
    %c1_132 = arith.constant 1 : index
    %c1_133 = arith.constant 1 : index
    %c0_134 = arith.constant 0 : index
    %118 = vector.load %arg24[%c1_132, %c1_133, %c0_134] : memref<18x18x32xf32, #tpu.memory_space<vmem>>, vector<16x16x32xf32>
    tpu.vector_store %arg24[%c1_132, %c1_133, %c0_134], %117 {strides = array<i32>} : memref<18x18x32xf32, #tpu.memory_space<vmem>>, vector<16x16x32xf32>,
    %c0_135 = arith.constant 0 : index
    %c0_136 = arith.constant 0 : index
    %c0_137 = arith.constant 0 : index
    %119 = vector.load %arg24[%c0_135, %c0_136, %c0_137] : memref<18x18x32xf32, #tpu.memory_space<vmem>>, vector<16x16x32xf32>
    %120 = vector.shape_cast %119 : vector<16x16x32xf32> to vector<256x32xf32>
    %c0_138 = arith.constant 0 : index
    %c0_139 = arith.constant 0 : index
    %121 = vector.load %arg25[%c0_138, %c0_139] : memref<256x160xf32, #tpu.memory_space<vmem>>, vector<256x32xf32>
    tpu.vector_store %arg25[%c0_138, %c0_139], %120 {strides = array<i32>} : memref<256x160xf32, #tpu.memory_space<vmem>>, vector<256x32xf32>,
    %c0_140 = arith.constant 0 : index
    %c1_141 = arith.constant 1 : index
    %c0_142 = arith.constant 0 : index
    %122 = vector.load %arg24[%c0_140, %c1_141, %c0_142] : memref<18x18x32xf32, #tpu.memory_space<vmem>>, vector<16x16x32xf32>
    %123 = vector.shape_cast %122 : vector<16x16x32xf32> to vector<256x32xf32>
    %c0_143 = arith.constant 0 : index
    %c32_144 = arith.constant 32 : index
    %124 = vector.load %arg25[%c0_143, %c32_144] : memref<256x160xf32, #tpu.memory_space<vmem>>, vector<256x32xf32>
    tpu.vector_store %arg25[%c0_143, %c32_144], %123 {strides = array<i32>} : memref<256x160xf32, #tpu.memory_space<vmem>>, vector<256x32xf32>,
    %c0_145 = arith.constant 0 : index
    %c2_146 = arith.constant 2 : index
    %c0_147 = arith.constant 0 : index
    %125 = vector.load %arg24[%c0_145, %c2_146, %c0_147] : memref<18x18x32xf32, #tpu.memory_space<vmem>>, vector<16x16x32xf32>
    %126 = vector.shape_cast %125 : vector<16x16x32xf32> to vector<256x32xf32>
    %c0_148 = arith.constant 0 : index
    %c64_149 = arith.constant 64 : index
    %127 = vector.load %arg25[%c0_148, %c64_149] : memref<256x160xf32, #tpu.memory_space<vmem>>, vector<256x32xf32>
    tpu.vector_store %arg25[%c0_148, %c64_149], %126 {strides = array<i32>} : memref<256x160xf32, #tpu.memory_space<vmem>>, vector<256x32xf32>,
    %c1_150 = arith.constant 1 : index
    %c0_151 = arith.constant 0 : index
    %c0_152 = arith.constant 0 : index
    %128 = vector.load %arg24[%c1_150, %c0_151, %c0_152] : memref<18x18x32xf32, #tpu.memory_space<vmem>>, vector<16x16x32xf32>
    %129 = vector.shape_cast %128 : vector<16x16x32xf32> to vector<256x32xf32>
    %c0_153 = arith.constant 0 : index
    %c96_154 = arith.constant 96 : index
    %130 = vector.load %arg25[%c0_153, %c96_154] : memref<256x160xf32, #tpu.memory_space<vmem>>, vector<256x32xf32>
    tpu.vector_store %arg25[%c0_153, %c96_154], %129 {strides = array<i32>} : memref<256x160xf32, #tpu.memory_space<vmem>>, vector<256x32xf32>,
    %c1_155 = arith.constant 1 : index
    %c1_156 = arith.constant 1 : index
    %c0_157 = arith.constant 0 : index
    %131 = vector.load %arg24[%c1_155, %c1_156, %c0_157] : memref<18x18x32xf32, #tpu.memory_space<vmem>>, vector<16x16x32xf32>
    %132 = vector.shape_cast %131 : vector<16x16x32xf32> to vector<256x32xf32>
    %c0_158 = arith.constant 0 : index
    %c128_159 = arith.constant 128 : index
    %133 = vector.load %arg25[%c0_158, %c128_159] : memref<256x160xf32, #tpu.memory_space<vmem>>, vector<256x32xf32>
    tpu.vector_store %arg25[%c0_158, %c128_159], %132 {strides = array<i32>} : memref<256x160xf32, #tpu.memory_space<vmem>>, vector<256x32xf32>,
    %c0_160 = arith.constant 0 : index
    %c0_161 = arith.constant 0 : index
    %134 = vector.load %arg25[%c0_160, %c0_161] : memref<256x160xf32, #tpu.memory_space<vmem>>, vector<256x160xf32>
    %135 = arith.truncf %134 : vector<256x160xf32> to vector<256x160xbf16>
    %c0_162 = arith.constant 0 : index
    %c0_163 = arith.constant 0 : index
    %136 = vector.load %arg6[%c0_162, %c0_163] : memref<160x32xbf16, #tpu.memory_space<vmem>>, vector<160x32xbf16>
    %cst_164 = arith.constant dense<0.000000e+00> : vector<256x32xf32>
    %137 = tpu.matmul %135, %136, %cst_164 {dimension_numbers = #tpu.dot_dimension_numbers<[1], [0], [0], [1], [0, 0, 1, 1], [], []>} : vector<256x160xbf16>, vector<160x32xbf16>, vector<256x32xf32> -> vector<256x32xf32>
    %c0_165 = arith.constant 0 : index
    %c0_166 = arith.constant 0 : index
    %138 = vector.load %arg7[%c0_165, %c0_166] : memref<1x32xf32, #tpu.memory_space<vmem>>, vector<1x32xf32>
    %139 = vector.broadcast %138 : vector<1x32xf32> to vector<256x32xf32>
    %140 = arith.addf %137, %139 : vector<256x32xf32>
    %cst_167 = arith.constant 0.000000e+00 : f32
    %141 = vector.broadcast %cst_167 : f32 to vector<256x32xf32>
    %142 = arith.maximumf %140, %141 : vector<256x32xf32>
    %143 = arith.truncf %142 : vector<256x32xf32> to vector<256x32xbf16>
    %c0_168 = arith.constant 0 : index
    %c0_169 = arith.constant 0 : index
    %144 = vector.load %arg8[%c0_168, %c0_169] : memref<32x64xbf16, #tpu.memory_space<vmem>>, vector<32x64xbf16>
    %cst_170 = arith.constant dense<0.000000e+00> : vector<256x64xf32>
    %145 = tpu.matmul %143, %144, %cst_170 {dimension_numbers = #tpu.dot_dimension_numbers<[1], [0], [0], [1], [0, 0, 1, 1], [], []>} : vector<256x32xbf16>, vector<32x64xbf16>, vector<256x64xf32> -> vector<256x64xf32>
    %c0_171 = arith.constant 0 : index
    %c0_172 = arith.constant 0 : index
    %146 = vector.load %arg9[%c0_171, %c0_172] : memref<1x64xf32, #tpu.memory_space<vmem>>, vector<1x64xf32>
    %147 = vector.broadcast %146 : vector<1x64xf32> to vector<256x64xf32>
    %148 = arith.addf %145, %147 : vector<256x64xf32>
    %cst_173 = arith.constant 0.000000e+00 : f32
    %149 = vector.broadcast %cst_173 : f32 to vector<256x64xf32>
    %150 = arith.maximumf %148, %149 : vector<256x64xf32>
    %151 = arith.truncf %150 : vector<256x64xf32> to vector<256x64xbf16>
    %c0_174 = arith.constant 0 : index
    %c0_175 = arith.constant 0 : index
    %152 = vector.load %arg10[%c0_174, %c0_175] : memref<64x32xbf16, #tpu.memory_space<vmem>>, vector<64x32xbf16>
    %cst_176 = arith.constant dense<0.000000e+00> : vector<256x32xf32>
    %153 = tpu.matmul %151, %152, %cst_176 {dimension_numbers = #tpu.dot_dimension_numbers<[1], [0], [0], [1], [0, 0, 1, 1], [], []>} : vector<256x64xbf16>, vector<64x32xbf16>, vector<256x32xf32> -> vector<256x32xf32>
    %c0_177 = arith.constant 0 : index
    %c0_178 = arith.constant 0 : index
    %154 = vector.load %arg11[%c0_177, %c0_178] : memref<1x32xf32, #tpu.memory_space<vmem>>, vector<1x32xf32>
    %155 = vector.broadcast %154 : vector<1x32xf32> to vector<256x32xf32>
    %156 = arith.addf %153, %155 : vector<256x32xf32>
    %cst_179 = arith.constant 0.000000e+00 : f32
    %157 = vector.broadcast %cst_179 : f32 to vector<256x32xf32>
    %158 = arith.maximumf %156, %157 : vector<256x32xf32>
    %159 = vector.shape_cast %158 : vector<256x32xf32> to vector<16x16x32xf32>
    %c1_180 = arith.constant 1 : index
    %c1_181 = arith.constant 1 : index
    %c0_182 = arith.constant 0 : index
    %160 = vector.load %arg24[%c1_180, %c1_181, %c0_182] : memref<18x18x32xf32, #tpu.memory_space<vmem>>, vector<16x16x32xf32>
    tpu.vector_store %arg24[%c1_180, %c1_181, %c0_182], %159 {strides = array<i32>} : memref<18x18x32xf32, #tpu.memory_space<vmem>>, vector<16x16x32xf32>,
    %c0_183 = arith.constant 0 : index
    %c0_184 = arith.constant 0 : index
    %c0_185 = arith.constant 0 : index
    %161 = vector.load %arg24[%c0_183, %c0_184, %c0_185] : memref<18x18x32xf32, #tpu.memory_space<vmem>>, vector<16x16x32xf32>
    %162 = vector.shape_cast %161 : vector<16x16x32xf32> to vector<256x32xf32>
    %c0_186 = arith.constant 0 : index
    %c0_187 = arith.constant 0 : index
    %163 = vector.load %arg25[%c0_186, %c0_187] : memref<256x160xf32, #tpu.memory_space<vmem>>, vector<256x32xf32>
    tpu.vector_store %arg25[%c0_186, %c0_187], %162 {strides = array<i32>} : memref<256x160xf32, #tpu.memory_space<vmem>>, vector<256x32xf32>,
    %c0_188 = arith.constant 0 : index
    %c1_189 = arith.constant 1 : index
    %c0_190 = arith.constant 0 : index
    %164 = vector.load %arg24[%c0_188, %c1_189, %c0_190] : memref<18x18x32xf32, #tpu.memory_space<vmem>>, vector<16x16x32xf32>
    %165 = vector.shape_cast %164 : vector<16x16x32xf32> to vector<256x32xf32>
    %c0_191 = arith.constant 0 : index
    %c32_192 = arith.constant 32 : index
    %166 = vector.load %arg25[%c0_191, %c32_192] : memref<256x160xf32, #tpu.memory_space<vmem>>, vector<256x32xf32>
    tpu.vector_store %arg25[%c0_191, %c32_192], %165 {strides = array<i32>} : memref<256x160xf32, #tpu.memory_space<vmem>>, vector<256x32xf32>,
    %c0_193 = arith.constant 0 : index
    %c2_194 = arith.constant 2 : index
    %c0_195 = arith.constant 0 : index
    %167 = vector.load %arg24[%c0_193, %c2_194, %c0_195] : memref<18x18x32xf32, #tpu.memory_space<vmem>>, vector<16x16x32xf32>
    %168 = vector.shape_cast %167 : vector<16x16x32xf32> to vector<256x32xf32>
    %c0_196 = arith.constant 0 : index
    %c64_197 = arith.constant 64 : index
    %169 = vector.load %arg25[%c0_196, %c64_197] : memref<256x160xf32, #tpu.memory_space<vmem>>, vector<256x32xf32>
    tpu.vector_store %arg25[%c0_196, %c64_197], %168 {strides = array<i32>} : memref<256x160xf32, #tpu.memory_space<vmem>>, vector<256x32xf32>,
    %c1_198 = arith.constant 1 : index
    %c0_199 = arith.constant 0 : index
    %c0_200 = arith.constant 0 : index
    %170 = vector.load %arg24[%c1_198, %c0_199, %c0_200] : memref<18x18x32xf32, #tpu.memory_space<vmem>>, vector<16x16x32xf32>
    %171 = vector.shape_cast %170 : vector<16x16x32xf32> to vector<256x32xf32>
    %c0_201 = arith.constant 0 : index
    %c96_202 = arith.constant 96 : index
    %172 = vector.load %arg25[%c0_201, %c96_202] : memref<256x160xf32, #tpu.memory_space<vmem>>, vector<256x32xf32>
    tpu.vector_store %arg25[%c0_201, %c96_202], %171 {strides = array<i32>} : memref<256x160xf32, #tpu.memory_space<vmem>>, vector<256x32xf32>,
    %c1_203 = arith.constant 1 : index
    %c1_204 = arith.constant 1 : index
    %c0_205 = arith.constant 0 : index
    %173 = vector.load %arg24[%c1_203, %c1_204, %c0_205] : memref<18x18x32xf32, #tpu.memory_space<vmem>>, vector<16x16x32xf32>
    %174 = vector.shape_cast %173 : vector<16x16x32xf32> to vector<256x32xf32>
    %c0_206 = arith.constant 0 : index
    %c128_207 = arith.constant 128 : index
    %175 = vector.load %arg25[%c0_206, %c128_207] : memref<256x160xf32, #tpu.memory_space<vmem>>, vector<256x32xf32>
    tpu.vector_store %arg25[%c0_206, %c128_207], %174 {strides = array<i32>} : memref<256x160xf32, #tpu.memory_space<vmem>>, vector<256x32xf32>,
    %c0_208 = arith.constant 0 : index
    %c0_209 = arith.constant 0 : index
    %176 = vector.load %arg25[%c0_208, %c0_209] : memref<256x160xf32, #tpu.memory_space<vmem>>, vector<256x160xf32>
    %177 = arith.truncf %176 : vector<256x160xf32> to vector<256x160xbf16>
    %c0_210 = arith.constant 0 : index
    %c0_211 = arith.constant 0 : index
    %178 = vector.load %arg12[%c0_210, %c0_211] : memref<160x32xbf16, #tpu.memory_space<vmem>>, vector<160x32xbf16>
    %cst_212 = arith.constant dense<0.000000e+00> : vector<256x32xf32>
    %179 = tpu.matmul %177, %178, %cst_212 {dimension_numbers = #tpu.dot_dimension_numbers<[1], [0], [0], [1], [0, 0, 1, 1], [], []>} : vector<256x160xbf16>, vector<160x32xbf16>, vector<256x32xf32> -> vector<256x32xf32>
    %c0_213 = arith.constant 0 : index
    %c0_214 = arith.constant 0 : index
    %180 = vector.load %arg13[%c0_213, %c0_214] : memref<1x32xf32, #tpu.memory_space<vmem>>, vector<1x32xf32>
    %181 = vector.broadcast %180 : vector<1x32xf32> to vector<256x32xf32>
    %182 = arith.addf %179, %181 : vector<256x32xf32>
    %cst_215 = arith.constant 0.000000e+00 : f32
    %183 = vector.broadcast %cst_215 : f32 to vector<256x32xf32>
    %184 = arith.maximumf %182, %183 : vector<256x32xf32>
    %185 = arith.truncf %184 : vector<256x32xf32> to vector<256x32xbf16>
    %c0_216 = arith.constant 0 : index
    %c0_217 = arith.constant 0 : index
    %186 = vector.load %arg14[%c0_216, %c0_217] : memref<32x64xbf16, #tpu.memory_space<vmem>>, vector<32x64xbf16>
    %cst_218 = arith.constant dense<0.000000e+00> : vector<256x64xf32>
    %187 = tpu.matmul %185, %186, %cst_218 {dimension_numbers = #tpu.dot_dimension_numbers<[1], [0], [0], [1], [0, 0, 1, 1], [], []>} : vector<256x32xbf16>, vector<32x64xbf16>, vector<256x64xf32> -> vector<256x64xf32>
    %c0_219 = arith.constant 0 : index
    %c0_220 = arith.constant 0 : index
    %188 = vector.load %arg15[%c0_219, %c0_220] : memref<1x64xf32, #tpu.memory_space<vmem>>, vector<1x64xf32>
    %189 = vector.broadcast %188 : vector<1x64xf32> to vector<256x64xf32>
    %190 = arith.addf %187, %189 : vector<256x64xf32>
    %191 = arith.truncf %190 : vector<256x64xf32> to vector<256x64xbf16>
    %c0_221 = arith.constant 0 : index
    %c0_222 = arith.constant 0 : index
    %192 = vector.load %arg16[%c0_221, %c0_222] : memref<64x64xbf16, #tpu.memory_space<vmem>>, vector<64x64xbf16>
    %cst_223 = arith.constant dense<0.000000e+00> : vector<256x64xf32>
    %193 = tpu.matmul %191, %192, %cst_223 {dimension_numbers = #tpu.dot_dimension_numbers<[1], [0], [0], [1], [0, 0, 1, 1], [], []>} : vector<256x64xbf16>, vector<64x64xbf16>, vector<256x64xf32> -> vector<256x64xf32>
    %c0_224 = arith.constant 0 : index
    %c0_225 = arith.constant 0 : index
    %194 = vector.load %arg17[%c0_224, %c0_225] : memref<1x64xf32, #tpu.memory_space<vmem>>, vector<1x64xf32>
    %195 = vector.broadcast %194 : vector<1x64xf32> to vector<256x64xf32>
    %196 = arith.addf %193, %195 : vector<256x64xf32>
    %cst_226 = arith.constant 0.000000e+00 : f32
    %197 = vector.broadcast %cst_226 : f32 to vector<256x64xf32>
    %198 = arith.maximumf %196, %197 : vector<256x64xf32>
    %199 = arith.truncf %198 : vector<256x64xf32> to vector<256x64xbf16>
    %c0_227 = arith.constant 0 : index
    %c0_228 = arith.constant 0 : index
    %200 = vector.load %arg18[%c0_227, %c0_228] : memref<64x64xbf16, #tpu.memory_space<vmem>>, vector<64x64xbf16>
    %cst_229 = arith.constant dense<0.000000e+00> : vector<256x64xf32>
    %201 = tpu.matmul %199, %200, %cst_229 {dimension_numbers = #tpu.dot_dimension_numbers<[1], [0], [0], [1], [0, 0, 1, 1], [], []>} : vector<256x64xbf16>, vector<64x64xbf16>, vector<256x64xf32> -> vector<256x64xf32>
    %c0_230 = arith.constant 0 : index
    %c0_231 = arith.constant 0 : index
    %202 = vector.load %arg19[%c0_230, %c0_231] : memref<1x64xf32, #tpu.memory_space<vmem>>, vector<1x64xf32>
    %203 = vector.broadcast %202 : vector<1x64xf32> to vector<256x64xf32>
    %204 = arith.addf %201, %203 : vector<256x64xf32>
    %cst_232 = arith.constant 0.000000e+00 : f32
    %205 = vector.broadcast %cst_232 : f32 to vector<256x64xf32>
    %206 = arith.maximumf %204, %205 : vector<256x64xf32>
    %207 = arith.truncf %206 : vector<256x64xf32> to vector<256x64xbf16>
    %c0_233 = arith.constant 0 : index
    %c0_234 = arith.constant 0 : index
    %208 = vector.load %arg20[%c0_233, %c0_234] : memref<64x256xbf16, #tpu.memory_space<vmem>>, vector<64x128xbf16>
    %cst_235 = arith.constant dense<0.000000e+00> : vector<256x128xf32>
    %209 = tpu.matmul %207, %208, %cst_235 {dimension_numbers = #tpu.dot_dimension_numbers<[1], [0], [0], [1], [0, 0, 1, 1], [], []>} : vector<256x64xbf16>, vector<64x128xbf16>, vector<256x128xf32> -> vector<256x128xf32>
    %c0_236 = arith.constant 0 : index
    %c0_237 = arith.constant 0 : index
    %210 = vector.load %arg21[%c0_236, %c0_237] : memref<1x256xf32, #tpu.memory_space<vmem>>, vector<1x128xf32>
    %211 = vector.broadcast %210 : vector<1x128xf32> to vector<256x128xf32>
    %212 = arith.addf %209, %211 : vector<256x128xf32>
    %213 = vector.shape_cast %212 : vector<256x128xf32> to vector<16x16x128xf32>
    %c0_238 = arith.constant 0 : index
    %c0_239 = arith.constant 0 : index
    %c0_240 = arith.constant 0 : index
    %c0_241 = arith.constant 0 : index
    %214 = vector.load %arg22[%c0_238, %c0_239, %c0_240, %c0_241] : memref<1x16x16x256xf32, #tpu.memory_space<vmem>>, vector<1x16x16x128xf32>
    %215 = vector.shape_cast %214 : vector<1x16x16x128xf32> to vector<16x16x128xf32>
    %216 = vector.shape_cast %213 : vector<16x16x128xf32> to vector<1x16x16x128xf32>
    tpu.vector_store %arg22[%c0_238, %c0_239, %c0_240, %c0_241], %216 {strides = array<i32>} : memref<1x16x16x256xf32, #tpu.memory_space<vmem>>, vector<1x16x16x128xf32>,
    %c0_242 = arith.constant 0 : index
    %c128_243 = arith.constant 128 : index
    %217 = vector.load %arg20[%c0_242, %c128_243] : memref<64x256xbf16, #tpu.memory_space<vmem>>, vector<64x128xbf16>
    %cst_244 = arith.constant dense<0.000000e+00> : vector<256x128xf32>
    %218 = tpu.matmul %207, %217, %cst_244 {dimension_numbers = #tpu.dot_dimension_numbers<[1], [0], [0], [1], [0, 0, 1, 1], [], []>} : vector<256x64xbf16>, vector<64x128xbf16>, vector<256x128xf32> -> vector<256x128xf32>
    %c0_245 = arith.constant 0 : index
    %c128_246 = arith.constant 128 : index
    %219 = vector.load %arg21[%c0_245, %c128_246] : memref<1x256xf32, #tpu.memory_space<vmem>>, vector<1x128xf32>
    %220 = vector.broadcast %219 : vector<1x128xf32> to vector<256x128xf32>
    %221 = arith.addf %218, %220 : vector<256x128xf32>
    %222 = vector.shape_cast %221 : vector<256x128xf32> to vector<16x16x128xf32>
    %c0_247 = arith.constant 0 : index
    %c0_248 = arith.constant 0 : index
    %c0_249 = arith.constant 0 : index
    %c128_250 = arith.constant 128 : index
    %223 = vector.load %arg22[%c0_247, %c0_248, %c0_249, %c128_250] : memref<1x16x16x256xf32, #tpu.memory_space<vmem>>, vector<1x16x16x128xf32>
    %224 = vector.shape_cast %223 : vector<1x16x16x128xf32> to vector<16x16x128xf32>
    %225 = vector.shape_cast %222 : vector<16x16x128xf32> to vector<1x16x16x128xf32>
    tpu.vector_store %arg22[%c0_247, %c0_248, %c0_249, %c128_250], %225 {strides = array<i32>} : memref<1x16x16x256xf32, #tpu.memory_space<vmem>>, vector<1x16x16x128xf32>,
    return
  }
  func.func @transform_0(%arg0: i32) -> (i32, i32, i32, i32) {
    %c0_i32 = arith.constant 0 : i32
    %c0_i32_0 = arith.constant 0 : i32
    %c0_i32_1 = arith.constant 0 : i32
    %c0_i32_2 = arith.constant 0 : i32
    return %arg0, %c0_i32, %c0_i32_0, %c0_i32_1 : i32, i32, i32, i32
  }
  func.func @transform_1(%arg0: i32) -> (i32, i32) {
    %c0_i32 = arith.constant 0 : i32
    %c0_i32_0 = arith.constant 0 : i32
    %c0_i32_1 = arith.constant 0 : i32
    return %c0_i32, %c0_i32_0 : i32, i32
  }
  func.func @transform_2(%arg0: i32) -> (i32, i32) {
    %c0_i32 = arith.constant 0 : i32
    %c0_i32_0 = arith.constant 0 : i32
    %c0_i32_1 = arith.constant 0 : i32
    return %c0_i32, %c0_i32_0 : i32, i32
  }
  func.func @transform_3(%arg0: i32) -> (i32, i32) {
    %c0_i32 = arith.constant 0 : i32
    %c0_i32_0 = arith.constant 0 : i32
    %c0_i32_1 = arith.constant 0 : i32
    return %c0_i32, %c0_i32_0 : i32, i32
  }
  func.func @transform_4(%arg0: i32) -> (i32, i32) {
    %c0_i32 = arith.constant 0 : i32
    %c0_i32_0 = arith.constant 0 : i32
    %c0_i32_1 = arith.constant 0 : i32
    return %c0_i32, %c0_i32_0 : i32, i32
  }
  func.func @transform_5(%arg0: i32) -> (i32, i32) {
    %c0_i32 = arith.constant 0 : i32
    %c0_i32_0 = arith.constant 0 : i32
    %c0_i32_1 = arith.constant 0 : i32
    return %c0_i32, %c0_i32_0 : i32, i32
  }
  func.func @transform_6(%arg0: i32) -> (i32, i32) {
    %c0_i32 = arith.constant 0 : i32
    %c0_i32_0 = arith.constant 0 : i32
    %c0_i32_1 = arith.constant 0 : i32
    return %c0_i32, %c0_i32_0 : i32, i32
  }
  func.func @transform_7(%arg0: i32) -> (i32, i32) {
    %c0_i32 = arith.constant 0 : i32
    %c0_i32_0 = arith.constant 0 : i32
    %c0_i32_1 = arith.constant 0 : i32
    return %c0_i32, %c0_i32_0 : i32, i32
  }
  func.func @transform_8(%arg0: i32) -> (i32, i32) {
    %c0_i32 = arith.constant 0 : i32
    %c0_i32_0 = arith.constant 0 : i32
    %c0_i32_1 = arith.constant 0 : i32
    return %c0_i32, %c0_i32_0 : i32, i32
  }
  func.func @transform_9(%arg0: i32) -> (i32, i32) {
    %c0_i32 = arith.constant 0 : i32
    %c0_i32_0 = arith.constant 0 : i32
    %c0_i32_1 = arith.constant 0 : i32
    return %c0_i32, %c0_i32_0 : i32, i32
  }
  func.func @transform_10(%arg0: i32) -> (i32, i32) {
    %c0_i32 = arith.constant 0 : i32
    %c0_i32_0 = arith.constant 0 : i32
    %c0_i32_1 = arith.constant 0 : i32
    return %c0_i32, %c0_i32_0 : i32, i32
  }
  func.func @transform_11(%arg0: i32) -> (i32, i32) {
    %c0_i32 = arith.constant 0 : i32
    %c0_i32_0 = arith.constant 0 : i32
    %c0_i32_1 = arith.constant 0 : i32
    return %c0_i32, %c0_i32_0 : i32, i32
  }
  func.func @transform_12(%arg0: i32) -> (i32, i32) {
    %c0_i32 = arith.constant 0 : i32
    %c0_i32_0 = arith.constant 0 : i32
    %c0_i32_1 = arith.constant 0 : i32
    return %c0_i32, %c0_i32_0 : i32, i32
  }
  func.func @transform_13(%arg0: i32) -> (i32, i32) {
    %c0_i32 = arith.constant 0 : i32
    %c0_i32_0 = arith.constant 0 : i32
    %c0_i32_1 = arith.constant 0 : i32
    return %c0_i32, %c0_i32_0 : i32, i32
  }
  func.func @transform_14(%arg0: i32) -> (i32, i32) {
    %c0_i32 = arith.constant 0 : i32
    %c0_i32_0 = arith.constant 0 : i32
    %c0_i32_1 = arith.constant 0 : i32
    return %c0_i32, %c0_i32_0 : i32, i32
  }
  func.func @transform_15(%arg0: i32) -> (i32, i32) {
    %c0_i32 = arith.constant 0 : i32
    %c0_i32_0 = arith.constant 0 : i32
    %c0_i32_1 = arith.constant 0 : i32
    return %c0_i32, %c0_i32_0 : i32, i32
  }
  func.func @transform_16(%arg0: i32) -> (i32, i32) {
    %c0_i32 = arith.constant 0 : i32
    %c0_i32_0 = arith.constant 0 : i32
    %c0_i32_1 = arith.constant 0 : i32
    return %c0_i32, %c0_i32_0 : i32, i32
  }
  func.func @transform_17(%arg0: i32) -> (i32, i32) {
    %c0_i32 = arith.constant 0 : i32
    %c0_i32_0 = arith.constant 0 : i32
    %c0_i32_1 = arith.constant 0 : i32
    return %c0_i32, %c0_i32_0 : i32, i32
  }
  func.func @transform_18(%arg0: i32) -> (i32, i32) {
    %c0_i32 = arith.constant 0 : i32
    %c0_i32_0 = arith.constant 0 : i32
    %c0_i32_1 = arith.constant 0 : i32
    return %c0_i32, %c0_i32_0 : i32, i32
  }
  func.func @transform_19(%arg0: i32) -> (i32, i32) {
    %c0_i32 = arith.constant 0 : i32
    %c0_i32_0 = arith.constant 0 : i32
    %c0_i32_1 = arith.constant 0 : i32
    return %c0_i32, %c0_i32_0 : i32, i32
  }
  func.func @transform_20(%arg0: i32) -> (i32, i32) {
    %c0_i32 = arith.constant 0 : i32
    %c0_i32_0 = arith.constant 0 : i32
    %c0_i32_1 = arith.constant 0 : i32
    return %c0_i32, %c0_i32_0 : i32, i32
  }
  func.func @transform_21(%arg0: i32) -> (i32, i32, i32, i32) {
    %c0_i32 = arith.constant 0 : i32
    %c0_i32_0 = arith.constant 0 : i32
    %c0_i32_1 = arith.constant 0 : i32
    %c0_i32_2 = arith.constant 0 : i32
    return %arg0, %c0_i32, %c0_i32_0, %c0_i32_1 : i32, i32, i32, i32
  }
}

</mosaic_0001>

<bundles_post_ra>
// kernel: pixelcnn_forward.1
= control target key start
LH: loop header
LB: loop body
LE: loop exit
PB: predicated region body
PF: predicated region fallthrough
CT: control target
= control target key end

     0   :  { %s16614_s0 = inlined_call_operand.vmem [shape: f32[2,22,22,8], index: 0, kind: input, shape index: {}]   ;;  %s16615_s1 = inlined_call_operand.vmem [shape: bf16[192,64], index: 1, kind: input, shape index: {}]   ;;  %s16616_s2 = inlined_call_operand.vmem [shape: f32[1,64], index: 2, kind: input, shape index: {}]   ;;  %s16617_s3 = inlined_call_operand.vmem [shape: bf16[64,32], index: 3, kind: input, shape index: {}]   ;;  %s16618_s4 = inlined_call_operand.vmem [shape: f32[1,32], index: 4, kind: input, shape index: {}]   ;;  %s16619_s5 = inlined_call_operand.vmem [shape: bf16[160,32], index: 5, kind: input, shape index: {}]   ;;  %s16620_s6 = inlined_call_operand.vmem [shape: f32[1,32], index: 6, kind: input, shape index: {}]   ;;  %s16621_s7 = inlined_call_operand.vmem [shape: bf16[32,64], index: 7, kind: input, shape index: {}]   ;;  %s16622_s8 = inlined_call_operand.vmem [shape: f32[1,64], index: 8, kind: input, shape index: {}]   ;;  %s16623_s9 = inlined_call_operand.vmem [shape: bf16[64,32], index: 9, kind: input, shape index: {}]   ;;  %s16624_s10 = inlined_call_operand.vmem [shape: f32[1,32], index: 10, kind: input, shape index: {}]   ;;  %s16625_s11 = inlined_call_operand.vmem [shape: bf16[160,32], index: 11, kind: input, shape index: {}]   ;;  %s16626_s12 = inlined_call_operand.vmem [shape: f32[1,32], index: 12, kind: input, shape index: {}]   ;;  %s16627_s13 = inlined_call_operand.vmem [shape: bf16[32,64], index: 13, kind: input, shape index: {}]   ;;  %s16628_s14 = inlined_call_operand.vmem [shape: f32[1,64], index: 14, kind: input, shape index: {}]   ;;  %s16629_s15 = inlined_call_operand.vmem [shape: bf16[64,64], index: 15, kind: input, shape index: {}]   ;;  %s16630_s16 = inlined_call_operand.vmem [shape: f32[1,64], index: 16, kind: input, shape index: {}]   ;;  %s16631_s17 = inlined_call_operand.vmem [shape: bf16[64,64], index: 17, kind: input, shape index: {}]   ;;  %s16632_s18 = inlined_call_operand.vmem [shape: f32[1,64], index: 18, kind: input, shape index: {}]   ;;  %s16633_s19 = inlined_call_operand.vmem [shape: bf16[64,256], index: 19, kind: input, shape index: {}]   ;;  %s16634_s20 = inlined_call_operand.vmem [shape: f32[1,256], index: 20, kind: input, shape index: {}]   ;;  %s16635_s21 = inlined_call_operand.hbm [shape: f32[2,16,16,256], index: 21, kind: output, shape index: {}]  }
   0x1   :  { %16694 = sst [smem:[#allocation17_spill]] %s16614_s0 }
   0x2   :  { %16695 = sst [smem:[#allocation18_spill]] %s16615_s1 }
   0x3   :  { %16696 = sst [smem:[#allocation19_spill]] %s16616_s2 }
   0x4   :  { %16697 = sst [smem:[#allocation20_spill]] %s16617_s3 }
   0x5   :  { %16698 = sst [smem:[#allocation21_spill]] %s16618_s4 }
   0x6   :  { %16699 = sst [smem:[#allocation22_spill]] %s16619_s5 }
   0x7   :  { %16700 = sst [smem:[#allocation23_spill]] %s16630_s16 }
   0x8   :  { %16701 = sst [smem:[#allocation24_spill]] %s16631_s17 }
   0x9   :  { %16702 = sst [smem:[#allocation25_spill]] %s16632_s18 }
   0xa   :  { %16703 = sst [smem:[#allocation26_spill]] %s16633_s19 }
   0xb   :  { %16704 = sst [smem:[#allocation27_spill]] %s16634_s20 }
   0xc   :  { %16705 = sst [smem:[#allocation28_spill]] %s16635_s21 }
   0xd   :  { %26 = vsyncpa [#allocation6], 0 }
   0xe   :  { %28 = vsyncpa [#allocation6 + $0x1], 0  ;;  %s11790_s2 = smov 0   ;;  %s11792_s25 = smov 0  }
   0xf   :  { %s11794_s26 = smov 0   ;;  %s11796_s27 = smov 0  }
  0x10 LB: > { %16706 = sst [smem:[#allocation8_spill]] %s11647_s2  ;;  %s11811_s3 = sadd.s32 4294967295, %s11659_s27   ;;  %s11659_s27 = sphi %s11796_s27, %s17186_s27   ;;  %s11655_s26 = sphi %s11794_s26, %s17189_s26   ;;  %s11651_s25 = sphi %s11792_s25, %s17188_s25   ;;  %s11647_s2 = sphi %s11790_s2, %s17187_s2  }
  0x11   : > { %16707 = sst [smem:[#allocation9_spill]] %s11651_s25  ;;  %s10196_s28 = sadd.s32 4294967294, %s11659_s27  }
  0x12   : > { %16708 = sst [smem:[#allocation10_spill]] %s11655_s26  ;;  %s11815_s29 = sadd.s32 1, %s11659_s27  }
  0x13   : > { %16709 = sst [smem:[#allocation11_spill]] %s11659_s27  ;;  %s487_s0 = sadd.s32 1, %s11655_s26 }
  0x14   : > { %16710 = sst [smem:[#allocation12_spill]] %s11811_s3  ;;  %s484_s4 = ssub.s32 %s11659_s27, %s11815_s29 }
  0x15   : > { %16711 = sst [smem:[#allocation13_spill]] %s11815_s29  ;;  %p497_p0 = scmp.ne.s32.totalorder %s11655_s26, %s11651_s25 }
  0x16   : > { %p485_p1 = scmp.eq.s32.totalorder %s484_s4, 0  ;;  %p498_p2 = scmp.eq.s32.totalorder %s11811_s3, 1 }
  0x17   : > { %p503_p3 = scmp.ne.s32.totalorder %s11651_s25, %s11647_s2  ;;  %p504_p4 = scmp.eq.s32.totalorder %s10196_s28, 1 }
  0x18   : > { %s11826_s30 = scalar_select %p485_p1, %s11655_s26, %s487_s0  }
  0x19   : > { %p11828_p5 = por %p498_p2, %p497_p0  ;;  %p11832_p6 = por %p504_p4, %p503_p3 }
  0x1a   : > { %16712 = sst [smem:[#allocation14_spill]] %s11826_s30  ;;  %p10199_p7 = scmp.ge.s32.totalorder %s11659_s27, 1 }
  0x1b   : > { %s16713_s5 = scalar_select %p11828_p5, 1, 0 }
  0x1c   : > { %s16715_s22 = scalar_select %p11832_p6, 1, 0 }
  0x1d   : > { %16714 = sst [smem:[#allocation15_spill]] %s16713_s5  ;;  %p590_p8 = scmp.lt.s32.totalorder %s11659_s27, 3 }
  0x1e   : > { %16716 = sst [smem:[#allocation16_spill]] %s16715_s22 }
  0x1f   : > { %p591_p9 = pnand %p10199_p7, %p590_p8 }
  0x20   : > { %p650_p10 = scmp.lt.s32.totalorder (!%p591_p9), %s11811_s3, 1  ;;  %s16717_s0 = sld [smem:[#allocation17_spill]] (!%p591_p9)  ;;  %vm688_vm0 = vcmask (!%p591_p9), 64512   ;;  %v11671_v37 = vmov (!%p591_p9), 0   ;;  %vm881_vm1 = vcmask (!%p591_p9), 130112   ;;  %vm1074_vm2 = vcmask (!%p591_p9), 195712  }
  0x21   : > { %594 = sbr.rel (%p591_p9) target bundleno = 4087 (0xff7), region = 104  ;;  %s16648_s30 = smov (!%p591_p9), 16   ;;  %5275 = vmatprep.subr.bf16.mxu0 (!%p591_p9), %v11671_v37  ;;  %vm1267_vm3 = vcmask (!%p591_p9), 261312   ;;  %vm16687_vm4 = vcmask (!%p591_p9), 326912   ;;  %vm16685_vm5 = vcmask (!%p591_p9), 392512   ;;  %vm1846_vm6 = vcmask (!%p591_p9), 458112  }
  0x22   : > { %s16650_s26 = smov (!%p591_p9), 8   ;;  %s16642_s24 = smov (!%p591_p9), 40   ;;  %vm2040_vm7 = vcmask (!%p591_p9), 523712   ;;  %vm2233_vm8 = vcmask (!%p591_p9), 589312   ;;  %vm16693_vm9 = vcmask (!%p591_p9), 654912   ;;  %vm2619_vm10 = vcmask (!%p591_p9), 720512  }
  0x23   : > { %s16660_s28 = smov (!%p591_p9), 48   ;;  %s16671_s29 = smov (!%p591_p9), 120   ;;  %vm2812_vm11 = vcmask (!%p591_p9), 786112   ;;  %vm16686_vm12 = vcmask (!%p591_p9), 851712   ;;  %vm16684_vm13 = vcmask (!%p591_p9), 917312   ;;  %vm16683_vm14 = vcmask (!%p591_p9), 982912  }
  0x24   : > { %s16722_s22 = smov (!%p591_p9), 64   ;;  %s16728_s2 = smov (!%p591_p9), 88   ;;  %vm3585_vm15 = vcmask (!%p591_p9), 1048512  }
  0x25   : > { %s16729_s27 = smov (!%p591_p9), 32   ;;  %s16730_s21 = smov (!%p591_p9), 96  }
  0x26   : > { %s16731_s5 = smov (!%p591_p9), 104   ;;  %s16733_s20 = smov (!%p591_p9), 120  }
  0x27   : > { %s16744_s19 = sld [smem:[#allocation20_spill]] (!%p591_p9)  ;;  %s16745_s16 = sld [smem:[#allocation19_spill]] (!%p591_p9) }
  0x28   : > { %s651_s23 = scalar_select %p650_p10, %s11811_s3, 1 }
  0x29   : > { %s16732_s3 = smov 112   ;;  %s16801_s18 = sld [smem:[#allocation21_spill]] }
  0x2a   : > { %s11471_s1 = smul.u32 528, %s651_s23  ;;  %s16658_s23 = smov 24  }
  0x2b   : > { %s17176_s17 = sld [smem:[#allocation26_spill]] }
  0x2c   : > { %s11843_s4 = scalar_lea.vmem %s16717_s0, %s11471_s1  ;;  %s16664_s1 = smov 32  }
  0x2d   : > { %v914_v0 = vld [vmem:[%s11843_s4 + $0x2] sm:$0xff]  ;;  %v915_v2 = vld [vmem:[%s11843_s4 + $0xa] sm:$0xff]  ;;  %v10202_v5 = vld [vmem:[%s11843_s4 + $0x18] sm:$0xff]  ;;  %s16644_s0 = smov 56  }
  0x2e   : > { %v721_v1 = vld [vmem:[%s11843_s4 + $0x1] sm:$0xff]  ;;  %978 = vrot.lane.b32.xlu1 %v914_v0, %s16648_s30  ;;  %v722_v3 = vld [vmem:[%s11843_s4 + $0x9] sm:$0xff]  ;;  %691 = vst.msk [vmem:[#allocation2 + $0x20] sm:$0xff] %vm688_vm0, %v10202_v5  ;;  %v11868_v12 = vld [vmem:[%s11843_s4 + $0x38] sm:$0xff] }
  0x2f   : > { %785 = vrot.lane.b32.xlu0 %v721_v1, %s16650_s26  ;;  %v10203_v4 = vld [vmem:[%s11843_s4 + $0x20] sm:$0xff]  ;;  %v1108_v6 = vld [vmem:[%s11843_s4 + $0xb] sm:$0xff]  ;;  %694 = vst.msk [vmem:[#allocation2 + $0x50] sm:$0xff] %vm688_vm0, %v11868_v12  ;;  %v11915_v25 = vld [vmem:[%s11843_s4 + $0x33] sm:$0xff] }
  0x30   : > { %692 = vst.msk [vmem:[#allocation2 + $0x30] sm:$0xff] %vm688_vm0, %v10203_v4  ;;  %v1107_v7 = vld [vmem:[%s11843_s4 + $0x3] sm:$0xff]  ;;  %v1301_v8 = vld [vmem:[%s11843_s4 + $0xc] sm:$0xff]  ;;  %v11894_v18 = vld [vmem:[%s11843_s4 + $0x3a] sm:$0xff] }
  0x31   : > { %v1300_v9 = vld [vmem:[%s11843_s4 + $0x4] sm:$0xff]  ;;  %v1494_v10 = vld [vmem:[%s11843_s4 + $0xd] sm:$0xff]  ;;  %3651 = vst.msk [vmem:[#allocation2 + $0x18] sm:$0xff] %vm688_vm0, %v11894_v18  ;;  %v10234_v23 = vld [vmem:[%s11843_s4 + $0x19] sm:$0xff] }
  0x32   : > { %980 = vrot.lane.b32.xlu1 %v915_v2, %s16648_s30  ;;  %v1493_v11 = vld [vmem:[%s11843_s4 + $0x5] sm:$0xff]  ;;  %v11871_v13 = vld [vmem:[%s11843_s4 + $0x30] sm:$0xff]  ;;  %v11912_v24 = vld [vmem:[%s11843_s4 + $0x3b] sm:$0xff] }
  0x33   : > { %787 = vrot.lane.b32.xlu0 %v722_v3, %s16650_s26  ;;  %v11874_v14 = vld [vmem:[%s11843_s4 + $0x52] sm:$0xff]  ;;  %v11877_v15 = vld [vmem:[%s11843_s4 + $0x4a] sm:$0xff]  ;;  %693 = vst.msk [vmem:[#allocation2 + $0x40] sm:$0xff] %vm688_vm0, %v11871_v13  ;;  %v656_v16 = vld [vmem:[%s11843_s4] sm:$0xff] }
  0x34   : > { %3653 = vst.msk [vmem:[#allocation2 + $0x38] sm:$0xff] %vm688_vm0, %v11874_v14  ;;  %v657_v17 = vld [vmem:[%s11843_s4 + $0x8] sm:$0xff]  ;;  %3652 = vst.msk [vmem:[#allocation2 + $0x28] sm:$0xff] %vm688_vm0, %v11877_v15  ;;  %v11899_v21 = vld [vmem:[%s11843_s4 + $0x32] sm:$0xff] }
  0x35   : > { %689 = vst.msk [vmem:[#allocation2] sm:$0xff] %vm688_vm0, %v656_v16  ;;  %690 = vst.msk [vmem:[#allocation2 + $0x10] sm:$0xff] %vm688_vm0, %v657_v17  ;;  %v1687_v19 = vld [vmem:[%s11843_s4 + $0xe] sm:$0xff]  ;;  %v1686_v20 = vld [vmem:[%s11843_s4 + $0x6] sm:$0xff] }
  0x36   : > { %1173 = vrot.lane.b32.xlu1 %v1108_v6, %s16658_s23  ;;  %3650 = vst.msk [vmem:[#allocation2 + $0x8] sm:$0xff] %vm688_vm0, %v11899_v21  ;;  %v10235_v22 = vld [vmem:[%s11843_s4 + $0x21] sm:$0xff]  ;;  %v11931_v29 = vld [vmem:[%s11843_s4 + $0x34] sm:$0xff]  ;;  %v11964_v38 = vld [vmem:[%s11843_s4 + $0x6a] sm:$0xff] }
  0x37   : > { %1171 = vrot.lane.b32.xlu0 %v1107_v7, %s16658_s23  ;;  %v10267_v26 = vld [vmem:[%s11843_s4 + $0x22] sm:$0xff]  ;;  %v10266_v27 = vld [vmem:[%s11843_s4 + $0x1a] sm:$0xff]  ;;  %3655 = vst.msk [vmem:[#allocation2 + $0x58] sm:$0xff] %vm688_vm0, %v11964_v38  ;;  %v12008_v48 = vld [vmem:[%s11843_s4 + $0x50] sm:$0xff] }
  0x38   : > { %v11928_v28 = vld [vmem:[%s11843_s4 + $0x3c] sm:$0xff]  ;;  %v10331_v35 = vld [vmem:[%s11843_s4 + $0x24] sm:$0xff]  ;;  %v12036_v55 = vld [vmem:[%s11843_s4 + $0x51] sm:$0xff] }
  0x39   : > { %v10299_v30 = vld [vmem:[%s11843_s4 + $0x23] sm:$0xff]  ;;  %v10298_v31 = vld [vmem:[%s11843_s4 + $0x1b] sm:$0xff]  ;;  %v10458_v62 = vld [vmem:[%s11843_s4 + $0x31] sm:$0xff] }
  0x3a   : > { %1366 = vrot.lane.b32.xlu1 %v1301_v8, %s16664_s1  ;;  %v11944_v32 = vld [vmem:[%s11843_s4 + $0x3d] sm:$0xff]  ;;  %v11947_v33 = vld [vmem:[%s11843_s4 + $0x35] sm:$0xff]  ;;  %v10363_v45 = vld [vmem:[%s11843_s4 + $0x25] sm:$0xff] }
  0x3b   : > { %1364 = vrot.lane.b32.xlu0 %v1300_v9, %s16664_s1  ;;  %v10330_v36 = vld [vmem:[%s11843_s4 + $0x1c] sm:$0xff]  ;;  %v12011_v49 = vld [vmem:[%s11843_s4 + $0x48] sm:$0xff]  ;;  %v12084_v1 = vld [vmem:[%s11843_s4 + $0x53] sm:$0xff] }
  0x3c   : > { %v11967_v39 = vld [vmem:[%s11843_s4 + $0x62] sm:$0xff]  ;;  %v11983_v42 = vld [vmem:[%s11843_s4 + $0x36] sm:$0xff]  ;;  %v12087_v2 = vld [vmem:[%s11843_s4 + $0x4b] sm:$0xff] }
  0x3d   : > { %3654 = vst.msk [vmem:[#allocation2 + $0x48] sm:$0xff] %vm688_vm0, %v11967_v39  ;;  %v11980_v41 = vld [vmem:[%s11843_s4 + $0x3e] sm:$0xff]  ;;  %v10395_v52 = vld [vmem:[%s11843_s4 + $0x26] sm:$0xff]  ;;  %v12106_v9 = vld [vmem:[%s11843_s4 + $0x54] sm:$0xff] }
  0x3e   : > { %1559 = vrot.lane.b32.xlu1 %v1494_v10, %s16642_s24  ;;  %v10362_v46 = vld [vmem:[%s11843_s4 + $0x1d] sm:$0xff]  ;;  %v12039_v56 = vld [vmem:[%s11843_s4 + $0x49] sm:$0xff] }
  0x3f   : > { %1557 = vrot.lane.b32.xlu0 %v1493_v11, %s16642_s24  ;;  %s16652_s24 = smov 64   ;;  %v10394_v53 = vld [vmem:[%s11843_s4 + $0x1e] sm:$0xff]  ;;  %v12109_v10 = vld [vmem:[%s11843_s4 + $0x4c] sm:$0xff] }
  0x40   : > { %v10459_v61 = vld [vmem:[%s11843_s4 + $0x39] sm:$0xff] }
  0x42   : > { %1752 = vrot.lane.b32.xlu1 %v1687_v19, %s16660_s28 }
  0x43   : > { %1750 = vrot.lane.b32.xlu0 %v1686_v20, %s16660_s28  ;;  %s16662_s28 = smov 96   ;;  %v12130_v20 = vld [vmem:[%s11843_s4 + $0x55] sm:$0xff] }
  0x46   : > { %1946 = vrot.lane.b32.xlu1 %v10203_v4, %s16644_s0 }
  0x47   : > { %1944 = vrot.lane.b32.xlu0 %v10202_v5, %s16644_s0  ;;  %s16646_s0 = smov 72  }
  0x4a   : > { %2139 = vrot.lane.b32.xlu1 %v10235_v22, %s16652_s24 }
  0x4b   : > { %2137 = vrot.lane.b32.xlu0 %v10234_v23, %s16652_s24  ;;  %s16718_s24 = sld [smem:[#allocation18_spill]] }
  0x4e   : > { %3748 = vrot.lane.b32.xlu1 %v11912_v24, %s16650_s26 }
  0x4f   : > { %3746 = vrot.lane.b32.xlu0 %v11915_v25, %s16650_s26 }
  0x51   : > { %v11529_v34 = vld [vmem:[%s16718_s24] sm:$0xff]   ;;  %v11530_v40 = vld [vmem:[%s16718_s24 + $0x8] sm:$0xff]   ;;  %v11531_v43 = vld [vmem:[%s16718_s24 + $0x10] sm:$0xff]  }
  0x52   : > { %791 = vrot.lane.b32.xlu1 %v10235_v22, %s16650_s26  ;;  %5276 = vmatpush1.bf16.msra.mxu0 %v11529_v34  ;;  %v11532_v44 = vld [vmem:[%s16718_s24 + $0x18] sm:$0xff]   ;;  %v11533_v47 = vld [vmem:[%s16718_s24 + $0x20] sm:$0xff]   ;;  %v11534_v50 = vld [vmem:[%s16718_s24 + $0x28] sm:$0xff]  }
  0x53   : > { %789 = vrot.lane.b32.xlu0 %v10234_v23, %s16650_s26  ;;  %5277 = vmatprep.subr.bf16.mxu0 %v11671_v37  ;;  %v11535_v51 = vld [vmem:[%s16718_s24 + $0x30] sm:$0xff]   ;;  %v11536_v54 = vld [vmem:[%s16718_s24 + $0x38] sm:$0xff]   ;;  %s16720_s26 = smov 48   ;;  %v11537_v57 = vld [vmem:[%s16718_s24 + $0x40] sm:$0xff]  }
  0x54   : > { %v11538_v58 = vld [vmem:[%s16718_s24 + $0x48] sm:$0xff]   ;;  %v11539_v59 = vld [vmem:[%s16718_s24 + $0x50] sm:$0xff]   ;;  %v11540_v60 = vld [vmem:[%s16718_s24 + $0x58] sm:$0xff]   ;;  %s16727_s24 = smov 24  }
  0x55   : > { %v12153_v34 = vld [vmem:[%s11843_s4 + $0x7a] sm:$0xff] }
  0x56   : > { %2332 = vrot.lane.b32.xlu1 %v10267_v26, %s16646_s0  ;;  %5278 = vmatpush1.bf16.msra.mxu0 %v11530_v40  ;;  %3656 = vst.msk [vmem:[#allocation2 + $0x68] sm:$0xff] %vm688_vm0, %v12153_v34 }
  0x57   : > { %2330 = vrot.lane.b32.xlu0 %v10266_v27, %s16646_s0  ;;  %s16654_s0 = smov 80   ;;  %5279 = vmatprep.subr.bf16.mxu0 %v11671_v37 }
  0x5a   : > { %3940 = vrot.lane.b32.xlu1 %v11928_v28, %s16648_s30  ;;  %5280 = vmatpush1.bf16.msra.mxu0 %v11531_v43 }
  0x5b   : > { %3938 = vrot.lane.b32.xlu0 %v11931_v29, %s16648_s30  ;;  %5281 = vmatprep.subr.bf16.mxu0 %v11671_v37 }
  0x5e   : > { %984 = vrot.lane.b32.xlu1 %v10267_v26, %s16648_s30  ;;  %5282 = vmatpush1.bf16.msra.mxu0 %v11532_v44 }
  0x5f   : > { %982 = vrot.lane.b32.xlu0 %v10266_v27, %s16648_s30  ;;  %5283 = vmatprep.subr.bf16.mxu0 %v11671_v37  ;;  %s16723_s30 = smov 8  }
  0x62   : > { %2525 = vrot.lane.b32.xlu1 %v10299_v30, %s16654_s0  ;;  %5284 = vmatpush1.bf16.msra.mxu0 %v11533_v47  ;;  %v12191_v47 = vld [vmem:[%s11843_s4 + $0x60] sm:$0xff] }
  0x63   : > { %2523 = vrot.lane.b32.xlu0 %v10298_v31, %s16654_s0  ;;  %s16656_s0 = smov 88   ;;  %5285 = vmatprep.subr.bf16.mxu0 %v11671_v37 }
  0x66   : > { %4132 = vrot.lane.b32.xlu1 %v11944_v32, %s16658_s23  ;;  %5286 = vmatpush1.bf16.msra.mxu0 %v11534_v50 }
  0x67   : > { %4130 = vrot.lane.b32.xlu0 %v11947_v33, %s16658_s23  ;;  %5287 = vmatprep.subr.bf16.mxu0 %v11671_v37 }
  0x6a   : > { %1177 = vrot.lane.b32.xlu1 %v10299_v30, %s16658_s23  ;;  %5288 = vmatpush1.bf16.msra.mxu0 %v11535_v51 }
  0x6b   : > { %1175 = vrot.lane.b32.xlu0 %v10298_v31, %s16658_s23  ;;  %s16719_s23 = smov 40   ;;  %5289 = vmatprep.subr.bf16.mxu0 %v11671_v37  ;;  %v12150_v31 = vld [vmem:[%s11843_s4 + $0x82] sm:$0xff] }
  0x6c   : > { %3657 = vst.msk [vmem:[#allocation2 + $0x78] sm:$0xff] %vm688_vm0, %v12150_v31 }
  0x6e   : > { %2718 = vrot.lane.b32.xlu1 %v10331_v35, %s16656_s0  ;;  %5290 = vmatpush1.bf16.msra.mxu0 %v11536_v54  ;;  %v12212_v54 = vld [vmem:[%s11843_s4 + $0x69] sm:$0xff] }
  0x6f   : > { %2716 = vrot.lane.b32.xlu0 %v10330_v36, %s16656_s0  ;;  %5291 = vmatprep.subr.bf16.mxu0 %v11671_v37  ;;  %s16724_s0 = smov 72  }
  0x72   : > { %4324 = vrot.lane.b32.xlu1 %v11980_v41, %s16664_s1  ;;  %5292 = vmatpush1.bf16.msra.mxu0 %v11537_v57  ;;  %v12215_v57 = vld [vmem:[%s11843_s4 + $0x61] sm:$0xff] }
  0x73   : > { %4322 = vrot.lane.b32.xlu0 %v11983_v42, %s16664_s1  ;;  %5293 = vmatprep.subr.bf16.mxu0 %v11671_v37 }
  0x76   : > { %1370 = vrot.lane.b32.xlu1 %v10331_v35, %s16664_s1  ;;  %5294 = vmatpush1.bf16.msra.mxu0 %v11538_v58 }
  0x77   : > { %1368 = vrot.lane.b32.xlu0 %v10330_v36, %s16664_s1  ;;  %s16668_s1 = smov 104   ;;  %5295 = vmatprep.subr.bf16.mxu0 %v11671_v37 }
  0x7a   : > { %2911 = vrot.lane.b32.xlu1 %v10363_v45, %s16662_s28  ;;  %5296 = vmatpush1.bf16.msra.mxu0 %v11539_v59 }
  0x7b   : > { %2909 = vrot.lane.b32.xlu0 %v10362_v46, %s16662_s28  ;;  %5297 = vmatprep.subr.bf16.mxu0 %v11671_v37  ;;  %s16721_s28 = smov 56  }
  0x7e   : > { %4517 = vrot.lane.b32.xlu1 %v12008_v48, %s16719_s23  ;;  %5298 = vmatpush1.bf16.msra.mxu0 %v11540_v60 }
  0x7f   : > { %4515 = vrot.lane.b32.xlu0 %v12011_v49, %s16719_s23 }
  0x82   : > { %1563 = vrot.lane.b32.xlu1 %v10363_v45, %s16719_s23 }
  0x83   : > { %1561 = vrot.lane.b32.xlu0 %v10362_v46, %s16719_s23  ;;  %v12188_v46 = vld [vmem:[%s11843_s4 + $0x68] sm:$0xff] }
  0x86   : > { %3104 = vrot.lane.b32.xlu1 %v10395_v52, %s16668_s1 }
  0x87   : > { %3102 = vrot.lane.b32.xlu0 %v10394_v53, %s16668_s1  ;;  %s16673_s1 = smov 112  }
  0x8a   : > { %4709 = vrot.lane.b32.xlu1 %v12036_v55, %s16720_s26 }
  0x8b   : > { %4707 = vrot.lane.b32.xlu0 %v12039_v56, %s16720_s26 }
  0x8e   : > { %1756 = vrot.lane.b32.xlu1 %v10395_v52, %s16720_s26 }
  0x8f   : > { %1754 = vrot.lane.b32.xlu0 %v10394_v53, %s16720_s26 }
  0x92   : > { %3298 = vrot.lane.b32.xlu1 %v11868_v12, %s16673_s1 }
  0x93   : > { %3296 = vrot.lane.b32.xlu0 %v11871_v13, %s16673_s1  ;;  %s16726_s1 = smov 80  }
  0x96   : > { %4901 = vrot.lane.b32.xlu1 %v11874_v14, %s16721_s28 }
  0x97   : > { %4899 = vrot.lane.b32.xlu0 %v11877_v15, %s16721_s28 }
  0x9a   : > { %1950 = vrot.lane.b32.xlu1 %v11868_v12, %s16721_s28 }
  0x9b   : > { %1948 = vrot.lane.b32.xlu0 %v11871_v13, %s16721_s28 }
  0x9e   : > { %3491 = vrot.lane.b32.xlu1 %v10459_v61, %s16671_s29 }
  0x9f   : > { %3489 = vrot.lane.b32.xlu0 %v10458_v62, %s16671_s29  ;;  %s16725_s29 = smov 16  }
  0xa0   : > { %v979_v63 = vpop.permute.xlu1 %978 }
  0xa1   : > { %v786_v0 = vpop.permute.xlu0 %785 }
  0xa2   : > { %882 = vst.msk [vmem:[#allocation2] sm:$0xff] %vm881_vm1, %v786_v0  ;;  %2143 = vrot.lane.b32.xlu1 %v10459_v61, %s16722_s22  ;;  %v663_v0 = vld [vmem:[%s11843_s4 + $0x50] sm:$0xff] }
  0xa3   : > { %2141 = vrot.lane.b32.xlu0 %v10458_v62, %s16722_s22  ;;  %1075 = vst.msk [vmem:[#allocation2] sm:$0xff] %vm1074_vm2, %v979_v63 }
  0xa4   : > { %v981_v3 = vpop.permute.xlu1 %980  ;;  %696 = vst.msk [vmem:[#allocation2 + $0x70] sm:$0xff] %vm688_vm0, %v663_v0 }
  0xa5   : > { %v788_v4 = vpop.permute.xlu0 %787 }
  0xa6   : > { %883 = vst.msk [vmem:[#allocation2 + $0x10] sm:$0xff] %vm881_vm1, %v788_v4  ;;  %3752 = vrot.lane.b32.xlu1 %v12084_v1, %s16723_s30 }
  0xa7   : > { %3750 = vrot.lane.b32.xlu0 %v12087_v2, %s16723_s30  ;;  %1076 = vst.msk [vmem:[#allocation2 + $0x10] sm:$0xff] %vm1074_vm2, %v981_v3  ;;  %v662_v3 = vld [vmem:[%s11843_s4 + $0x48] sm:$0xff] }
  0xa8   : > { %v1174_v5 = vpop.permute.xlu1 %1173  ;;  %695 = vst.msk [vmem:[#allocation2 + $0x60] sm:$0xff] %vm688_vm0, %v662_v3 }
  0xa9   : > { %v1172_v6 = vpop.permute.xlu0 %1171  ;;  %1269 = vst.msk [vmem:[#allocation2 + $0x10] sm:$0xff] %vm1267_vm3, %v1174_v5 }
  0xaa   : > { %1268 = vst.msk [vmem:[#allocation2] sm:$0xff] %vm1267_vm3, %v1172_v6  ;;  %795 = vrot.lane.b32.xlu1 %v10459_v61, %s16723_s30  ;;  %v12264_v6 = vld [vmem:[%s11843_s4 + $0x6b] sm:$0xff] }
  0xab   : > { %793 = vrot.lane.b32.xlu0 %v10458_v62, %s16723_s30 }
  0xac   : > { %v1367_v7 = vpop.permute.xlu1 %1366 }
  0xad   : > { %v1365_v8 = vpop.permute.xlu0 %1364  ;;  %1462 = vst.msk [vmem:[#allocation2 + $0x10] sm:$0xff] %vm16687_vm4, %v1367_v7  ;;  %v12267_v7 = vld [vmem:[%s11843_s4 + $0x63] sm:$0xff] }
  0xae   : > { %1461 = vst.msk [vmem:[#allocation2] sm:$0xff] %vm16687_vm4, %v1365_v8  ;;  %2336 = vrot.lane.b32.xlu1 %v11894_v18, %s16724_s0 }
  0xaf   : > { %2334 = vrot.lane.b32.xlu0 %v11899_v21, %s16724_s0 }
  0xb0   : > { %v1560_v11 = vpop.permute.xlu1 %1559 }
  0xb1   : > { %v1558_v12 = vpop.permute.xlu0 %1557  ;;  %1655 = vst.msk [vmem:[#allocation2 + $0x10] sm:$0xff] %vm16685_vm5, %v1560_v11 }
  0xb2   : > { %1654 = vst.msk [vmem:[#allocation2] sm:$0xff] %vm16685_vm5, %v1558_v12  ;;  %3944 = vrot.lane.b32.xlu1 %v12106_v9, %s16725_s29 }
  0xb3   : > { %3942 = vrot.lane.b32.xlu0 %v12109_v10, %s16725_s29 }
  0xb4   : > { %v1753_v13 = vpop.permute.xlu1 %1752 }
  0xb5   : > { %v1751_v16 = vpop.permute.xlu0 %1750  ;;  %1848 = vst.msk [vmem:[#allocation2 + $0x10] sm:$0xff] %vm1846_vm6, %v1753_v13 }
  0xb6   : > { %1847 = vst.msk [vmem:[#allocation2] sm:$0xff] %vm1846_vm6, %v1751_v16  ;;  %988 = vrot.lane.b32.xlu1 %v11894_v18, %s16725_s29  ;;  %v12133_v18 = vld [vmem:[%s11843_s4 + $0x4d] sm:$0xff] }
  0xb7   : > { %986 = vrot.lane.b32.xlu0 %v11899_v21, %s16725_s29 }
  0xb8   : > { %v1947_v17 = vpop.permute.xlu1 %1946 }
  0xb9   : > { %v1945_v19 = vpop.permute.xlu0 %1944  ;;  %2042 = vst.msk [vmem:[#allocation2 + $0x10] sm:$0xff] %vm2040_vm7, %v1947_v17 }
  0xba   : > { %2041 = vst.msk [vmem:[#allocation2] sm:$0xff] %vm2040_vm7, %v1945_v19  ;;  %2529 = vrot.lane.b32.xlu1 %v11912_v24, %s16726_s1  ;;  %v12288_v19 = vld [vmem:[%s11843_s4 + $0x6c] sm:$0xff] }
  0xbb   : > { %2527 = vrot.lane.b32.xlu0 %v11915_v25, %s16726_s1 }
  0xbc   : > { %v2140_v22 = vpop.permute.xlu1 %2139 }
  0xbd   : > { %v2138_v21 = vpop.permute.xlu0 %2137  ;;  %2235 = vst.msk [vmem:[#allocation2 + $0x10] sm:$0xff] %vm2233_vm8, %v2140_v22  ;;  %v12291_v22 = vld [vmem:[%s11843_s4 + $0x64] sm:$0xff] }
  0xbe   : > { %2234 = vst.msk [vmem:[#allocation2] sm:$0xff] %vm2233_vm8, %v2138_v21  ;;  %4136 = vrot.lane.b32.xlu1 %v12130_v20, %s16727_s24 }
  0xbf   : > { %4134 = vrot.lane.b32.xlu0 %v12133_v18, %s16727_s24 }
  0xc0   : > { %v3749_v23 = vpop.permute.xlu1 %3748 }
  0xc1   : > { %v3747_v26 = vpop.permute.xlu0 %3746  ;;  %3843 = vst.msk [vmem:[#allocation2 + $0x18] sm:$0xff] %vm881_vm1, %v3749_v23 }
  0xc2   : > { %3842 = vst.msk [vmem:[#allocation2 + $0x8] sm:$0xff] %vm881_vm1, %v3747_v26  ;;  %1181 = vrot.lane.b32.xlu1 %v11912_v24, %s16727_s24  ;;  %v12164_v24 = vld [vmem:[%s11843_s4 + $0x56] sm:$0xff] }
  0xc3   : > { %1179 = vrot.lane.b32.xlu0 %v11915_v25, %s16727_s24  ;;  %v12167_v25 = vld [vmem:[%s11843_s4 + $0x4e] sm:$0xff] }
  0xc4   : > { %v792_v27 = vpop.permute.xlu1 %791 }
  0xc5   : > { %v790_v30 = vpop.permute.xlu0 %789  ;;  %885 = vst.msk [vmem:[#allocation2 + $0x30] sm:$0xff] %vm881_vm1, %v792_v27 }
  0xc6   : > { %884 = vst.msk [vmem:[#allocation2 + $0x20] sm:$0xff] %vm881_vm1, %v790_v30  ;;  %2722 = vrot.lane.b32.xlu1 %v11928_v28, %s16728_s2 }
  0xc7   : > { %2720 = vrot.lane.b32.xlu0 %v11931_v29, %s16728_s2 }
  0xc8   : > { %v2333_v35 = vpop.permute.xlu1 %2332 }
  0xc9   : > { %v2331_v36 = vpop.permute.xlu0 %2330  ;;  %2428 = vst.msk [vmem:[#allocation2 + $0x10] sm:$0xff] %vm16693_vm9, %v2333_v35 }
  0xca   : > { %2427 = vst.msk [vmem:[#allocation2] sm:$0xff] %vm16693_vm9, %v2331_v36  ;;  %4328 = vrot.lane.b32.xlu1 %v12164_v24, %s16729_s27 }
  0xcb   : > { %4326 = vrot.lane.b32.xlu0 %v12167_v25, %s16729_s27 }
  0xcc   : > { %v3941_v40 = vpop.permute.xlu1 %3940 }
  0xcd   : > { %v3939_v43 = vpop.permute.xlu0 %3938  ;;  %4035 = vst.msk [vmem:[#allocation2 + $0x18] sm:$0xff] %vm1074_vm2, %v3941_v40 }
  0xce   : > { %4034 = vst.msk [vmem:[#allocation2 + $0x8] sm:$0xff] %vm1074_vm2, %v3939_v43  ;;  %1374 = vrot.lane.b32.xlu1 %v11928_v28, %s16729_s27 }
  0xcf   : > { %1372 = vrot.lane.b32.xlu0 %v11931_v29, %s16729_s27 }
  0xd0   : > { %v985_v44 = vpop.permute.xlu1 %984 }
  0xd1   : > { %v983_v45 = vpop.permute.xlu0 %982  ;;  %1078 = vst.msk [vmem:[#allocation2 + $0x30] sm:$0xff] %vm1074_vm2, %v985_v44 }
  0xd2   : > { %1077 = vst.msk [vmem:[#allocation2 + $0x20] sm:$0xff] %vm1074_vm2, %v983_v45  ;;  %2915 = vrot.lane.b32.xlu1 %v11944_v32, %s16730_s21 }
  0xd3   : > { %2913 = vrot.lane.b32.xlu0 %v11947_v33, %s16730_s21 }
  0xd4   : > { %v2526_v28 = vpop.permute.xlu1 %2525 }
  0xd5   : > { %v2524_v50 = vpop.permute.xlu0 %2523  ;;  %2621 = vst.msk [vmem:[#allocation2 + $0x10] sm:$0xff] %vm2619_vm10, %v2526_v28 }
  0xd6   : > { %2620 = vst.msk [vmem:[#allocation2] sm:$0xff] %vm2619_vm10, %v2524_v50  ;;  %4521 = vrot.lane.b32.xlu1 %v12188_v46, %s16719_s23 }
  0xd7   : > { %4519 = vrot.lane.b32.xlu0 %v12191_v47, %s16719_s23 }
  0xd8   : > { %v4133_v29 = vpop.permute.xlu1 %4132 }
  0xd9   : > { %v4131_v51 = vpop.permute.xlu0 %4130  ;;  %4227 = vst.msk [vmem:[#allocation2 + $0x18] sm:$0xff] %vm1267_vm3, %v4133_v29 }
  0xda   : > { %4226 = vst.msk [vmem:[#allocation2 + $0x8] sm:$0xff] %vm1267_vm3, %v4131_v51  ;;  %1567 = vrot.lane.b32.xlu1 %v11944_v32, %s16719_s23 }
  0xdb   : > { %1565 = vrot.lane.b32.xlu0 %v11947_v33, %s16719_s23 }
  0xdc   : > { %v1178_v52 = vpop.permute.xlu1 %1177 }
  0xdd   : > { %v1176_v53 = vpop.permute.xlu0 %1175  ;;  %1271 = vst.msk [vmem:[#allocation2 + $0x30] sm:$0xff] %vm1267_vm3, %v1178_v52 }
  0xde   : > { %1270 = vst.msk [vmem:[#allocation2 + $0x20] sm:$0xff] %vm1267_vm3, %v1176_v53  ;;  %3108 = vrot.lane.b32.xlu1 %v11980_v41, %s16731_s5  ;;  %v12333_v53 = vld [vmem:[%s11843_s4 + $0x9a] sm:$0xff] }
  0xdf   : > { %3106 = vrot.lane.b32.xlu0 %v11983_v42, %s16731_s5  ;;  %3659 = vst.msk [vmem:[#allocation2 + $0x98] sm:$0xff] %vm688_vm0, %v12333_v53 }
  0xe0   : > { %v2719_v32 = vpop.permute.xlu1 %2718 }
  0xe1   : > { %v2717_v58 = vpop.permute.xlu0 %2716  ;;  %2814 = vst.msk [vmem:[#allocation2 + $0x10] sm:$0xff] %vm2812_vm11, %v2719_v32  ;;  %v12336_v32 = vld [vmem:[%s11843_s4 + $0x92] sm:$0xff] }
  0xe2   : > { %2813 = vst.msk [vmem:[#allocation2] sm:$0xff] %vm2812_vm11, %v2717_v58  ;;  %4713 = vrot.lane.b32.xlu1 %v12212_v54, %s16720_s26 }
  0xe3   : > { %4711 = vrot.lane.b32.xlu0 %v12215_v57, %s16720_s26  ;;  %3658 = vst.msk [vmem:[#allocation2 + $0x88] sm:$0xff] %vm688_vm0, %v12336_v32 }
  0xe4   : > { %v4325_v33 = vpop.permute.xlu1 %4324 }
  0xe5   : > { %v4323_v59 = vpop.permute.xlu0 %4322  ;;  %4419 = vst.msk [vmem:[#allocation2 + $0x18] sm:$0xff] %vm16687_vm4, %v4325_v33 }
  0xe6   : > { %4418 = vst.msk [vmem:[#allocation2 + $0x8] sm:$0xff] %vm16687_vm4, %v4323_v59  ;;  %1760 = vrot.lane.b32.xlu1 %v11980_v41, %s16720_s26 }
  0xe7   : > { %1758 = vrot.lane.b32.xlu0 %v11983_v42, %s16720_s26 }
  0xe8   : > { %v1371_v60 = vpop.permute.xlu1 %1370 }
  0xe9   : > { %v1369_v61 = vpop.permute.xlu0 %1368  ;;  %1464 = vst.msk [vmem:[#allocation2 + $0x30] sm:$0xff] %vm16687_vm4, %v1371_v60 }
  0xea   : > { %1463 = vst.msk [vmem:[#allocation2 + $0x20] sm:$0xff] %vm16687_vm4, %v1369_v61  ;;  %3302 = vrot.lane.b32.xlu1 %v12008_v48, %s16732_s3 }
  0xeb   : > { %3300 = vrot.lane.b32.xlu0 %v12011_v49, %s16732_s3 }
  0xec   : > { %v2912_v62 = vpop.permute.xlu1 %2911 }
  0xed   : > { %v2910_v41 = vpop.permute.xlu0 %2909  ;;  %3007 = vst.msk [vmem:[#allocation2 + $0x10] sm:$0xff] %vm16686_vm12, %v2912_v62 }
  0xee   : > { %3006 = vst.msk [vmem:[#allocation2] sm:$0xff] %vm16686_vm12, %v2910_v41  ;;  %4905 = vrot.lane.b32.xlu1 %v11964_v38, %s16721_s28  ;;  %v12371_v41 = vld [vmem:[%s11843_s4 + $0x80] sm:$0xff] }
  0xef   : > { %4903 = vrot.lane.b32.xlu0 %v11967_v39, %s16721_s28 }
  0xf0   : > { %v4518_v42 = vpop.permute.xlu1 %4517 }
  0xf1   : > { %v4516_v63 = vpop.permute.xlu0 %4515  ;;  %4612 = vst.msk [vmem:[#allocation2 + $0x18] sm:$0xff] %vm16685_vm5, %v4518_v42  ;;  %v12374_v42 = vld [vmem:[%s11843_s4 + $0x78] sm:$0xff] }
  0xf2   : > { %4611 = vst.msk [vmem:[#allocation2 + $0x8] sm:$0xff] %vm16685_vm5, %v4516_v63  ;;  %1954 = vrot.lane.b32.xlu1 %v12008_v48, %s16721_s28 }
  0xf3   : > { %1952 = vrot.lane.b32.xlu0 %v12011_v49, %s16721_s28 }
  0xf4   : > { %v1564_v4 = vpop.permute.xlu1 %1563 }
  0xf5   : > { %v1562_v5 = vpop.permute.xlu0 %1561  ;;  %1657 = vst.msk [vmem:[#allocation2 + $0x30] sm:$0xff] %vm16685_vm5, %v1564_v4 }
  0xf6   : > { %1656 = vst.msk [vmem:[#allocation2 + $0x20] sm:$0xff] %vm16685_vm5, %v1562_v5  ;;  %3495 = vrot.lane.b32.xlu1 %v12036_v55, %s16733_s20  ;;  %v12395_v5 = vld [vmem:[%s11843_s4 + $0x81] sm:$0xff] }
  0xf7   : > { %3493 = vrot.lane.b32.xlu0 %v12039_v56, %s16733_s20 }
  0xf8   : > { %v3105_v48 = vpop.permute.xlu1 %3104 }
  0xf9   : > { %v3103_v49 = vpop.permute.xlu0 %3102  ;;  %3200 = vst.msk [vmem:[#allocation2 + $0x10] sm:$0xff] %vm16684_vm13, %v3105_v48  ;;  %v12398_v48 = vld [vmem:[%s11843_s4 + $0x79] sm:$0xff] }
  0xfa   : > { %3199 = vst.msk [vmem:[#allocation2] sm:$0xff] %vm16684_vm13, %v3103_v49  ;;  %2147 = vrot.lane.b32.xlu1 %v12036_v55, %s16722_s22 }
  0xfb   : > { %2145 = vrot.lane.b32.xlu0 %v12039_v56, %s16722_s22 }
  0xfc   : > { %v4710_v8 = vpop.permute.xlu1 %4709 }
  0xfd   : > { %v4708_v11 = vpop.permute.xlu0 %4707  ;;  %4804 = vst.msk [vmem:[#allocation2 + $0x18] sm:$0xff] %vm1846_vm6, %v4710_v8 }
  0xfe   : > { %4803 = vst.msk [vmem:[#allocation2 + $0x8] sm:$0xff] %vm1846_vm6, %v4708_v11  ;;  %3756 = vrot.lane.b32.xlu1 %v12264_v6, %s16723_s30 }
  0xff   : > { %3754 = vrot.lane.b32.xlu0 %v12267_v7, %s16723_s30 }
 0x100   : > { %v1757_v12 = vpop.permute.xlu1 %1756 }
 0x101   : > { %v1755_v13 = vpop.permute.xlu0 %1754  ;;  %1850 = vst.msk [vmem:[#allocation2 + $0x30] sm:$0xff] %vm1846_vm6, %v1757_v12 }
 0x102   : > { %1849 = vst.msk [vmem:[#allocation2 + $0x20] sm:$0xff] %vm1846_vm6, %v1755_v13  ;;  %799 = vrot.lane.b32.xlu1 %v12036_v55, %s16723_s30 }
 0x103   : > { %797 = vrot.lane.b32.xlu0 %v12039_v56, %s16723_s30 }
 0x104   : > { %v3299_v16 = vpop.permute.xlu1 %3298 }
 0x105   : > { %v3297_v17 = vpop.permute.xlu0 %3296  ;;  %3394 = vst.msk [vmem:[#allocation2 + $0x10] sm:$0xff] %vm16683_vm14, %v3299_v16 }
 0x106   : > { %3393 = vst.msk [vmem:[#allocation2] sm:$0xff] %vm16683_vm14, %v3297_v17  ;;  %2340 = vrot.lane.b32.xlu1 %v11874_v14, %s16724_s0  ;;  %vm5226_vm14 = vcmask 523264   ;;  %v665_v17 = vld [vmem:[%s11843_s4 + $0x68] sm:$0xff] }
 0x107   : > { %2338 = vrot.lane.b32.xlu0 %v11877_v15, %s16724_s0  ;;  %698 = vst.msk [vmem:[#allocation2 + $0x90] sm:$0xff] %vm688_vm0, %v665_v17 }
 0x108   : > { %v4902_v55 = vpop.permute.xlu1 %4901 }
 0x109   : > { %v4900_v21 = vpop.permute.xlu0 %4899  ;;  %4996 = vst.msk [vmem:[#allocation2 + $0x18] sm:$0xff] %vm2040_vm7, %v4902_v55  ;;  %v664_v55 = vld [vmem:[%s11843_s4 + $0x60] sm:$0xff] }
 0x10a   : > { %4995 = vst.msk [vmem:[#allocation2 + $0x8] sm:$0xff] %vm2040_vm7, %v4900_v21  ;;  %3948 = vrot.lane.b32.xlu1 %v12288_v19, %s16725_s29 }
 0x10b   : > { %3946 = vrot.lane.b32.xlu0 %v12291_v22, %s16725_s29  ;;  %697 = vst.msk [vmem:[#allocation2 + $0x80] sm:$0xff] %vm688_vm0, %v664_v55 }
 0x10c   : > { %v1951_v56 = vpop.permute.xlu1 %1950 }
 0x10d   : > { %v1949_v23 = vpop.permute.xlu0 %1948  ;;  %2044 = vst.msk [vmem:[#allocation2 + $0x30] sm:$0xff] %vm2040_vm7, %v1951_v56 }
 0x10e   : > { %2043 = vst.msk [vmem:[#allocation2 + $0x20] sm:$0xff] %vm2040_vm7, %v1949_v23  ;;  %992 = vrot.lane.b32.xlu1 %v11874_v14, %s16725_s29  ;;  %v12313_v14 = vld [vmem:[%s11843_s4 + $0x6d] sm:$0xff]  ;;  %v12447_v23 = vld [vmem:[%s11843_s4 + $0x83] sm:$0xff] }
 0x10f   : > { %990 = vrot.lane.b32.xlu0 %v11877_v15, %s16725_s29  ;;  %v12316_v15 = vld [vmem:[%s11843_s4 + $0x65] sm:$0xff] }
 0x110   : > { %v3492_v26 = vpop.permute.xlu1 %3491  ;;  %v5030_v35 = vld [vmem:[#allocation2 + $0x18] sm:$0xff] }
 0x111   : > { %v3490_v27 = vpop.permute.xlu0 %3489  ;;  %v5028_v30 = vld [vmem:[#allocation2 + $0x8] sm:$0xff]  ;;  %3587 = vst.msk [vmem:[#allocation2 + $0x10] sm:$0xff] %vm3585_vm15, %v3492_v26  ;;  %v12450_v26 = vld [vmem:[%s11843_s4 + $0x7b] sm:$0xff] }
 0x112   : > { %3586 = vst.msk [vmem:[#allocation2] sm:$0xff] %vm3585_vm15, %v3490_v27  ;;  %v5092_v36 = vpack.c.bf16 %v5030_v35, %v5028_v30  ;;  %2533 = vrot.lane.b32.xlu1 %v12084_v1, %s16726_s1 }
 0x113   : > { %2531 = vrot.lane.b32.xlu0 %v12087_v2, %s16726_s1 }
 0x114   : > { %10759 = vmatprep.mubr.msk.bf16.mxu0 %vm5226_vm14, %v5092_v36  ;;  %v2144_v40 = vpop.permute.xlu1 %2143 }
 0x115   : > { %v2142_v43 = vpop.permute.xlu0 %2141  ;;  %2237 = vst.msk [vmem:[#allocation2 + $0x30] sm:$0xff] %vm2233_vm8, %v2144_v40 }
 0x116   : > { %2236 = vst.msk [vmem:[#allocation2 + $0x20] sm:$0xff] %vm2233_vm8, %v2142_v43  ;;  %4140 = vrot.lane.b32.xlu1 %v12313_v14, %s16727_s24 }
 0x117   : > { %4138 = vrot.lane.b32.xlu0 %v12316_v15, %s16727_s24 }
 0x118   : > { %v3753_v44 = vpop.permute.xlu1 %3752  ;;  %v5029_v50 = vld [vmem:[#allocation2 + $0x10] sm:$0xff] }
 0x119   : > { %v3751_v45 = vpop.permute.xlu0 %3750  ;;  %v5027_v28 = vld [vmem:[#allocation2] sm:$0xff]  ;;  %3845 = vst.msk [vmem:[#allocation2 + $0x38] sm:$0xff] %vm881_vm1, %v3753_v44 }
 0x11a   : > { %3844 = vst.msk [vmem:[#allocation2 + $0x28] sm:$0xff] %vm881_vm1, %v3751_v45  ;;  %v5091_v29 = vpack.c.bf16 %v5029_v50, %v5027_v28  ;;  %1185 = vrot.lane.b32.xlu1 %v12084_v1, %s16727_s24  ;;  %v12347_v1 = vld [vmem:[%s11843_s4 + $0x6e] sm:$0xff]  ;;  %v12471_v44 = vld [vmem:[%s11843_s4 + $0x84] sm:$0xff]  ;;  %v12474_v45 = vld [vmem:[%s11843_s4 + $0x7c] sm:$0xff] }
 0x11b   : > { %1183 = vrot.lane.b32.xlu0 %v12087_v2, %s16727_s24  ;;  %v12350_v2 = vld [vmem:[%s11843_s4 + $0x66] sm:$0xff] }
 0x11c   : > { %5308 = vmatmul.mubr.bf16.vlgmr.msra.gmra.mrb[0].mxu0 %v5091_v29  ;;  %v796_v51 = vpop.permute.xlu1 %795 }
 0x11d   : > { %v794_v52 = vpop.permute.xlu0 %793  ;;  %887 = vst.msk [vmem:[#allocation2 + $0x50] sm:$0xff] %vm881_vm1, %v796_v51 }
 0x11e   : > { %886 = vst.msk [vmem:[#allocation2 + $0x40] sm:$0xff] %vm881_vm1, %v794_v52  ;;  %2726 = vrot.lane.b32.xlu1 %v12106_v9, %s16728_s2 }
 0x11f   : > { %2724 = vrot.lane.b32.xlu0 %v12109_v10, %s16728_s2 }
 0x120   : > { %v2337_v58 = vpop.permute.xlu1 %2336 }
 0x121   : > { %v2335_v33 = vpop.permute.xlu0 %2334  ;;  %2430 = vst.msk [vmem:[#allocation2 + $0x30] sm:$0xff] %vm16693_vm9, %v2337_v58 }
 0x122   : > { %2429 = vst.msk [vmem:[#allocation2 + $0x20] sm:$0xff] %vm16693_vm9, %v2335_v33  ;;  %4332 = vrot.lane.b32.xlu1 %v12347_v1, %s16729_s27 }
 0x123   : > { %4330 = vrot.lane.b32.xlu0 %v12350_v2, %s16729_s27 }
 0x124   : > { %v3945_v59 = vpop.permute.xlu1 %3944 }
 0x125   : > { %v3943_v60 = vpop.permute.xlu0 %3942  ;;  %4037 = vst.msk [vmem:[#allocation2 + $0x38] sm:$0xff] %vm1074_vm2, %v3945_v59 }
 0x126   : > { %4036 = vst.msk [vmem:[#allocation2 + $0x28] sm:$0xff] %vm1074_vm2, %v3943_v60  ;;  %1378 = vrot.lane.b32.xlu1 %v12106_v9, %s16729_s27 }
 0x127   : > { %1376 = vrot.lane.b32.xlu0 %v12109_v10, %s16729_s27 }
 0x128   : > { %v989_v61 = vpop.permute.xlu1 %988 }
 0x129   : > { %v987_v62 = vpop.permute.xlu0 %986  ;;  %1080 = vst.msk [vmem:[#allocation2 + $0x50] sm:$0xff] %vm1074_vm2, %v989_v61 }
 0x12a   : > { %1079 = vst.msk [vmem:[#allocation2 + $0x40] sm:$0xff] %vm1074_vm2, %v987_v62  ;;  %2919 = vrot.lane.b32.xlu1 %v12130_v20, %s16730_s21 }
 0x12b   : > { %2917 = vrot.lane.b32.xlu0 %v12133_v18, %s16730_s21 }
 0x12c   : > { %v2530_v9 = vpop.permute.xlu1 %2529 }
 0x12d   : > { %v2528_v63 = vpop.permute.xlu0 %2527  ;;  %2623 = vst.msk [vmem:[#allocation2 + $0x30] sm:$0xff] %vm2619_vm10, %v2530_v9 }
 0x12e   : > { %2622 = vst.msk [vmem:[#allocation2 + $0x20] sm:$0xff] %vm2619_vm10, %v2528_v63  ;;  %4525 = vrot.lane.b32.xlu1 %v12371_v41, %s16719_s23 }
 0x12f   : > { %4523 = vrot.lane.b32.xlu0 %v12374_v42, %s16719_s23 }
 0x130   : > { %v4137_v10 = vpop.permute.xlu1 %4136 }
 0x131   : > { %v4135_v0 = vpop.permute.xlu0 %4134  ;;  %4229 = vst.msk [vmem:[#allocation2 + $0x38] sm:$0xff] %vm1267_vm3, %v4137_v10 }
 0x132   : > { %4228 = vst.msk [vmem:[#allocation2 + $0x28] sm:$0xff] %vm1267_vm3, %v4135_v0  ;;  %1571 = vrot.lane.b32.xlu1 %v12130_v20, %s16719_s23 }
 0x133   : > { %1569 = vrot.lane.b32.xlu0 %v12133_v18, %s16719_s23 }
 0x134   : > { %v1182_v3 = vpop.permute.xlu1 %1181 }
 0x135   : > { %v1180_v4 = vpop.permute.xlu0 %1179  ;;  %1273 = vst.msk [vmem:[#allocation2 + $0x50] sm:$0xff] %vm1267_vm3, %v1182_v3 }
 0x136   : > { %1272 = vst.msk [vmem:[#allocation2 + $0x40] sm:$0xff] %vm1267_vm3, %v1180_v4  ;;  %3112 = vrot.lane.b32.xlu1 %v12164_v24, %s16731_s5  ;;  %v12520_v4 = vld [vmem:[%s11843_s4 + $0xb2] sm:$0xff] }
 0x137   : > { %3110 = vrot.lane.b32.xlu0 %v12167_v25, %s16731_s5  ;;  %3661 = vst.msk [vmem:[#allocation2 + $0xb8] sm:$0xff] %vm688_vm0, %v12520_v4 }
 0x138   : > { %v2723_v20 = vpop.permute.xlu1 %2722 }
 0x139   : > { %v2721_v49 = vpop.permute.xlu0 %2720  ;;  %2816 = vst.msk [vmem:[#allocation2 + $0x30] sm:$0xff] %vm2812_vm11, %v2723_v20  ;;  %v12523_v20 = vld [vmem:[%s11843_s4 + $0xaa] sm:$0xff] }
 0x13a   : > { %2815 = vst.msk [vmem:[#allocation2 + $0x20] sm:$0xff] %vm2812_vm11, %v2721_v49  ;;  %4717 = vrot.lane.b32.xlu1 %v12395_v5, %s16720_s26 }
 0x13b   : > { %4715 = vrot.lane.b32.xlu0 %v12398_v48, %s16720_s26  ;;  %3660 = vst.msk [vmem:[#allocation2 + $0xa8] sm:$0xff] %vm688_vm0, %v12523_v20 }
 0x13c   : > { %v4329_v18 = vpop.permute.xlu1 %4328 }
 0x13d   : > { %v4327_v8 = vpop.permute.xlu0 %4326  ;;  %4421 = vst.msk [vmem:[#allocation2 + $0x38] sm:$0xff] %vm16687_vm4, %v4329_v18 }
 0x13e   : > { %4420 = vst.msk [vmem:[#allocation2 + $0x28] sm:$0xff] %vm16687_vm4, %v4327_v8  ;;  %1764 = vrot.lane.b32.xlu1 %v12164_v24, %s16720_s26 }
 0x13f   : > { %1762 = vrot.lane.b32.xlu0 %v12167_v25, %s16720_s26 }
 0x140   : > { %v1375_v11 = vpop.permute.xlu1 %1374 }
 0x141   : > { %v1373_v12 = vpop.permute.xlu0 %1372  ;;  %1466 = vst.msk [vmem:[#allocation2 + $0x50] sm:$0xff] %vm16687_vm4, %v1375_v11 }
 0x142   : > { %1465 = vst.msk [vmem:[#allocation2 + $0x40] sm:$0xff] %vm16687_vm4, %v1373_v12  ;;  %3306 = vrot.lane.b32.xlu1 %v12188_v46, %s16732_s3 }
 0x143   : > { %3304 = vrot.lane.b32.xlu0 %v12191_v47, %s16732_s3 }
 0x144   : > { %v2916_v13 = vpop.permute.xlu1 %2915 }
 0x145   : > { %v2914_v16 = vpop.permute.xlu0 %2913  ;;  %3009 = vst.msk [vmem:[#allocation2 + $0x30] sm:$0xff] %vm16686_vm12, %v2916_v13 }
 0x146   : > { %3008 = vst.msk [vmem:[#allocation2 + $0x20] sm:$0xff] %vm16686_vm12, %v2914_v16  ;;  %4909 = vrot.lane.b32.xlu1 %v12150_v31, %s16721_s28  ;;  %v12554_v16 = vld [vmem:[%s11843_s4 + $0x98] sm:$0xff] }
 0x147   : > { %4907 = vrot.lane.b32.xlu0 %v12153_v34, %s16721_s28 }
 0x148   : > { %v4522_v24 = vpop.permute.xlu1 %4521 }
 0x149   : > { %v4520_v25 = vpop.permute.xlu0 %4519  ;;  %4614 = vst.msk [vmem:[#allocation2 + $0x38] sm:$0xff] %vm16685_vm5, %v4522_v24  ;;  %v12557_v24 = vld [vmem:[%s11843_s4 + $0x90] sm:$0xff] }
 0x14a   : > { %4613 = vst.msk [vmem:[#allocation2 + $0x28] sm:$0xff] %vm16685_vm5, %v4520_v25  ;;  %1958 = vrot.lane.b32.xlu1 %v12188_v46, %s16721_s28 }
 0x14b   : > { %1956 = vrot.lane.b32.xlu0 %v12191_v47, %s16721_s28 }
 0x14c   : > { %v1568_v21 = vpop.permute.xlu1 %1567 }
 0x14d   : > { %v1566_v56 = vpop.permute.xlu0 %1565  ;;  %1659 = vst.msk [vmem:[#allocation2 + $0x50] sm:$0xff] %vm16685_vm5, %v1568_v21 }
 0x14e   : > { %1658 = vst.msk [vmem:[#allocation2 + $0x40] sm:$0xff] %vm16685_vm5, %v1566_v56  ;;  %3499 = vrot.lane.b32.xlu1 %v12212_v54, %s16733_s20  ;;  %v12578_v56 = vld [vmem:[%s11843_s4 + $0x99] sm:$0xff] }
 0x14f   : > { %3497 = vrot.lane.b32.xlu0 %v12215_v57, %s16733_s20 }
 0x150   : > { %v3109_v46 = vpop.permute.xlu1 %3108 }
 0x151   : > { %v3107_v47 = vpop.permute.xlu0 %3106  ;;  %3202 = vst.msk [vmem:[#allocation2 + $0x30] sm:$0xff] %vm16684_vm13, %v3109_v46  ;;  %v12581_v46 = vld [vmem:[%s11843_s4 + $0x91] sm:$0xff] }
 0x152   : > { %3201 = vst.msk [vmem:[#allocation2 + $0x20] sm:$0xff] %vm16684_vm13, %v3107_v47  ;;  %2151 = vrot.lane.b32.xlu1 %v12212_v54, %s16722_s22  ;;  %vm16734_vm13 = vcmask 982912  }
 0x153   : > { %2149 = vrot.lane.b32.xlu0 %v12215_v57, %s16722_s22  ;;  %vm16735_vm5 = vmmov %vm16734_vm13 }
 0x154   : > { %v4714_v27 = vpop.permute.xlu1 %4713 }
 0x155   : > { %v4712_v30 = vpop.permute.xlu0 %4711  ;;  %4806 = vst.msk [vmem:[#allocation2 + $0x38] sm:$0xff] %vm1846_vm6, %v4714_v27 }
 0x156   : > { %4805 = vst.msk [vmem:[#allocation2 + $0x28] sm:$0xff] %vm1846_vm6, %v4712_v30  ;;  %3760 = vrot.lane.b32.xlu1 %v12447_v23, %s16723_s30 }
 0x157   : > { %3758 = vrot.lane.b32.xlu0 %v12450_v26, %s16723_s30 }
 0x158   : > { %v1761_v35 = vpop.permute.xlu1 %1760 }
 0x159   : > { %v1759_v36 = vpop.permute.xlu0 %1758  ;;  %1852 = vst.msk [vmem:[#allocation2 + $0x50] sm:$0xff] %vm1846_vm6, %v1761_v35 }
 0x15a   : > { %1851 = vst.msk [vmem:[#allocation2 + $0x40] sm:$0xff] %vm1846_vm6, %v1759_v36  ;;  %803 = vrot.lane.b32.xlu1 %v12212_v54, %s16723_s30 }
 0x15b   : > { %801 = vrot.lane.b32.xlu0 %v12215_v57, %s16723_s30 }
 0x15c   : > { %v3303_v40 = vpop.permute.xlu1 %3302 }
 0x15d   : > { %v3301_v43 = vpop.permute.xlu0 %3300  ;;  %3396 = vst.msk [vmem:[#allocation2 + $0x30] sm:$0xff] %vm16734_vm13, %v3303_v40 }
 0x15e   : > { %3395 = vst.msk [vmem:[#allocation2 + $0x20] sm:$0xff] %vm16735_vm5, %v3301_v43  ;;  %2344 = vrot.lane.b32.xlu1 %v11964_v38, %s16724_s0  ;;  %vm16736_vm5 = vcmask 392512  }
 0x15f   : > { %2342 = vrot.lane.b32.xlu0 %v11967_v39, %s16724_s0  ;;  %vm16737_vm13 = vmmov %vm16736_vm5 }
 0x160   : > { %v4906_v54 = vpop.permute.xlu1 %4905 }
 0x161   : > { %v4904_v28 = vpop.permute.xlu0 %4903  ;;  %4998 = vst.msk [vmem:[#allocation2 + $0x38] sm:$0xff] %vm2040_vm7, %v4906_v54 }
 0x162   : > { %4997 = vst.msk [vmem:[#allocation2 + $0x28] sm:$0xff] %vm2040_vm7, %v4904_v28  ;;  %3952 = vrot.lane.b32.xlu1 %v12471_v44, %s16725_s29  ;;  %v667_v28 = vld [vmem:[%s11843_s4 + $0x80] sm:$0xff] }
 0x163   : > { %3950 = vrot.lane.b32.xlu0 %v12474_v45, %s16725_s29  ;;  %700 = vst.msk [vmem:[#allocation2 + $0xb0] sm:$0xff] %vm688_vm0, %v667_v28  ;;  %v12753_v28 = vld [vmem:[%s11843_s4 + $0xa8] sm:$0xff] }
 0x164   : > { %v1955_v57 = vpop.permute.xlu1 %1954 }
 0x165   : > { %v1953_v50 = vpop.permute.xlu0 %1952  ;;  %2046 = vst.msk [vmem:[#allocation2 + $0x50] sm:$0xff] %vm2040_vm7, %v1955_v57  ;;  %v666_v57 = vld [vmem:[%s11843_s4 + $0x78] sm:$0xff] }
 0x166   : > { %2045 = vst.msk [vmem:[#allocation2 + $0x40] sm:$0xff] %vm2040_vm7, %v1953_v50  ;;  %996 = vrot.lane.b32.xlu1 %v11964_v38, %s16725_s29  ;;  %v12496_v38 = vld [vmem:[%s11843_s4 + $0x85] sm:$0xff]  ;;  %v12630_v50 = vld [vmem:[%s11843_s4 + $0x9b] sm:$0xff] }
 0x167   : > { %994 = vrot.lane.b32.xlu0 %v11967_v39, %s16725_s29  ;;  %v12499_v39 = vld [vmem:[%s11843_s4 + $0x7d] sm:$0xff]  ;;  %699 = vst.msk [vmem:[#allocation2 + $0xa0] sm:$0xff] %vm688_vm0, %v666_v57 }
 0x168   : > { %v3496_v29 = vpop.permute.xlu1 %3495  ;;  %v5034_v58 = vld [vmem:[#allocation2 + $0x38] sm:$0xff] }
 0x169   : > { %v3494_v51 = vpop.permute.xlu0 %3493  ;;  %v5032_v52 = vld [vmem:[#allocation2 + $0x28] sm:$0xff]  ;;  %3589 = vst.msk [vmem:[#allocation2 + $0x30] sm:$0xff] %vm3585_vm15, %v3496_v29  ;;  %v12633_v29 = vld [vmem:[%s11843_s4 + $0x93] sm:$0xff] }
 0x16a   : > { %3588 = vst.msk [vmem:[#allocation2 + $0x20] sm:$0xff] %vm3585_vm15, %v3494_v51  ;;  %v5094_v33 = vpack.c.bf16 %v5034_v58, %v5032_v52  ;;  %2537 = vrot.lane.b32.xlu1 %v12264_v6, %s16726_s1 }
 0x16b   : > { %2535 = vrot.lane.b32.xlu0 %v12267_v7, %s16726_s1 }
 0x16c   : > { %10760 = vmatprep.mubr.msk.bf16.mxu0 %vm5226_vm14, %v5094_v33  ;;  %v2148_v59 = vpop.permute.xlu1 %2147 }
 0x16d   : > { %v2146_v60 = vpop.permute.xlu0 %2145  ;;  %2239 = vst.msk [vmem:[#allocation2 + $0x50] sm:$0xff] %vm2233_vm8, %v2148_v59 }
 0x16e   : > { %2238 = vst.msk [vmem:[#allocation2 + $0x40] sm:$0xff] %vm2233_vm8, %v2146_v60  ;;  %4144 = vrot.lane.b32.xlu1 %v12496_v38, %s16727_s24 }
 0x16f   : > { %4142 = vrot.lane.b32.xlu0 %v12499_v39, %s16727_s24 }
 0x170   : > { %v3757_v61 = vpop.permute.xlu1 %3756  ;;  %v5033_v63 = vld [vmem:[#allocation2 + $0x30] sm:$0xff] }
 0x171   : > { %v3755_v62 = vpop.permute.xlu0 %3754  ;;  %v5031_v9 = vld [vmem:[#allocation2 + $0x20] sm:$0xff]  ;;  %3847 = vst.msk [vmem:[#allocation2 + $0x58] sm:$0xff] %vm881_vm1, %v3757_v61 }
 0x172   : > { %3846 = vst.msk [vmem:[#allocation2 + $0x48] sm:$0xff] %vm881_vm1, %v3755_v62  ;;  %v5093_v10 = vpack.c.bf16 %v5033_v63, %v5031_v9  ;;  %1189 = vrot.lane.b32.xlu1 %v12264_v6, %s16727_s24  ;;  %v12526_v6 = vld [vmem:[%s11843_s4 + $0x86] sm:$0xff]  ;;  %v12654_v61 = vld [vmem:[%s11843_s4 + $0x9c] sm:$0xff]  ;;  %v12657_v62 = vld [vmem:[%s11843_s4 + $0x94] sm:$0xff] }
 0x173   : > { %1187 = vrot.lane.b32.xlu0 %v12267_v7, %s16727_s24  ;;  %v12529_v7 = vld [vmem:[%s11843_s4 + $0x7e] sm:$0xff] }
 0x174   : > { %5316 = vmatmul.mubr.bf16.gmra.mrb[4].mxu0 %v5093_v10  ;;  %v800_v0 = vpop.permute.xlu1 %799 }
 0x175   : > { %v798_v3 = vpop.permute.xlu0 %797  ;;  %889 = vst.msk [vmem:[#allocation2 + $0x70] sm:$0xff] %vm881_vm1, %v800_v0 }
 0x176   : > { %888 = vst.msk [vmem:[#allocation2 + $0x60] sm:$0xff] %vm881_vm1, %v798_v3  ;;  %2730 = vrot.lane.b32.xlu1 %v12288_v19, %s16728_s2 }
 0x177   : > { %2728 = vrot.lane.b32.xlu0 %v12291_v22, %s16728_s2 }
 0x178   : > { %v2341_v49 = vpop.permute.xlu1 %2340 }
 0x179   : > { %v2339_v18 = vpop.permute.xlu0 %2338  ;;  %2432 = vst.msk [vmem:[#allocation2 + $0x50] sm:$0xff] %vm16693_vm9, %v2341_v49 }
 0x17a   : > { %2431 = vst.msk [vmem:[#allocation2 + $0x40] sm:$0xff] %vm16693_vm9, %v2339_v18  ;;  %4336 = vrot.lane.b32.xlu1 %v12526_v6, %s16729_s27  ;;  %v11541_v18 = vld [vmem:[%s16744_s19] sm:$0xff]  }
 0x17b   : > { %4334 = vrot.lane.b32.xlu0 %v12529_v7, %s16729_s27  ;;  %11155 = vmatprep.subr.bf16.mxu1 %v11541_v18 }
 0x17c   : > { %v3949_v8 = vpop.permute.xlu1 %3948  ;;  %11156 = vmatpush3.bf16.msra.mxu1 %v11541_v18 }
 0x17d   : > { %v3947_v11 = vpop.permute.xlu0 %3946  ;;  %4039 = vst.msk [vmem:[#allocation2 + $0x58] sm:$0xff] %vm1074_vm2, %v3949_v8 }
 0x17e   : > { %4038 = vst.msk [vmem:[#allocation2 + $0x48] sm:$0xff] %vm1074_vm2, %v3947_v11  ;;  %1382 = vrot.lane.b32.xlu1 %v12288_v19, %s16729_s27 }
 0x17f   : > { %1380 = vrot.lane.b32.xlu0 %v12291_v22, %s16729_s27 }
 0x180   : > { %v993_v12 = vpop.permute.xlu1 %992 }
 0x181   : > { %v991_v13 = vpop.permute.xlu0 %990  ;;  %1082 = vst.msk [vmem:[#allocation2 + $0x70] sm:$0xff] %vm1074_vm2, %v993_v12 }
 0x182   : > { %1081 = vst.msk [vmem:[#allocation2 + $0x60] sm:$0xff] %vm1074_vm2, %v991_v13  ;;  %2923 = vrot.lane.b32.xlu1 %v12313_v14, %s16730_s21  ;;  %v11542_v13 = vld [vmem:[%s16744_s19 + $0x8] sm:$0xff]  }
 0x183   : > { %2921 = vrot.lane.b32.xlu0 %v12316_v15, %s16730_s21  ;;  %11157 = vmatprep.subr.bf16.mxu1 %v11542_v13 }
 0x184   : > { %v2534_v19 = vpop.permute.xlu1 %2533  ;;  %11158 = vmatpush3.bf16.msra.mxu1 %v11542_v13 }
 0x185   : > { %v2532_v25 = vpop.permute.xlu0 %2531  ;;  %2625 = vst.msk [vmem:[#allocation2 + $0x50] sm:$0xff] %vm2619_vm10, %v2534_v19 }
 0x186   : > { %2624 = vst.msk [vmem:[#allocation2 + $0x40] sm:$0xff] %vm2619_vm10, %v2532_v25  ;;  %4529 = vrot.lane.b32.xlu1 %v12554_v16, %s16719_s23 }
 0x187   : > { %4527 = vrot.lane.b32.xlu0 %v12557_v24, %s16719_s23 }
 0x188   : > { %v4141_v22 = vpop.permute.xlu1 %4140 }
 0x189   : > { %v4139_v17 = vpop.permute.xlu0 %4138  ;;  %4231 = vst.msk [vmem:[#allocation2 + $0x58] sm:$0xff] %vm1267_vm3, %v4141_v22 }
 0x18a   : > { %4230 = vst.msk [vmem:[#allocation2 + $0x48] sm:$0xff] %vm1267_vm3, %v4139_v17  ;;  %1575 = vrot.lane.b32.xlu1 %v12313_v14, %s16719_s23 }
 0x18b   : > { %1573 = vrot.lane.b32.xlu0 %v12316_v15, %s16719_s23 }
 0x18c   : > { %v1186_v55 = vpop.permute.xlu1 %1185 }
 0x18d   : > { %v1184_v21 = vpop.permute.xlu0 %1183  ;;  %1275 = vst.msk [vmem:[#allocation2 + $0x70] sm:$0xff] %vm1267_vm3, %v1186_v55  ;;  %v11543_v55 = vld [vmem:[%s16744_s19 + $0x10] sm:$0xff]  }
 0x18e   : > { %1274 = vst.msk [vmem:[#allocation2 + $0x60] sm:$0xff] %vm1267_vm3, %v1184_v21  ;;  %3116 = vrot.lane.b32.xlu1 %v12347_v1, %s16731_s5  ;;  %11159 = vmatprep.subr.bf16.mxu1 %v11543_v55 }
 0x18f   : > { %3114 = vrot.lane.b32.xlu0 %v12350_v2, %s16731_s5  ;;  %11160 = vmatpush3.bf16.msra.mxu1 %v11543_v55  ;;  %v669_v55 = vld [vmem:[%s11843_s4 + $0x98] sm:$0xff] }
 0x190   : > { %v2727_v14 = vpop.permute.xlu1 %2726  ;;  %702 = vst.msk [vmem:[#allocation2 + $0xd0] sm:$0xff] %vm688_vm0, %v669_v55 }
 0x191   : > { %v2725_v47 = vpop.permute.xlu0 %2724  ;;  %2818 = vst.msk [vmem:[#allocation2 + $0x50] sm:$0xff] %vm2812_vm11, %v2727_v14 }
 0x192   : > { %2817 = vst.msk [vmem:[#allocation2 + $0x40] sm:$0xff] %vm2812_vm11, %v2725_v47  ;;  %4721 = vrot.lane.b32.xlu1 %v12578_v56, %s16720_s26 }
 0x193   : > { %4719 = vrot.lane.b32.xlu0 %v12581_v46, %s16720_s26 }
 0x194   : > { %v4333_v15 = vpop.permute.xlu1 %4332 }
 0x195   : > { %v4331_v27 = vpop.permute.xlu0 %4330  ;;  %4423 = vst.msk [vmem:[#allocation2 + $0x58] sm:$0xff] %vm16687_vm4, %v4333_v15  ;;  %v11544_v15 = vld [vmem:[%s16744_s19 + $0x18] sm:$0xff]  }
 0x196   : > { %4422 = vst.msk [vmem:[#allocation2 + $0x48] sm:$0xff] %vm16687_vm4, %v4331_v27  ;;  %1768 = vrot.lane.b32.xlu1 %v12347_v1, %s16720_s26  ;;  %v12721_v27 = vld [vmem:[%s11843_s4 + $0x9e] sm:$0xff]  ;;  %11161 = vmatprep.subr.bf16.mxu1 %v11544_v15 }
 0x197   : > { %1766 = vrot.lane.b32.xlu0 %v12350_v2, %s16720_s26  ;;  %11162 = vmatpush3.bf16.msra.mxu1 %v11544_v15 }
 0x198   : > { %v1379_v30 = vpop.permute.xlu1 %1378  ;;  %6823 = vmatprep.subr.bf16.mxu1 %v11671_v37 }
 0x199   : > { %v1377_v35 = vpop.permute.xlu0 %1376  ;;  %1468 = vst.msk [vmem:[#allocation2 + $0x70] sm:$0xff] %vm16687_vm4, %v1379_v30  ;;  %v12724_v30 = vld [vmem:[%s11843_s4 + $0x96] sm:$0xff] }
 0x19a   : > { %1467 = vst.msk [vmem:[#allocation2 + $0x60] sm:$0xff] %vm16687_vm4, %v1377_v35  ;;  %3310 = vrot.lane.b32.xlu1 %v12371_v41, %s16732_s3  ;;  %vm16739_vm4 = vmmov %vm16736_vm5 }
 0x19b   : > { %3308 = vrot.lane.b32.xlu0 %v12374_v42, %s16732_s3 }
 0x19c   : > { %v2920_v36 = vpop.permute.xlu1 %2919 }
 0x19d   : > { %v2918_v40 = vpop.permute.xlu0 %2917  ;;  %3011 = vst.msk [vmem:[#allocation2 + $0x50] sm:$0xff] %vm16686_vm12, %v2920_v36 }
 0x19e   : > { %3010 = vst.msk [vmem:[#allocation2 + $0x40] sm:$0xff] %vm16686_vm12, %v2918_v40  ;;  %4913 = vrot.lane.b32.xlu1 %v12333_v53, %s16721_s28  ;;  %vm16738_vm12 = vmmov %vm16736_vm5 }
 0x19f   : > { %4911 = vrot.lane.b32.xlu0 %v12336_v32, %s16721_s28 }
 0x1a0   : > { %v4526_v1 = vpop.permute.xlu1 %4525 }
 0x1a1   : > { %v4524_v2 = vpop.permute.xlu0 %4523  ;;  %4616 = vst.msk [vmem:[#allocation2 + $0x58] sm:$0xff] %vm16736_vm5, %v4526_v1  ;;  %vm16740_vm5 = vcmask 917312  }
 0x1a2   : > { %4615 = vst.msk [vmem:[#allocation2 + $0x48] sm:$0xff] %vm16737_vm13, %v4524_v2  ;;  %1962 = vrot.lane.b32.xlu1 %v12371_v41, %s16721_s28  ;;  %vm16741_vm13 = vmmov %vm16740_vm5 }
 0x1a3   : > { %1960 = vrot.lane.b32.xlu0 %v12374_v42, %s16721_s28 }
 0x1a4   : > { %v1572_v43 = vpop.permute.xlu1 %1571 }
 0x1a5   : > { %v1570_v54 = vpop.permute.xlu0 %1569  ;;  %1661 = vst.msk [vmem:[#allocation2 + $0x70] sm:$0xff] %vm16738_vm12, %v1572_v43 }
 0x1a6   : > { %1660 = vst.msk [vmem:[#allocation2 + $0x60] sm:$0xff] %vm16739_vm4, %v1570_v54  ;;  %3503 = vrot.lane.b32.xlu1 %v12395_v5, %s16733_s20  ;;  %vm16742_vm4 = vcmask 982912   ;;  %v12750_v54 = vld [vmem:[%s11843_s4 + $0xb0] sm:$0xff] }
 0x1a7   : > { %3501 = vrot.lane.b32.xlu0 %v12398_v48, %s16733_s20  ;;  %vm16743_vm12 = vmmov %vm16742_vm4 }
 0x1a8   : > { %v3113_v41 = vpop.permute.xlu1 %3112 }
 0x1a9   : > { %v3111_v42 = vpop.permute.xlu0 %3110  ;;  %3204 = vst.msk [vmem:[#allocation2 + $0x50] sm:$0xff] %vm16740_vm5, %v3113_v41  ;;  %vm16746_vm5 = vcmask 326912  }
 0x1aa   : > { %3203 = vst.msk [vmem:[#allocation2 + $0x40] sm:$0xff] %vm16741_vm13, %v3111_v42  ;;  %2155 = vrot.lane.b32.xlu1 %v12395_v5, %s16722_s22  ;;  %vm16747_vm13 = vmmov %vm16746_vm5 }
 0x1ab   : > { %2153 = vrot.lane.b32.xlu0 %v12398_v48, %s16722_s22 }
 0x1ac   : > { %v4718_v51 = vpop.permute.xlu1 %4717 }
 0x1ad   : > { %v4716_v52 = vpop.permute.xlu0 %4715  ;;  %4808 = vst.msk [vmem:[#allocation2 + $0x58] sm:$0xff] %vm1846_vm6, %v4718_v51 }
 0x1ae   : > { %4807 = vst.msk [vmem:[#allocation2 + $0x48] sm:$0xff] %vm1846_vm6, %v4716_v52  ;;  %3764 = vrot.lane.b32.xlu1 %v12630_v50, %s16723_s30  ;;  %v12774_v52 = vld [vmem:[%s11843_s4 + $0xb1] sm:$0xff] }
 0x1af   : > { %3762 = vrot.lane.b32.xlu0 %v12633_v29, %s16723_s30 }
 0x1b0   : > { %v1765_v58 = vpop.permute.xlu1 %1764 }
 0x1b1   : > { %v1763_v33 = vpop.permute.xlu0 %1762  ;;  %1854 = vst.msk [vmem:[#allocation2 + $0x70] sm:$0xff] %vm1846_vm6, %v1765_v58  ;;  %v12777_v58 = vld [vmem:[%s11843_s4 + $0xa9] sm:$0xff] }
 0x1b2   : > { %1853 = vst.msk [vmem:[#allocation2 + $0x60] sm:$0xff] %vm1846_vm6, %v1763_v33  ;;  %807 = vrot.lane.b32.xlu1 %v12395_v5, %s16723_s30 }
 0x1b3   : > { %805 = vrot.lane.b32.xlu0 %v12398_v48, %s16723_s30 }
 0x1b4   : > { %v3307_v59 = vpop.permute.xlu1 %3306 }
 0x1b5   : > { %v3305_v60 = vpop.permute.xlu0 %3304  ;;  %3398 = vst.msk [vmem:[#allocation2 + $0x50] sm:$0xff] %vm16742_vm4, %v3307_v59  ;;  %vm16748_vm4 = vmmov %vm16746_vm5 }
 0x1b6   : > { %3397 = vst.msk [vmem:[#allocation2 + $0x40] sm:$0xff] %vm16743_vm12, %v3305_v60  ;;  %2348 = vrot.lane.b32.xlu1 %v12150_v31, %s16724_s0  ;;  %v12788_v60 = vld [vmem:[%s16745_s16] ss:$0 sm:$0xff]  ;;  %vm16749_vm12 = vmmov %vm16748_vm4 }
 0x1b7   : > { %2346 = vrot.lane.b32.xlu0 %v12153_v34, %s16724_s0 }
 0x1b8   : > { %v4910_v5 = vpop.permute.xlu1 %4909 }
 0x1b9   : > { %v4908_v9 = vpop.permute.xlu0 %4907  ;;  %5000 = vst.msk [vmem:[#allocation2 + $0x58] sm:$0xff] %vm2040_vm7, %v4910_v5 }
 0x1ba   : > { %4999 = vst.msk [vmem:[#allocation2 + $0x48] sm:$0xff] %vm2040_vm7, %v4908_v9  ;;  %3956 = vrot.lane.b32.xlu1 %v12654_v61, %s16725_s29 }
 0x1bb   : > { %3954 = vrot.lane.b32.xlu0 %v12657_v62, %s16725_s29 }
 0x1bc   : > { %v1959_v48 = vpop.permute.xlu1 %1958 }
 0x1bd   : > { %v1957_v63 = vpop.permute.xlu0 %1956  ;;  %2048 = vst.msk [vmem:[#allocation2 + $0x70] sm:$0xff] %vm2040_vm7, %v1959_v48 }
 0x1be   : > { %2047 = vst.msk [vmem:[#allocation2 + $0x60] sm:$0xff] %vm2040_vm7, %v1957_v63  ;;  %1000 = vrot.lane.b32.xlu1 %v12150_v31, %s16725_s29  ;;  %v12682_v31 = vld [vmem:[%s11843_s4 + $0x9d] sm:$0xff] }
 0x1bf   : > { %998 = vrot.lane.b32.xlu0 %v12153_v34, %s16725_s29  ;;  %v12685_v34 = vld [vmem:[%s11843_s4 + $0x95] sm:$0xff] }
 0x1c0   : > { %v3500_v10 = vpop.permute.xlu1 %3499  ;;  %v5038_v49 = vld [vmem:[#allocation2 + $0x58] sm:$0xff] }
 0x1c1   : > { %v3498_v0 = vpop.permute.xlu0 %3497  ;;  %v5036_v3 = vld [vmem:[#allocation2 + $0x48] sm:$0xff]  ;;  %3591 = vst.msk [vmem:[#allocation2 + $0x50] sm:$0xff] %vm3585_vm15, %v3500_v10 }
 0x1c2   : > { %3590 = vst.msk [vmem:[#allocation2 + $0x40] sm:$0xff] %vm3585_vm15, %v3498_v0  ;;  %v5096_v8 = vpack.c.bf16 %v5038_v49, %v5036_v3  ;;  %2541 = vrot.lane.b32.xlu1 %v12447_v23, %s16726_s1 }
 0x1c3   : > { %2539 = vrot.lane.b32.xlu0 %v12450_v26, %s16726_s1 }
 0x1c4   : > { %10761 = vmatprep.mubr.msk.bf16.mxu0 %vm5226_vm14, %v5096_v8  ;;  %v2152_v11 = vpop.permute.xlu1 %2151 }
 0x1c5   : > { %v2150_v12 = vpop.permute.xlu0 %2149  ;;  %2241 = vst.msk [vmem:[#allocation2 + $0x70] sm:$0xff] %vm2233_vm8, %v2152_v11 }
 0x1c6   : > { %2240 = vst.msk [vmem:[#allocation2 + $0x60] sm:$0xff] %vm2233_vm8, %v2150_v12  ;;  %4148 = vrot.lane.b32.xlu1 %v12682_v31, %s16727_s24 }
 0x1c7   : > { %4146 = vrot.lane.b32.xlu0 %v12685_v34, %s16727_s24 }
 0x1c8   : > { %v3761_v19 = vpop.permute.xlu1 %3760  ;;  %v5037_v17 = vld [vmem:[#allocation2 + $0x50] sm:$0xff] }
 0x1c9   : > { %v3759_v25 = vpop.permute.xlu0 %3758  ;;  %v5035_v22 = vld [vmem:[#allocation2 + $0x40] sm:$0xff]  ;;  %3849 = vst.msk [vmem:[#allocation2 + $0x78] sm:$0xff] %vm881_vm1, %v3761_v19 }
 0x1ca   : > { %3848 = vst.msk [vmem:[#allocation2 + $0x68] sm:$0xff] %vm881_vm1, %v3759_v25  ;;  %v5095_v21 = vpack.c.bf16 %v5037_v17, %v5035_v22  ;;  %1193 = vrot.lane.b32.xlu1 %v12447_v23, %s16727_s24  ;;  %v12715_v23 = vld [vmem:[%s11843_s4 + $0xca] sm:$0xff] }
 0x1cb   : > { %1191 = vrot.lane.b32.xlu0 %v12450_v26, %s16727_s24  ;;  %v12718_v26 = vld [vmem:[%s11843_s4 + $0xc2] sm:$0xff]  ;;  %3663 = vst.msk [vmem:[#allocation2 + $0xd8] sm:$0xff] %vm688_vm0, %v12715_v23 }
 0x1cc   : > { %5324 = vmatmul.mubr.bf16.gmra.mrb[8].mxu0 %v5095_v21  ;;  %v804_v14 = vpop.permute.xlu1 %803  ;;  %3662 = vst.msk [vmem:[#allocation2 + $0xc8] sm:$0xff] %vm688_vm0, %v12718_v26  ;;  %v668_v21 = vld [vmem:[%s11843_s4 + $0x90] sm:$0xff] }
 0x1cd   : > { %v802_v47 = vpop.permute.xlu0 %801  ;;  %891 = vst.msk [vmem:[#allocation2 + $0x90] sm:$0xff] %vm881_vm1, %v804_v14  ;;  %v12834_v14 = vld [vmem:[%s11843_s4 + $0xb3] sm:$0xff] }
 0x1ce   : > { %890 = vst.msk [vmem:[#allocation2 + $0x80] sm:$0xff] %vm881_vm1, %v802_v47  ;;  %2734 = vrot.lane.b32.xlu1 %v12471_v44, %s16728_s2 }
 0x1cf   : > { %2732 = vrot.lane.b32.xlu0 %v12474_v45, %s16728_s2  ;;  %701 = vst.msk [vmem:[#allocation2 + $0xc0] sm:$0xff] %vm688_vm0, %v668_v21 }
 0x1d0   : > { %v2345_v35 = vpop.permute.xlu1 %2344 }
 0x1d1   : > { %v2343_v36 = vpop.permute.xlu0 %2342  ;;  %2434 = vst.msk [vmem:[#allocation2 + $0x70] sm:$0xff] %vm16693_vm9, %v2345_v35  ;;  %v12837_v35 = vld [vmem:[%s11843_s4 + $0xab] sm:$0xff] }
 0x1d2   : > { %2433 = vst.msk [vmem:[#allocation2 + $0x60] sm:$0xff] %vm16693_vm9, %v2343_v36  ;;  %4340 = vrot.lane.b32.xlu1 %v12721_v27, %s16729_s27 }
 0x1d3   : > { %4338 = vrot.lane.b32.xlu0 %v12724_v30, %s16729_s27 }
 0x1d4   : > { %v3953_v40 = vpop.permute.xlu1 %3952 }
 0x1d5   : > { %v3951_v1 = vpop.permute.xlu0 %3950  ;;  %4041 = vst.msk [vmem:[#allocation2 + $0x78] sm:$0xff] %vm1074_vm2, %v3953_v40 }
 0x1d6   : > { %4040 = vst.msk [vmem:[#allocation2 + $0x68] sm:$0xff] %vm1074_vm2, %v3951_v1  ;;  %1386 = vrot.lane.b32.xlu1 %v12471_v44, %s16729_s27 }
 0x1d7   : > { %1384 = vrot.lane.b32.xlu0 %v12474_v45, %s16729_s27 }
 0x1d8   : > { %v997_v2 = vpop.permute.xlu1 %996 }
 0x1d9   : > { %v995_v43 = vpop.permute.xlu0 %994  ;;  %1084 = vst.msk [vmem:[#allocation2 + $0x90] sm:$0xff] %vm1074_vm2, %v997_v2 }
 0x1da   : > { %1083 = vst.msk [vmem:[#allocation2 + $0x80] sm:$0xff] %vm1074_vm2, %v995_v43  ;;  %2927 = vrot.lane.b32.xlu1 %v12496_v38, %s16730_s21  ;;  %v12858_v43 = vld [vmem:[%s11843_s4 + $0xb4] sm:$0xff] }
 0x1db   : > { %2925 = vrot.lane.b32.xlu0 %v12499_v39, %s16730_s21 }
 0x1dc   : > { %v2538_v44 = vpop.permute.xlu1 %2537 }
 0x1dd   : > { %v2536_v57 = vpop.permute.xlu0 %2535  ;;  %2627 = vst.msk [vmem:[#allocation2 + $0x70] sm:$0xff] %vm2619_vm10, %v2538_v44 }
 0x1de   : > { %2626 = vst.msk [vmem:[#allocation2 + $0x60] sm:$0xff] %vm2619_vm10, %v2536_v57  ;;  %4533 = vrot.lane.b32.xlu1 %v12750_v54, %s16719_s23 }
 0x1df   : > { %4531 = vrot.lane.b32.xlu0 %v12753_v28, %s16719_s23 }
 0x1e0   : > { %v4145_v45 = vpop.permute.xlu1 %4144 }
 0x1e1   : > { %v4143_v41 = vpop.permute.xlu0 %4142  ;;  %4233 = vst.msk [vmem:[#allocation2 + $0x78] sm:$0xff] %vm1267_vm3, %v4145_v45 }
 0x1e2   : > { %4232 = vst.msk [vmem:[#allocation2 + $0x68] sm:$0xff] %vm1267_vm3, %v4143_v41  ;;  %1579 = vrot.lane.b32.xlu1 %v12496_v38, %s16719_s23 }
 0x1e3   : > { %1577 = vrot.lane.b32.xlu0 %v12499_v39, %s16719_s23 }
 0x1e4   : > { %v1190_v42 = vpop.permute.xlu1 %1189 }
 0x1e5   : > { %v1188_v51 = vpop.permute.xlu0 %1187  ;;  %1277 = vst.msk [vmem:[#allocation2 + $0x90] sm:$0xff] %vm1267_vm3, %v1190_v42 }
 0x1e6   : > { %1276 = vst.msk [vmem:[#allocation2 + $0x80] sm:$0xff] %vm1267_vm3, %v1188_v51  ;;  %3120 = vrot.lane.b32.xlu1 %v12526_v6, %s16731_s5 }
 0x1e7   : > { %3118 = vrot.lane.b32.xlu0 %v12529_v7, %s16731_s5 }
 0x1e8   : > { %v2731_v38 = vpop.permute.xlu1 %2730 }
 0x1e9   : > { %v2729_v33 = vpop.permute.xlu0 %2728  ;;  %2820 = vst.msk [vmem:[#allocation2 + $0x70] sm:$0xff] %vm2812_vm11, %v2731_v38 }
 0x1ea   : > { %2819 = vst.msk [vmem:[#allocation2 + $0x60] sm:$0xff] %vm2812_vm11, %v2729_v33  ;;  %4725 = vrot.lane.b32.xlu1 %v12774_v52, %s16720_s26 }
 0x1eb   : > { %4723 = vrot.lane.b32.xlu0 %v12777_v58, %s16720_s26 }
 0x1ec   : > { %v4337_v39 = vpop.permute.xlu1 %4336 }
 0x1ed   : > { %v4335_v59 = vpop.permute.xlu0 %4334  ;;  %4425 = vst.msk [vmem:[#allocation2 + $0x78] sm:$0xff] %vm16746_vm5, %v4337_v39  ;;  %vm16750_vm5 = vcmask 851712  }
 0x1ee   : > { %4424 = vst.msk [vmem:[#allocation2 + $0x68] sm:$0xff] %vm16747_vm13, %v4335_v59  ;;  %1772 = vrot.lane.b32.xlu1 %v12526_v6, %s16720_s26  ;;  %vm16751_vm13 = vmmov %vm16750_vm5  ;;  %v12886_v59 = vld [vmem:[%s11843_s4 + $0xad] sm:$0xff] }
 0x1ef   : > { %1770 = vrot.lane.b32.xlu0 %v12529_v7, %s16720_s26  ;;  %v5309_v5 = vpop.f32.mrb[0].mxu0 }
 0x1f0   : > { %v5310_v9 = vadd.f32 %v12788_v60, %v5309_v5  ;;  %v5311_v48 = vpop.f32.mrb[1].mxu0  ;;  %v1383_v63 = vpop.permute.xlu1 %1382 }
 0x1f1   : > { %v1381_v10 = vpop.permute.xlu0 %1380  ;;  %1470 = vst.msk [vmem:[#allocation2 + $0x90] sm:$0xff] %vm16748_vm4, %v1383_v63  ;;  %v5312_v0 = vpop.f32.mrb[2].mxu0  ;;  %vm16752_vm4 = vcmask 392512  }
 0x1f2   : > { %1469 = vst.msk [vmem:[#allocation2 + $0x80] sm:$0xff] %vm16749_vm12, %v1381_v10  ;;  %v5436_v3 = vmax.f32 %v5310_v9, 0.0  ;;  %v5313_v49 = vadd.f32 %v12788_v60, %v5312_v0  ;;  %v5314_v18 = vpop.f32.mrb[3].mxu0  ;;  %3314 = vrot.lane.b32.xlu1 %v12554_v16, %s16732_s3  ;;  %vm16753_vm12 = vmmov %vm16752_vm4 }
 0x1f3   : > { %3312 = vrot.lane.b32.xlu0 %v12557_v24, %s16732_s3  ;;  %v12908_v18 = vld [vmem:[%s11843_s4 + $0xda] sm:$0xff] }
 0x1f4   : > { %v5437_v6 = vmax.f32 %v5313_v49, 0.0  ;;  %v2924_v7 = vpop.permute.xlu1 %2923  ;;  %v5524_v11 = vmax.f32 %v5436_v3, 0.0  ;;  %v12905_v49 = vld [vmem:[%s11843_s4 + $0xe2] sm:$0xff]  ;;  %3664 = vst.msk [vmem:[#allocation2 + $0xe8] sm:$0xff] %vm688_vm0, %v12908_v18 }
 0x1f5   : > { %v2922_v8 = vpop.permute.xlu0 %2921  ;;  %3013 = vst.msk [vmem:[#allocation2 + $0x70] sm:$0xff] %vm16750_vm5, %v2924_v7  ;;  %vm16754_vm5 = vmmov %vm16752_vm4  ;;  %v12920_v7 = vld [vmem:[%s11843_s4 + $0xae] sm:$0xff] }
 0x1f6   : > { %3012 = vst.msk [vmem:[#allocation2 + $0x60] sm:$0xff] %vm16751_vm13, %v2922_v8  ;;  %v5525_v12 = vmax.f32 %v5437_v6, 0.0  ;;  %4917 = vrot.lane.b32.xlu1 %v12520_v4, %s16721_s28  ;;  %vm16755_vm13 = vmmov %vm16752_vm4 }
 0x1f7   : > { %4915 = vrot.lane.b32.xlu0 %v12523_v20, %s16721_s28  ;;  %3665 = vst.msk [vmem:[#allocation2 + $0xf8] sm:$0xff] %vm688_vm0, %v12905_v49 }
 0x1f8   : > { %v4530_v13 = vpop.permute.xlu1 %4529  ;;  %v5556_v25 = vpack.c.bf16 %v5525_v12, %v5524_v11 }
 0x1f9   : > { %v4528_v19 = vpop.permute.xlu0 %4527  ;;  %4618 = vst.msk [vmem:[#allocation2 + $0x78] sm:$0xff] %vm16752_vm4, %v4530_v13  ;;  %vm16756_vm4 = vcmask 917312  }
 0x1fa   : > { %4617 = vst.msk [vmem:[#allocation2 + $0x68] sm:$0xff] %vm16753_vm12, %v4528_v19  ;;  %11163 = vmatprep.mubr.msk.bf16.mxu1 %vm5226_vm14, %v5556_v25  ;;  %1966 = vrot.lane.b32.xlu1 %v12554_v16, %s16721_s28  ;;  %vm16757_vm12 = vmmov %vm16756_vm4  ;;  %v12941_v19 = vld [vmem:[%s11843_s4 + $0xc8] sm:$0xff] }
 0x1fb   : > { %1964 = vrot.lane.b32.xlu0 %v12557_v24, %s16721_s28 }
 0x1fc   : > { %v1576_v22 = vpop.permute.xlu1 %1575 }
 0x1fd   : > { %v1574_v17 = vpop.permute.xlu0 %1573  ;;  %1663 = vst.msk [vmem:[#allocation2 + $0x90] sm:$0xff] %vm16754_vm5, %v1576_v22  ;;  %vm16758_vm5 = vcmask 982912  }
 0x1fe   : > { %1662 = vst.msk [vmem:[#allocation2 + $0x80] sm:$0xff] %vm16755_vm13, %v1574_v17  ;;  %3507 = vrot.lane.b32.xlu1 %v12578_v56, %s16733_s20  ;;  %vm16759_vm13 = vmmov %vm16758_vm5 }
 0x1ff   : > { %3505 = vrot.lane.b32.xlu0 %v12581_v46, %s16733_s20 }
 0x200   : > { %v3117_v16 = vpop.permute.xlu1 %3116 }
 0x201   : > { %v3115_v24 = vpop.permute.xlu0 %3114  ;;  %3206 = vst.msk [vmem:[#allocation2 + $0x70] sm:$0xff] %vm16756_vm4, %v3117_v16  ;;  %v12965_v16 = vld [vmem:[%s11843_s4 + $0xc9] sm:$0xff]  ;;  %vm16760_vm4 = vcmask 326912  }
 0x202   : > { %3205 = vst.msk [vmem:[#allocation2 + $0x60] sm:$0xff] %vm16757_vm12, %v3115_v24  ;;  %2159 = vrot.lane.b32.xlu1 %v12578_v56, %s16722_s22  ;;  %vm16761_vm12 = vmmov %vm16760_vm4 }
 0x203   : > { %2157 = vrot.lane.b32.xlu0 %v12581_v46, %s16722_s22 }
 0x204   : > { %v4722_v47 = vpop.permute.xlu1 %4721 }
 0x205   : > { %v4720_v15 = vpop.permute.xlu0 %4719  ;;  %4810 = vst.msk [vmem:[#allocation2 + $0x78] sm:$0xff] %vm1846_vm6, %v4722_v47 }
 0x206   : > { %4809 = vst.msk [vmem:[#allocation2 + $0x68] sm:$0xff] %vm1846_vm6, %v4720_v15  ;;  %3768 = vrot.lane.b32.xlu1 %v12834_v14, %s16723_s30 }
 0x207   : > { %3766 = vrot.lane.b32.xlu0 %v12837_v35, %s16723_s30 }
 0x208   : > { %v1769_v36 = vpop.permute.xlu1 %1768 }
 0x209   : > { %v1767_v40 = vpop.permute.xlu0 %1766  ;;  %1856 = vst.msk [vmem:[#allocation2 + $0x90] sm:$0xff] %vm1846_vm6, %v1769_v36 }
 0x20a   : > { %1855 = vst.msk [vmem:[#allocation2 + $0x80] sm:$0xff] %vm1846_vm6, %v1767_v40  ;;  %811 = vrot.lane.b32.xlu1 %v12578_v56, %s16723_s30  ;;  %v12861_v56 = vld [vmem:[%s11843_s4 + $0xac] sm:$0xff] }
 0x20b   : > { %809 = vrot.lane.b32.xlu0 %v12581_v46, %s16723_s30 }
 0x20c   : > { %v3311_v1 = vpop.permute.xlu1 %3310 }
 0x20d   : > { %v3309_v2 = vpop.permute.xlu0 %3308  ;;  %3400 = vst.msk [vmem:[#allocation2 + $0x70] sm:$0xff] %vm16758_vm5, %v3311_v1  ;;  %vm16762_vm5 = vmmov %vm16760_vm4 }
 0x20e   : > { %3399 = vst.msk [vmem:[#allocation2 + $0x60] sm:$0xff] %vm16759_vm13, %v3309_v2  ;;  %2352 = vrot.lane.b32.xlu1 %v12333_v53, %s16724_s0  ;;  %vm16763_vm13 = vmmov %vm16760_vm4 }
 0x20f   : > { %2350 = vrot.lane.b32.xlu0 %v12336_v32, %s16724_s0 }
 0x210   : > { %v4914_v44 = vpop.permute.xlu1 %4913 }
 0x211   : > { %v4912_v57 = vpop.permute.xlu0 %4911  ;;  %5002 = vst.msk [vmem:[#allocation2 + $0x78] sm:$0xff] %vm2040_vm7, %v4914_v44 }
 0x212   : > { %5001 = vst.msk [vmem:[#allocation2 + $0x68] sm:$0xff] %vm2040_vm7, %v4912_v57  ;;  %3960 = vrot.lane.b32.xlu1 %v12858_v43, %s16725_s29 }
 0x213   : > { %3958 = vrot.lane.b32.xlu0 %v12861_v56, %s16725_s29 }
 0x214   : > { %v1963_v46 = vpop.permute.xlu1 %1962 }
 0x215   : > { %v1961_v45 = vpop.permute.xlu0 %1960  ;;  %2050 = vst.msk [vmem:[#allocation2 + $0x90] sm:$0xff] %vm2040_vm7, %v1963_v46 }
 0x216   : > { %2049 = vst.msk [vmem:[#allocation2 + $0x80] sm:$0xff] %vm2040_vm7, %v1961_v45  ;;  %1004 = vrot.lane.b32.xlu1 %v12333_v53, %s16725_s29  ;;  %v12883_v53 = vld [vmem:[%s11843_s4 + $0xb5] sm:$0xff] }
 0x217   : > { %1002 = vrot.lane.b32.xlu0 %v12336_v32, %s16725_s29 }
 0x218   : > { %v3504_v41 = vpop.permute.xlu1 %3503  ;;  %v5042_v38 = vld [vmem:[#allocation2 + $0x78] sm:$0xff] }
 0x219   : > { %v3502_v42 = vpop.permute.xlu0 %3501  ;;  %v5040_v51 = vld [vmem:[#allocation2 + $0x68] sm:$0xff]  ;;  %3593 = vst.msk [vmem:[#allocation2 + $0x70] sm:$0xff] %vm3585_vm15, %v3504_v41 }
 0x21a   : > { %3592 = vst.msk [vmem:[#allocation2 + $0x60] sm:$0xff] %vm3585_vm15, %v3502_v42  ;;  %v5098_v33 = vpack.c.bf16 %v5042_v38, %v5040_v51  ;;  %2545 = vrot.lane.b32.xlu1 %v12630_v50, %s16726_s1 }
 0x21b   : > { %2543 = vrot.lane.b32.xlu0 %v12633_v29, %s16726_s1 }
 0x21c   : > { %10762 = vmatprep.mubr.msk.bf16.mxu0 %vm5226_vm14, %v5098_v33  ;;  %v2156_v32 = vpop.permute.xlu1 %2155 }
 0x21d   : > { %v2154_v39 = vpop.permute.xlu0 %2153  ;;  %2243 = vst.msk [vmem:[#allocation2 + $0x90] sm:$0xff] %vm2233_vm8, %v2156_v32 }
 0x21e   : > { %2242 = vst.msk [vmem:[#allocation2 + $0x80] sm:$0xff] %vm2233_vm8, %v2154_v39  ;;  %4152 = vrot.lane.b32.xlu1 %v12883_v53, %s16727_s24 }
 0x21f   : > { %4150 = vrot.lane.b32.xlu0 %v12886_v59, %s16727_s24 }
 0x220   : > { %v3765_v5 = vpop.permute.xlu1 %3764  ;;  %v5041_v63 = vld [vmem:[#allocation2 + $0x70] sm:$0xff] }
 0x221   : > { %v3763_v9 = vpop.permute.xlu0 %3762  ;;  %v5039_v48 = vld [vmem:[#allocation2 + $0x60] sm:$0xff]  ;;  %3851 = vst.msk [vmem:[#allocation2 + $0x98] sm:$0xff] %vm881_vm1, %v3765_v5 }
 0x222   : > { %3850 = vst.msk [vmem:[#allocation2 + $0x88] sm:$0xff] %vm881_vm1, %v3763_v9  ;;  %v5097_v10 = vpack.c.bf16 %v5041_v63, %v5039_v48  ;;  %1197 = vrot.lane.b32.xlu1 %v12630_v50, %s16727_s24  ;;  %v12913_v50 = vld [vmem:[%s11843_s4 + $0xb6] sm:$0xff]  ;;  %v670_v63 = vld [vmem:[%s11843_s4 + $0xa8] sm:$0xff] }
 0x223   : > { %1195 = vrot.lane.b32.xlu0 %v12633_v29, %s16727_s24  ;;  %v671_v48 = vld [vmem:[%s11843_s4 + $0xb0] sm:$0xff]  ;;  %703 = vst.msk [vmem:[#allocation2 + $0xe0] sm:$0xff] %vm688_vm0, %v670_v63 }
 0x224   : > { %5332 = vmatmul.mubr.bf16.gmra.mrb[12].mxu0 %v5097_v10  ;;  %v808_v0 = vpop.permute.xlu1 %807  ;;  %704 = vst.msk [vmem:[#allocation2 + $0xf0] sm:$0xff] %vm688_vm0, %v671_v48  ;;  %v13020_v10 = vld [vmem:[%s11843_s4 + $0xcb] sm:$0xff] }
 0x225   : > { %v806_v3 = vpop.permute.xlu0 %805  ;;  %893 = vst.msk [vmem:[#allocation2 + $0xb0] sm:$0xff] %vm881_vm1, %v808_v0 }
 0x226   : > { %892 = vst.msk [vmem:[#allocation2 + $0xa0] sm:$0xff] %vm881_vm1, %v806_v3  ;;  %2738 = vrot.lane.b32.xlu1 %v12654_v61, %s16728_s2 }
 0x227   : > { %2736 = vrot.lane.b32.xlu0 %v12657_v62, %s16728_s2 }
 0x228   : > { %v2349_v29 = vpop.permute.xlu1 %2348 }
 0x229   : > { %v2347_v6 = vpop.permute.xlu0 %2346  ;;  %2436 = vst.msk [vmem:[#allocation2 + $0x90] sm:$0xff] %vm16693_vm9, %v2349_v29  ;;  %v13023_v29 = vld [vmem:[%s11843_s4 + $0xc3] sm:$0xff] }
 0x22a   : > { %2435 = vst.msk [vmem:[#allocation2 + $0x80] sm:$0xff] %vm16693_vm9, %v2347_v6  ;;  %4344 = vrot.lane.b32.xlu1 %v12913_v50, %s16729_s27 }
 0x22b   : > { %4342 = vrot.lane.b32.xlu0 %v12920_v7, %s16729_s27 }
 0x22c   : > { %v3957_v8 = vpop.permute.xlu1 %3956 }
 0x22d   : > { %v3955_v11 = vpop.permute.xlu0 %3954  ;;  %4043 = vst.msk [vmem:[#allocation2 + $0x98] sm:$0xff] %vm1074_vm2, %v3957_v8 }
 0x22e   : > { %4042 = vst.msk [vmem:[#allocation2 + $0x88] sm:$0xff] %vm1074_vm2, %v3955_v11  ;;  %1390 = vrot.lane.b32.xlu1 %v12654_v61, %s16729_s27  ;;  %v12944_v61 = vld [vmem:[%s11843_s4 + $0xc0] sm:$0xff] }
 0x22f   : > { %1388 = vrot.lane.b32.xlu0 %v12657_v62, %s16729_s27 }
 0x230   : > { %v1001_v12 = vpop.permute.xlu1 %1000 }
 0x231   : > { %v999_v13 = vpop.permute.xlu0 %998  ;;  %1086 = vst.msk [vmem:[#allocation2 + $0xb0] sm:$0xff] %vm1074_vm2, %v1001_v12 }
 0x232   : > { %1085 = vst.msk [vmem:[#allocation2 + $0xa0] sm:$0xff] %vm1074_vm2, %v999_v13  ;;  %2931 = vrot.lane.b32.xlu1 %v12682_v31, %s16730_s21  ;;  %v13044_v13 = vld [vmem:[%s11843_s4 + $0xcc] sm:$0xff] }
 0x233   : > { %2929 = vrot.lane.b32.xlu0 %v12685_v34, %s16730_s21 }
 0x234   : > { %v2542_v25 = vpop.permute.xlu1 %2541 }
 0x235   : > { %v2540_v22 = vpop.permute.xlu0 %2539  ;;  %2629 = vst.msk [vmem:[#allocation2 + $0x90] sm:$0xff] %vm2619_vm10, %v2542_v25 }
 0x236   : > { %2628 = vst.msk [vmem:[#allocation2 + $0x80] sm:$0xff] %vm2619_vm10, %v2540_v22  ;;  %4537 = vrot.lane.b32.xlu1 %v12941_v19, %s16719_s23 }
 0x237   : > { %4535 = vrot.lane.b32.xlu0 %v12944_v61, %s16719_s23 }
 0x238   : > { %v4149_v62 = vpop.permute.xlu1 %4148 }
 0x239   : > { %v4147_v17 = vpop.permute.xlu0 %4146  ;;  %4235 = vst.msk [vmem:[#allocation2 + $0x98] sm:$0xff] %vm1267_vm3, %v4149_v62 }
 0x23a   : > { %4234 = vst.msk [vmem:[#allocation2 + $0x88] sm:$0xff] %vm1267_vm3, %v4147_v17  ;;  %1583 = vrot.lane.b32.xlu1 %v12682_v31, %s16719_s23  ;;  %v12968_v31 = vld [vmem:[%s11843_s4 + $0xc1] sm:$0xff] }
 0x23b   : > { %1581 = vrot.lane.b32.xlu0 %v12685_v34, %s16719_s23 }
 0x23c   : > { %v1194_v55 = vpop.permute.xlu1 %1193 }
 0x23d   : > { %v1192_v21 = vpop.permute.xlu0 %1191  ;;  %1279 = vst.msk [vmem:[#allocation2 + $0xb0] sm:$0xff] %vm1267_vm3, %v1194_v55 }
 0x23e   : > { %1278 = vst.msk [vmem:[#allocation2 + $0xa0] sm:$0xff] %vm1267_vm3, %v1192_v21  ;;  %3124 = vrot.lane.b32.xlu1 %v12721_v27, %s16731_s5 }
 0x23f   : > { %3122 = vrot.lane.b32.xlu0 %v12724_v30, %s16731_s5 }
 0x240   : > { %v2735_v24 = vpop.permute.xlu1 %2734 }
 0x241   : > { %v2733_v47 = vpop.permute.xlu0 %2732  ;;  %2822 = vst.msk [vmem:[#allocation2 + $0x90] sm:$0xff] %vm2812_vm11, %v2735_v24 }
 0x242   : > { %2821 = vst.msk [vmem:[#allocation2 + $0x80] sm:$0xff] %vm2812_vm11, %v2733_v47  ;;  %4729 = vrot.lane.b32.xlu1 %v12965_v16, %s16720_s26 }
 0x243   : > { %4727 = vrot.lane.b32.xlu0 %v12968_v31, %s16720_s26 }
 0x244   : > { %v4341_v34 = vpop.permute.xlu1 %4340 }
 0x245   : > { %v4339_v15 = vpop.permute.xlu0 %4338  ;;  %4427 = vst.msk [vmem:[#allocation2 + $0x98] sm:$0xff] %vm16760_vm4, %v4341_v34  ;;  %vm16764_vm4 = vcmask 851712   ;;  %v13072_v34 = vld [vmem:[%s11843_s4 + $0xc5] sm:$0xff] }
 0x246   : > { %4426 = vst.msk [vmem:[#allocation2 + $0x88] sm:$0xff] %vm16761_vm12, %v4339_v15  ;;  %1776 = vrot.lane.b32.xlu1 %v12721_v27, %s16720_s26  ;;  %vm16765_vm12 = vmmov %vm16764_vm4 }
 0x247   : > { %v5317_v36 = vpop.f32.mrb[4].mxu0  ;;  %1774 = vrot.lane.b32.xlu0 %v12724_v30, %s16720_s26 }
 0x248   : > { %v5318_v40 = vadd.f32 %v12788_v60, %v5317_v36  ;;  %v5319_v1 = vpop.f32.mrb[5].mxu0  ;;  %v1387_v2 = vpop.permute.xlu1 %1386 }
 0x249   : > { %v1385_v44 = vpop.permute.xlu0 %1384  ;;  %1472 = vst.msk [vmem:[#allocation2 + $0xb0] sm:$0xff] %vm16762_vm5, %v1387_v2  ;;  %v5320_v57 = vpop.f32.mrb[6].mxu0  ;;  %vm16766_vm5 = vcmask 392512  }
 0x24a   : > { %1471 = vst.msk [vmem:[#allocation2 + $0xa0] sm:$0xff] %vm16763_vm13, %v1385_v44  ;;  %v5438_v46 = vmax.f32 %v5318_v40, 0.0  ;;  %v5321_v45 = vadd.f32 %v12788_v60, %v5320_v57  ;;  %v5322_v41 = vpop.f32.mrb[7].mxu0  ;;  %3318 = vrot.lane.b32.xlu1 %v12750_v54, %s16732_s3  ;;  %vm16767_vm13 = vmmov %vm16766_vm5 }
 0x24b   : > { %3316 = vrot.lane.b32.xlu0 %v12753_v28, %s16732_s3  ;;  %v13094_v41 = vld [vmem:[%s11843_s4 + $0xf2] sm:$0xff] }
 0x24c   : > { %v5439_v27 = vmax.f32 %v5321_v45, 0.0  ;;  %v2928_v30 = vpop.permute.xlu1 %2927  ;;  %v5526_v51 = vmax.f32 %v5438_v46, 0.0  ;;  %v13091_v45 = vld [vmem:[%s11843_s4 + $0xfa] sm:$0xff]  ;;  %3666 = vst.msk [vmem:[#allocation2 + $0x108] sm:$0xff] %vm688_vm0, %v13094_v41 }
 0x24d   : > { %v2926_v42 = vpop.permute.xlu0 %2925  ;;  %3015 = vst.msk [vmem:[#allocation2 + $0x90] sm:$0xff] %vm16764_vm4, %v2928_v30  ;;  %vm16768_vm4 = vmmov %vm16766_vm5 }
 0x24e   : > { %3014 = vst.msk [vmem:[#allocation2 + $0x80] sm:$0xff] %vm16765_vm12, %v2926_v42  ;;  %v5527_v38 = vmax.f32 %v5439_v27, 0.0  ;;  %4921 = vrot.lane.b32.xlu1 %v12715_v23, %s16721_s28  ;;  %vm16769_vm12 = vmmov %vm16768_vm4  ;;  %v13106_v27 = vld [vmem:[%s11843_s4 + $0xc6] sm:$0xff] }
 0x24f   : > { %4919 = vrot.lane.b32.xlu0 %v12718_v26, %s16721_s28  ;;  %3667 = vst.msk [vmem:[#allocation2 + $0x118] sm:$0xff] %vm688_vm0, %v13091_v45 }
 0x250   : > { %v5557_v33 = vpack.c.bf16 %v5527_v38, %v5526_v51  ;;  %v4534_v32 = vpop.permute.xlu1 %4533 }
 0x251   : > { %v4532_v39 = vpop.permute.xlu0 %4531  ;;  %4620 = vst.msk [vmem:[#allocation2 + $0x98] sm:$0xff] %vm16766_vm5, %v4534_v32  ;;  %vm16770_vm5 = vcmask 917312   ;;  %v13127_v32 = vld [vmem:[%s11843_s4 + $0xe0] sm:$0xff] }
 0x252   : > { %4619 = vst.msk [vmem:[#allocation2 + $0x88] sm:$0xff] %vm16767_vm13, %v4532_v39  ;;  %11164 = vmatmul.mubr.msk.bf16.vlgmr.msra.gmra.mrb[0].mxu1 %vm5226_vm14, %v5557_v33  ;;  %1970 = vrot.lane.b32.xlu1 %v12750_v54, %s16721_s28  ;;  %vm16771_vm13 = vmmov %vm16770_vm5 }
 0x253   : > { %1968 = vrot.lane.b32.xlu0 %v12753_v28, %s16721_s28 }
 0x254   : > { %v1580_v5 = vpop.permute.xlu1 %1579 }
 0x255   : > { %v1578_v9 = vpop.permute.xlu0 %1577  ;;  %1665 = vst.msk [vmem:[#allocation2 + $0xb0] sm:$0xff] %vm16768_vm4, %v1580_v5  ;;  %vm16772_vm4 = vcmask 982912   ;;  %v13130_v5 = vld [vmem:[%s11843_s4 + $0xd8] sm:$0xff] }
 0x256   : > { %1664 = vst.msk [vmem:[#allocation2 + $0xa0] sm:$0xff] %vm16769_vm12, %v1578_v9  ;;  %3511 = vrot.lane.b32.xlu1 %v12774_v52, %s16733_s20  ;;  %vm16773_vm12 = vmmov %vm16772_vm4 }
 0x257   : > { %3509 = vrot.lane.b32.xlu0 %v12777_v58, %s16733_s20 }
 0x258   : > { %v3121_v54 = vpop.permute.xlu1 %3120 }
 0x259   : > { %v3119_v28 = vpop.permute.xlu0 %3118  ;;  %3208 = vst.msk [vmem:[#allocation2 + $0x90] sm:$0xff] %vm16770_vm5, %v3121_v54  ;;  %v13151_v54 = vld [vmem:[%s11843_s4 + $0xe1] sm:$0xff]  ;;  %vm16774_vm5 = vcmask 326912  }
 0x25a   : > { %3207 = vst.msk [vmem:[#allocation2 + $0x80] sm:$0xff] %vm16771_vm13, %v3119_v28  ;;  %2163 = vrot.lane.b32.xlu1 %v12774_v52, %s16722_s22  ;;  %vm16775_vm13 = vmmov %vm16774_vm5 }
 0x25b   : > { %2161 = vrot.lane.b32.xlu0 %v12777_v58, %s16722_s22 }
 0x25c   : > { %v4726_v0 = vpop.permute.xlu1 %4725 }
 0x25d   : > { %v4724_v3 = vpop.permute.xlu0 %4723  ;;  %4812 = vst.msk [vmem:[#allocation2 + $0x98] sm:$0xff] %vm1846_vm6, %v4726_v0  ;;  %v13154_v0 = vld [vmem:[%s11843_s4 + $0xd9] sm:$0xff] }
 0x25e   : > { %4811 = vst.msk [vmem:[#allocation2 + $0x88] sm:$0xff] %vm1846_vm6, %v4724_v3  ;;  %3772 = vrot.lane.b32.xlu1 %v13020_v10, %s16723_s30 }
 0x25f   : > { %3770 = vrot.lane.b32.xlu0 %v13023_v29, %s16723_s30 }
 0x260   : > { %v1773_v6 = vpop.permute.xlu1 %1772 }
 0x261   : > { %v1771_v8 = vpop.permute.xlu0 %1770  ;;  %1858 = vst.msk [vmem:[#allocation2 + $0xb0] sm:$0xff] %vm1846_vm6, %v1773_v6 }
 0x262   : > { %1857 = vst.msk [vmem:[#allocation2 + $0xa0] sm:$0xff] %vm1846_vm6, %v1771_v8  ;;  %815 = vrot.lane.b32.xlu1 %v12774_v52, %s16723_s30  ;;  %v13047_v52 = vld [vmem:[%s11843_s4 + $0xc4] sm:$0xff] }
 0x263   : > { %813 = vrot.lane.b32.xlu0 %v12777_v58, %s16723_s30 }
 0x264   : > { %v3315_v11 = vpop.permute.xlu1 %3314 }
 0x265   : > { %v3313_v12 = vpop.permute.xlu0 %3312  ;;  %3402 = vst.msk [vmem:[#allocation2 + $0x90] sm:$0xff] %vm16772_vm4, %v3315_v11  ;;  %vm16776_vm4 = vmmov %vm16774_vm5 }
 0x266   : > { %3401 = vst.msk [vmem:[#allocation2 + $0x80] sm:$0xff] %vm16773_vm12, %v3313_v12  ;;  %2356 = vrot.lane.b32.xlu1 %v12520_v4, %s16724_s0  ;;  %vm16777_vm12 = vmmov %vm16776_vm4 }
 0x267   : > { %2354 = vrot.lane.b32.xlu0 %v12523_v20, %s16724_s0 }
 0x268   : > { %v4918_v25 = vpop.permute.xlu1 %4917 }
 0x269   : > { %v4916_v22 = vpop.permute.xlu0 %4915  ;;  %5004 = vst.msk [vmem:[#allocation2 + $0x98] sm:$0xff] %vm2040_vm7, %v4918_v25 }
 0x26a   : > { %5003 = vst.msk [vmem:[#allocation2 + $0x88] sm:$0xff] %vm2040_vm7, %v4916_v22  ;;  %3964 = vrot.lane.b32.xlu1 %v13044_v13, %s16725_s29 }
 0x26b   : > { %3962 = vrot.lane.b32.xlu0 %v13047_v52, %s16725_s29 }
 0x26c   : > { %v1967_v58 = vpop.permute.xlu1 %1966 }
 0x26d   : > { %2052 = vst.msk [vmem:[#allocation2 + $0xb0] sm:$0xff] %vm2040_vm7, %v1967_v58  ;;  %v1965_v62 = vpop.permute.xlu0 %1964 }
 0x26e   : > { %2051 = vst.msk [vmem:[#allocation2 + $0xa0] sm:$0xff] %vm2040_vm7, %v1965_v62  ;;  %1008 = vrot.lane.b32.xlu1 %v12520_v4, %s16725_s29  ;;  %v13069_v4 = vld [vmem:[%s11843_s4 + $0xcd] sm:$0xff] }
 0x26f   : > { %1006 = vrot.lane.b32.xlu0 %v12523_v20, %s16725_s29 }
 0x270   : > { %v3508_v17 = vpop.permute.xlu1 %3507  ;;  %v5046_v21 = vld [vmem:[#allocation2 + $0x98] sm:$0xff] }
 0x271   : > { %v5044_v55 = vld [vmem:[#allocation2 + $0x88] sm:$0xff]  ;;  %3595 = vst.msk [vmem:[#allocation2 + $0x90] sm:$0xff] %vm3585_vm15, %v3508_v17  ;;  %v3506_v24 = vpop.permute.xlu0 %3505 }
 0x272   : > { %v5100_v47 = vpack.c.bf16 %v5046_v21, %v5044_v55  ;;  %3594 = vst.msk [vmem:[#allocation2 + $0x80] sm:$0xff] %vm3585_vm15, %v3506_v24  ;;  %2549 = vrot.lane.b32.xlu1 %v12834_v14, %s16726_s1 }
 0x273   : > { %2547 = vrot.lane.b32.xlu0 %v12837_v35, %s16726_s1 }
 0x274   : > { %10763 = vmatprep.mubr.msk.bf16.mxu0 %vm5226_vm14, %v5100_v47  ;;  %v2160_v20 = vpop.permute.xlu1 %2159  ;;  %v11677_v47 = vmov 0.0  }
 0x275   : > { %2245 = vst.msk [vmem:[#allocation2 + $0xb0] sm:$0xff] %vm2233_vm8, %v2160_v20  ;;  %v2158_v15 = vpop.permute.xlu0 %2157 }
 0x276   : > { %2244 = vst.msk [vmem:[#allocation2 + $0xa0] sm:$0xff] %vm2233_vm8, %v2158_v15  ;;  %4156 = vrot.lane.b32.xlu1 %v13069_v4, %s16727_s24 }
 0x277   : > { %4154 = vrot.lane.b32.xlu0 %v13072_v34, %s16727_s24 }
 0x278   : > { %v3769_v36 = vpop.permute.xlu1 %3768  ;;  %v5045_v40 = vld [vmem:[#allocation2 + $0x90] sm:$0xff] }
 0x279   : > { %3853 = vst.msk [vmem:[#allocation2 + $0xb8] sm:$0xff] %vm881_vm1, %v3769_v36  ;;  %v3767_v1 = vpop.permute.xlu0 %3766  ;;  %v5043_v2 = vld [vmem:[#allocation2 + $0x80] sm:$0xff] }
 0x27a   : > { %3852 = vst.msk [vmem:[#allocation2 + $0xa8] sm:$0xff] %vm881_vm1, %v3767_v1  ;;  %1201 = vrot.lane.b32.xlu1 %v12834_v14, %s16727_s24  ;;  %v5099_v44 = vpack.c.bf16 %v5045_v40, %v5043_v2  ;;  %v13099_v14 = vld [vmem:[%s11843_s4 + $0xce] sm:$0xff]  ;;  %v672_v36 = vld [vmem:[%s11843_s4 + $0xc0] sm:$0xff] }
 0x27b   : > { %1199 = vrot.lane.b32.xlu0 %v12837_v35, %s16727_s24  ;;  %705 = vst.msk [vmem:[#allocation2 + $0x100] sm:$0xff] %vm688_vm0, %v672_v36 }
 0x27c   : > { %5340 = vmatmul.mubr.bf16.gmra.mrb[16].mxu0 %v5099_v44  ;;  %v812_v57 = vpop.permute.xlu1 %811  ;;  %v13257_v44 = vld [vmem:[%s11843_s4 + $0xe3] sm:$0xff] }
 0x27d   : > { %895 = vst.msk [vmem:[#allocation2 + $0xd0] sm:$0xff] %vm881_vm1, %v812_v57  ;;  %v810_v46 = vpop.permute.xlu0 %809 }
 0x27e   : > { %894 = vst.msk [vmem:[#allocation2 + $0xc0] sm:$0xff] %vm881_vm1, %v810_v46  ;;  %2742 = vrot.lane.b32.xlu1 %v12858_v43, %s16728_s2  ;;  %v13260_v46 = vld [vmem:[%s11843_s4 + $0xdb] sm:$0xff] }
 0x27f   : > { %2740 = vrot.lane.b32.xlu0 %v12861_v56, %s16728_s2 }
 0x280   : > { %v2353_v35 = vpop.permute.xlu1 %2352 }
 0x281   : > { %2438 = vst.msk [vmem:[#allocation2 + $0xb0] sm:$0xff] %vm16693_vm9, %v2353_v35  ;;  %v2351_v30 = vpop.permute.xlu0 %2350 }
 0x282   : > { %2437 = vst.msk [vmem:[#allocation2 + $0xa0] sm:$0xff] %vm16693_vm9, %v2351_v30  ;;  %4348 = vrot.lane.b32.xlu1 %v13099_v14, %s16729_s27 }
 0x283   : > { %4346 = vrot.lane.b32.xlu0 %v13106_v27, %s16729_s27 }
 0x284   : > { %v3961_v42 = vpop.permute.xlu1 %3960 }
 0x285   : > { %4045 = vst.msk [vmem:[#allocation2 + $0xb8] sm:$0xff] %vm1074_vm2, %v3961_v42  ;;  %v3959_v51 = vpop.permute.xlu0 %3958 }
 0x286   : > { %4044 = vst.msk [vmem:[#allocation2 + $0xa8] sm:$0xff] %vm1074_vm2, %v3959_v51  ;;  %1394 = vrot.lane.b32.xlu1 %v12858_v43, %s16729_s27 }
 0x287   : > { %1392 = vrot.lane.b32.xlu0 %v12861_v56, %s16729_s27 }
 0x288   : > { %v1005_v38 = vpop.permute.xlu1 %1004 }
 0x289   : > { %1088 = vst.msk [vmem:[#allocation2 + $0xd0] sm:$0xff] %vm1074_vm2, %v1005_v38  ;;  %v1003_v33 = vpop.permute.xlu0 %1002 }
 0x28a   : > { %1087 = vst.msk [vmem:[#allocation2 + $0xc0] sm:$0xff] %vm1074_vm2, %v1003_v33  ;;  %2935 = vrot.lane.b32.xlu1 %v12883_v53, %s16730_s21  ;;  %v13281_v33 = vld [vmem:[%s11843_s4 + $0xe4] sm:$0xff] }
 0x28b   : > { %2933 = vrot.lane.b32.xlu0 %v12886_v59, %s16730_s21 }
 0x28c   : > { %v2546_v39 = vpop.permute.xlu1 %2545 }
 0x28d   : > { %2631 = vst.msk [vmem:[#allocation2 + $0xb0] sm:$0xff] %vm2619_vm10, %v2546_v39  ;;  %v2544_v43 = vpop.permute.xlu0 %2543 }
 0x28e   : > { %2630 = vst.msk [vmem:[#allocation2 + $0xa0] sm:$0xff] %vm2619_vm10, %v2544_v43  ;;  %4541 = vrot.lane.b32.xlu1 %v13127_v32, %s16719_s23  ;;  %v13284_v43 = vld [vmem:[%s11843_s4 + $0xdc] sm:$0xff] }
 0x28f   : > { %4539 = vrot.lane.b32.xlu0 %v13130_v5, %s16719_s23 }
 0x290   : > { %v4153_v56 = vpop.permute.xlu1 %4152 }
 0x291   : > { %4237 = vst.msk [vmem:[#allocation2 + $0xb8] sm:$0xff] %vm1267_vm3, %v4153_v56  ;;  %v4151_v9 = vpop.permute.xlu0 %4150 }
 0x292   : > { %4236 = vst.msk [vmem:[#allocation2 + $0xa8] sm:$0xff] %vm1267_vm3, %v4151_v9  ;;  %1587 = vrot.lane.b32.xlu1 %v12883_v53, %s16719_s23 }
 0x293   : > { %1585 = vrot.lane.b32.xlu0 %v12886_v59, %s16719_s23 }
 0x294   : > { %v1198_v48 = vpop.permute.xlu1 %1197 }
 0x295   : > { %1281 = vst.msk [vmem:[#allocation2 + $0xd0] sm:$0xff] %vm1267_vm3, %v1198_v48  ;;  %v1196_v63 = vpop.permute.xlu0 %1195 }
 0x296   : > { %1280 = vst.msk [vmem:[#allocation2 + $0xc0] sm:$0xff] %vm1267_vm3, %v1196_v63  ;;  %3128 = vrot.lane.b32.xlu1 %v12913_v50, %s16731_s5 }
 0x297   : > { %3126 = vrot.lane.b32.xlu0 %v12920_v7, %s16731_s5 }
 0x298   : > { %v2739_v28 = vpop.permute.xlu1 %2738 }
 0x299   : > { %2824 = vst.msk [vmem:[#allocation2 + $0xb0] sm:$0xff] %vm2812_vm11, %v2739_v28  ;;  %v2737_v53 = vpop.permute.xlu0 %2736 }
 0x29a   : > { %2823 = vst.msk [vmem:[#allocation2 + $0xa0] sm:$0xff] %vm2812_vm11, %v2737_v53  ;;  %4733 = vrot.lane.b32.xlu1 %v13151_v54, %s16720_s26 }
 0x29b   : > { %4731 = vrot.lane.b32.xlu0 %v13154_v0, %s16720_s26 }
 0x29c   : > { %v4345_v59 = vpop.permute.xlu1 %4344 }
 0x29d   : > { %4429 = vst.msk [vmem:[#allocation2 + $0xb8] sm:$0xff] %vm16774_vm5, %v4345_v59  ;;  %v4343_v3 = vpop.permute.xlu0 %4342  ;;  %vm16778_vm5 = vcmask 851712   ;;  %v13305_v59 = vld [vmem:[%s11843_s4 + $0xe5] sm:$0xff] }
 0x29e   : > { %4428 = vst.msk [vmem:[#allocation2 + $0xa8] sm:$0xff] %vm16775_vm13, %v4343_v3  ;;  %1780 = vrot.lane.b32.xlu1 %v12913_v50, %s16720_s26  ;;  %vm16779_vm13 = vmmov %vm16778_vm5 }
 0x29f   : > { %v5325_v6 = vpop.f32.mrb[8].mxu0  ;;  %1778 = vrot.lane.b32.xlu0 %v12920_v7, %s16720_s26 }
 0x2a0   : > { %v5326_v8 = vadd.f32 %v12788_v60, %v5325_v6  ;;  %v5327_v11 = vpop.f32.mrb[9].mxu0  ;;  %v1391_v12 = vpop.permute.xlu1 %1390 }
 0x2a1   : > { %v5328_v25 = vpop.f32.mrb[10].mxu0  ;;  %1474 = vst.msk [vmem:[#allocation2 + $0xd0] sm:$0xff] %vm16776_vm4, %v1391_v12  ;;  %v1389_v58 = vpop.permute.xlu0 %1388  ;;  %vm16692_vm4 = vcmask 261120  }
 0x2a2   : > { %v5440_v22 = vmax.f32 %v5326_v8, 0.0  ;;  %v5329_v62 = vadd.f32 %v12788_v60, %v5328_v25  ;;  %v5330_v17 = vpop.f32.mrb[11].mxu0  ;;  %1473 = vst.msk [vmem:[#allocation2 + $0xc0] sm:$0xff] %vm16777_vm12, %v1389_v58  ;;  %3322 = vrot.lane.b32.xlu1 %v12941_v19, %s16732_s3  ;;  %vm16780_vm12 = vcmask 392512  }
 0x2a3   : > { %3320 = vrot.lane.b32.xlu0 %v12944_v61, %s16732_s3  ;;  %5476 = vst.msk [vmem:[#allocation3 + $0x30] sm:$0xff] %vm16692_vm4, %v11677_v47  ;;  %5477 = vst.msk [vmem:[#allocation3 + $0x38] sm:$0xff] %vm16692_vm4, %v11677_v47  ;;  %v13331_v17 = vld [vmem:[%s11843_s4 + $0x10a] sm:$0xff] }
 0x2a4   : > { %v5441_v50 = vmax.f32 %v5329_v62, 0.0  ;;  %v2932_v7 = vpop.permute.xlu1 %2931  ;;  %v5528_v55 = vmax.f32 %v5440_v22, 0.0  ;;  %5469 = vst.msk [vmem:[#allocation3] sm:$0xff] %vm16692_vm4, %v11677_v47  ;;  %5470 = vst.msk [vmem:[#allocation3 + $0x8] sm:$0xff] %vm16692_vm4, %v11677_v47  ;;  %v13328_v62 = vld [vmem:[%s11843_s4 + $0x112] sm:$0xff] }
 0x2a5   : > { %3017 = vst.msk [vmem:[#allocation2 + $0xb0] sm:$0xff] %vm16778_vm5, %v2932_v7  ;;  %v2930_v24 = vpop.permute.xlu0 %2929  ;;  %vm16781_vm5 = vmmov %vm16780_vm12 }
 0x2a6   : > { %v5529_v21 = vmax.f32 %v5441_v50, 0.0  ;;  %3016 = vst.msk [vmem:[#allocation2 + $0xa0] sm:$0xff] %vm16779_vm13, %v2930_v24  ;;  %4925 = vrot.lane.b32.xlu1 %v12905_v49, %s16721_s28  ;;  %vm5471_vm13 = vcmask 254976   ;;  %v13343_v50 = vld [vmem:[%s11843_s4 + $0xde] sm:$0xff] }
 0x2a7   : > { %4923 = vrot.lane.b32.xlu0 %v12908_v18, %s16721_s28  ;;  %5473 = vst.msk [vmem:[#allocation3 + $0x18] sm:$0xff] %vm16692_vm4, %v11677_v47  ;;  %5474 = vst.msk [vmem:[#allocation3 + $0x20] sm:$0xff] %vm16692_vm4, %v11677_v47 }
 0x2a8   : > { %v5558_v60 = vpack.c.bf16 %v5529_v21, %v5528_v55  ;;  %5479 = vst.msk [vmem:[#allocation3 + $0x48] sm:$0xff] %vm16692_vm4, %v11677_v47  ;;  %5480 = vst.msk [vmem:[#allocation3 + $0x50] sm:$0xff] %vm16692_vm4, %v11677_v47  ;;  %v4538_v20 = vpop.permute.xlu1 %4537 }
 0x2a9   : > { %5482 = vst.msk [vmem:[#allocation3 + $0x60] sm:$0xff] %vm16692_vm4, %v11677_v47  ;;  %5483 = vst.msk [vmem:[#allocation3 + $0x68] sm:$0xff] %vm16692_vm4, %v11677_v47  ;;  %v4536_v15 = vpop.permute.xlu0 %4535 }
 0x2aa   : > { %5485 = vst.msk [vmem:[#allocation3 + $0x78] sm:$0xff] %vm16692_vm4, %v11677_v47  ;;  %5486 = vst.msk [vmem:[#allocation3 + $0x80] sm:$0xff] %vm16692_vm4, %v11677_v47  ;;  %11167 = vmatprep.mubr.msk.bf16.mxu1 %vm5226_vm14, %v5558_v60  ;;  %1974 = vrot.lane.b32.xlu1 %v12941_v19, %s16721_s28 }
 0x2ab   : > { %5488 = vst.msk [vmem:[#allocation3 + $0x90] sm:$0xff] %vm16692_vm4, %v11677_v47  ;;  %5489 = vst.msk [vmem:[#allocation3 + $0x98] sm:$0xff] %vm16692_vm4, %v11677_v47  ;;  %1972 = vrot.lane.b32.xlu0 %v12944_v61, %s16721_s28  ;;  %v673_v61 = vld [vmem:[%s11843_s4 + $0xc8] sm:$0xff] }
 0x2ac   : > { %5491 = vst.msk [vmem:[#allocation3 + $0xa8] sm:$0xff] %vm16692_vm4, %v11677_v47  ;;  %5492 = vst.msk [vmem:[#allocation3 + $0xb0] sm:$0xff] %vm16692_vm4, %v11677_v47  ;;  %v1584_v19 = vpop.permute.xlu1 %1583 }
 0x2ad   : > { %5494 = vst.msk [vmem:[#allocation3 + $0xc0] sm:$0xff] %vm16692_vm4, %v11677_v47  ;;  %5495 = vst.msk [vmem:[#allocation3 + $0xc8] sm:$0xff] %vm16692_vm4, %v11677_v47  ;;  %v1582_v40 = vpop.permute.xlu0 %1581 }
 0x2ae   : > { %5497 = vst.msk [vmem:[#allocation3 + $0xd8] sm:$0xff] %vm16692_vm4, %v11677_v47  ;;  %5498 = vst.msk [vmem:[#allocation3 + $0xe0] sm:$0xff] %vm16692_vm4, %v11677_v47  ;;  %3515 = vrot.lane.b32.xlu1 %v12965_v16, %s16733_s20 }
 0x2af   : > { %5500 = vst.msk [vmem:[#allocation3 + $0xf0] sm:$0xff] %vm16692_vm4, %v11677_v47  ;;  %5501 = vst.msk [vmem:[#allocation3 + $0xf8] sm:$0xff] %vm16692_vm4, %v11677_v47  ;;  %3513 = vrot.lane.b32.xlu0 %v12968_v31, %s16733_s20 }
 0x2b0   : > { %5503 = vst.msk [vmem:[#allocation3 + $0x108] sm:$0xff] %vm16692_vm4, %v11677_v47  ;;  %5504 = vst.msk [vmem:[#allocation3 + $0x110] sm:$0xff] %vm16692_vm4, %v11677_v47  ;;  %v3125_v1 = vpop.permute.xlu1 %3124 }
 0x2b1   : > { %5506 = vst.msk [vmem:[#allocation3 + $0x120] sm:$0xff] %vm16692_vm4, %v11677_v47  ;;  %5507 = vst.msk [vmem:[#allocation3 + $0x128] sm:$0xff] %vm16692_vm4, %v11677_v47  ;;  %v3123_v2 = vpop.permute.xlu0 %3122 }
 0x2b2   : > { %5509 = vst.msk [vmem:[#allocation3 + $0x138] sm:$0xff] %vm16692_vm4, %v11677_v47  ;;  %5510 = vst.msk [vmem:[#allocation3 + $0x140] sm:$0xff] %vm16692_vm4, %v11677_v47  ;;  %2167 = vrot.lane.b32.xlu1 %v12965_v16, %s16722_s22 }
 0x2b3   : > { %5512 = vst.msk [vmem:[#allocation3 + $0x150] sm:$0xff] %vm16692_vm4, %v11677_v47  ;;  %5513 = vst.msk [vmem:[#allocation3 + $0x158] sm:$0xff] %vm16692_vm4, %v11677_v47  ;;  %2165 = vrot.lane.b32.xlu0 %v12968_v31, %s16722_s22 }
 0x2b4   : > { %5515 = vst.msk [vmem:[#allocation3 + $0x168] sm:$0xff] %vm16692_vm4, %v11677_v47  ;;  %5516 = vst.msk [vmem:[#allocation3 + $0x170] sm:$0xff] %vm16692_vm4, %v11677_v47  ;;  %v4730_v57 = vpop.permute.xlu1 %4729 }
 0x2b5   : > { %5518 = vst.msk [vmem:[#allocation3 + $0x180] sm:$0xff] %vm16692_vm4, %v11677_v47  ;;  %5519 = vst.msk [vmem:[#allocation3 + $0x188] sm:$0xff] %vm16692_vm4, %v11677_v47  ;;  %v4728_v35 = vpop.permute.xlu0 %4727 }
 0x2b6   : > { %4622 = vst.msk [vmem:[#allocation2 + $0xb8] sm:$0xff] %vm16780_vm12, %v4538_v20  ;;  %vm16782_vm12 = vmmov %vm16781_vm5  ;;  %3776 = vrot.lane.b32.xlu1 %v13257_v44, %s16723_s30 }
 0x2b7   : > { %4621 = vst.msk [vmem:[#allocation2 + $0xa8] sm:$0xff] %vm16781_vm5, %v4536_v15  ;;  %1666 = vst.msk [vmem:[#allocation2 + $0xc0] sm:$0xff] %vm16781_vm5, %v1582_v40  ;;  %3774 = vrot.lane.b32.xlu0 %v13260_v46, %s16723_s30  ;;  %v13367_v15 = vld [vmem:[%s11843_s4 + $0xf0] sm:$0xff]  ;;  %v13388_v40 = vld [vmem:[%s11843_s4 + $0xf9] sm:$0xff]  ;;  %vm16787_vm5 = vcmask 326912  }
 0x2b8   : > { %5478 = vst.msk [vmem:[#allocation3 + $0x40] sm:$0x3] %vm5471_vm13, %v11677_v47  ;;  %5472 = vst.msk [vmem:[#allocation3 + $0x10] sm:$0x3] %vm5471_vm13, %v11677_v47  ;;  %v1777_v30 = vpop.permute.xlu1 %1776 }
 0x2b9   : > { %5475 = vst.msk [vmem:[#allocation3 + $0x28] sm:$0x3] %vm5471_vm13, %v11677_v47  ;;  %5481 = vst.msk [vmem:[#allocation3 + $0x58] sm:$0x3] %vm5471_vm13, %v11677_v47  ;;  %v1775_v42 = vpop.permute.xlu0 %1774 }
 0x2ba   : > { %5484 = vst.msk [vmem:[#allocation3 + $0x70] sm:$0x3] %vm5471_vm13, %v11677_v47  ;;  %5487 = vst.msk [vmem:[#allocation3 + $0x88] sm:$0x3] %vm5471_vm13, %v11677_v47  ;;  %819 = vrot.lane.b32.xlu1 %v12965_v16, %s16723_s30 }
 0x2bb   : > { %5490 = vst.msk [vmem:[#allocation3 + $0xa0] sm:$0x3] %vm5471_vm13, %v11677_v47  ;;  %5493 = vst.msk [vmem:[#allocation3 + $0xb8] sm:$0x3] %vm5471_vm13, %v11677_v47  ;;  %817 = vrot.lane.b32.xlu0 %v12968_v31, %s16723_s30 }
 0x2bc   : > { %5496 = vst.msk [vmem:[#allocation3 + $0xd0] sm:$0x3] %vm5471_vm13, %v11677_v47  ;;  %5499 = vst.msk [vmem:[#allocation3 + $0xe8] sm:$0x3] %vm5471_vm13, %v11677_v47  ;;  %v3319_v51 = vpop.permute.xlu1 %3318 }
 0x2bd   : > { %5502 = vst.msk [vmem:[#allocation3 + $0x100] sm:$0x3] %vm5471_vm13, %v11677_v47  ;;  %5505 = vst.msk [vmem:[#allocation3 + $0x118] sm:$0x3] %vm5471_vm13, %v11677_v47  ;;  %v3317_v38 = vpop.permute.xlu0 %3316 }
 0x2be   : > { %5508 = vst.msk [vmem:[#allocation3 + $0x130] sm:$0x3] %vm5471_vm13, %v11677_v47  ;;  %5511 = vst.msk [vmem:[#allocation3 + $0x148] sm:$0x3] %vm5471_vm13, %v11677_v47  ;;  %2360 = vrot.lane.b32.xlu1 %v12715_v23, %s16724_s0 }
 0x2bf   : > { %5514 = vst.msk [vmem:[#allocation3 + $0x160] sm:$0x3] %vm5471_vm13, %v11677_v47  ;;  %5517 = vst.msk [vmem:[#allocation3 + $0x178] sm:$0x3] %vm5471_vm13, %v11677_v47  ;;  %2358 = vrot.lane.b32.xlu0 %v12718_v26, %s16724_s0 }
 0x2c0   : > { %5520 = vst.msk [vmem:[#allocation3 + $0x190] sm:$0x3] %vm5471_vm13, %v11677_v47  ;;  %vm16783_vm13 = vcmask 917312   ;;  %v4922_v39 = vpop.permute.xlu1 %4921  ;;  %v13364_v47 = vld [vmem:[%s11843_s4 + $0xf8] sm:$0xff] }
 0x2c1   : > { %1667 = vst.msk [vmem:[#allocation2 + $0xd0] sm:$0xff] %vm16782_vm12, %v1584_v19  ;;  %vm16784_vm4 = vmmov %vm16783_vm13  ;;  %v4920_v16 = vpop.permute.xlu0 %4919 }
 0x2c2   : > { %706 = vst.msk [vmem:[#allocation2 + $0x110] sm:$0xff] %vm688_vm0, %v673_v61  ;;  %3968 = vrot.lane.b32.xlu1 %v13281_v33, %s16725_s29  ;;  %3669 = vst.msk [vmem:[#allocation2 + $0x138] sm:$0xff] %vm688_vm0, %v13328_v62 }
 0x2c3   : > { %3210 = vst.msk [vmem:[#allocation2 + $0xb0] sm:$0xff] %vm16783_vm13, %v3125_v1  ;;  %3966 = vrot.lane.b32.xlu0 %v13284_v43, %s16725_s29  ;;  %vm16788_vm13 = vmmov %vm16787_vm5 }
 0x2c4   : > { %3209 = vst.msk [vmem:[#allocation2 + $0xa0] sm:$0xff] %vm16784_vm4, %v3123_v2  ;;  %vm16785_vm4 = vcmask 982912   ;;  %v1971_v31 = vpop.permute.xlu1 %1970  ;;  %v13391_v2 = vld [vmem:[%s11843_s4 + $0xf1] sm:$0xff] }
 0x2c5   : > { %4814 = vst.msk [vmem:[#allocation2 + $0xb8] sm:$0xff] %vm1846_vm6, %v4730_v57  ;;  %4813 = vst.msk [vmem:[#allocation2 + $0xa8] sm:$0xff] %vm1846_vm6, %v4728_v35  ;;  %v1969_v56 = vpop.permute.xlu0 %1968 }
 0x2c6   : > { %1860 = vst.msk [vmem:[#allocation2 + $0xd0] sm:$0xff] %vm1846_vm6, %v1777_v30  ;;  %1859 = vst.msk [vmem:[#allocation2 + $0xc0] sm:$0xff] %vm1846_vm6, %v1775_v42  ;;  %1012 = vrot.lane.b32.xlu1 %v12715_v23, %s16725_s29  ;;  %v13408_v30 = vld [vmem:[%s16745_s16] ss:$0 sm:$0xff] }
 0x2c7   : > { %3404 = vst.msk [vmem:[#allocation2 + $0xb0] sm:$0xff] %vm16785_vm4, %v3319_v51  ;;  %vm16786_vm12 = vmmov %vm16785_vm4  ;;  %1010 = vrot.lane.b32.xlu0 %v12718_v26, %s16725_s29  ;;  %v13309_v26 = vld [vmem:[%s11843_s4 + $0xdd] sm:$0xff] }
 0x2c8   : > { %3403 = vst.msk [vmem:[#allocation2 + $0xa0] sm:$0xff] %vm16786_vm12, %v3317_v38  ;;  %v3512_v9 = vpop.permute.xlu1 %3511  ;;  %vm16789_vm4 = vmmov %vm16787_vm5 }
 0x2c9   : > { %5006 = vst.msk [vmem:[#allocation2 + $0xb8] sm:$0xff] %vm2040_vm7, %v4922_v39  ;;  %5005 = vst.msk [vmem:[#allocation2 + $0xa8] sm:$0xff] %vm2040_vm7, %v4920_v16  ;;  %v3510_v63 = vpop.permute.xlu0 %3509 }
 0x2ca   : > { %2054 = vst.msk [vmem:[#allocation2 + $0xd0] sm:$0xff] %vm2040_vm7, %v1971_v31  ;;  %2053 = vst.msk [vmem:[#allocation2 + $0xc0] sm:$0xff] %vm2040_vm7, %v1969_v56  ;;  %2553 = vrot.lane.b32.xlu1 %v13020_v10, %s16726_s1 }
 0x2cb   : > { %3597 = vst.msk [vmem:[#allocation2 + $0xb0] sm:$0xff] %vm3585_vm15, %v3512_v9  ;;  %3596 = vst.msk [vmem:[#allocation2 + $0xa0] sm:$0xff] %vm3585_vm15, %v3510_v63  ;;  %2551 = vrot.lane.b32.xlu0 %v13023_v29, %s16726_s1 }
 0x2cc   : > { %v2164_v23 = vpop.permute.xlu1 %2163  ;;  %3668 = vst.msk [vmem:[#allocation2 + $0x128] sm:$0xff] %vm688_vm0, %v13331_v17  ;;  %vm16790_vm12 = vmmov %vm16789_vm4 }
 0x2cd   : > { %2247 = vst.msk [vmem:[#allocation2 + $0xd0] sm:$0xff] %vm2233_vm8, %v2164_v23  ;;  %v2162_v3 = vpop.permute.xlu0 %2161 }
 0x2ce   : > { %2246 = vst.msk [vmem:[#allocation2 + $0xc0] sm:$0xff] %vm2233_vm8, %v2162_v3  ;;  %4160 = vrot.lane.b32.xlu1 %v13305_v59, %s16727_s24 }
 0x2cf   : > { %4158 = vrot.lane.b32.xlu0 %v13309_v26, %s16727_s24 }
 0x2d0   : > { %v5050_v48 = vld [vmem:[#allocation2 + $0xb8] sm:$0xff]  ;;  %v5048_v28 = vld [vmem:[#allocation2 + $0xa8] sm:$0xff]  ;;  %v3773_v6 = vpop.permute.xlu1 %3772 }
 0x2d1   : > { %v5102_v53 = vpack.c.bf16 %v5050_v48, %v5048_v28  ;;  %3855 = vst.msk [vmem:[#allocation2 + $0xd8] sm:$0xff] %vm881_vm1, %v3773_v6  ;;  %v3771_v11 = vpop.permute.xlu0 %3770 }
 0x2d2   : > { %v5049_v8 = vld [vmem:[#allocation2 + $0xb0] sm:$0xff]  ;;  %v5047_v12 = vld [vmem:[#allocation2 + $0xa0] sm:$0xff]  ;;  %3854 = vst.msk [vmem:[#allocation2 + $0xc8] sm:$0xff] %vm881_vm1, %v3771_v11  ;;  %1205 = vrot.lane.b32.xlu1 %v13020_v10, %s16727_s24  ;;  %v674_v11 = vld [vmem:[%s11843_s4 + $0xd8] sm:$0xff] }
 0x2d3   : > { %10764 = vmatprep.mubr.msk.bf16.mxu0 %vm5226_vm14, %v5102_v53  ;;  %v5101_v25 = vpack.c.bf16 %v5049_v8, %v5047_v12  ;;  %1203 = vrot.lane.b32.xlu0 %v13023_v29, %s16727_s24  ;;  %v13336_v10 = vld [vmem:[%s11843_s4 + $0xe6] sm:$0xff]  ;;  %707 = vst.msk [vmem:[#allocation2 + $0x120] sm:$0xff] %vm688_vm0, %v674_v11 }
 0x2d4   : > { %v816_v22 = vpop.permute.xlu1 %815  ;;  %v675_v8 = vld [vmem:[%s11843_s4 + $0xe0] sm:$0xff] }
 0x2d5   : > { %5348 = vmatmul.mubr.bf16.gmra.mrb[20].mxu0 %v5101_v25  ;;  %897 = vst.msk [vmem:[#allocation2 + $0xf0] sm:$0xff] %vm881_vm1, %v816_v22  ;;  %v814_v58 = vpop.permute.xlu0 %813  ;;  %v13448_v25 = vld [vmem:[%s11843_s4 + $0xfb] sm:$0xff] }
 0x2d6   : > { %896 = vst.msk [vmem:[#allocation2 + $0xe0] sm:$0xff] %vm881_vm1, %v814_v58  ;;  %2746 = vrot.lane.b32.xlu1 %v13044_v13, %s16728_s2  ;;  %v13451_v58 = vld [vmem:[%s11843_s4 + $0xf3] sm:$0xff] }
 0x2d7   : > { %2744 = vrot.lane.b32.xlu0 %v13047_v52, %s16728_s2  ;;  %708 = vst.msk [vmem:[#allocation2 + $0x130] sm:$0xff] %vm688_vm0, %v675_v8 }
 0x2d8   : > { %v2357_v29 = vpop.permute.xlu1 %2356 }
 0x2d9   : > { %2440 = vst.msk [vmem:[#allocation2 + $0xd0] sm:$0xff] %vm16693_vm9, %v2357_v29  ;;  %v2355_v7 = vpop.permute.xlu0 %2354 }
 0x2da   : > { %2439 = vst.msk [vmem:[#allocation2 + $0xc0] sm:$0xff] %vm16693_vm9, %v2355_v7  ;;  %4352 = vrot.lane.b32.xlu1 %v13336_v10, %s16729_s27 }
 0x2db   : > { %4350 = vrot.lane.b32.xlu0 %v13343_v50, %s16729_s27 }
 0x2dc   : > { %v3965_v55 = vpop.permute.xlu1 %3964 }
 0x2dd   : > { %4047 = vst.msk [vmem:[#allocation2 + $0xd8] sm:$0xff] %vm1074_vm2, %v3965_v55  ;;  %v3963_v21 = vpop.permute.xlu0 %3962 }
 0x2de   : > { %4046 = vst.msk [vmem:[#allocation2 + $0xc8] sm:$0xff] %vm1074_vm2, %v3963_v21  ;;  %1398 = vrot.lane.b32.xlu1 %v13044_v13, %s16729_s27 }
 0x2df   : > { %1396 = vrot.lane.b32.xlu0 %v13047_v52, %s16729_s27 }
 0x2e0   : > { %v1009_v24 = vpop.permute.xlu1 %1008 }
 0x2e1   : > { %1090 = vst.msk [vmem:[#allocation2 + $0xf0] sm:$0xff] %vm1074_vm2, %v1009_v24  ;;  %v1007_v60 = vpop.permute.xlu0 %1006 }
 0x2e2   : > { %1089 = vst.msk [vmem:[#allocation2 + $0xe0] sm:$0xff] %vm1074_vm2, %v1007_v60  ;;  %2939 = vrot.lane.b32.xlu1 %v13069_v4, %s16730_s21  ;;  %v13472_v60 = vld [vmem:[%s11843_s4 + $0xfc] sm:$0xff] }
 0x2e3   : > { %2937 = vrot.lane.b32.xlu0 %v13072_v34, %s16730_s21 }
 0x2e4   : > { %v2550_v20 = vpop.permute.xlu1 %2549 }
 0x2e5   : > { %2633 = vst.msk [vmem:[#allocation2 + $0xd0] sm:$0xff] %vm2619_vm10, %v2550_v20  ;;  %v2548_v13 = vpop.permute.xlu0 %2547 }
 0x2e6   : > { %2632 = vst.msk [vmem:[#allocation2 + $0xc0] sm:$0xff] %vm2619_vm10, %v2548_v13  ;;  %4545 = vrot.lane.b32.xlu1 %v13364_v47, %s16719_s23  ;;  %v13475_v13 = vld [vmem:[%s11843_s4 + $0xf4] sm:$0xff] }
 0x2e7   : > { %4543 = vrot.lane.b32.xlu0 %v13367_v15, %s16719_s23 }
 0x2e8   : > { %v4157_v52 = vpop.permute.xlu1 %4156 }
 0x2e9   : > { %4239 = vst.msk [vmem:[#allocation2 + $0xd8] sm:$0xff] %vm1267_vm3, %v4157_v52  ;;  %v4155_v19 = vpop.permute.xlu0 %4154 }
 0x2ea   : > { %4238 = vst.msk [vmem:[#allocation2 + $0xc8] sm:$0xff] %vm1267_vm3, %v4155_v19  ;;  %1591 = vrot.lane.b32.xlu1 %v13069_v4, %s16719_s23 }
 0x2eb   : > { %1589 = vrot.lane.b32.xlu0 %v13072_v34, %s16719_s23 }
 0x2ec   : > { %v1202_v61 = vpop.permute.xlu1 %1201 }
 0x2ed   : > { %1283 = vst.msk [vmem:[#allocation2 + $0xf0] sm:$0xff] %vm1267_vm3, %v1202_v61  ;;  %v1200_v36 = vpop.permute.xlu0 %1199 }
 0x2ee   : > { %1282 = vst.msk [vmem:[#allocation2 + $0xe0] sm:$0xff] %vm1267_vm3, %v1200_v36  ;;  %3132 = vrot.lane.b32.xlu1 %v13099_v14, %s16731_s5 }
 0x2ef   : > { %3130 = vrot.lane.b32.xlu0 %v13106_v27, %s16731_s5 }
 0x2f0   : > { %v2743_v1 = vpop.permute.xlu1 %2742 }
 0x2f1   : > { %2826 = vst.msk [vmem:[#allocation2 + $0xd0] sm:$0xff] %vm2812_vm11, %v2743_v1  ;;  %v2741_v4 = vpop.permute.xlu0 %2740 }
 0x2f2   : > { %2825 = vst.msk [vmem:[#allocation2 + $0xc0] sm:$0xff] %vm2812_vm11, %v2741_v4  ;;  %4737 = vrot.lane.b32.xlu1 %v13388_v40, %s16720_s26 }
 0x2f3   : > { %4735 = vrot.lane.b32.xlu0 %v13391_v2, %s16720_s26 }
 0x2f4   : > { %v4349_v34 = vpop.permute.xlu1 %4348 }
 0x2f5   : > { %4431 = vst.msk [vmem:[#allocation2 + $0xd8] sm:$0xff] %vm16787_vm5, %v4349_v34  ;;  %v4347_v57 = vpop.permute.xlu0 %4346  ;;  %vm16791_vm5 = vcmask 851712  }
 0x2f6   : > { %4430 = vst.msk [vmem:[#allocation2 + $0xc8] sm:$0xff] %vm16788_vm13, %v4347_v57  ;;  %1784 = vrot.lane.b32.xlu1 %v13099_v14, %s16720_s26  ;;  %vm16792_vm13 = vmmov %vm16791_vm5  ;;  %v13505_v57 = vld [vmem:[%s11843_s4 + $0xf5] sm:$0xff] }
 0x2f7   : > { %v5333_v35 = vpop.f32.mrb[12].mxu0  ;;  %1782 = vrot.lane.b32.xlu0 %v13106_v27, %s16720_s26 }
 0x2f8   : > { %v5334_v42 = vadd.f32 %v13408_v30, %v5333_v35  ;;  %v5335_v51 = vpop.f32.mrb[13].mxu0  ;;  %v1395_v38 = vpop.permute.xlu1 %1394 }
 0x2f9   : > { %v5336_v39 = vpop.f32.mrb[14].mxu0  ;;  %1476 = vst.msk [vmem:[#allocation2 + $0xf0] sm:$0xff] %vm16789_vm4, %v1395_v38  ;;  %v1393_v31 = vpop.permute.xlu0 %1392  ;;  %vm16793_vm4 = vcmask 392512  }
 0x2fa   : > { %v5442_v16 = vmax.f32 %v5334_v42, 0.0  ;;  %v5337_v14 = vadd.f32 %v13408_v30, %v5336_v39  ;;  %v5338_v56 = vpop.f32.mrb[15].mxu0  ;;  %1475 = vst.msk [vmem:[#allocation2 + $0xe0] sm:$0xff] %vm16790_vm12, %v1393_v31  ;;  %3326 = vrot.lane.b32.xlu1 %v13127_v32, %s16732_s3  ;;  %vm16794_vm12 = vmmov %vm16793_vm4 }
 0x2fb   : > { %3324 = vrot.lane.b32.xlu0 %v13130_v5, %s16732_s3 }
 0x2fc   : > { %v5443_v27 = vmax.f32 %v5337_v14, 0.0  ;;  %v2936_v9 = vpop.permute.xlu1 %2935  ;;  %v5530_v48 = vmax.f32 %v5442_v16, 0.0 }
 0x2fd   : > { %3019 = vst.msk [vmem:[#allocation2 + $0xd0] sm:$0xff] %vm16791_vm5, %v2936_v9  ;;  %v2934_v28 = vpop.permute.xlu0 %2933  ;;  %vm16795_vm5 = vmmov %vm16793_vm4 }
 0x2fe   : > { %v5531_v63 = vmax.f32 %v5443_v27, 0.0  ;;  %3018 = vst.msk [vmem:[#allocation2 + $0xc0] sm:$0xff] %vm16792_vm13, %v2934_v28  ;;  %4929 = vrot.lane.b32.xlu1 %v13091_v45, %s16721_s28  ;;  %vm16796_vm13 = vmmov %vm16793_vm4 }
 0x2ff   : > { %4927 = vrot.lane.b32.xlu0 %v13094_v41, %s16721_s28 }
 0x300   : > { %v5559_v53 = vpack.c.bf16 %v5531_v63, %v5530_v48  ;;  %v4542_v23 = vpop.permute.xlu1 %4541 }
 0x301   : > { %4624 = vst.msk [vmem:[#allocation2 + $0xd8] sm:$0xff] %vm16793_vm4, %v4542_v23  ;;  %v4540_v3 = vpop.permute.xlu0 %4539  ;;  %vm16797_vm4 = vcmask 917312  }
 0x302   : > { %11168 = vmatmul.mubr.msk.bf16.gmra.mrb[4].mxu1 %vm5226_vm14, %v5559_v53  ;;  %4623 = vst.msk [vmem:[#allocation2 + $0xc8] sm:$0xff] %vm16794_vm12, %v4540_v3  ;;  %1978 = vrot.lane.b32.xlu1 %v13127_v32, %s16721_s28  ;;  %vm16798_vm12 = vmmov %vm16797_vm4 }
 0x303   : > { %1976 = vrot.lane.b32.xlu0 %v13130_v5, %s16721_s28 }
 0x304   : > { %v1588_v6 = vpop.permute.xlu1 %1587 }
 0x305   : > { %1669 = vst.msk [vmem:[#allocation2 + $0xf0] sm:$0xff] %vm16795_vm5, %v1588_v6  ;;  %v1586_v12 = vpop.permute.xlu0 %1585  ;;  %vm16799_vm5 = vcmask 982912  }
 0x306   : > { %1668 = vst.msk [vmem:[#allocation2 + $0xe0] sm:$0xff] %vm16796_vm13, %v1586_v12  ;;  %3519 = vrot.lane.b32.xlu1 %v13151_v54, %s16733_s20  ;;  %vm16800_vm13 = vmmov %vm16799_vm5  ;;  %v13535_v12 = vld [vmem:[%s11843_s4 + $0x122] sm:$0xff] }
 0x307   : > { %3517 = vrot.lane.b32.xlu0 %v13154_v0, %s16733_s20  ;;  %3670 = vst.msk [vmem:[#allocation2 + $0x148] sm:$0xff] %vm688_vm0, %v13535_v12 }
 0x308   : > { %v3129_v32 = vpop.permute.xlu1 %3128 }
 0x309   : > { %3212 = vst.msk [vmem:[#allocation2 + $0xd0] sm:$0xff] %vm16797_vm4, %v3129_v32  ;;  %v3127_v5 = vpop.permute.xlu0 %3126  ;;  %vm16802_vm4 = vcmask 261120  }
 0x30a   : > { %3211 = vst.msk [vmem:[#allocation2 + $0xc0] sm:$0xff] %vm16798_vm12, %v3127_v5  ;;  %2171 = vrot.lane.b32.xlu1 %v13151_v54, %s16722_s22  ;;  %vm16803_vm12 = vmmov %vm16802_vm4  ;;  %v13547_v5 = vld [vmem:[%s11843_s4 + $0xf6] sm:$0xff] }
 0x30b   : > { %2169 = vrot.lane.b32.xlu0 %v13154_v0, %s16722_s22 }
 0x30c   : > { %v4734_v22 = vpop.permute.xlu1 %4733 }
 0x30d   : > { %4816 = vst.msk [vmem:[#allocation2 + $0xd8] sm:$0xff] %vm1846_vm6, %v4734_v22  ;;  %v4732_v29 = vpop.permute.xlu0 %4731 }
 0x30e   : > { %4815 = vst.msk [vmem:[#allocation2 + $0xc8] sm:$0xff] %vm1846_vm6, %v4732_v29  ;;  %3780 = vrot.lane.b32.xlu1 %v13448_v25, %s16723_s30 }
 0x30f   : > { %3778 = vrot.lane.b32.xlu0 %v13451_v58, %s16723_s30 }
 0x310   : > { %v1781_v7 = vpop.permute.xlu1 %1780 }
 0x311   : > { %1862 = vst.msk [vmem:[#allocation2 + $0xf0] sm:$0xff] %vm1846_vm6, %v1781_v7  ;;  %v1779_v55 = vpop.permute.xlu0 %1778 }
 0x312   : > { %1861 = vst.msk [vmem:[#allocation2 + $0xe0] sm:$0xff] %vm1846_vm6, %v1779_v55  ;;  %823 = vrot.lane.b32.xlu1 %v13151_v54, %s16723_s30 }
 0x313   : > { %821 = vrot.lane.b32.xlu0 %v13154_v0, %s16723_s30 }
 0x314   : > { %v3323_v21 = vpop.permute.xlu1 %3322 }
 0x315   : > { %3406 = vst.msk [vmem:[#allocation2 + $0xd0] sm:$0xff] %vm16799_vm5, %v3323_v21  ;;  %v3321_v24 = vpop.permute.xlu0 %3320  ;;  %vm16804_vm5 = vmmov %vm16802_vm4 }
 0x316   : > { %3405 = vst.msk [vmem:[#allocation2 + $0xc0] sm:$0xff] %vm16800_vm13, %v3321_v24  ;;  %2364 = vrot.lane.b32.xlu1 %v12905_v49, %s16724_s0  ;;  %vm16805_vm13 = vmmov %vm16802_vm4 }
 0x317   : > { %2362 = vrot.lane.b32.xlu0 %v12908_v18, %s16724_s0 }
 0x318   : > { %v4926_v20 = vpop.permute.xlu1 %4925 }
 0x319   : > { %5008 = vst.msk [vmem:[#allocation2 + $0xd8] sm:$0xff] %vm2040_vm7, %v4926_v20  ;;  %v4924_v54 = vpop.permute.xlu0 %4923 }
 0x31a   : > { %5007 = vst.msk [vmem:[#allocation2 + $0xc8] sm:$0xff] %vm2040_vm7, %v4924_v54  ;;  %3972 = vrot.lane.b32.xlu1 %v13472_v60, %s16725_s29 }
 0x31b   : > { %3970 = vrot.lane.b32.xlu0 %v13475_v13, %s16725_s29 }
 0x31c   : > { %v1975_v0 = vpop.permute.xlu1 %1974 }
 0x31d   : > { %2056 = vst.msk [vmem:[#allocation2 + $0xf0] sm:$0xff] %vm2040_vm7, %v1975_v0  ;;  %v1973_v52 = vpop.permute.xlu0 %1972 }
 0x31e   : > { %2055 = vst.msk [vmem:[#allocation2 + $0xe0] sm:$0xff] %vm2040_vm7, %v1973_v52  ;;  %1016 = vrot.lane.b32.xlu1 %v12905_v49, %s16725_s29  ;;  %v13498_v49 = vld [vmem:[%s16801_s18] ss:$0 sm:$0xff] }
 0x31f   : > { %1014 = vrot.lane.b32.xlu0 %v12908_v18, %s16725_s29  ;;  %v13501_v18 = vld [vmem:[%s11843_s4 + $0xfd] sm:$0xff] }
 0x320   : > { %v3516_v19 = vpop.permute.xlu1 %3515  ;;  %v5054_v61 = vld [vmem:[#allocation2 + $0xd8] sm:$0xff] }
 0x321   : > { %3599 = vst.msk [vmem:[#allocation2 + $0xd0] sm:$0xff] %vm3585_vm15, %v3516_v19  ;;  %v3514_v36 = vpop.permute.xlu0 %3513  ;;  %v5052_v1 = vld [vmem:[#allocation2 + $0xc8] sm:$0xff] }
 0x322   : > { %3598 = vst.msk [vmem:[#allocation2 + $0xc0] sm:$0xff] %vm3585_vm15, %v3514_v36  ;;  %2557 = vrot.lane.b32.xlu1 %v13257_v44, %s16726_s1  ;;  %v5104_v4 = vpack.c.bf16 %v5054_v61, %v5052_v1  ;;  %v13588_v1 = vld [vmem:[%s11843_s4 + $0x110] sm:$0xff] }
 0x323   : > { %2555 = vrot.lane.b32.xlu0 %v13260_v46, %s16726_s1 }
 0x324   : > { %10765 = vmatprep.mubr.msk.bf16.mxu0 %vm5226_vm14, %v5104_v4  ;;  %v2168_v34 = vpop.permute.xlu1 %2167 }
 0x325   : > { %2249 = vst.msk [vmem:[#allocation2 + $0xf0] sm:$0xff] %vm2233_vm8, %v2168_v34  ;;  %v2166_v35 = vpop.permute.xlu0 %2165  ;;  %v11165_v42 = vpop.f32.mrb[0].mxu1  ;;  %v13591_v34 = vld [vmem:[%s11843_s4 + $0x108] sm:$0xff] }
 0x326   : > { %2248 = vst.msk [vmem:[#allocation2 + $0xe0] sm:$0xff] %vm2233_vm8, %v2166_v35  ;;  %v5702_v51 = vadd.f32 %v11165_v42, %v13498_v49  ;;  %v5693_v38 = vpop.f32.mrb[1].mxu1  ;;  %4164 = vrot.lane.b32.xlu1 %v13501_v18, %s16727_s24 }
 0x327   : > { %v5694_v39 = vadd.f32 %v13498_v49, %v5693_v38  ;;  %4162 = vrot.lane.b32.xlu0 %v13505_v57, %s16727_s24  ;;  %v11166_v16 = vpop.f32.mrb[2].mxu1  ;;  %v13612_v38 = vld [vmem:[%s11843_s4 + $0x111] sm:$0xff] }
 0x328   : > { %v5822_v31 = vmax.f32 %v5702_v51, 0.0  ;;  %v5705_v14 = vadd.f32 %v11166_v16, %v13498_v49  ;;  %v5696_v56 = vpop.f32.mrb[3].mxu1  ;;  %v3777_v27 = vpop.permute.xlu1 %3776  ;;  %v5053_v9 = vld [vmem:[#allocation2 + $0xd0] sm:$0xff] }
 0x329   : > { %v5820_v48 = vmax.f32 %v5694_v39, 0.0  ;;  %v5697_v63 = vadd.f32 %v13498_v49, %v5696_v56  ;;  %3857 = vst.msk [vmem:[#allocation2 + $0xf8] sm:$0xff] %vm881_vm1, %v3777_v27  ;;  %v3775_v28 = vpop.permute.xlu0 %3774  ;;  %v5051_v53 = vld [vmem:[#allocation2 + $0xc0] sm:$0xff]  ;;  %v13615_v16 = vld [vmem:[%s11843_s4 + $0x109] sm:$0xff] }
 0x32a   : > { %5855 = vst.msk [vmem:[#allocation3 + $0x31] sm:$0xff] %vm16802_vm4, %v5822_v31  ;;  %v5823_v23 = vmax.f32 %v5705_v14, 0.0  ;;  %1209 = vrot.lane.b32.xlu1 %v13257_v44, %s16727_s24  ;;  %v5103_v3 = vpack.c.bf16 %v5053_v9, %v5051_v53  ;;  %v13532_v44 = vld [vmem:[%s11843_s4 + $0x12a] sm:$0xff] }
 0x32b   : > { %3856 = vst.msk [vmem:[#allocation2 + $0xe8] sm:$0xff] %vm881_vm1, %v3775_v28  ;;  %v5821_v6 = vmax.f32 %v5697_v63, 0.0  ;;  %1207 = vrot.lane.b32.xlu0 %v13260_v46, %s16727_s24  ;;  %v13540_v46 = vld [vmem:[%s11843_s4 + $0xfe] sm:$0xff] }
 0x32c   : > { %5853 = vst.msk [vmem:[#allocation3 + $0x19] sm:$0xff] %vm16803_vm12, %v5820_v48  ;;  %5356 = vmatmul.mubr.bf16.gmra.mrb[24].mxu0 %v5103_v3  ;;  %v820_v8 = vpop.permute.xlu1 %819  ;;  %vm16806_vm12 = vmmov %vm16802_vm4 }
 0x32d   : > { %5856 = vst.msk [vmem:[#allocation3 + $0x39] sm:$0xff] %vm16804_vm5, %v5823_v23  ;;  %v818_v11 = vpop.permute.xlu0 %817  ;;  %vm16807_vm5 = vmmov %vm16802_vm4 }
 0x32e   : > { %5854 = vst.msk [vmem:[#allocation3 + $0x21] sm:$0xff] %vm16805_vm13, %v5821_v6  ;;  %2750 = vrot.lane.b32.xlu1 %v13281_v33, %s16728_s2  ;;  %vm16808_vm13 = vmmov %vm16802_vm4 }
 0x32f   : > { %899 = vst.msk [vmem:[#allocation2 + $0x110] sm:$0xff] %vm881_vm1, %v820_v8  ;;  %898 = vst.msk [vmem:[#allocation2 + $0x100] sm:$0xff] %vm881_vm1, %v818_v11  ;;  %2748 = vrot.lane.b32.xlu0 %v13284_v43, %s16728_s2 }
 0x330   : > { %3671 = vst.msk [vmem:[#allocation2 + $0x158] sm:$0xff] %vm688_vm0, %v13532_v44  ;;  %v2361_v32 = vpop.permute.xlu1 %2360 }
 0x331   : > { %v6530_v22 = vld [vmem:[#allocation3 + $0x31] sm:$0xff]  ;;  %2442 = vst.msk [vmem:[#allocation2 + $0xf0] sm:$0xff] %vm16693_vm9, %v2361_v32  ;;  %v2359_v29 = vpop.permute.xlu0 %2358 }
 0x332   : > { %v13550_v7 = vld [vmem:[#allocation3 + $0x30] sm:$0xff]  ;;  %6562 = vst.msk [vmem:[#allocation4 + $0x28] sm:$0xff] %vm16802_vm4, %v6530_v22  ;;  %4356 = vrot.lane.b32.xlu1 %v13540_v46, %s16729_s27 }
 0x333   : > { %v6528_v55 = vld [vmem:[#allocation3 + $0x19] sm:$0xff]  ;;  %2441 = vst.msk [vmem:[#allocation2 + $0xe0] sm:$0xff] %vm16693_vm9, %v2359_v29  ;;  %4354 = vrot.lane.b32.xlu0 %v13547_v5, %s16729_s27  ;;  %vm16811_vm9 = vmmov %vm16802_vm4 }
 0x334   : > { %v13556_v21 = vld [vmem:[#allocation3 + $0x18] sm:$0xff]  ;;  %5921 = vst.msk [vmem:[#allocation4 + $0x40] sm:$0xff] %vm16806_vm12, %v13550_v7  ;;  %v3969_v0 = vpop.permute.xlu1 %3968  ;;  %vm16809_vm12 = vmmov %vm16802_vm4 }
 0x335   : > { %6560 = vst.msk [vmem:[#allocation4 + $0x8] sm:$0xff] %vm16807_vm5, %v6528_v55  ;;  %v6531_v24 = vld [vmem:[#allocation3 + $0x39] sm:$0xff]  ;;  %v6529_v54 = vld [vmem:[#allocation3 + $0x21] sm:$0xff]  ;;  %vm16810_vm5 = vmmov %vm16802_vm4  ;;  %v3967_v19 = vpop.permute.xlu0 %3966 }
 0x336   : > { %v13563_v20 = vld [vmem:[#allocation3 + $0x38] sm:$0xff]  ;;  %5919 = vst.msk [vmem:[#allocation4 + $0x20] sm:$0xff] %vm16808_vm13, %v13556_v21  ;;  %v13568_v52 = vld [vmem:[#allocation3 + $0x20] sm:$0xff]  ;;  %1402 = vrot.lane.b32.xlu1 %v13281_v33, %s16729_s27 }
 0x337   : > { %6563 = vst.msk [vmem:[#allocation4 + $0x38] sm:$0xff] %vm16802_vm4, %v6531_v24  ;;  %1400 = vrot.lane.b32.xlu0 %v13284_v43, %s16729_s27  ;;  %v677_v55 = vld [vmem:[%s11843_s4 + $0xf8] sm:$0xff]  ;;  %v676_v24 = vld [vmem:[%s11843_s4 + $0xf0] sm:$0xff] }
 0x338   : > { %5922 = vst.msk [vmem:[#allocation4 + $0x50] sm:$0xff] %vm16809_vm12, %v13563_v20  ;;  %v1013_v61 = vpop.permute.xlu1 %1012 }
 0x339   : > { %6561 = vst.msk [vmem:[#allocation4 + $0x18] sm:$0xff] %vm16810_vm5, %v6529_v54  ;;  %v1011_v36 = vpop.permute.xlu0 %1010  ;;  %vm16816_vm5 = vcmask 851712  }
 0x33a   : > { %4049 = vst.msk [vmem:[#allocation2 + $0xf8] sm:$0xff] %vm1074_vm2, %v3969_v0  ;;  %4048 = vst.msk [vmem:[#allocation2 + $0xe8] sm:$0xff] %vm1074_vm2, %v3967_v19  ;;  %2943 = vrot.lane.b32.xlu1 %v13305_v59, %s16730_s21  ;;  %v13667_v0 = vld [vmem:[%s11843_s4 + $0x113] sm:$0xff] }
 0x33b   : > { %5920 = vst.msk [vmem:[#allocation4 + $0x30] sm:$0xff] %vm16811_vm9, %v13568_v52  ;;  %2941 = vrot.lane.b32.xlu0 %v13309_v26, %s16730_s21  ;;  %vm16812_vm9 = vcmask 326912  }
 0x33c   : > { %1092 = vst.msk [vmem:[#allocation2 + $0x110] sm:$0xff] %vm1074_vm2, %v1013_v61  ;;  %1091 = vst.msk [vmem:[#allocation2 + $0x100] sm:$0xff] %vm1074_vm2, %v1011_v36  ;;  %v2554_v4 = vpop.permute.xlu1 %2553  ;;  %v13670_v61 = vld [vmem:[%s11843_s4 + $0x10b] sm:$0xff] }
 0x33d   : > { %2635 = vst.msk [vmem:[#allocation2 + $0xf0] sm:$0xff] %vm2619_vm10, %v2554_v4  ;;  %v2552_v33 = vpop.permute.xlu0 %2551  ;;  %vm16813_vm13 = vmmov %vm16812_vm9 }
 0x33e   : > { %2634 = vst.msk [vmem:[#allocation2 + $0xe0] sm:$0xff] %vm2619_vm10, %v2552_v33  ;;  %4549 = vrot.lane.b32.xlu1 %v13588_v1, %s16719_s23  ;;  %vm16814_vm4 = vmmov %vm16812_vm9 }
 0x33f   : > { %4547 = vrot.lane.b32.xlu0 %v13591_v34, %s16719_s23  ;;  %vm16815_vm12 = vmmov %vm16814_vm4  ;;  %710 = vst.msk [vmem:[#allocation2 + $0x150] sm:$0xff] %vm688_vm0, %v677_v55 }
 0x340   : > { %v4161_v43 = vpop.permute.xlu1 %4160  ;;  %709 = vst.msk [vmem:[#allocation2 + $0x140] sm:$0xff] %vm688_vm0, %v676_v24 }
 0x341   : > { %4241 = vst.msk [vmem:[#allocation2 + $0xf8] sm:$0xff] %vm1267_vm3, %v4161_v43  ;;  %v4159_v35 = vpop.permute.xlu0 %4158 }
 0x342   : > { %4240 = vst.msk [vmem:[#allocation2 + $0xe8] sm:$0xff] %vm1267_vm3, %v4159_v35  ;;  %1595 = vrot.lane.b32.xlu1 %v13305_v59, %s16719_s23 }
 0x343   : > { %1593 = vrot.lane.b32.xlu0 %v13309_v26, %s16719_s23 }
 0x344   : > { %v1206_v42 = vpop.permute.xlu1 %1205 }
 0x345   : > { %1285 = vst.msk [vmem:[#allocation2 + $0x110] sm:$0xff] %vm1267_vm3, %v1206_v42  ;;  %v1204_v51 = vpop.permute.xlu0 %1203  ;;  %v13691_v42 = vld [vmem:[%s11843_s4 + $0x114] sm:$0xff] }
 0x346   : > { %1284 = vst.msk [vmem:[#allocation2 + $0x100] sm:$0xff] %vm1267_vm3, %v1204_v51  ;;  %3136 = vrot.lane.b32.xlu1 %v13336_v10, %s16731_s5 }
 0x347   : > { %3134 = vrot.lane.b32.xlu0 %v13343_v50, %s16731_s5 }
 0x348   : > { %v2747_v39 = vpop.permute.xlu1 %2746 }
 0x349   : > { %2828 = vst.msk [vmem:[#allocation2 + $0xf0] sm:$0xff] %vm2812_vm11, %v2747_v39  ;;  %v2745_v59 = vpop.permute.xlu0 %2744  ;;  %v13694_v39 = vld [vmem:[%s11843_s4 + $0x10c] sm:$0xff] }
 0x34a   : > { %2827 = vst.msk [vmem:[#allocation2 + $0xe0] sm:$0xff] %vm2812_vm11, %v2745_v59  ;;  %4741 = vrot.lane.b32.xlu1 %v13612_v38, %s16720_s26 }
 0x34b   : > { %4739 = vrot.lane.b32.xlu0 %v13615_v16, %s16720_s26 }
 0x34c   : > { %v4353_v26 = vpop.permute.xlu1 %4352 }
 0x34d   : > { %4433 = vst.msk [vmem:[#allocation2 + $0xf8] sm:$0xff] %vm16812_vm9, %v4353_v26  ;;  %v4351_v31 = vpop.permute.xlu0 %4350  ;;  %vm16817_vm9 = vmmov %vm16816_vm5 }
 0x34e   : > { %4432 = vst.msk [vmem:[#allocation2 + $0xe8] sm:$0xff] %vm16813_vm13, %v4351_v31  ;;  %1788 = vrot.lane.b32.xlu1 %v13336_v10, %s16720_s26  ;;  %vm16818_vm13 = vcmask 392512  }
 0x34f   : > { %1786 = vrot.lane.b32.xlu0 %v13343_v50, %s16720_s26  ;;  %v5341_v14 = vpop.f32.mrb[16].mxu0 }
 0x350   : > { %v5342_v56 = vadd.f32 %v13408_v30, %v5341_v14  ;;  %v5343_v27 = vpop.f32.mrb[17].mxu0  ;;  %v1399_v9 = vpop.permute.xlu1 %1398 }
 0x351   : > { %1478 = vst.msk [vmem:[#allocation2 + $0x110] sm:$0xff] %vm16814_vm4, %v1399_v9  ;;  %v1397_v48 = vpop.permute.xlu0 %1396  ;;  %v5344_v63 = vpop.f32.mrb[18].mxu0  ;;  %vm16819_vm4 = vmmov %vm16818_vm13  ;;  %v13715_v9 = vld [vmem:[%s11843_s4 + $0x115] sm:$0xff] }
 0x352   : > { %v5444_v28 = vmax.f32 %v5342_v56, 0.0  ;;  %1477 = vst.msk [vmem:[#allocation2 + $0x100] sm:$0xff] %vm16815_vm12, %v1397_v48  ;;  %v5345_v53 = vadd.f32 %v13408_v30, %v5344_v63  ;;  %v5346_v23 = vpop.f32.mrb[19].mxu0  ;;  %3330 = vrot.lane.b32.xlu1 %v13364_v47, %s16732_s3  ;;  %vm16820_vm12 = vmmov %vm16819_vm4 }
 0x353   : > { %3328 = vrot.lane.b32.xlu0 %v13367_v15, %s16732_s3 }
 0x354   : > { %v5445_v10 = vmax.f32 %v5345_v53, 0.0  ;;  %v2940_v50 = vpop.permute.xlu1 %2939  ;;  %v5532_v6 = vmax.f32 %v5444_v28, 0.0 }
 0x355   : > { %3021 = vst.msk [vmem:[#allocation2 + $0xf0] sm:$0xff] %vm16816_vm5, %v2940_v50  ;;  %v2938_v3 = vpop.permute.xlu0 %2937  ;;  %vm16821_vm5 = vmmov %vm16819_vm4 }
 0x356   : > { %v5533_v8 = vmax.f32 %v5445_v10, 0.0  ;;  %3020 = vst.msk [vmem:[#allocation2 + $0xe0] sm:$0xff] %vm16817_vm9, %v2938_v3  ;;  %4933 = vrot.lane.b32.xlu1 %v13328_v62, %s16721_s28  ;;  %vm16822_vm9 = vcmask 917312  }
 0x357   : > { %4931 = vrot.lane.b32.xlu0 %v13331_v17, %s16721_s28 }
 0x358   : > { %v5560_v11 = vpack.c.bf16 %v5533_v8, %v5532_v6  ;;  %v4546_v32 = vpop.permute.xlu1 %4545  ;;  %v13738_v6 = vld [vmem:[%s11843_s4 + $0x142] sm:$0xff]  ;;  %v13741_v8 = vld [vmem:[%s11843_s4 + $0x13a] sm:$0xff] }
 0x359   : > { %4626 = vst.msk [vmem:[#allocation2 + $0xf8] sm:$0xff] %vm16818_vm13, %v4546_v32  ;;  %v4544_v22 = vpop.permute.xlu0 %4543  ;;  %vm16823_vm13 = vmmov %vm16822_vm9 }
 0x35a   : > { %4625 = vst.msk [vmem:[#allocation2 + $0xe8] sm:$0xff] %vm16819_vm4, %v4544_v22  ;;  %11171 = vmatprep.mubr.msk.bf16.mxu1 %vm5226_vm14, %v5560_v11  ;;  %1982 = vrot.lane.b32.xlu1 %v13364_v47, %s16721_s28  ;;  %vm16824_vm4 = vcmask 982912   ;;  %v13753_v11 = vld [vmem:[%s11843_s4 + $0x10e] sm:$0xff] }
 0x35b   : > { %1980 = vrot.lane.b32.xlu0 %v13367_v15, %s16721_s28  ;;  %3673 = vst.msk [vmem:[#allocation2 + $0x178] sm:$0xff] %vm688_vm0, %v13738_v6  ;;  %3672 = vst.msk [vmem:[#allocation2 + $0x168] sm:$0xff] %vm688_vm0, %v13741_v8 }
 0x35c   : > { %v1592_v29 = vpop.permute.xlu1 %1591 }
 0x35d   : > { %1671 = vst.msk [vmem:[#allocation2 + $0x110] sm:$0xff] %vm16820_vm12, %v1592_v29  ;;  %v1590_v54 = vpop.permute.xlu0 %1589  ;;  %vm16825_vm12 = vmmov %vm16824_vm4 }
 0x35e   : > { %1670 = vst.msk [vmem:[#allocation2 + $0x100] sm:$0xff] %vm16821_vm5, %v1590_v54  ;;  %3523 = vrot.lane.b32.xlu1 %v13388_v40, %s16733_s20  ;;  %vm16826_vm5 = vcmask 654912   ;;  %v13774_v54 = vld [vmem:[%s11843_s4 + $0x128] sm:$0xff] }
 0x35f   : > { %3521 = vrot.lane.b32.xlu0 %v13391_v2, %s16733_s20 }
 0x360   : > { %v3133_v47 = vpop.permute.xlu1 %3132 }
 0x361   : > { %3214 = vst.msk [vmem:[#allocation2 + $0xf0] sm:$0xff] %vm16822_vm9, %v3133_v47  ;;  %v3131_v15 = vpop.permute.xlu0 %3130  ;;  %vm16827_vm9 = vmmov %vm16826_vm5 }
 0x362   : > { %3213 = vst.msk [vmem:[#allocation2 + $0xe0] sm:$0xff] %vm16823_vm13, %v3131_v15  ;;  %2175 = vrot.lane.b32.xlu1 %v13388_v40, %s16722_s22  ;;  %v13777_v15 = vld [vmem:[%s11843_s4 + $0x120] sm:$0xff]  ;;  %vm16828_vm13 = vcmask 326912  }
 0x363   : > { %2173 = vrot.lane.b32.xlu0 %v13391_v2, %s16722_s22 }
 0x364   : > { %v4738_v19 = vpop.permute.xlu1 %4737 }
 0x365   : > { %4818 = vst.msk [vmem:[#allocation2 + $0xf8] sm:$0xff] %vm1846_vm6, %v4738_v19  ;;  %v4736_v36 = vpop.permute.xlu0 %4735 }
 0x366   : > { %4817 = vst.msk [vmem:[#allocation2 + $0xe8] sm:$0xff] %vm1846_vm6, %v4736_v36  ;;  %3784 = vrot.lane.b32.xlu1 %v13667_v0, %s16723_s30 }
 0x367   : > { %3782 = vrot.lane.b32.xlu0 %v13670_v61, %s16723_s30 }
 0x368   : > { %v1785_v4 = vpop.permute.xlu1 %1784 }
 0x369   : > { %1864 = vst.msk [vmem:[#allocation2 + $0x110] sm:$0xff] %vm1846_vm6, %v1785_v4  ;;  %v1783_v33 = vpop.permute.xlu0 %1782 }
 0x36a   : > { %1863 = vst.msk [vmem:[#allocation2 + $0x100] sm:$0xff] %vm1846_vm6, %v1783_v33  ;;  %827 = vrot.lane.b32.xlu1 %v13388_v40, %s16723_s30  ;;  %v13798_v33 = vld [vmem:[%s11843_s4 + $0x129] sm:$0xff] }
 0x36b   : > { %825 = vrot.lane.b32.xlu0 %v13391_v2, %s16723_s30 }
 0x36c   : > { %v3327_v43 = vpop.permute.xlu1 %3326 }
 0x36d   : > { %3408 = vst.msk [vmem:[#allocation2 + $0xf0] sm:$0xff] %vm16824_vm4, %v3327_v43  ;;  %v3325_v35 = vpop.permute.xlu0 %3324  ;;  %vm16829_vm4 = vmmov %vm16828_vm13 }
 0x36e   : > { %3407 = vst.msk [vmem:[#allocation2 + $0xe0] sm:$0xff] %vm16825_vm12, %v3325_v35  ;;  %2368 = vrot.lane.b32.xlu1 %v13091_v45, %s16724_s0  ;;  %v13801_v35 = vld [vmem:[%s11843_s4 + $0x121] sm:$0xff]  ;;  %vm16830_vm12 = vmmov %vm16829_vm4 }
 0x36f   : > { %2366 = vrot.lane.b32.xlu0 %v13094_v41, %s16724_s0 }
 0x370   : > { %v4930_v51 = vpop.permute.xlu1 %4929 }
 0x371   : > { %5010 = vst.msk [vmem:[#allocation2 + $0xf8] sm:$0xff] %vm2040_vm7, %v4930_v51  ;;  %v4928_v40 = vpop.permute.xlu0 %4927 }
 0x372   : > { %5009 = vst.msk [vmem:[#allocation2 + $0xe8] sm:$0xff] %vm2040_vm7, %v4928_v40  ;;  %3976 = vrot.lane.b32.xlu1 %v13691_v42, %s16725_s29 }
 0x373   : > { %3974 = vrot.lane.b32.xlu0 %v13694_v39, %s16725_s29 }
 0x374   : > { %v1979_v2 = vpop.permute.xlu1 %1978 }
 0x375   : > { %2058 = vst.msk [vmem:[#allocation2 + $0x110] sm:$0xff] %vm2040_vm7, %v1979_v2  ;;  %v1977_v59 = vpop.permute.xlu0 %1976 }
 0x376   : > { %2057 = vst.msk [vmem:[#allocation2 + $0x100] sm:$0xff] %vm2040_vm7, %v1977_v59  ;;  %1020 = vrot.lane.b32.xlu1 %v13091_v45, %s16725_s29 }
 0x377   : > { %1018 = vrot.lane.b32.xlu0 %v13094_v41, %s16725_s29  ;;  %v13719_v41 = vld [vmem:[%s11843_s4 + $0x10d] sm:$0xff] }
 0x378   : > { %v3520_v26 = vpop.permute.xlu1 %3519  ;;  %v5058_v31 = vld [vmem:[#allocation2 + $0xf8] sm:$0xff] }
 0x379   : > { %3601 = vst.msk [vmem:[#allocation2 + $0xf0] sm:$0xff] %vm3585_vm15, %v3520_v26  ;;  %v3518_v14 = vpop.permute.xlu0 %3517  ;;  %v5056_v56 = vld [vmem:[#allocation2 + $0xe8] sm:$0xff] }
 0x37a   : > { %3600 = vst.msk [vmem:[#allocation2 + $0xe0] sm:$0xff] %vm3585_vm15, %v3518_v14  ;;  %2561 = vrot.lane.b32.xlu1 %v13448_v25, %s16726_s1  ;;  %v5106_v27 = vpack.c.bf16 %v5058_v31, %v5056_v56 }
 0x37b   : > { %2559 = vrot.lane.b32.xlu0 %v13451_v58, %s16726_s1 }
 0x37c   : > { %10766 = vmatprep.mubr.msk.bf16.mxu0 %vm5226_vm14, %v5106_v27  ;;  %v2172_v45 = vpop.permute.xlu1 %2171 }
 0x37d   : > { %2251 = vst.msk [vmem:[#allocation2 + $0x110] sm:$0xff] %vm2233_vm8, %v2172_v45  ;;  %v2170_v48 = vpop.permute.xlu0 %2169 }
 0x37e   : > { %2250 = vst.msk [vmem:[#allocation2 + $0x100] sm:$0xff] %vm2233_vm8, %v2170_v48  ;;  %4168 = vrot.lane.b32.xlu1 %v13715_v9, %s16727_s24 }
 0x37f   : > { %4166 = vrot.lane.b32.xlu0 %v13719_v41, %s16727_s24 }
 0x380   : > { %v3781_v63 = vpop.permute.xlu1 %3780  ;;  %v5057_v28 = vld [vmem:[#allocation2 + $0xf0] sm:$0xff] }
 0x381   : > { %3859 = vst.msk [vmem:[#allocation2 + $0x118] sm:$0xff] %vm881_vm1, %v3781_v63  ;;  %v3779_v53 = vpop.permute.xlu0 %3778  ;;  %v5055_v23 = vld [vmem:[#allocation2 + $0xe0] sm:$0xff] }
 0x382   : > { %3858 = vst.msk [vmem:[#allocation2 + $0x108] sm:$0xff] %vm881_vm1, %v3779_v53  ;;  %1213 = vrot.lane.b32.xlu1 %v13448_v25, %s16727_s24  ;;  %v5105_v10 = vpack.c.bf16 %v5057_v28, %v5055_v23  ;;  %v13746_v25 = vld [vmem:[%s11843_s4 + $0x116] sm:$0xff] }
 0x383   : > { %1211 = vrot.lane.b32.xlu0 %v13451_v58, %s16727_s24 }
 0x384   : > { %5364 = vmatmul.mubr.bf16.gmra.mrb[28].mxu0 %v5105_v10  ;;  %v824_v50 = vpop.permute.xlu1 %823 }
 0x385   : > { %901 = vst.msk [vmem:[#allocation2 + $0x130] sm:$0xff] %vm881_vm1, %v824_v50  ;;  %v822_v3 = vpop.permute.xlu0 %821  ;;  %v679_v50 = vld [vmem:[%s11843_s4 + $0x110] sm:$0xff] }
 0x386   : > { %900 = vst.msk [vmem:[#allocation2 + $0x120] sm:$0xff] %vm881_vm1, %v822_v3  ;;  %2754 = vrot.lane.b32.xlu1 %v13472_v60, %s16728_s2  ;;  %v678_v3 = vld [vmem:[%s11843_s4 + $0x108] sm:$0xff] }
 0x387   : > { %2752 = vrot.lane.b32.xlu0 %v13475_v13, %s16728_s2  ;;  %712 = vst.msk [vmem:[#allocation2 + $0x170] sm:$0xff] %vm688_vm0, %v679_v50  ;;  %711 = vst.msk [vmem:[#allocation2 + $0x160] sm:$0xff] %vm688_vm0, %v678_v3 }
 0x388   : > { %v2365_v58 = vpop.permute.xlu1 %2364 }
 0x389   : > { %2444 = vst.msk [vmem:[#allocation2 + $0x110] sm:$0xff] %vm16826_vm5, %v2365_v58  ;;  %v2363_v32 = vpop.permute.xlu0 %2362  ;;  %vm16831_vm5 = vmmov %vm16829_vm4 }
 0x38a   : > { %2443 = vst.msk [vmem:[#allocation2 + $0x100] sm:$0xff] %vm16827_vm9, %v2363_v32  ;;  %4360 = vrot.lane.b32.xlu1 %v13746_v25, %s16729_s27  ;;  %vm16832_vm9 = vcmask 851712   ;;  %v13853_v32 = vld [vmem:[%s11843_s4 + $0x12b] sm:$0xff] }
 0x38b   : > { %4358 = vrot.lane.b32.xlu0 %v13753_v11, %s16729_s27 }
 0x38c   : > { %v3973_v22 = vpop.permute.xlu1 %3972 }
 0x38d   : > { %4051 = vst.msk [vmem:[#allocation2 + $0x118] sm:$0xff] %vm1074_vm2, %v3973_v22  ;;  %v3971_v29 = vpop.permute.xlu0 %3970 }
 0x38e   : > { %4050 = vst.msk [vmem:[#allocation2 + $0x108] sm:$0xff] %vm1074_vm2, %v3971_v29  ;;  %1406 = vrot.lane.b32.xlu1 %v13472_v60, %s16729_s27  ;;  %v13856_v29 = vld [vmem:[%s11843_s4 + $0x123] sm:$0xff] }
 0x38f   : > { %1404 = vrot.lane.b32.xlu0 %v13475_v13, %s16729_s27 }
 0x390   : > { %v1017_v55 = vpop.permute.xlu1 %1016 }
 0x391   : > { %1094 = vst.msk [vmem:[#allocation2 + $0x130] sm:$0xff] %vm1074_vm2, %v1017_v55  ;;  %v1015_v24 = vpop.permute.xlu0 %1014 }
 0x392   : > { %1093 = vst.msk [vmem:[#allocation2 + $0x120] sm:$0xff] %vm1074_vm2, %v1015_v24  ;;  %2947 = vrot.lane.b32.xlu1 %v13501_v18, %s16730_s21 }
 0x393   : > { %2945 = vrot.lane.b32.xlu0 %v13505_v57, %s16730_s21 }
 0x394   : > { %v2558_v47 = vpop.permute.xlu1 %2557 }
 0x395   : > { %2637 = vst.msk [vmem:[#allocation2 + $0x110] sm:$0xff] %vm2619_vm10, %v2558_v47  ;;  %v2556_v60 = vpop.permute.xlu0 %2555 }
 0x396   : > { %2636 = vst.msk [vmem:[#allocation2 + $0x100] sm:$0xff] %vm2619_vm10, %v2556_v60  ;;  %4553 = vrot.lane.b32.xlu1 %v13774_v54, %s16719_s23 }
 0x397   : > { %4551 = vrot.lane.b32.xlu0 %v13777_v15, %s16719_s23 }
 0x398   : > { %v4165_v13 = vpop.permute.xlu1 %4164 }
 0x399   : > { %4243 = vst.msk [vmem:[#allocation2 + $0x118] sm:$0xff] %vm1267_vm3, %v4165_v13  ;;  %v4163_v19 = vpop.permute.xlu0 %4162 }
 0x39a   : > { %4242 = vst.msk [vmem:[#allocation2 + $0x108] sm:$0xff] %vm1267_vm3, %v4163_v19  ;;  %1599 = vrot.lane.b32.xlu1 %v13501_v18, %s16719_s23  ;;  %v13877_v19 = vld [vmem:[%s11843_s4 + $0x12c] sm:$0xff] }
 0x39b   : > { %1597 = vrot.lane.b32.xlu0 %v13505_v57, %s16719_s23 }
 0x39c   : > { %v1210_v36 = vpop.permute.xlu1 %1209 }
 0x39d   : > { %1287 = vst.msk [vmem:[#allocation2 + $0x130] sm:$0xff] %vm1267_vm3, %v1210_v36  ;;  %v1208_v4 = vpop.permute.xlu0 %1207 }
 0x39e   : > { %1286 = vst.msk [vmem:[#allocation2 + $0x120] sm:$0xff] %vm1267_vm3, %v1208_v4  ;;  %3140 = vrot.lane.b32.xlu1 %v13540_v46, %s16731_s5  ;;  %v13880_v4 = vld [vmem:[%s11843_s4 + $0x124] sm:$0xff] }
 0x39f   : > { %3138 = vrot.lane.b32.xlu0 %v13547_v5, %s16731_s5 }
 0x3a0   : > { %v2751_v43 = vpop.permute.xlu1 %2750 }
 0x3a1   : > { %2830 = vst.msk [vmem:[#allocation2 + $0x110] sm:$0xff] %vm2812_vm11, %v2751_v43  ;;  %v2749_v18 = vpop.permute.xlu0 %2748 }
 0x3a2   : > { %2829 = vst.msk [vmem:[#allocation2 + $0x100] sm:$0xff] %vm2812_vm11, %v2749_v18  ;;  %4745 = vrot.lane.b32.xlu1 %v13798_v33, %s16720_s26 }
 0x3a3   : > { %4743 = vrot.lane.b32.xlu0 %v13801_v35, %s16720_s26 }
 0x3a4   : > { %v4357_v57 = vpop.permute.xlu1 %4356 }
 0x3a5   : > { %4435 = vst.msk [vmem:[#allocation2 + $0x118] sm:$0xff] %vm16828_vm13, %v4357_v57  ;;  %v4355_v51 = vpop.permute.xlu0 %4354  ;;  %vm16833_vm13 = vmmov %vm16832_vm9 }
 0x3a6   : > { %4434 = vst.msk [vmem:[#allocation2 + $0x108] sm:$0xff] %vm16829_vm4, %v4355_v51  ;;  %1792 = vrot.lane.b32.xlu1 %v13540_v46, %s16720_s26  ;;  %vm16834_vm4 = vcmask 392512  }
 0x3a7   : > { %1790 = vrot.lane.b32.xlu0 %v13547_v5, %s16720_s26 }
 0x3a8   : > { %v5349_v40 = vpop.f32.mrb[20].mxu0  ;;  %v1403_v26 = vpop.permute.xlu1 %1402 }
 0x3a9   : > { %v5350_v2 = vadd.f32 %v13408_v30, %v5349_v40  ;;  %v5351_v59 = vpop.f32.mrb[21].mxu0  ;;  %1480 = vst.msk [vmem:[#allocation2 + $0x130] sm:$0xff] %vm16830_vm12, %v1403_v26  ;;  %v1401_v31 = vpop.permute.xlu0 %1400  ;;  %vm16835_vm12 = vmmov %vm16834_vm4  ;;  %v13905_v26 = vld [vmem:[%s11843_s4 + $0x125] sm:$0xff] }
 0x3aa   : > { %v5352_v14 = vpop.f32.mrb[22].mxu0  ;;  %1479 = vst.msk [vmem:[#allocation2 + $0x120] sm:$0xff] %vm16831_vm5, %v1401_v31  ;;  %3334 = vrot.lane.b32.xlu1 %v13588_v1, %s16732_s3  ;;  %vm16836_vm5 = vmmov %vm16834_vm4  ;;  %v13901_v59 = vld [vmem:[%s11843_s4 + $0x12d] sm:$0xff] }
 0x3ab   : > { %v5446_v56 = vmax.f32 %v5350_v2, 0.0  ;;  %v5353_v27 = vadd.f32 %v13408_v30, %v5352_v14  ;;  %v5354_v45 = vpop.f32.mrb[23].mxu0  ;;  %3332 = vrot.lane.b32.xlu0 %v13591_v34, %s16732_s3 }
 0x3ac   : > { %v2944_v5 = vpop.permute.xlu1 %2943 }
 0x3ad   : > { %v5447_v46 = vmax.f32 %v5353_v27, 0.0  ;;  %3023 = vst.msk [vmem:[#allocation2 + $0x110] sm:$0xff] %vm16832_vm9, %v2944_v5  ;;  %v2942_v48 = vpop.permute.xlu0 %2941  ;;  %v5534_v63 = vmax.f32 %v5446_v56, 0.0  ;;  %vm16837_vm9 = vmmov %vm16834_vm4 }
 0x3ae   : > { %3022 = vst.msk [vmem:[#allocation2 + $0x100] sm:$0xff] %vm16833_vm13, %v2942_v48  ;;  %4937 = vrot.lane.b32.xlu1 %v13532_v44, %s16721_s28  ;;  %vm16838_vm13 = vcmask 917312  }
 0x3af   : > { %v5535_v28 = vmax.f32 %v5447_v46, 0.0  ;;  %4935 = vrot.lane.b32.xlu0 %v13535_v12, %s16721_s28 }
 0x3b0   : > { %v4550_v53 = vpop.permute.xlu1 %4549 }
 0x3b1   : > { %v5561_v30 = vpack.c.bf16 %v5535_v28, %v5534_v63  ;;  %4628 = vst.msk [vmem:[#allocation2 + $0x118] sm:$0xff] %vm16834_vm4, %v4550_v53  ;;  %v4548_v23 = vpop.permute.xlu0 %4547  ;;  %vm16839_vm4 = vmmov %vm16838_vm13 }
 0x3b2   : > { %4627 = vst.msk [vmem:[#allocation2 + $0x108] sm:$0xff] %vm16835_vm12, %v4548_v23  ;;  %1986 = vrot.lane.b32.xlu1 %v13588_v1, %s16721_s28  ;;  %vm16840_vm12 = vcmask 982912  }
 0x3b3   : > { %11172 = vmatmul.mubr.msk.bf16.gmra.mrb[8].mxu1 %vm5226_vm14, %v5561_v30  ;;  %1984 = vrot.lane.b32.xlu0 %v13591_v34, %s16721_s28 }
 0x3b4   : > { %v1596_v10 = vpop.permute.xlu1 %1595 }
 0x3b5   : > { %1673 = vst.msk [vmem:[#allocation2 + $0x130] sm:$0xff] %vm16836_vm5, %v1596_v10  ;;  %v1594_v58 = vpop.permute.xlu0 %1593  ;;  %vm16841_vm5 = vmmov %vm16840_vm12 }
 0x3b6   : > { %1672 = vst.msk [vmem:[#allocation2 + $0x120] sm:$0xff] %vm16837_vm9, %v1594_v58  ;;  %3527 = vrot.lane.b32.xlu1 %v13612_v38, %s16733_s20  ;;  %vm16842_vm9 = vcmask 261120  }
 0x3b7   : > { %3525 = vrot.lane.b32.xlu0 %v13615_v16, %s16733_s20 }
 0x3b8   : > { %v3137_v1 = vpop.permute.xlu1 %3136 }
 0x3b9   : > { %3216 = vst.msk [vmem:[#allocation2 + $0x110] sm:$0xff] %vm16838_vm13, %v3137_v1  ;;  %v3135_v34 = vpop.permute.xlu0 %3134  ;;  %vm16843_vm13 = vmmov %vm16842_vm9 }
 0x3ba   : > { %3215 = vst.msk [vmem:[#allocation2 + $0x100] sm:$0xff] %vm16839_vm4, %v3135_v34  ;;  %2179 = vrot.lane.b32.xlu1 %v13612_v38, %s16722_s22  ;;  %vm16844_vm4 = vmmov %vm16842_vm9  ;;  %v13935_v34 = vld [vmem:[%s11843_s4 + $0x152] sm:$0xff] }
 0x3bb   : > { %2177 = vrot.lane.b32.xlu0 %v13615_v16, %s16722_s22  ;;  %3674 = vst.msk [vmem:[#allocation2 + $0x188] sm:$0xff] %vm688_vm0, %v13935_v34 }
 0x3bc   : > { %v4742_v22 = vpop.permute.xlu1 %4741 }
 0x3bd   : > { %4820 = vst.msk [vmem:[#allocation2 + $0x118] sm:$0xff] %vm1846_vm6, %v4742_v22  ;;  %v4740_v55 = vpop.permute.xlu0 %4739 }
 0x3be   : > { %4819 = vst.msk [vmem:[#allocation2 + $0x108] sm:$0xff] %vm1846_vm6, %v4740_v55  ;;  %3788 = vrot.lane.b32.xlu1 %v13853_v32, %s16723_s30 }
 0x3bf   : > { %3786 = vrot.lane.b32.xlu0 %v13856_v29, %s16723_s30 }
 0x3c0   : > { %v1789_v24 = vpop.permute.xlu1 %1788 }
 0x3c1   : > { %1866 = vst.msk [vmem:[#allocation2 + $0x130] sm:$0xff] %vm1846_vm6, %v1789_v24  ;;  %v1787_v47 = vpop.permute.xlu0 %1786  ;;  %v13947_v24 = vld [vmem:[%s11843_s4 + $0x126] sm:$0xff] }
 0x3c2   : > { %1865 = vst.msk [vmem:[#allocation2 + $0x120] sm:$0xff] %vm1846_vm6, %v1787_v47  ;;  %831 = vrot.lane.b32.xlu1 %v13612_v38, %s16723_s30 }
 0x3c3   : > { %829 = vrot.lane.b32.xlu0 %v13615_v16, %s16723_s30 }
 0x3c4   : > { %v3331_v60 = vpop.permute.xlu1 %3330 }
 0x3c5   : > { %3410 = vst.msk [vmem:[#allocation2 + $0x110] sm:$0xff] %vm16840_vm12, %v3331_v60  ;;  %v3329_v13 = vpop.permute.xlu0 %3328  ;;  %vm16845_vm12 = vmmov %vm16844_vm4 }
 0x3c6   : > { %3409 = vst.msk [vmem:[#allocation2 + $0x100] sm:$0xff] %vm16841_vm5, %v3329_v13  ;;  %2372 = vrot.lane.b32.xlu1 %v13328_v62, %s16724_s0  ;;  %vm16846_vm5 = vmmov %vm16844_vm4 }
 0x3c7   : > { %2370 = vrot.lane.b32.xlu0 %v13331_v17, %s16724_s0 }
 0x3c8   : > { %v4934_v36 = vpop.permute.xlu1 %4933 }
 0x3c9   : > { %5012 = vst.msk [vmem:[#allocation2 + $0x118] sm:$0xff] %vm2040_vm7, %v4934_v36  ;;  %v4932_v38 = vpop.permute.xlu0 %4931 }
 0x3ca   : > { %5011 = vst.msk [vmem:[#allocation2 + $0x108] sm:$0xff] %vm2040_vm7, %v4932_v38  ;;  %3980 = vrot.lane.b32.xlu1 %v13877_v19, %s16725_s29 }
 0x3cb   : > { %3978 = vrot.lane.b32.xlu0 %v13880_v4, %s16725_s29 }
 0x3cc   : > { %v1983_v16 = vpop.permute.xlu1 %1982 }
 0x3cd   : > { %2060 = vst.msk [vmem:[#allocation2 + $0x130] sm:$0xff] %vm2040_vm7, %v1983_v16  ;;  %v1981_v43 = vpop.permute.xlu0 %1980 }
 0x3ce   : > { %2059 = vst.msk [vmem:[#allocation2 + $0x120] sm:$0xff] %vm2040_vm7, %v1981_v43  ;;  %1024 = vrot.lane.b32.xlu1 %v13328_v62, %s16725_s29 }
 0x3cf   : > { %1022 = vrot.lane.b32.xlu0 %v13331_v17, %s16725_s29 }
 0x3d0   : > { %v3524_v18 = vpop.permute.xlu1 %3523  ;;  %v5062_v57 = vld [vmem:[#allocation2 + $0x118] sm:$0xff] }
 0x3d1   : > { %3603 = vst.msk [vmem:[#allocation2 + $0x110] sm:$0xff] %vm3585_vm15, %v3524_v18  ;;  %v3522_v51 = vpop.permute.xlu0 %3521  ;;  %v5060_v40 = vld [vmem:[#allocation2 + $0x108] sm:$0xff] }
 0x3d2   : > { %3602 = vst.msk [vmem:[#allocation2 + $0x100] sm:$0xff] %vm3585_vm15, %v3522_v51  ;;  %2565 = vrot.lane.b32.xlu1 %v13667_v0, %s16726_s1  ;;  %v5108_v2 = vpack.c.bf16 %v5062_v57, %v5060_v40 }
 0x3d3   : > { %2563 = vrot.lane.b32.xlu0 %v13670_v61, %s16726_s1 }
 0x3d4   : > { %10767 = vmatprep.mubr.msk.bf16.mxu0 %vm5226_vm14, %v5108_v2  ;;  %v2176_v62 = vpop.permute.xlu1 %2175 }
 0x3d5   : > { %v11169_v17 = vpop.f32.mrb[4].mxu1  ;;  %2253 = vst.msk [vmem:[#allocation2 + $0x130] sm:$0xff] %vm2233_vm8, %v2176_v62  ;;  %v2174_v31 = vpop.permute.xlu0 %2173  ;;  %v13988_v62 = vld [vmem:[%s11843_s4 + $0x140] sm:$0xff] }
 0x3d6   : > { %v5718_v14 = vadd.f32 %v11169_v17, %v13498_v49  ;;  %v5709_v56 = vpop.f32.mrb[5].mxu1  ;;  %2252 = vst.msk [vmem:[#allocation2 + $0x120] sm:$0xff] %vm2233_vm8, %v2174_v31  ;;  %4172 = vrot.lane.b32.xlu1 %v13901_v59, %s16727_s24  ;;  %v13991_v31 = vld [vmem:[%s11843_s4 + $0x138] sm:$0xff] }
 0x3d7   : > { %v5710_v27 = vadd.f32 %v13498_v49, %v5709_v56  ;;  %v11170_v45 = vpop.f32.mrb[6].mxu1  ;;  %4170 = vrot.lane.b32.xlu0 %v13905_v26, %s16727_s24 }
 0x3d8   : > { %v5826_v46 = vmax.f32 %v5718_v14, 0.0  ;;  %v5721_v5 = vadd.f32 %v11170_v45, %v13498_v49  ;;  %v5712_v48 = vpop.f32.mrb[7].mxu1  ;;  %v3785_v30 = vpop.permute.xlu1 %3784  ;;  %v5061_v53 = vld [vmem:[#allocation2 + $0x110] sm:$0xff]  ;;  %v14012_v45 = vld [vmem:[%s11843_s4 + $0x141] sm:$0xff] }
 0x3d9   : > { %v5824_v63 = vmax.f32 %v5710_v27, 0.0  ;;  %v5713_v28 = vadd.f32 %v13498_v49, %v5712_v48  ;;  %3861 = vst.msk [vmem:[#allocation2 + $0x138] sm:$0xff] %vm881_vm1, %v3785_v30  ;;  %v3783_v10 = vpop.permute.xlu0 %3782  ;;  %v5059_v50 = vld [vmem:[#allocation2 + $0x100] sm:$0xff] }
 0x3da   : > { %5859 = vst.msk [vmem:[#allocation3 + $0x61] sm:$0xff] %vm16842_vm9, %v5826_v46  ;;  %v5827_v23 = vmax.f32 %v5721_v5, 0.0  ;;  %1217 = vrot.lane.b32.xlu1 %v13667_v0, %s16727_s24  ;;  %v5107_v49 = vpack.c.bf16 %v5061_v53, %v5059_v50  ;;  %v13932_v0 = vld [vmem:[%s11843_s4 + $0x15a] sm:$0xff]  ;;  %vm16847_vm9 = vcmask 654912  }
 0x3db   : > { %5857 = vst.msk [vmem:[#allocation3 + $0x49] sm:$0xff] %vm16843_vm13, %v5824_v63  ;;  %v5825_v3 = vmax.f32 %v5713_v28, 0.0  ;;  %1215 = vrot.lane.b32.xlu0 %v13670_v61, %s16727_s24  ;;  %v13940_v61 = vld [vmem:[%s11843_s4 + $0x12e] sm:$0xff]  ;;  %vm16848_vm13 = vmmov %vm16844_vm4  ;;  %v14015_v5 = vld [vmem:[%s11843_s4 + $0x139] sm:$0xff] }
 0x3dc   : > { %3860 = vst.msk [vmem:[#allocation2 + $0x128] sm:$0xff] %vm881_vm1, %v3783_v10  ;;  %5372 = vmatmul.mubr.bf16.gmra.mrb[32].mxu0 %v5107_v49  ;;  %v828_v58 = vpop.permute.xlu1 %827  ;;  %v14032_v28 = vld [vmem:[%s16745_s16] ss:$0 sm:$0xff] }
 0x3dd   : > { %5860 = vst.msk [vmem:[#allocation3 + $0x69] sm:$0xff] %vm16844_vm4, %v5827_v23  ;;  %v826_v1 = vpop.permute.xlu0 %825 }
 0x3de   : > { %5858 = vst.msk [vmem:[#allocation3 + $0x51] sm:$0xff] %vm16845_vm12, %v5825_v3  ;;  %2758 = vrot.lane.b32.xlu1 %v13691_v42, %s16728_s2  ;;  %vm16849_vm12 = vmmov %vm16847_vm9 }
 0x3df   : > { %903 = vst.msk [vmem:[#allocation2 + $0x150] sm:$0xff] %vm881_vm1, %v828_v58  ;;  %902 = vst.msk [vmem:[#allocation2 + $0x140] sm:$0xff] %vm881_vm1, %v826_v1  ;;  %2756 = vrot.lane.b32.xlu0 %v13694_v39, %s16728_s2 }
 0x3e0   : > { %3675 = vst.msk [vmem:[#allocation2 + $0x198] sm:$0xff] %vm688_vm0, %v13932_v0  ;;  %v2369_v55 = vpop.permute.xlu1 %2368 }
 0x3e1   : > { %v6534_v22 = vld [vmem:[#allocation3 + $0x61] sm:$0xff]  ;;  %2446 = vst.msk [vmem:[#allocation2 + $0x130] sm:$0xff] %vm16847_vm9, %v2369_v55  ;;  %v2367_v13 = vpop.permute.xlu0 %2366  ;;  %vm16851_vm9 = vmmov %vm16844_vm4 }
 0x3e2   : > { %v13949_v47 = vld [vmem:[#allocation3 + $0x60] sm:$0xff]  ;;  %6566 = vst.msk [vmem:[#allocation4 + $0x68] sm:$0xff] %vm16846_vm5, %v6534_v22  ;;  %v6532_v60 = vld [vmem:[#allocation3 + $0x49] sm:$0xff]  ;;  %4364 = vrot.lane.b32.xlu1 %v13940_v61, %s16729_s27  ;;  %vm16850_vm5 = vmmov %vm16844_vm4 }
 0x3e3   : > { %v13953_v36 = vld [vmem:[#allocation3 + $0x48] sm:$0xff]  ;;  %5925 = vst.msk [vmem:[#allocation4 + $0x80] sm:$0xff] %vm16848_vm13, %v13949_v47  ;;  %4362 = vrot.lane.b32.xlu0 %v13947_v24, %s16729_s27  ;;  %vm16852_vm13 = vmmov %vm16844_vm4 }
 0x3e4   : > { %6564 = vst.msk [vmem:[#allocation4 + $0x48] sm:$0xff] %vm16844_vm4, %v6532_v60  ;;  %v6535_v38 = vld [vmem:[#allocation3 + $0x69] sm:$0xff]  ;;  %v3977_v57 = vpop.permute.xlu1 %3976 }
 0x3e5   : > { %2445 = vst.msk [vmem:[#allocation2 + $0x120] sm:$0xff] %vm16849_vm12, %v2367_v13  ;;  %v13961_v16 = vld [vmem:[#allocation3 + $0x68] sm:$0xff]  ;;  %v6533_v43 = vld [vmem:[#allocation3 + $0x51] sm:$0xff]  ;;  %vm16853_vm12 = vmmov %vm16844_vm4  ;;  %v3975_v51 = vpop.permute.xlu0 %3974 }
 0x3e6   : > { %5923 = vst.msk [vmem:[#allocation4 + $0x60] sm:$0xff] %vm16850_vm5, %v13953_v36  ;;  %v13968_v18 = vld [vmem:[#allocation3 + $0x50] sm:$0xff]  ;;  %1410 = vrot.lane.b32.xlu1 %v13691_v42, %s16729_s27  ;;  %vm16854_vm5 = vcmask 326912  }
 0x3e7   : > { %6567 = vst.msk [vmem:[#allocation4 + $0x78] sm:$0xff] %vm16851_vm9, %v6535_v38  ;;  %1408 = vrot.lane.b32.xlu0 %v13694_v39, %s16729_s27  ;;  %vm16855_vm9 = vmmov %vm16854_vm5 }
 0x3e8   : > { %5926 = vst.msk [vmem:[#allocation4 + $0x90] sm:$0xff] %vm16852_vm13, %v13961_v16  ;;  %v1021_v40 = vpop.permute.xlu1 %1020  ;;  %vm16856_vm13 = vmmov %vm16854_vm5 }
 0x3e9   : > { %6565 = vst.msk [vmem:[#allocation4 + $0x58] sm:$0xff] %vm16844_vm4, %v6533_v43  ;;  %v1019_v2 = vpop.permute.xlu0 %1018  ;;  %vm16857_vm4 = vmmov %vm16854_vm5 }
 0x3ea   : > { %5924 = vst.msk [vmem:[#allocation4 + $0x70] sm:$0xff] %vm16853_vm12, %v13968_v18  ;;  %2951 = vrot.lane.b32.xlu1 %v13715_v9, %s16730_s21  ;;  %vm16858_vm12 = vcmask 851712  }
 0x3eb   : > { %4053 = vst.msk [vmem:[#allocation2 + $0x138] sm:$0xff] %vm1074_vm2, %v3977_v57  ;;  %4052 = vst.msk [vmem:[#allocation2 + $0x128] sm:$0xff] %vm1074_vm2, %v3975_v51  ;;  %2949 = vrot.lane.b32.xlu0 %v13719_v41, %s16730_s21  ;;  %v681_v57 = vld [vmem:[%s11843_s4 + $0x128] sm:$0xff]  ;;  %v680_v51 = vld [vmem:[%s11843_s4 + $0x120] sm:$0xff] }
 0x3ec   : > { %1096 = vst.msk [vmem:[#allocation2 + $0x150] sm:$0xff] %vm1074_vm2, %v1021_v40  ;;  %1095 = vst.msk [vmem:[#allocation2 + $0x140] sm:$0xff] %vm1074_vm2, %v1019_v2  ;;  %v2562_v17 = vpop.permute.xlu1 %2561  ;;  %v14072_v2 = vld [vmem:[%s11843_s4 + $0x143] sm:$0xff] }
 0x3ed   : > { %2639 = vst.msk [vmem:[#allocation2 + $0x130] sm:$0xff] %vm2619_vm10, %v2562_v17  ;;  %v2560_v42 = vpop.permute.xlu0 %2559 }
 0x3ee   : > { %2638 = vst.msk [vmem:[#allocation2 + $0x120] sm:$0xff] %vm2619_vm10, %v2560_v42  ;;  %4557 = vrot.lane.b32.xlu1 %v13988_v62, %s16719_s23  ;;  %v14075_v42 = vld [vmem:[%s11843_s4 + $0x13b] sm:$0xff] }
 0x3ef   : > { %4555 = vrot.lane.b32.xlu0 %v13991_v31, %s16719_s23  ;;  %714 = vst.msk [vmem:[#allocation2 + $0x190] sm:$0xff] %vm688_vm0, %v681_v57  ;;  %713 = vst.msk [vmem:[#allocation2 + $0x180] sm:$0xff] %vm688_vm0, %v680_v51 }
 0x3f0   : > { %v4169_v39 = vpop.permute.xlu1 %4168 }
 0x3f1   : > { %4245 = vst.msk [vmem:[#allocation2 + $0x138] sm:$0xff] %vm1267_vm3, %v4169_v39  ;;  %v4167_v14 = vpop.permute.xlu0 %4166 }
 0x3f2   : > { %4244 = vst.msk [vmem:[#allocation2 + $0x128] sm:$0xff] %vm1267_vm3, %v4167_v14  ;;  %1603 = vrot.lane.b32.xlu1 %v13715_v9, %s16719_s23 }
 0x3f3   : > { %1601 = vrot.lane.b32.xlu0 %v13719_v41, %s16719_s23 }
 0x3f4   : > { %v1214_v56 = vpop.permute.xlu1 %1213 }
 0x3f5   : > { %1289 = vst.msk [vmem:[#allocation2 + $0x150] sm:$0xff] %vm1267_vm3, %v1214_v56  ;;  %v1212_v27 = vpop.permute.xlu0 %1211 }
 0x3f6   : > { %1288 = vst.msk [vmem:[#allocation2 + $0x140] sm:$0xff] %vm1267_vm3, %v1212_v27  ;;  %3144 = vrot.lane.b32.xlu1 %v13746_v25, %s16731_s5 }
 0x3f7   : > { %3142 = vrot.lane.b32.xlu0 %v13753_v11, %s16731_s5 }
 0x3f8   : > { %v2755_v46 = vpop.permute.xlu1 %2754 }
 0x3f9   : > { %2832 = vst.msk [vmem:[#allocation2 + $0x130] sm:$0xff] %vm2812_vm11, %v2755_v46  ;;  %v2753_v9 = vpop.permute.xlu0 %2752 }
 0x3fa   : > { %2831 = vst.msk [vmem:[#allocation2 + $0x120] sm:$0xff] %vm2812_vm11, %v2753_v9  ;;  %4749 = vrot.lane.b32.xlu1 %v14012_v45, %s16720_s26  ;;  %v14096_v9 = vld [vmem:[%s11843_s4 + $0x144] sm:$0xff] }
 0x3fb   : > { %4747 = vrot.lane.b32.xlu0 %v14015_v5, %s16720_s26 }
 0x3fc   : > { %v4361_v41 = vpop.permute.xlu1 %4360 }
 0x3fd   : > { %4437 = vst.msk [vmem:[#allocation2 + $0x138] sm:$0xff] %vm16854_vm5, %v4361_v41  ;;  %v4359_v48 = vpop.permute.xlu0 %4358  ;;  %vm16859_vm5 = vmmov %vm16858_vm12 }
 0x3fe   : > { %4436 = vst.msk [vmem:[#allocation2 + $0x128] sm:$0xff] %vm16855_vm9, %v4359_v48  ;;  %1796 = vrot.lane.b32.xlu1 %v13746_v25, %s16720_s26  ;;  %vm16860_vm9 = vcmask 392512   ;;  %v14099_v48 = vld [vmem:[%s11843_s4 + $0x13c] sm:$0xff] }
 0x3ff   : > { %1794 = vrot.lane.b32.xlu0 %v13753_v11, %s16720_s26  ;;  %v5357_v63 = vpop.f32.mrb[24].mxu0 }
 0x400   : > { %v5358_v30 = vadd.f32 %v14032_v28, %v5357_v63  ;;  %v5359_v53 = vpop.f32.mrb[25].mxu0  ;;  %v1407_v23 = vpop.permute.xlu1 %1406 }
 0x401   : > { %1482 = vst.msk [vmem:[#allocation2 + $0x150] sm:$0xff] %vm16856_vm13, %v1407_v23  ;;  %v1405_v10 = vpop.permute.xlu0 %1404  ;;  %v5360_v50 = vpop.f32.mrb[26].mxu0  ;;  %vm16861_vm13 = vmmov %vm16860_vm9 }
 0x402   : > { %v5448_v3 = vmax.f32 %v5358_v30, 0.0  ;;  %1481 = vst.msk [vmem:[#allocation2 + $0x140] sm:$0xff] %vm16857_vm4, %v1405_v10  ;;  %v5361_v25 = vadd.f32 %v14032_v28, %v5360_v50  ;;  %v5362_v11 = vpop.f32.mrb[27].mxu0  ;;  %3338 = vrot.lane.b32.xlu1 %v13774_v54, %s16732_s3  ;;  %vm16862_vm4 = vmmov %vm16860_vm9 }
 0x403   : > { %3336 = vrot.lane.b32.xlu0 %v13777_v15, %s16732_s3 }
 0x404   : > { %v5449_v49 = vmax.f32 %v5361_v25, 0.0  ;;  %v2948_v58 = vpop.permute.xlu1 %2947  ;;  %v5536_v22 = vmax.f32 %v5448_v3, 0.0  ;;  %v14120_v3 = vld [vmem:[%s11843_s4 + $0x145] sm:$0xff] }
 0x405   : > { %3025 = vst.msk [vmem:[#allocation2 + $0x130] sm:$0xff] %vm16858_vm12, %v2948_v58  ;;  %v2946_v1 = vpop.permute.xlu0 %2945  ;;  %vm16863_vm12 = vmmov %vm16862_vm4 }
 0x406   : > { %v5537_v55 = vmax.f32 %v5449_v49, 0.0  ;;  %3024 = vst.msk [vmem:[#allocation2 + $0x120] sm:$0xff] %vm16859_vm5, %v2946_v1  ;;  %4941 = vrot.lane.b32.xlu1 %v13738_v6, %s16721_s28  ;;  %vm16864_vm5 = vcmask 917312  }
 0x407   : > { %4939 = vrot.lane.b32.xlu0 %v13741_v8, %s16721_s28 }
 0x408   : > { %v5562_v60 = vpack.c.bf16 %v5537_v55, %v5536_v22  ;;  %v4554_v13 = vpop.permute.xlu1 %4553 }
 0x409   : > { %4630 = vst.msk [vmem:[#allocation2 + $0x138] sm:$0xff] %vm16860_vm9, %v4554_v13  ;;  %v4552_v38 = vpop.permute.xlu0 %4551  ;;  %vm16865_vm9 = vmmov %vm16864_vm5  ;;  %v14143_v13 = vld [vmem:[%s11843_s4 + $0x172] sm:$0xff] }
 0x40a   : > { %4629 = vst.msk [vmem:[#allocation2 + $0x128] sm:$0xff] %vm16861_vm13, %v4552_v38  ;;  %11175 = vmatprep.mubr.msk.bf16.mxu1 %vm5226_vm14, %v5562_v60  ;;  %1990 = vrot.lane.b32.xlu1 %v13774_v54, %s16721_s28  ;;  %vm16866_vm13 = vcmask 982912   ;;  %v14146_v38 = vld [vmem:[%s11843_s4 + $0x16a] sm:$0xff] }
 0x40b   : > { %1988 = vrot.lane.b32.xlu0 %v13777_v15, %s16721_s28  ;;  %3677 = vst.msk [vmem:[#allocation2 + $0x1b8] sm:$0xff] %vm688_vm0, %v14143_v13  ;;  %3676 = vst.msk [vmem:[#allocation2 + $0x1a8] sm:$0xff] %vm688_vm0, %v14146_v38 }
 0x40c   : > { %v1600_v43 = vpop.permute.xlu1 %1599 }
 0x40d   : > { %1675 = vst.msk [vmem:[#allocation2 + $0x150] sm:$0xff] %vm16862_vm4, %v1600_v43  ;;  %v1598_v40 = vpop.permute.xlu0 %1597  ;;  %vm16867_vm4 = vmmov %vm16866_vm13  ;;  %v14158_v43 = vld [vmem:[%s11843_s4 + $0x13e] sm:$0xff] }
 0x40e   : > { %1674 = vst.msk [vmem:[#allocation2 + $0x140] sm:$0xff] %vm16863_vm12, %v1598_v40  ;;  %3531 = vrot.lane.b32.xlu1 %v13798_v33, %s16733_s20  ;;  %vm16868_vm12 = vcmask 654912  }
 0x40f   : > { %3529 = vrot.lane.b32.xlu0 %v13801_v35, %s16733_s20 }
 0x410   : > { %v3141_v54 = vpop.permute.xlu1 %3140 }
 0x411   : > { %3218 = vst.msk [vmem:[#allocation2 + $0x130] sm:$0xff] %vm16864_vm5, %v3141_v54  ;;  %v3139_v15 = vpop.permute.xlu0 %3138  ;;  %vm16869_vm5 = vmmov %vm16868_vm12 }
 0x412   : > { %3217 = vst.msk [vmem:[#allocation2 + $0x120] sm:$0xff] %vm16865_vm9, %v3139_v15  ;;  %2183 = vrot.lane.b32.xlu1 %v13798_v33, %s16722_s22  ;;  %vm16870_vm9 = vcmask 326912  }
 0x413   : > { %2181 = vrot.lane.b32.xlu0 %v13801_v35, %s16722_s22 }
 0x414   : > { %v4746_v17 = vpop.permute.xlu1 %4745 }
 0x415   : > { %4822 = vst.msk [vmem:[#allocation2 + $0x138] sm:$0xff] %vm1846_vm6, %v4746_v17  ;;  %v4744_v39 = vpop.permute.xlu0 %4743  ;;  %v14179_v17 = vld [vmem:[%s11843_s4 + $0x158] sm:$0xff] }
 0x416   : > { %4821 = vst.msk [vmem:[#allocation2 + $0x128] sm:$0xff] %vm1846_vm6, %v4744_v39  ;;  %3792 = vrot.lane.b32.xlu1 %v14072_v2, %s16723_s30 }
 0x417   : > { %3790 = vrot.lane.b32.xlu0 %v14075_v42, %s16723_s30 }
 0x418   : > { %v1793_v14 = vpop.permute.xlu1 %1792 }
 0x419   : > { %1868 = vst.msk [vmem:[#allocation2 + $0x150] sm:$0xff] %vm1846_vm6, %v1793_v14  ;;  %v1791_v56 = vpop.permute.xlu0 %1790  ;;  %v14182_v14 = vld [vmem:[%s11843_s4 + $0x150] sm:$0xff] }
 0x41a   : > { %1867 = vst.msk [vmem:[#allocation2 + $0x140] sm:$0xff] %vm1846_vm6, %v1791_v56  ;;  %835 = vrot.lane.b32.xlu1 %v13798_v33, %s16723_s30 }
 0x41b   : > { %833 = vrot.lane.b32.xlu0 %v13801_v35, %s16723_s30 }
 0x41c   : > { %v3335_v27 = vpop.permute.xlu1 %3334 }
 0x41d   : > { %3412 = vst.msk [vmem:[#allocation2 + $0x130] sm:$0xff] %vm16866_vm13, %v3335_v27  ;;  %v3333_v46 = vpop.permute.xlu0 %3332  ;;  %vm16871_vm13 = vmmov %vm16870_vm9 }
 0x41e   : > { %3411 = vst.msk [vmem:[#allocation2 + $0x120] sm:$0xff] %vm16867_vm4, %v3333_v46  ;;  %2376 = vrot.lane.b32.xlu1 %v13532_v44, %s16724_s0  ;;  %vm16872_vm4 = vmmov %vm16870_vm9 }
 0x41f   : > { %2374 = vrot.lane.b32.xlu0 %v13535_v12, %s16724_s0 }
 0x420   : > { %v4938_v41 = vpop.permute.xlu1 %4937 }
 0x421   : > { %5014 = vst.msk [vmem:[#allocation2 + $0x138] sm:$0xff] %vm2040_vm7, %v4938_v41  ;;  %v4936_v33 = vpop.permute.xlu0 %4935  ;;  %v14203_v41 = vld [vmem:[%s11843_s4 + $0x159] sm:$0xff] }
 0x422   : > { %5013 = vst.msk [vmem:[#allocation2 + $0x128] sm:$0xff] %vm2040_vm7, %v4936_v33  ;;  %3984 = vrot.lane.b32.xlu1 %v14096_v9, %s16725_s29 }
 0x423   : > { %3982 = vrot.lane.b32.xlu0 %v14099_v48, %s16725_s29 }
 0x424   : > { %v1987_v35 = vpop.permute.xlu1 %1986 }
 0x425   : > { %2062 = vst.msk [vmem:[#allocation2 + $0x150] sm:$0xff] %vm2040_vm7, %v1987_v35  ;;  %v1985_v63 = vpop.permute.xlu0 %1984  ;;  %v14206_v35 = vld [vmem:[%s11843_s4 + $0x151] sm:$0xff] }
 0x426   : > { %2061 = vst.msk [vmem:[#allocation2 + $0x140] sm:$0xff] %vm2040_vm7, %v1985_v63  ;;  %1028 = vrot.lane.b32.xlu1 %v13532_v44, %s16725_s29 }
 0x427   : > { %1026 = vrot.lane.b32.xlu0 %v13535_v12, %s16725_s29  ;;  %v14124_v12 = vld [vmem:[%s11843_s4 + $0x13d] sm:$0xff] }
 0x428   : > { %v3528_v30 = vpop.permute.xlu1 %3527  ;;  %v5066_v53 = vld [vmem:[#allocation2 + $0x138] sm:$0xff] }
 0x429   : > { %3605 = vst.msk [vmem:[#allocation2 + $0x130] sm:$0xff] %vm3585_vm15, %v3528_v30  ;;  %v3526_v23 = vpop.permute.xlu0 %3525  ;;  %v5064_v10 = vld [vmem:[#allocation2 + $0x128] sm:$0xff] }
 0x42a   : > { %3604 = vst.msk [vmem:[#allocation2 + $0x120] sm:$0xff] %vm3585_vm15, %v3526_v23  ;;  %2569 = vrot.lane.b32.xlu1 %v13853_v32, %s16726_s1  ;;  %v5110_v50 = vpack.c.bf16 %v5066_v53, %v5064_v10 }
 0x42b   : > { %2567 = vrot.lane.b32.xlu0 %v13856_v29, %s16726_s1 }
 0x42c   : > { %10768 = vmatprep.mubr.msk.bf16.mxu0 %vm5226_vm14, %v5110_v50  ;;  %v2180_v44 = vpop.permute.xlu1 %2179 }
 0x42d   : > { %2255 = vst.msk [vmem:[#allocation2 + $0x150] sm:$0xff] %vm2233_vm8, %v2180_v44  ;;  %v2178_v25 = vpop.permute.xlu0 %2177 }
 0x42e   : > { %2254 = vst.msk [vmem:[#allocation2 + $0x140] sm:$0xff] %vm2233_vm8, %v2178_v25  ;;  %4176 = vrot.lane.b32.xlu1 %v14120_v3, %s16727_s24 }
 0x42f   : > { %4174 = vrot.lane.b32.xlu0 %v14124_v12, %s16727_s24 }
 0x430   : > { %v3789_v11 = vpop.permute.xlu1 %3788  ;;  %v5065_v49 = vld [vmem:[#allocation2 + $0x130] sm:$0xff] }
 0x431   : > { %3863 = vst.msk [vmem:[#allocation2 + $0x158] sm:$0xff] %vm881_vm1, %v3789_v11  ;;  %v3787_v58 = vpop.permute.xlu0 %3786  ;;  %v5063_v1 = vld [vmem:[#allocation2 + $0x120] sm:$0xff] }
 0x432   : > { %3862 = vst.msk [vmem:[#allocation2 + $0x148] sm:$0xff] %vm881_vm1, %v3787_v58  ;;  %1221 = vrot.lane.b32.xlu1 %v13853_v32, %s16727_s24  ;;  %v5109_v22 = vpack.c.bf16 %v5065_v49, %v5063_v1  ;;  %v14151_v32 = vld [vmem:[%s11843_s4 + $0x146] sm:$0xff] }
 0x433   : > { %1219 = vrot.lane.b32.xlu0 %v13856_v29, %s16727_s24 }
 0x434   : > { %5380 = vmatmul.mubr.bf16.gmra.mrb[36].mxu0 %v5109_v22  ;;  %v832_v55 = vpop.permute.xlu1 %831 }
 0x435   : > { %905 = vst.msk [vmem:[#allocation2 + $0x170] sm:$0xff] %vm881_vm1, %v832_v55  ;;  %v830_v60 = vpop.permute.xlu0 %829 }
 0x436   : > { %904 = vst.msk [vmem:[#allocation2 + $0x160] sm:$0xff] %vm881_vm1, %v830_v60  ;;  %2762 = vrot.lane.b32.xlu1 %v13877_v19, %s16728_s2 }
 0x437   : > { %2760 = vrot.lane.b32.xlu0 %v13880_v4, %s16728_s2 }
 0x438   : > { %v2373_v29 = vpop.permute.xlu1 %2372 }
 0x439   : > { %2448 = vst.msk [vmem:[#allocation2 + $0x150] sm:$0xff] %vm16868_vm12, %v2373_v29  ;;  %v2371_v57 = vpop.permute.xlu0 %2370  ;;  %vm16873_vm12 = vmmov %vm16872_vm4 }
 0x43a   : > { %2447 = vst.msk [vmem:[#allocation2 + $0x140] sm:$0xff] %vm16869_vm5, %v2371_v57  ;;  %4368 = vrot.lane.b32.xlu1 %v14151_v32, %s16729_s27  ;;  %vm16874_vm5 = vcmask 851712  }
 0x43b   : > { %4366 = vrot.lane.b32.xlu0 %v14158_v43, %s16729_s27 }
 0x43c   : > { %v3981_v51 = vpop.permute.xlu1 %3980 }
 0x43d   : > { %4055 = vst.msk [vmem:[#allocation2 + $0x158] sm:$0xff] %vm1074_vm2, %v3981_v51  ;;  %v3979_v40 = vpop.permute.xlu0 %3978  ;;  %v683_v51 = vld [vmem:[%s11843_s4 + $0x140] sm:$0xff] }
 0x43e   : > { %4054 = vst.msk [vmem:[#allocation2 + $0x148] sm:$0xff] %vm1074_vm2, %v3979_v40  ;;  %1414 = vrot.lane.b32.xlu1 %v13877_v19, %s16729_s27  ;;  %v682_v40 = vld [vmem:[%s11843_s4 + $0x138] sm:$0xff] }
 0x43f   : > { %1412 = vrot.lane.b32.xlu0 %v13880_v4, %s16729_s27  ;;  %716 = vst.msk [vmem:[#allocation2 + $0x1b0] sm:$0xff] %vm688_vm0, %v683_v51  ;;  %715 = vst.msk [vmem:[#allocation2 + $0x1a0] sm:$0xff] %vm688_vm0, %v682_v40 }
 0x440   : > { %v1025_v54 = vpop.permute.xlu1 %1024 }
 0x441   : > { %1098 = vst.msk [vmem:[#allocation2 + $0x170] sm:$0xff] %vm1074_vm2, %v1025_v54  ;;  %v1023_v15 = vpop.permute.xlu0 %1022 }
 0x442   : > { %1097 = vst.msk [vmem:[#allocation2 + $0x160] sm:$0xff] %vm1074_vm2, %v1023_v15  ;;  %2955 = vrot.lane.b32.xlu1 %v13901_v59, %s16730_s21  ;;  %v14258_v15 = vld [vmem:[%s11843_s4 + $0x15b] sm:$0xff] }
 0x443   : > { %2953 = vrot.lane.b32.xlu0 %v13905_v26, %s16730_s21 }
 0x444   : > { %v2566_v39 = vpop.permute.xlu1 %2565 }
 0x445   : > { %2641 = vst.msk [vmem:[#allocation2 + $0x150] sm:$0xff] %vm2619_vm10, %v2566_v39  ;;  %v2564_v19 = vpop.permute.xlu0 %2563 }
 0x446   : > { %2640 = vst.msk [vmem:[#allocation2 + $0x140] sm:$0xff] %vm2619_vm10, %v2564_v19  ;;  %4561 = vrot.lane.b32.xlu1 %v14179_v17, %s16719_s23  ;;  %v14261_v19 = vld [vmem:[%s11843_s4 + $0x153] sm:$0xff] }
 0x447   : > { %4559 = vrot.lane.b32.xlu0 %v14182_v14, %s16719_s23 }
 0x448   : > { %v4173_v4 = vpop.permute.xlu1 %4172 }
 0x449   : > { %4247 = vst.msk [vmem:[#allocation2 + $0x158] sm:$0xff] %vm1267_vm3, %v4173_v4  ;;  %v4171_v56 = vpop.permute.xlu0 %4170 }
 0x44a   : > { %4246 = vst.msk [vmem:[#allocation2 + $0x148] sm:$0xff] %vm1267_vm3, %v4171_v56  ;;  %1607 = vrot.lane.b32.xlu1 %v13901_v59, %s16719_s23 }
 0x44b   : > { %1605 = vrot.lane.b32.xlu0 %v13905_v26, %s16719_s23 }
 0x44c   : > { %v1218_v27 = vpop.permute.xlu1 %1217 }
 0x44d   : > { %1291 = vst.msk [vmem:[#allocation2 + $0x170] sm:$0xff] %vm1267_vm3, %v1218_v27  ;;  %v1216_v46 = vpop.permute.xlu0 %1215 }
 0x44e   : > { %1290 = vst.msk [vmem:[#allocation2 + $0x160] sm:$0xff] %vm1267_vm3, %v1216_v46  ;;  %3148 = vrot.lane.b32.xlu1 %v13940_v61, %s16731_s5 }
 0x44f   : > { %3146 = vrot.lane.b32.xlu0 %v13947_v24, %s16731_s5 }
 0x450   : > { %v2759_v33 = vpop.permute.xlu1 %2758 }
 0x451   : > { %2834 = vst.msk [vmem:[#allocation2 + $0x150] sm:$0xff] %vm2812_vm11, %v2759_v33  ;;  %v2757_v59 = vpop.permute.xlu0 %2756 }
 0x452   : > { %2833 = vst.msk [vmem:[#allocation2 + $0x140] sm:$0xff] %vm2812_vm11, %v2757_v59  ;;  %4753 = vrot.lane.b32.xlu1 %v14203_v41, %s16720_s26  ;;  %v14282_v59 = vld [vmem:[%s11843_s4 + $0x15c] sm:$0xff] }
 0x453   : > { %4751 = vrot.lane.b32.xlu0 %v14206_v35, %s16720_s26 }
 0x454   : > { %v4365_v26 = vpop.permute.xlu1 %4364 }
 0x455   : > { %4439 = vst.msk [vmem:[#allocation2 + $0x158] sm:$0xff] %vm16870_vm9, %v4365_v26  ;;  %v4363_v63 = vpop.permute.xlu0 %4362  ;;  %vm16875_vm9 = vmmov %vm16874_vm5 }
 0x456   : > { %4438 = vst.msk [vmem:[#allocation2 + $0x148] sm:$0xff] %vm16871_vm13, %v4363_v63  ;;  %1800 = vrot.lane.b32.xlu1 %v13940_v61, %s16720_s26  ;;  %vm16876_vm13 = vcmask 392512   ;;  %v14285_v63 = vld [vmem:[%s11843_s4 + $0x154] sm:$0xff] }
 0x457   : > { %1798 = vrot.lane.b32.xlu0 %v13947_v24, %s16720_s26  ;;  %v5365_v30 = vpop.f32.mrb[28].mxu0 }
 0x458   : > { %v5366_v53 = vadd.f32 %v14032_v28, %v5365_v30  ;;  %v5367_v23 = vpop.f32.mrb[29].mxu0  ;;  %v1411_v10 = vpop.permute.xlu1 %1410 }
 0x459   : > { %1484 = vst.msk [vmem:[#allocation2 + $0x170] sm:$0xff] %vm16872_vm4, %v1411_v10  ;;  %v1409_v50 = vpop.permute.xlu0 %1408  ;;  %v5368_v44 = vpop.f32.mrb[30].mxu0  ;;  %vm16877_vm4 = vmmov %vm16876_vm13 }
 0x45a   : > { %v5450_v25 = vmax.f32 %v5366_v53, 0.0  ;;  %1483 = vst.msk [vmem:[#allocation2 + $0x160] sm:$0xff] %vm16873_vm12, %v1409_v50  ;;  %v5369_v11 = vadd.f32 %v14032_v28, %v5368_v44  ;;  %v5370_v49 = vpop.f32.mrb[31].mxu0  ;;  %3342 = vrot.lane.b32.xlu1 %v13988_v62, %s16732_s3  ;;  %vm16878_vm12 = vmmov %vm16877_vm4 }
 0x45b   : > { %3340 = vrot.lane.b32.xlu0 %v13991_v31, %s16732_s3 }
 0x45c   : > { %v5451_v61 = vmax.f32 %v5369_v11, 0.0  ;;  %v2952_v24 = vpop.permute.xlu1 %2951  ;;  %v5538_v1 = vmax.f32 %v5450_v25, 0.0  ;;  %v14306_v25 = vld [vmem:[%s11843_s4 + $0x15d] sm:$0xff] }
 0x45d   : > { %3027 = vst.msk [vmem:[#allocation2 + $0x150] sm:$0xff] %vm16874_vm5, %v2952_v24  ;;  %v2950_v58 = vpop.permute.xlu0 %2949  ;;  %vm16879_vm5 = vmmov %vm16877_vm4 }
 0x45e   : > { %v5539_v22 = vmax.f32 %v5451_v61, 0.0  ;;  %3026 = vst.msk [vmem:[#allocation2 + $0x140] sm:$0xff] %vm16875_vm9, %v2950_v58  ;;  %4945 = vrot.lane.b32.xlu1 %v13932_v0, %s16721_s28  ;;  %vm16880_vm9 = vcmask 917312   ;;  %v14317_v61 = vld [vmem:[%s16801_s18] ss:$0 sm:$0xff] }
 0x45f   : > { %4943 = vrot.lane.b32.xlu0 %v13935_v34, %s16721_s28 }
 0x460   : > { %v5563_v55 = vpack.c.bf16 %v5539_v22, %v5538_v1  ;;  %v4558_v60 = vpop.permute.xlu1 %4557 }
 0x461   : > { %4632 = vst.msk [vmem:[#allocation2 + $0x158] sm:$0xff] %vm16876_vm13, %v4558_v60  ;;  %v4556_v29 = vpop.permute.xlu0 %4555  ;;  %vm16881_vm13 = vmmov %vm16880_vm9 }
 0x462   : > { %4631 = vst.msk [vmem:[#allocation2 + $0x148] sm:$0xff] %vm16877_vm4, %v4556_v29  ;;  %11176 = vmatmul.mubr.msk.bf16.gmra.mrb[12].mxu1 %vm5226_vm14, %v5563_v55  ;;  %1994 = vrot.lane.b32.xlu1 %v13988_v62, %s16721_s28  ;;  %vm16882_vm4 = vcmask 982912  }
 0x463   : > { %1992 = vrot.lane.b32.xlu0 %v13991_v31, %s16721_s28 }
 0x464   : > { %v1604_v57 = vpop.permute.xlu1 %1603 }
 0x465   : > { %1677 = vst.msk [vmem:[#allocation2 + $0x170] sm:$0xff] %vm16878_vm12, %v1604_v57  ;;  %v1602_v54 = vpop.permute.xlu0 %1601  ;;  %vm16883_vm12 = vmmov %vm16882_vm4 }
 0x466   : > { %1676 = vst.msk [vmem:[#allocation2 + $0x160] sm:$0xff] %vm16879_vm5, %v1602_v54  ;;  %3535 = vrot.lane.b32.xlu1 %v14012_v45, %s16733_s20  ;;  %vm16884_vm5 = vcmask 261120  }
 0x467   : > { %3533 = vrot.lane.b32.xlu0 %v14015_v5, %s16733_s20 }
 0x468   : > { %v3145_v62 = vpop.permute.xlu1 %3144 }
 0x469   : > { %3220 = vst.msk [vmem:[#allocation2 + $0x150] sm:$0xff] %vm16880_vm9, %v3145_v62  ;;  %v3143_v31 = vpop.permute.xlu0 %3142  ;;  %vm16885_vm9 = vmmov %vm16884_vm5 }
 0x46a   : > { %3219 = vst.msk [vmem:[#allocation2 + $0x140] sm:$0xff] %vm16881_vm13, %v3143_v31  ;;  %2187 = vrot.lane.b32.xlu1 %v14012_v45, %s16722_s22  ;;  %vm16886_vm13 = vmmov %vm16884_vm5 }
 0x46b   : > { %2185 = vrot.lane.b32.xlu0 %v14015_v5, %s16722_s22 }
 0x46c   : > { %v4750_v39 = vpop.permute.xlu1 %4749 }
 0x46d   : > { %4824 = vst.msk [vmem:[#allocation2 + $0x158] sm:$0xff] %vm1846_vm6, %v4750_v39  ;;  %v4748_v4 = vpop.permute.xlu0 %4747 }
 0x46e   : > { %4823 = vst.msk [vmem:[#allocation2 + $0x148] sm:$0xff] %vm1846_vm6, %v4748_v4  ;;  %3796 = vrot.lane.b32.xlu1 %v14258_v15, %s16723_s30 }
 0x46f   : > { %3794 = vrot.lane.b32.xlu0 %v14261_v19, %s16723_s30 }
 0x470   : > { %v1797_v56 = vpop.permute.xlu1 %1796 }
 0x471   : > { %1870 = vst.msk [vmem:[#allocation2 + $0x170] sm:$0xff] %vm1846_vm6, %v1797_v56  ;;  %v1795_v27 = vpop.permute.xlu0 %1794 }
 0x472   : > { %1869 = vst.msk [vmem:[#allocation2 + $0x160] sm:$0xff] %vm1846_vm6, %v1795_v27  ;;  %839 = vrot.lane.b32.xlu1 %v14012_v45, %s16723_s30 }
 0x473   : > { %837 = vrot.lane.b32.xlu0 %v14015_v5, %s16723_s30 }
 0x474   : > { %v3339_v46 = vpop.permute.xlu1 %3338 }
 0x475   : > { %3414 = vst.msk [vmem:[#allocation2 + $0x150] sm:$0xff] %vm16882_vm4, %v3339_v46  ;;  %v3337_v33 = vpop.permute.xlu0 %3336  ;;  %vm16887_vm4 = vmmov %vm16884_vm5 }
 0x476   : > { %3413 = vst.msk [vmem:[#allocation2 + $0x140] sm:$0xff] %vm16883_vm12, %v3337_v33  ;;  %2380 = vrot.lane.b32.xlu1 %v13738_v6, %s16724_s0  ;;  %v14345_v33 = vld [vmem:[%s11843_s4 + $0x182] sm:$0xff]  ;;  %vm16888_vm12 = vcmask 654912  }
 0x477   : > { %2378 = vrot.lane.b32.xlu0 %v13741_v8, %s16724_s0  ;;  %3678 = vst.msk [vmem:[#allocation2 + $0x1c8] sm:$0xff] %vm688_vm0, %v14345_v33 }
 0x478   : > { %v4942_v26 = vpop.permute.xlu1 %4941 }
 0x479   : > { %5016 = vst.msk [vmem:[#allocation2 + $0x158] sm:$0xff] %vm2040_vm7, %v4942_v26  ;;  %v4940_v45 = vpop.permute.xlu0 %4939 }
 0x47a   : > { %5015 = vst.msk [vmem:[#allocation2 + $0x148] sm:$0xff] %vm2040_vm7, %v4940_v45  ;;  %3988 = vrot.lane.b32.xlu1 %v14282_v59, %s16725_s29  ;;  %v14357_v45 = vld [vmem:[%s11843_s4 + $0x156] sm:$0xff] }
 0x47b   : > { %3986 = vrot.lane.b32.xlu0 %v14285_v63, %s16725_s29 }
 0x47c   : > { %v1991_v5 = vpop.permute.xlu1 %1990 }
 0x47d   : > { %2064 = vst.msk [vmem:[#allocation2 + $0x170] sm:$0xff] %vm2040_vm7, %v1991_v5  ;;  %v1989_v30 = vpop.permute.xlu0 %1988 }
 0x47e   : > { %2063 = vst.msk [vmem:[#allocation2 + $0x160] sm:$0xff] %vm2040_vm7, %v1989_v30  ;;  %1032 = vrot.lane.b32.xlu1 %v13738_v6, %s16725_s29 }
 0x47f   : > { %1030 = vrot.lane.b32.xlu0 %v13741_v8, %s16725_s29  ;;  %v14310_v8 = vld [vmem:[%s11843_s4 + $0x155] sm:$0xff] }
 0x480   : > { %v3532_v53 = vpop.permute.xlu1 %3531  ;;  %v5070_v23 = vld [vmem:[#allocation2 + $0x158] sm:$0xff] }
 0x481   : > { %3607 = vst.msk [vmem:[#allocation2 + $0x150] sm:$0xff] %vm3585_vm15, %v3532_v53  ;;  %v3530_v10 = vpop.permute.xlu0 %3529  ;;  %v5068_v50 = vld [vmem:[#allocation2 + $0x148] sm:$0xff] }
 0x482   : > { %3606 = vst.msk [vmem:[#allocation2 + $0x140] sm:$0xff] %vm3585_vm15, %v3530_v10  ;;  %2573 = vrot.lane.b32.xlu1 %v14072_v2, %s16726_s1  ;;  %v5112_v44 = vpack.c.bf16 %v5070_v23, %v5068_v50 }
 0x483   : > { %2571 = vrot.lane.b32.xlu0 %v14075_v42, %s16726_s1 }
 0x484   : > { %10769 = vmatprep.mubr.msk.bf16.mxu0 %vm5226_vm14, %v5112_v44  ;;  %v2184_v6 = vpop.permute.xlu1 %2183 }
 0x485   : > { %2257 = vst.msk [vmem:[#allocation2 + $0x170] sm:$0xff] %vm2233_vm8, %v2184_v6  ;;  %v2182_v11 = vpop.permute.xlu0 %2181 }
 0x486   : > { %v11173_v49 = vpop.f32.mrb[8].mxu1  ;;  %2256 = vst.msk [vmem:[#allocation2 + $0x160] sm:$0xff] %vm2233_vm8, %v2182_v11  ;;  %4180 = vrot.lane.b32.xlu1 %v14306_v25, %s16727_s24 }
 0x487   : > { %v5734_v24 = vadd.f32 %v14317_v61, %v11173_v49  ;;  %v5725_v58 = vpop.f32.mrb[9].mxu1  ;;  %4178 = vrot.lane.b32.xlu0 %v14310_v8, %s16727_s24 }
 0x488   : > { %v5726_v1 = vadd.f32 %v14317_v61, %v5725_v58  ;;  %v11174_v22 = vpop.f32.mrb[10].mxu1  ;;  %v3793_v57 = vpop.permute.xlu1 %3792  ;;  %v5069_v51 = vld [vmem:[#allocation2 + $0x150] sm:$0xff] }
 0x489   : > { %v5830_v55 = vmax.f32 %v5734_v24, 0.0  ;;  %v5737_v60 = vadd.f32 %v14317_v61, %v11174_v22  ;;  %v5728_v29 = vpop.f32.mrb[11].mxu1  ;;  %3865 = vst.msk [vmem:[#allocation2 + $0x178] sm:$0xff] %vm881_vm1, %v3793_v57  ;;  %v3791_v62 = vpop.permute.xlu0 %3790  ;;  %v5067_v31 = vld [vmem:[#allocation2 + $0x140] sm:$0xff]  ;;  %v14398_v22 = vld [vmem:[%s11843_s4 + $0x170] sm:$0xff] }
 0x48a   : > { %v5828_v40 = vmax.f32 %v5726_v1, 0.0  ;;  %v5729_v54 = vadd.f32 %v14317_v61, %v5728_v29  ;;  %3864 = vst.msk [vmem:[#allocation2 + $0x168] sm:$0xff] %vm881_vm1, %v3791_v62  ;;  %1225 = vrot.lane.b32.xlu1 %v14072_v2, %s16727_s24  ;;  %v5111_v4 = vpack.c.bf16 %v5069_v51, %v5067_v31  ;;  %v14342_v2 = vld [vmem:[%s11843_s4 + $0x18a] sm:$0xff] }
 0x48b   : > { %5863 = vst.msk [vmem:[#allocation3 + $0x91] sm:$0xff] %vm16884_vm5, %v5830_v55  ;;  %v5831_v39 = vmax.f32 %v5737_v60, 0.0  ;;  %1223 = vrot.lane.b32.xlu0 %v14075_v42, %s16727_s24  ;;  %v14350_v42 = vld [vmem:[%s11843_s4 + $0x15e] sm:$0xff]  ;;  %vm16889_vm5 = vmmov %vm16887_vm4  ;;  %v14401_v60 = vld [vmem:[%s11843_s4 + $0x168] sm:$0xff] }
 0x48c   : > { %5861 = vst.msk [vmem:[#allocation3 + $0x79] sm:$0xff] %vm16885_vm9, %v5828_v40  ;;  %v5829_v56 = vmax.f32 %v5729_v54, 0.0  ;;  %5388 = vmatmul.mubr.bf16.gmra.mrb[40].mxu0 %v5111_v4  ;;  %v836_v27 = vpop.permute.xlu1 %835  ;;  %vm16890_vm9 = vmmov %vm16888_vm12  ;;  %v14422_v40 = vld [vmem:[%s11843_s4 + $0x171] sm:$0xff]  ;;  %v14425_v62 = vld [vmem:[%s11843_s4 + $0x169] sm:$0xff] }
 0x48d   : > { %5864 = vst.msk [vmem:[#allocation3 + $0x99] sm:$0xff] %vm16886_vm13, %v5831_v39  ;;  %v834_v46 = vpop.permute.xlu0 %833  ;;  %vm16891_vm13 = vmmov %vm16887_vm4 }
 0x48e   : > { %5862 = vst.msk [vmem:[#allocation3 + $0x81] sm:$0xff] %vm16887_vm4, %v5829_v56  ;;  %2766 = vrot.lane.b32.xlu1 %v14096_v9, %s16728_s2 }
 0x48f   : > { %907 = vst.msk [vmem:[#allocation2 + $0x190] sm:$0xff] %vm881_vm1, %v836_v27  ;;  %906 = vst.msk [vmem:[#allocation2 + $0x180] sm:$0xff] %vm881_vm1, %v834_v46  ;;  %2764 = vrot.lane.b32.xlu0 %v14099_v48, %s16728_s2 }
 0x490   : > { %3679 = vst.msk [vmem:[#allocation2 + $0x1d8] sm:$0xff] %vm688_vm0, %v14342_v2  ;;  %v2377_v26 = vpop.permute.xlu1 %2376 }
 0x491   : > { %2450 = vst.msk [vmem:[#allocation2 + $0x170] sm:$0xff] %vm16888_vm12, %v2377_v26  ;;  %v2375_v30 = vpop.permute.xlu0 %2374  ;;  %vm16892_vm12 = vmmov %vm16887_vm4 }
 0x492   : > { %v6538_v5 = vld [vmem:[#allocation3 + $0x91] sm:$0xff]  ;;  %2449 = vst.msk [vmem:[#allocation2 + $0x160] sm:$0xff] %vm16890_vm9, %v2375_v30  ;;  %4372 = vrot.lane.b32.xlu1 %v14350_v42, %s16729_s27  ;;  %vm16894_vm9 = vmmov %vm16887_vm4 }
 0x493   : > { %v14360_v53 = vld [vmem:[#allocation3 + $0x90] sm:$0xff]  ;;  %6570 = vst.msk [vmem:[#allocation4 + $0xa8] sm:$0xff] %vm16889_vm5, %v6538_v5  ;;  %v6536_v23 = vld [vmem:[#allocation3 + $0x79] sm:$0xff]  ;;  %4370 = vrot.lane.b32.xlu0 %v14357_v45, %s16729_s27  ;;  %vm16893_vm5 = vmmov %vm16887_vm4 }
 0x494   : > { %v14366_v10 = vld [vmem:[#allocation3 + $0x78] sm:$0xff]  ;;  %5929 = vst.msk [vmem:[#allocation4 + $0xc0] sm:$0xff] %vm16891_vm13, %v14360_v53  ;;  %v3985_v11 = vpop.permute.xlu1 %3984  ;;  %vm16895_vm13 = vmmov %vm16887_vm4 }
 0x495   : > { %6568 = vst.msk [vmem:[#allocation4 + $0x88] sm:$0xff] %vm16887_vm4, %v6536_v23  ;;  %v6539_v50 = vld [vmem:[#allocation3 + $0x99] sm:$0xff]  ;;  %v6537_v6 = vld [vmem:[#allocation3 + $0x81] sm:$0xff]  ;;  %v3983_v24 = vpop.permute.xlu0 %3982 }
 0x496   : > { %v14373_v44 = vld [vmem:[#allocation3 + $0x98] sm:$0xff]  ;;  %5927 = vst.msk [vmem:[#allocation4 + $0xa0] sm:$0xff] %vm16892_vm12, %v14366_v10  ;;  %v14378_v49 = vld [vmem:[#allocation3 + $0x80] sm:$0xff]  ;;  %1418 = vrot.lane.b32.xlu1 %v14096_v9, %s16729_s27  ;;  %vm16896_vm12 = vcmask 326912  }
 0x497   : > { %6571 = vst.msk [vmem:[#allocation4 + $0xb8] sm:$0xff] %vm16893_vm5, %v6539_v50  ;;  %1416 = vrot.lane.b32.xlu0 %v14099_v48, %s16729_s27  ;;  %vm16897_vm5 = vmmov %vm16896_vm12 }
 0x498   : > { %5930 = vst.msk [vmem:[#allocation4 + $0xd0] sm:$0xff] %vm16894_vm9, %v14373_v44  ;;  %v1029_v58 = vpop.permute.xlu1 %1028  ;;  %vm16898_vm9 = vmmov %vm16897_vm5 }
 0x499   : > { %6569 = vst.msk [vmem:[#allocation4 + $0x98] sm:$0xff] %vm16895_vm13, %v6537_v6  ;;  %v1027_v1 = vpop.permute.xlu0 %1026  ;;  %vm16899_vm13 = vmmov %vm16897_vm5 }
 0x49a   : > { %4057 = vst.msk [vmem:[#allocation2 + $0x178] sm:$0xff] %vm1074_vm2, %v3985_v11  ;;  %4056 = vst.msk [vmem:[#allocation2 + $0x168] sm:$0xff] %vm1074_vm2, %v3983_v24  ;;  %2959 = vrot.lane.b32.xlu1 %v14120_v3, %s16730_s21 }
 0x49b   : > { %5928 = vst.msk [vmem:[#allocation4 + $0xb0] sm:$0xff] %vm16887_vm4, %v14378_v49  ;;  %2957 = vrot.lane.b32.xlu0 %v14124_v12, %s16730_s21  ;;  %vm16900_vm4 = vcmask 851712  }
 0x49c   : > { %1100 = vst.msk [vmem:[#allocation2 + $0x190] sm:$0xff] %vm1074_vm2, %v1029_v58  ;;  %1099 = vst.msk [vmem:[#allocation2 + $0x180] sm:$0xff] %vm1074_vm2, %v1027_v1  ;;  %v2570_v55 = vpop.permute.xlu1 %2569 }
 0x49d   : > { %2643 = vst.msk [vmem:[#allocation2 + $0x170] sm:$0xff] %vm2619_vm10, %v2570_v55  ;;  %v2568_v9 = vpop.permute.xlu0 %2567  ;;  %v685_v55 = vld [vmem:[%s11843_s4 + $0x158] sm:$0xff] }
 0x49e   : > { %2642 = vst.msk [vmem:[#allocation2 + $0x160] sm:$0xff] %vm2619_vm10, %v2568_v9  ;;  %4565 = vrot.lane.b32.xlu1 %v14398_v22, %s16719_s23  ;;  %v684_v9 = vld [vmem:[%s11843_s4 + $0x150] sm:$0xff] }
 0x49f   : > { %4563 = vrot.lane.b32.xlu0 %v14401_v60, %s16719_s23  ;;  %718 = vst.msk [vmem:[#allocation2 + $0x1d0] sm:$0xff] %vm688_vm0, %v685_v55  ;;  %717 = vst.msk [vmem:[#allocation2 + $0x1c0] sm:$0xff] %vm688_vm0, %v684_v9  ;;  %v14548_v9 = vld [vmem:[%s11843_s4 + $0x1a2] sm:$0xff] }
 0x4a0   : > { %v4177_v48 = vpop.permute.xlu1 %4176  ;;  %3681 = vst.msk [vmem:[#allocation2 + $0x1f8] sm:$0xff] %vm688_vm0, %v14548_v9 }
 0x4a1   : > { %4249 = vst.msk [vmem:[#allocation2 + $0x178] sm:$0xff] %vm1267_vm3, %v4177_v48  ;;  %v4175_v29 = vpop.permute.xlu0 %4174 }
 0x4a2   : > { %4248 = vst.msk [vmem:[#allocation2 + $0x168] sm:$0xff] %vm1267_vm3, %v4175_v29  ;;  %1611 = vrot.lane.b32.xlu1 %v14120_v3, %s16719_s23  ;;  %v14477_v29 = vld [vmem:[%s11843_s4 + $0x173] sm:$0xff] }
 0x4a3   : > { %1609 = vrot.lane.b32.xlu0 %v14124_v12, %s16719_s23 }
 0x4a4   : > { %v1222_v57 = vpop.permute.xlu1 %1221 }
 0x4a5   : > { %1293 = vst.msk [vmem:[#allocation2 + $0x190] sm:$0xff] %vm1267_vm3, %v1222_v57  ;;  %v1220_v51 = vpop.permute.xlu0 %1219 }
 0x4a6   : > { %1292 = vst.msk [vmem:[#allocation2 + $0x180] sm:$0xff] %vm1267_vm3, %v1220_v51  ;;  %3152 = vrot.lane.b32.xlu1 %v14151_v32, %s16731_s5  ;;  %v14480_v51 = vld [vmem:[%s11843_s4 + $0x16b] sm:$0xff] }
 0x4a7   : > { %3150 = vrot.lane.b32.xlu0 %v14158_v43, %s16731_s5 }
 0x4a8   : > { %v2763_v54 = vpop.permute.xlu1 %2762 }
 0x4a9   : > { %2836 = vst.msk [vmem:[#allocation2 + $0x170] sm:$0xff] %vm2812_vm11, %v2763_v54  ;;  %v2761_v3 = vpop.permute.xlu0 %2760 }
 0x4aa   : > { %2835 = vst.msk [vmem:[#allocation2 + $0x160] sm:$0xff] %vm2812_vm11, %v2761_v3  ;;  %4757 = vrot.lane.b32.xlu1 %v14422_v40, %s16720_s26 }
 0x4ab   : > { %4755 = vrot.lane.b32.xlu0 %v14425_v62, %s16720_s26 }
 0x4ac   : > { %v4369_v12 = vpop.permute.xlu1 %4368 }
 0x4ad   : > { %4441 = vst.msk [vmem:[#allocation2 + $0x178] sm:$0xff] %vm16896_vm12, %v4369_v12  ;;  %v4367_v31 = vpop.permute.xlu0 %4366  ;;  %vm16901_vm12 = vmmov %vm16900_vm4 }
 0x4ae   : > { %4440 = vst.msk [vmem:[#allocation2 + $0x168] sm:$0xff] %vm16897_vm5, %v4367_v31  ;;  %1804 = vrot.lane.b32.xlu1 %v14151_v32, %s16720_s26  ;;  %vm16902_vm5 = vcmask 392512  }
 0x4af   : > { %1802 = vrot.lane.b32.xlu0 %v14158_v43, %s16720_s26  ;;  %v5373_v39 = vpop.f32.mrb[32].mxu0 }
 0x4b0   : > { %v5374_v4 = vadd.f32 %v14032_v28, %v5373_v39  ;;  %v5375_v56 = vpop.f32.mrb[33].mxu0  ;;  %v1415_v27 = vpop.permute.xlu1 %1414 }
 0x4b1   : > { %1486 = vst.msk [vmem:[#allocation2 + $0x190] sm:$0xff] %vm16898_vm9, %v1415_v27  ;;  %v1413_v46 = vpop.permute.xlu0 %1412  ;;  %v5376_v26 = vpop.f32.mrb[34].mxu0  ;;  %vm16903_vm9 = vmmov %vm16902_vm5  ;;  %v14504_v27 = vld [vmem:[%s11843_s4 + $0x16c] sm:$0xff] }
 0x4b2   : > { %v5452_v5 = vmax.f32 %v5374_v4, 0.0  ;;  %1485 = vst.msk [vmem:[#allocation2 + $0x180] sm:$0xff] %vm16899_vm13, %v1413_v46  ;;  %v5377_v30 = vadd.f32 %v14032_v28, %v5376_v26  ;;  %v5378_v23 = vpop.f32.mrb[35].mxu0  ;;  %3346 = vrot.lane.b32.xlu1 %v14179_v17, %s16732_s3  ;;  %vm16904_vm13 = vmmov %vm16902_vm5  ;;  %v14501_v4 = vld [vmem:[%s11843_s4 + $0x174] sm:$0xff] }
 0x4b3   : > { %3344 = vrot.lane.b32.xlu0 %v14182_v14, %s16732_s3 }
 0x4b4   : > { %v5453_v32 = vmax.f32 %v5377_v30, 0.0  ;;  %v2956_v43 = vpop.permute.xlu1 %2955  ;;  %v5540_v6 = vmax.f32 %v5452_v5, 0.0 }
 0x4b5   : > { %3029 = vst.msk [vmem:[#allocation2 + $0x170] sm:$0xff] %vm16900_vm4, %v2956_v43  ;;  %v2954_v50 = vpop.permute.xlu0 %2953  ;;  %vm16905_vm4 = vmmov %vm16902_vm5  ;;  %v14525_v43 = vld [vmem:[%s11843_s4 + $0x175] sm:$0xff] }
 0x4b6   : > { %v5541_v11 = vmax.f32 %v5453_v32, 0.0  ;;  %3028 = vst.msk [vmem:[#allocation2 + $0x160] sm:$0xff] %vm16901_vm12, %v2954_v50  ;;  %4949 = vrot.lane.b32.xlu1 %v14143_v13, %s16721_s28  ;;  %vm16906_vm12 = vcmask 917312  }
 0x4b7   : > { %4947 = vrot.lane.b32.xlu0 %v14146_v38, %s16721_s28 }
 0x4b8   : > { %v5564_v28 = vpack.c.bf16 %v5541_v11, %v5540_v6  ;;  %v4562_v24 = vpop.permute.xlu1 %4561 }
 0x4b9   : > { %4634 = vst.msk [vmem:[#allocation2 + $0x178] sm:$0xff] %vm16902_vm5, %v4562_v24  ;;  %v4560_v58 = vpop.permute.xlu0 %4559  ;;  %vm16907_vm5 = vmmov %vm16906_vm12 }
 0x4ba   : > { %4633 = vst.msk [vmem:[#allocation2 + $0x168] sm:$0xff] %vm16903_vm9, %v4560_v58  ;;  %11179 = vmatprep.mubr.msk.bf16.mxu1 %vm5226_vm14, %v5564_v28  ;;  %1998 = vrot.lane.b32.xlu1 %v14179_v17, %s16721_s28  ;;  %vm16908_vm9 = vcmask 982912  }
 0x4bb   : > { %1996 = vrot.lane.b32.xlu0 %v14182_v14, %s16721_s28 }
 0x4bc   : > { %v1608_v1 = vpop.permute.xlu1 %1607 }
 0x4bd   : > { %1679 = vst.msk [vmem:[#allocation2 + $0x190] sm:$0xff] %vm16904_vm13, %v1608_v1  ;;  %v1606_v48 = vpop.permute.xlu0 %1605  ;;  %vm16909_vm13 = vmmov %vm16908_vm9 }
 0x4be   : > { %1678 = vst.msk [vmem:[#allocation2 + $0x180] sm:$0xff] %vm16905_vm4, %v1606_v48  ;;  %3539 = vrot.lane.b32.xlu1 %v14203_v41, %s16733_s20  ;;  %v14551_v48 = vld [vmem:[%s11843_s4 + $0x19a] sm:$0xff]  ;;  %vm16910_vm4 = vcmask 654912  }
 0x4bf   : > { %3537 = vrot.lane.b32.xlu0 %v14206_v35, %s16733_s20  ;;  %3680 = vst.msk [vmem:[#allocation2 + $0x1e8] sm:$0xff] %vm688_vm0, %v14551_v48 }
 0x4c0   : > { %v3149_v17 = vpop.permute.xlu1 %3148 }
 0x4c1   : > { %3222 = vst.msk [vmem:[#allocation2 + $0x170] sm:$0xff] %vm16906_vm12, %v3149_v17  ;;  %v3147_v14 = vpop.permute.xlu0 %3146  ;;  %v14563_v17 = vld [vmem:[%s11843_s4 + $0x16e] sm:$0xff]  ;;  %vm16911_vm12 = vmmov %vm16910_vm4 }
 0x4c2   : > { %3221 = vst.msk [vmem:[#allocation2 + $0x160] sm:$0xff] %vm16907_vm5, %v3147_v14  ;;  %2191 = vrot.lane.b32.xlu1 %v14203_v41, %s16722_s22  ;;  %vm16912_vm5 = vcmask 326912  }
 0x4c3   : > { %2189 = vrot.lane.b32.xlu0 %v14206_v35, %s16722_s22 }
 0x4c4   : > { %v4754_v57 = vpop.permute.xlu1 %4753 }
 0x4c5   : > { %4826 = vst.msk [vmem:[#allocation2 + $0x178] sm:$0xff] %vm1846_vm6, %v4754_v57  ;;  %v4752_v54 = vpop.permute.xlu0 %4751 }
 0x4c6   : > { %4825 = vst.msk [vmem:[#allocation2 + $0x168] sm:$0xff] %vm1846_vm6, %v4752_v54  ;;  %3800 = vrot.lane.b32.xlu1 %v14477_v29, %s16723_s30 }
 0x4c7   : > { %3798 = vrot.lane.b32.xlu0 %v14480_v51, %s16723_s30 }
 0x4c8   : > { %v1801_v3 = vpop.permute.xlu1 %1800 }
 0x4c9   : > { %1872 = vst.msk [vmem:[#allocation2 + $0x190] sm:$0xff] %vm1846_vm6, %v1801_v3  ;;  %v1799_v12 = vpop.permute.xlu0 %1798 }
 0x4ca   : > { %1871 = vst.msk [vmem:[#allocation2 + $0x180] sm:$0xff] %vm1846_vm6, %v1799_v12  ;;  %843 = vrot.lane.b32.xlu1 %v14203_v41, %s16723_s30 }
 0x4cb   : > { %841 = vrot.lane.b32.xlu0 %v14206_v35, %s16723_s30 }
 0x4cc   : > { %v3343_v31 = vpop.permute.xlu1 %3342 }
 0x4cd   : > { %3416 = vst.msk [vmem:[#allocation2 + $0x170] sm:$0xff] %vm16908_vm9, %v3343_v31  ;;  %v3341_v39 = vpop.permute.xlu0 %3340  ;;  %v14584_v31 = vld [vmem:[%s11843_s4 + $0x188] sm:$0xff]  ;;  %vm16913_vm9 = vmmov %vm16912_vm5 }
 0x4ce   : > { %3415 = vst.msk [vmem:[#allocation2 + $0x160] sm:$0xff] %vm16909_vm13, %v3341_v39  ;;  %2384 = vrot.lane.b32.xlu1 %v13932_v0, %s16724_s0  ;;  %vm16914_vm13 = vmmov %vm16912_vm5 }
 0x4cf   : > { %2382 = vrot.lane.b32.xlu0 %v13935_v34, %s16724_s0 }
 0x4d0   : > { %v4946_v56 = vpop.permute.xlu1 %4945 }
 0x4d1   : > { %5018 = vst.msk [vmem:[#allocation2 + $0x178] sm:$0xff] %vm2040_vm7, %v4946_v56  ;;  %v4944_v41 = vpop.permute.xlu0 %4943  ;;  %v14587_v56 = vld [vmem:[%s11843_s4 + $0x180] sm:$0xff] }
 0x4d2   : > { %5017 = vst.msk [vmem:[#allocation2 + $0x168] sm:$0xff] %vm2040_vm7, %v4944_v41  ;;  %3992 = vrot.lane.b32.xlu1 %v14501_v4, %s16725_s29 }
 0x4d3   : > { %3990 = vrot.lane.b32.xlu0 %v14504_v27, %s16725_s29 }
 0x4d4   : > { %v1995_v35 = vpop.permute.xlu1 %1994 }
 0x4d5   : > { %2066 = vst.msk [vmem:[#allocation2 + $0x190] sm:$0xff] %vm2040_vm7, %v1995_v35  ;;  %v1993_v46 = vpop.permute.xlu0 %1992 }
 0x4d6   : > { %2065 = vst.msk [vmem:[#allocation2 + $0x180] sm:$0xff] %vm2040_vm7, %v1993_v46  ;;  %1036 = vrot.lane.b32.xlu1 %v13932_v0, %s16725_s29 }
 0x4d7   : > { %1034 = vrot.lane.b32.xlu0 %v13935_v34, %s16725_s29  ;;  %v14529_v34 = vld [vmem:[%s11843_s4 + $0x16d] sm:$0xff] }
 0x4d8   : > { %v3536_v26 = vpop.permute.xlu1 %3535  ;;  %v5074_v5 = vld [vmem:[#allocation2 + $0x178] sm:$0xff] }
 0x4d9   : > { %3609 = vst.msk [vmem:[#allocation2 + $0x170] sm:$0xff] %vm3585_vm15, %v3536_v26  ;;  %v3534_v30 = vpop.permute.xlu0 %3533  ;;  %v5072_v23 = vld [vmem:[#allocation2 + $0x168] sm:$0xff] }
 0x4da   : > { %3608 = vst.msk [vmem:[#allocation2 + $0x160] sm:$0xff] %vm3585_vm15, %v3534_v30  ;;  %2577 = vrot.lane.b32.xlu1 %v14258_v15, %s16726_s1  ;;  %v5114_v32 = vpack.c.bf16 %v5074_v5, %v5072_v23  ;;  %v14608_v26 = vld [vmem:[%s11843_s4 + $0x189] sm:$0xff]  ;;  %v14611_v30 = vld [vmem:[%s11843_s4 + $0x181] sm:$0xff] }
 0x4db   : > { %2575 = vrot.lane.b32.xlu0 %v14261_v19, %s16726_s1 }
 0x4dc   : > { %10770 = vmatprep.mubr.msk.bf16.mxu0 %vm5226_vm14, %v5114_v32  ;;  %v2188_v0 = vpop.permute.xlu1 %2187 }
 0x4dd   : > { %2259 = vst.msk [vmem:[#allocation2 + $0x190] sm:$0xff] %vm2233_vm8, %v2188_v0  ;;  %v2186_v50 = vpop.permute.xlu0 %2185  ;;  %v14628_v0 = vld [vmem:[%s16745_s16] ss:$0 sm:$0xff] }
 0x4de   : > { %2258 = vst.msk [vmem:[#allocation2 + $0x180] sm:$0xff] %vm2233_vm8, %v2186_v50  ;;  %4184 = vrot.lane.b32.xlu1 %v14525_v43, %s16727_s24 }
 0x4df   : > { %4182 = vrot.lane.b32.xlu0 %v14529_v34, %s16727_s24 }
 0x4e0   : > { %v3797_v6 = vpop.permute.xlu1 %3796  ;;  %v5073_v11 = vld [vmem:[#allocation2 + $0x170] sm:$0xff] }
 0x4e1   : > { %3867 = vst.msk [vmem:[#allocation2 + $0x198] sm:$0xff] %vm881_vm1, %v3797_v6  ;;  %v3795_v28 = vpop.permute.xlu0 %3794  ;;  %v5071_v24 = vld [vmem:[#allocation2 + $0x160] sm:$0xff] }
 0x4e2   : > { %3866 = vst.msk [vmem:[#allocation2 + $0x188] sm:$0xff] %vm881_vm1, %v3795_v28  ;;  %1229 = vrot.lane.b32.xlu1 %v14258_v15, %s16727_s24  ;;  %v5113_v58 = vpack.c.bf16 %v5073_v11, %v5071_v24  ;;  %v14556_v15 = vld [vmem:[%s11843_s4 + $0x176] sm:$0xff] }
 0x4e3   : > { %1227 = vrot.lane.b32.xlu0 %v14261_v19, %s16727_s24 }
 0x4e4   : > { %5396 = vmatmul.mubr.bf16.gmra.mrb[44].mxu0 %v5113_v58  ;;  %v840_v1 = vpop.permute.xlu1 %839 }
 0x4e5   : > { %909 = vst.msk [vmem:[#allocation2 + $0x1b0] sm:$0xff] %vm881_vm1, %v840_v1  ;;  %v838_v55 = vpop.permute.xlu0 %837 }
 0x4e6   : > { %908 = vst.msk [vmem:[#allocation2 + $0x1a0] sm:$0xff] %vm881_vm1, %v838_v55  ;;  %2770 = vrot.lane.b32.xlu1 %v14282_v59, %s16728_s2 }
 0x4e7   : > { %2768 = vrot.lane.b32.xlu0 %v14285_v63, %s16728_s2 }
 0x4e8   : > { %v2381_v19 = vpop.permute.xlu1 %2380 }
 0x4e9   : > { %2452 = vst.msk [vmem:[#allocation2 + $0x190] sm:$0xff] %vm16910_vm4, %v2381_v19  ;;  %v2379_v14 = vpop.permute.xlu0 %2378  ;;  %vm16915_vm4 = vmmov %vm16912_vm5 }
 0x4ea   : > { %2451 = vst.msk [vmem:[#allocation2 + $0x180] sm:$0xff] %vm16911_vm12, %v2379_v14  ;;  %4376 = vrot.lane.b32.xlu1 %v14556_v15, %s16729_s27  ;;  %vm16916_vm12 = vcmask 851712  }
 0x4eb   : > { %4374 = vrot.lane.b32.xlu0 %v14563_v17, %s16729_s27 }
 0x4ec   : > { %v3989_v57 = vpop.permute.xlu1 %3988 }
 0x4ed   : > { %4059 = vst.msk [vmem:[#allocation2 + $0x198] sm:$0xff] %vm1074_vm2, %v3989_v57  ;;  %v3987_v54 = vpop.permute.xlu0 %3986 }
 0x4ee   : > { %4058 = vst.msk [vmem:[#allocation2 + $0x188] sm:$0xff] %vm1074_vm2, %v3987_v54  ;;  %1422 = vrot.lane.b32.xlu1 %v14282_v59, %s16729_s27 }
 0x4ef   : > { %1420 = vrot.lane.b32.xlu0 %v14285_v63, %s16729_s27 }
 0x4f0   : > { %v1033_v3 = vpop.permute.xlu1 %1032 }
 0x4f1   : > { %1102 = vst.msk [vmem:[#allocation2 + $0x1b0] sm:$0xff] %vm1074_vm2, %v1033_v3  ;;  %v1031_v12 = vpop.permute.xlu0 %1030 }
 0x4f2   : > { %1101 = vst.msk [vmem:[#allocation2 + $0x1a0] sm:$0xff] %vm1074_vm2, %v1031_v12  ;;  %2963 = vrot.lane.b32.xlu1 %v14306_v25, %s16730_s21 }
 0x4f3   : > { %2961 = vrot.lane.b32.xlu0 %v14310_v8, %s16730_s21 }
 0x4f4   : > { %v2574_v39 = vpop.permute.xlu1 %2573 }
 0x4f5   : > { %2645 = vst.msk [vmem:[#allocation2 + $0x190] sm:$0xff] %vm2619_vm10, %v2574_v39  ;;  %v2572_v59 = vpop.permute.xlu0 %2571 }
 0x4f6   : > { %2644 = vst.msk [vmem:[#allocation2 + $0x180] sm:$0xff] %vm2619_vm10, %v2572_v59  ;;  %4569 = vrot.lane.b32.xlu1 %v14584_v31, %s16719_s23  ;;  %v687_v59 = vld [vmem:[%s11843_s4 + $0x170] sm:$0xff] }
 0x4f7   : > { %4567 = vrot.lane.b32.xlu0 %v14587_v56, %s16719_s23  ;;  %720 = vst.msk [vmem:[#allocation2 + $0x1f0] sm:$0xff] %vm688_vm0, %v687_v59 }
 0x4f8   : > { %v4181_v63 = vpop.permute.xlu1 %4180 }
 0x4f9   : > { %4251 = vst.msk [vmem:[#allocation2 + $0x198] sm:$0xff] %vm1267_vm3, %v4181_v63  ;;  %v4179_v41 = vpop.permute.xlu0 %4178  ;;  %v686_v63 = vld [vmem:[%s11843_s4 + $0x168] sm:$0xff] }
 0x4fa   : > { %4250 = vst.msk [vmem:[#allocation2 + $0x188] sm:$0xff] %vm1267_vm3, %v4179_v41  ;;  %1615 = vrot.lane.b32.xlu1 %v14306_v25, %s16719_s23 }
 0x4fb   : > { %1613 = vrot.lane.b32.xlu0 %v14310_v8, %s16719_s23  ;;  %719 = vst.msk [vmem:[#allocation2 + $0x1e0] sm:$0xff] %vm688_vm0, %v686_v63  ;;  %vm16924_vm0 = vcmask 982912  }
 0x4fc   : > { %v1226_v35 = vpop.permute.xlu1 %1225 }
 0x4fd   : > { %1295 = vst.msk [vmem:[#allocation2 + $0x1b0] sm:$0xff] %vm1267_vm3, %v1226_v35  ;;  %v1224_v46 = vpop.permute.xlu0 %1223  ;;  %v14668_v35 = vld [vmem:[%s11843_s4 + $0x18b] sm:$0xff] }
 0x4fe   : > { %1294 = vst.msk [vmem:[#allocation2 + $0x1a0] sm:$0xff] %vm1267_vm3, %v1224_v46  ;;  %3156 = vrot.lane.b32.xlu1 %v14350_v42, %s16731_s5 }
 0x4ff   : > { %3154 = vrot.lane.b32.xlu0 %v14357_v45, %s16731_s5 }
 0x500   : > { %v2767_v5 = vpop.permute.xlu1 %2766 }
 0x501   : > { %2838 = vst.msk [vmem:[#allocation2 + $0x190] sm:$0xff] %vm2812_vm11, %v2767_v5  ;;  %v2765_v25 = vpop.permute.xlu0 %2764  ;;  %v14671_v5 = vld [vmem:[%s11843_s4 + $0x183] sm:$0xff] }
 0x502   : > { %2837 = vst.msk [vmem:[#allocation2 + $0x180] sm:$0xff] %vm2812_vm11, %v2765_v25  ;;  %4761 = vrot.lane.b32.xlu1 %v14608_v26, %s16720_s26 }
 0x503   : > { %4759 = vrot.lane.b32.xlu0 %v14611_v30, %s16720_s26 }
 0x504   : > { %v4373_v8 = vpop.permute.xlu1 %4372 }
 0x505   : > { %4443 = vst.msk [vmem:[#allocation2 + $0x198] sm:$0xff] %vm16912_vm5, %v4373_v8  ;;  %v4371_v23 = vpop.permute.xlu0 %4370  ;;  %vm16917_vm5 = vmmov %vm16916_vm12 }
 0x506   : > { %4442 = vst.msk [vmem:[#allocation2 + $0x188] sm:$0xff] %vm16913_vm9, %v4371_v23  ;;  %1808 = vrot.lane.b32.xlu1 %v14350_v42, %s16720_s26  ;;  %vm16918_vm9 = vcmask 392512  }
 0x507   : > { %1806 = vrot.lane.b32.xlu0 %v14357_v45, %s16720_s26  ;;  %v5381_v32 = vpop.f32.mrb[36].mxu0 }
 0x508   : > { %v5382_v50 = vadd.f32 %v14628_v0, %v5381_v32  ;;  %v5383_v6 = vpop.f32.mrb[37].mxu0  ;;  %v1419_v11 = vpop.permute.xlu1 %1418 }
 0x509   : > { %1488 = vst.msk [vmem:[#allocation2 + $0x1b0] sm:$0xff] %vm16914_vm13, %v1419_v11  ;;  %v1417_v28 = vpop.permute.xlu0 %1416  ;;  %v5384_v24 = vpop.f32.mrb[38].mxu0  ;;  %vm16919_vm13 = vmmov %vm16918_vm9  ;;  %v14692_v6 = vld [vmem:[%s11843_s4 + $0x18c] sm:$0xff] }
 0x50a   : > { %v5454_v58 = vmax.f32 %v5382_v50, 0.0  ;;  %1487 = vst.msk [vmem:[#allocation2 + $0x1a0] sm:$0xff] %vm16915_vm4, %v1417_v28  ;;  %v5385_v42 = vadd.f32 %v14628_v0, %v5384_v24  ;;  %v5386_v45 = vpop.f32.mrb[39].mxu0  ;;  %3350 = vrot.lane.b32.xlu1 %v14398_v22, %s16732_s3  ;;  %vm16920_vm4 = vmmov %vm16918_vm9  ;;  %v14695_v28 = vld [vmem:[%s11843_s4 + $0x184] sm:$0xff] }
 0x50b   : > { %3348 = vrot.lane.b32.xlu0 %v14401_v60, %s16732_s3 }
 0x50c   : > { %v5455_v1 = vmax.f32 %v5385_v42, 0.0  ;;  %v2960_v55 = vpop.permute.xlu1 %2959  ;;  %v5542_v14 = vmax.f32 %v5454_v58, 0.0 }
 0x50d   : > { %3031 = vst.msk [vmem:[#allocation2 + $0x190] sm:$0xff] %vm16916_vm12, %v2960_v55  ;;  %v2958_v19 = vpop.permute.xlu0 %2957  ;;  %vm16921_vm12 = vmmov %vm16920_vm4 }
 0x50e   : > { %v5543_v57 = vmax.f32 %v5455_v1, 0.0  ;;  %3030 = vst.msk [vmem:[#allocation2 + $0x180] sm:$0xff] %vm16917_vm5, %v2958_v19  ;;  %4953 = vrot.lane.b32.xlu1 %v14342_v2, %s16721_s28  ;;  %vm16922_vm5 = vcmask 917312   ;;  %v14716_v19 = vld [vmem:[%s11843_s4 + $0x18d] sm:$0xff] }
 0x50f   : > { %4951 = vrot.lane.b32.xlu0 %v14345_v33, %s16721_s28 }
 0x510   : > { %v5565_v54 = vpack.c.bf16 %v5543_v57, %v5542_v14  ;;  %v4566_v3 = vpop.permute.xlu1 %4565 }
 0x511   : > { %4636 = vst.msk [vmem:[#allocation2 + $0x198] sm:$0xff] %vm16918_vm9, %v4566_v3  ;;  %v4564_v12 = vpop.permute.xlu0 %4563  ;;  %vm16923_vm9 = vmmov %vm16922_vm5 }
 0x512   : > { %4635 = vst.msk [vmem:[#allocation2 + $0x188] sm:$0xff] %vm16919_vm13, %v4564_v12  ;;  %11180 = vmatmul.mubr.msk.bf16.gmra.mrb[16].mxu1 %vm5226_vm14, %v5565_v54  ;;  %2002 = vrot.lane.b32.xlu1 %v14398_v22, %s16721_s28  ;;  %vm16925_vm13 = vmmov %vm16924_vm0 }
 0x513   : > { %2000 = vrot.lane.b32.xlu0 %v14401_v60, %s16721_s28 }
 0x514   : > { %v1612_v39 = vpop.permute.xlu1 %1611 }
 0x515   : > { %1681 = vst.msk [vmem:[#allocation2 + $0x1b0] sm:$0xff] %vm16920_vm4, %v1612_v39  ;;  %v1610_v41 = vpop.permute.xlu0 %1609  ;;  %vm16926_vm4 = vcmask 261120  }
 0x516   : > { %1680 = vst.msk [vmem:[#allocation2 + $0x1a0] sm:$0xff] %vm16921_vm12, %v1610_v41  ;;  %3543 = vrot.lane.b32.xlu1 %v14422_v40, %s16733_s20  ;;  %vm16927_vm12 = vmmov %vm16926_vm4 }
 0x517   : > { %3541 = vrot.lane.b32.xlu0 %v14425_v62, %s16733_s20 }
 0x518   : > { %v3153_v22 = vpop.permute.xlu1 %3152 }
 0x519   : > { %3224 = vst.msk [vmem:[#allocation2 + $0x190] sm:$0xff] %vm16922_vm5, %v3153_v22  ;;  %v3151_v60 = vpop.permute.xlu0 %3150  ;;  %vm16928_vm5 = vmmov %vm16926_vm4 }
 0x51a   : > { %3223 = vst.msk [vmem:[#allocation2 + $0x180] sm:$0xff] %vm16923_vm9, %v3151_v60  ;;  %2195 = vrot.lane.b32.xlu1 %v14422_v40, %s16722_s22  ;;  %vm16929_vm9 = vmmov %vm16926_vm4 }
 0x51b   : > { %2193 = vrot.lane.b32.xlu0 %v14425_v62, %s16722_s22 }
 0x51c   : > { %v4758_v46 = vpop.permute.xlu1 %4757 }
 0x51d   : > { %4828 = vst.msk [vmem:[#allocation2 + $0x198] sm:$0xff] %vm1846_vm6, %v4758_v46  ;;  %v4756_v25 = vpop.permute.xlu0 %4755 }
 0x51e   : > { %4827 = vst.msk [vmem:[#allocation2 + $0x188] sm:$0xff] %vm1846_vm6, %v4756_v25  ;;  %3804 = vrot.lane.b32.xlu1 %v14668_v35, %s16723_s30 }
 0x51f   : > { %3802 = vrot.lane.b32.xlu0 %v14671_v5, %s16723_s30 }
 0x520   : > { %v1805_v8 = vpop.permute.xlu1 %1804 }
 0x521   : > { %1874 = vst.msk [vmem:[#allocation2 + $0x1b0] sm:$0xff] %vm1846_vm6, %v1805_v8  ;;  %v1803_v23 = vpop.permute.xlu0 %1802 }
 0x522   : > { %1873 = vst.msk [vmem:[#allocation2 + $0x1a0] sm:$0xff] %vm1846_vm6, %v1803_v23  ;;  %847 = vrot.lane.b32.xlu1 %v14422_v40, %s16723_s30 }
 0x523   : > { %845 = vrot.lane.b32.xlu0 %v14425_v62, %s16723_s30 }
 0x524   : > { %v3347_v32 = vpop.permute.xlu1 %3346 }
 0x525   : > { %3418 = vst.msk [vmem:[#allocation2 + $0x190] sm:$0xff] %vm16924_vm0, %v3347_v32  ;;  %v3345_v50 = vpop.permute.xlu0 %3344  ;;  %vm16930_vm0 = vcmask 654912  }
 0x526   : > { %3417 = vst.msk [vmem:[#allocation2 + $0x180] sm:$0xff] %vm16925_vm13, %v3345_v50  ;;  %2388 = vrot.lane.b32.xlu1 %v14143_v13, %s16724_s0  ;;  %vm16931_vm13 = vmmov %vm16926_vm4 }
 0x527   : > { %2386 = vrot.lane.b32.xlu0 %v14146_v38, %s16724_s0 }
 0x528   : > { %v4950_v11 = vpop.permute.xlu1 %4949 }
 0x529   : > { %5020 = vst.msk [vmem:[#allocation2 + $0x198] sm:$0xff] %vm2040_vm7, %v4950_v11  ;;  %v4948_v40 = vpop.permute.xlu0 %4947 }
 0x52a   : > { %5019 = vst.msk [vmem:[#allocation2 + $0x188] sm:$0xff] %vm2040_vm7, %v4948_v40  ;;  %3996 = vrot.lane.b32.xlu1 %v14692_v6, %s16725_s29 }
 0x52b   : > { %3994 = vrot.lane.b32.xlu0 %v14695_v28, %s16725_s29 }
 0x52c   : > { %v1999_v62 = vpop.permute.xlu1 %1998 }
 0x52d   : > { %2068 = vst.msk [vmem:[#allocation2 + $0x1b0] sm:$0xff] %vm2040_vm7, %v1999_v62  ;;  %v1997_v24 = vpop.permute.xlu0 %1996  ;;  %v14752_v62 = vld [vmem:[%s11843_s4 + $0x186] sm:$0xff] }
 0x52e   : > { %2067 = vst.msk [vmem:[#allocation2 + $0x1a0] sm:$0xff] %vm2040_vm7, %v1997_v24  ;;  %1040 = vrot.lane.b32.xlu1 %v14143_v13, %s16725_s29 }
 0x52f   : > { %1038 = vrot.lane.b32.xlu0 %v14146_v38, %s16725_s29  ;;  %v14720_v38 = vld [vmem:[%s11843_s4 + $0x185] sm:$0xff] }
 0x530   : > { %v3540_v58 = vpop.permute.xlu1 %3539  ;;  %v5078_v42 = vld [vmem:[#allocation2 + $0x198] sm:$0xff] }
 0x531   : > { %3611 = vst.msk [vmem:[#allocation2 + $0x190] sm:$0xff] %vm3585_vm15, %v3540_v58  ;;  %v3538_v45 = vpop.permute.xlu0 %3537  ;;  %v5076_v1 = vld [vmem:[#allocation2 + $0x188] sm:$0xff] }
 0x532   : > { %3610 = vst.msk [vmem:[#allocation2 + $0x180] sm:$0xff] %vm3585_vm15, %v3538_v45  ;;  %2581 = vrot.lane.b32.xlu1 %v14477_v29, %s16726_s1  ;;  %v5116_v55 = vpack.c.bf16 %v5078_v42, %v5076_v1 }
 0x533   : > { %2579 = vrot.lane.b32.xlu0 %v14480_v51, %s16726_s1 }
 0x534   : > { %10771 = vmatprep.mubr.msk.bf16.mxu0 %vm5226_vm14, %v5116_v55  ;;  %v2192_v13 = vpop.permute.xlu1 %2191 }
 0x535   : > { %2261 = vst.msk [vmem:[#allocation2 + $0x1b0] sm:$0xff] %vm2233_vm8, %v2192_v13  ;;  %v2190_v14 = vpop.permute.xlu0 %2189  ;;  %v11177_v57 = vpop.f32.mrb[12].mxu1 }
 0x536   : > { %2260 = vst.msk [vmem:[#allocation2 + $0x1a0] sm:$0xff] %vm2233_vm8, %v2190_v14  ;;  %v5750_v54 = vadd.f32 %v14317_v61, %v11177_v57  ;;  %v5741_v3 = vpop.f32.mrb[13].mxu1  ;;  %4188 = vrot.lane.b32.xlu1 %v14716_v19, %s16727_s24 }
 0x537   : > { %v5742_v12 = vadd.f32 %v14317_v61, %v5741_v3  ;;  %4186 = vrot.lane.b32.xlu0 %v14720_v38, %s16727_s24  ;;  %v11178_v39 = vpop.f32.mrb[14].mxu1 }
 0x538   : > { %v5834_v59 = vmax.f32 %v5750_v54, 0.0  ;;  %v5753_v63 = vadd.f32 %v14317_v61, %v11178_v39  ;;  %v5744_v41 = vpop.f32.mrb[15].mxu1  ;;  %v3801_v22 = vpop.permute.xlu1 %3800  ;;  %v5077_v60 = vld [vmem:[#allocation2 + $0x190] sm:$0xff] }
 0x539   : > { %v5832_v46 = vmax.f32 %v5742_v12, 0.0  ;;  %v5745_v25 = vadd.f32 %v14317_v61, %v5744_v41  ;;  %3869 = vst.msk [vmem:[#allocation2 + $0x1b8] sm:$0xff] %vm881_vm1, %v3801_v22  ;;  %v3799_v8 = vpop.permute.xlu0 %3798  ;;  %v5075_v23 = vld [vmem:[#allocation2 + $0x180] sm:$0xff]  ;;  %v14802_v41 = vld [vmem:[%s11843_s4 + $0x198] sm:$0xff] }
 0x53a   : > { %5867 = vst.msk [vmem:[#allocation3 + $0xc1] sm:$0xff] %vm16926_vm4, %v5834_v59  ;;  %v5835_v32 = vmax.f32 %v5753_v63, 0.0  ;;  %1233 = vrot.lane.b32.xlu1 %v14477_v29, %s16727_s24  ;;  %v5115_v50 = vpack.c.bf16 %v5077_v60, %v5075_v23  ;;  %v14749_v29 = vld [vmem:[%s11843_s4 + $0x18e] sm:$0xff]  ;;  %vm16932_vm4 = vmmov %vm16930_vm0  ;;  %v14799_v59 = vld [vmem:[%s11843_s4 + $0x1a0] sm:$0xff] }
 0x53b   : > { %3868 = vst.msk [vmem:[#allocation2 + $0x1a8] sm:$0xff] %vm881_vm1, %v3799_v8  ;;  %v5833_v11 = vmax.f32 %v5745_v25, 0.0  ;;  %1231 = vrot.lane.b32.xlu0 %v14480_v51, %s16727_s24  ;;  %v14823_v25 = vld [vmem:[%s11843_s4 + $0x1a1] sm:$0xff]  ;;  %v14826_v23 = vld [vmem:[%s11843_s4 + $0x199] sm:$0xff] }
 0x53c   : > { %5865 = vst.msk [vmem:[#allocation3 + $0xa9] sm:$0xff] %vm16927_vm12, %v5832_v46  ;;  %5404 = vmatmul.mubr.bf16.gmra.mrb[48].mxu0 %v5115_v50  ;;  %v844_v61 = vpop.permute.xlu1 %843  ;;  %vm16933_vm12 = vmmov %vm16928_vm5 }
 0x53d   : > { %5868 = vst.msk [vmem:[#allocation3 + $0xc9] sm:$0xff] %vm16928_vm5, %v5835_v32  ;;  %v842_v40 = vpop.permute.xlu0 %841 }
 0x53e   : > { %5866 = vst.msk [vmem:[#allocation3 + $0xb1] sm:$0xff] %vm16929_vm9, %v5833_v11  ;;  %2774 = vrot.lane.b32.xlu1 %v14501_v4, %s16728_s2  ;;  %vm16934_vm9 = vmmov %vm16928_vm5 }
 0x53f   : > { %911 = vst.msk [vmem:[#allocation2 + $0x1d0] sm:$0xff] %vm881_vm1, %v844_v61  ;;  %910 = vst.msk [vmem:[#allocation2 + $0x1c0] sm:$0xff] %vm881_vm1, %v842_v40  ;;  %2772 = vrot.lane.b32.xlu0 %v14504_v27, %s16728_s2 }
 0x540   : > { %v2385_v51 = vpop.permute.xlu1 %2384 }
 0x541   : > { %v6542_v24 = vld [vmem:[#allocation3 + $0xc1] sm:$0xff]  ;;  %2454 = vst.msk [vmem:[#allocation2 + $0x1b0] sm:$0xff] %vm16930_vm0, %v2385_v51  ;;  %v2383_v58 = vpop.permute.xlu0 %2382  ;;  %vm16935_vm0 = vmmov %vm16928_vm5 }
 0x542   : > { %v14755_v42 = vld [vmem:[#allocation3 + $0xc0] sm:$0xff]  ;;  %6574 = vst.msk [vmem:[#allocation4 + $0xe8] sm:$0xff] %vm16931_vm13, %v6542_v24  ;;  %4380 = vrot.lane.b32.xlu1 %v14749_v29, %s16729_s27  ;;  %vm16936_vm13 = vmmov %vm16935_vm0 }
 0x543   : > { %v14758_v45 = vld [vmem:[#allocation3 + $0xa9] sm:$0xff]  ;;  %2453 = vst.msk [vmem:[#allocation2 + $0x1a0] sm:$0xff] %vm16932_vm4, %v2383_v58  ;;  %4378 = vrot.lane.b32.xlu0 %v14752_v62, %s16729_s27  ;;  %vm16937_vm4 = vmmov %vm16935_vm0 }
 0x544   : > { %v14763_v1 = vld [vmem:[#allocation3 + $0xa8] sm:$0xff]  ;;  %5933 = vst.msk [vmem:[#allocation4 + $0x100] sm:$0xff] %vm16933_vm12, %v14755_v42  ;;  %v3993_v57 = vpop.permute.xlu1 %3992  ;;  %vm16938_vm12 = vmmov %vm16935_vm0 }
 0x545   : > { %6572 = vst.msk [vmem:[#allocation4 + $0xc8] sm:$0xff] %vm16928_vm5, %v14758_v45  ;;  %v6543_v55 = vld [vmem:[#allocation3 + $0xc9] sm:$0xff]  ;;  %v14776_v14 = vld [vmem:[#allocation3 + $0xb1] sm:$0xff]  ;;  %v3991_v3 = vpop.permute.xlu0 %3990  ;;  %vm16939_vm5 = vcmask 326912  }
 0x546   : > { %v14771_v13 = vld [vmem:[#allocation3 + $0xc8] sm:$0xff]  ;;  %5931 = vst.msk [vmem:[#allocation4 + $0xe0] sm:$0xff] %vm16934_vm9, %v14763_v1  ;;  %v14778_v54 = vld [vmem:[#allocation3 + $0xb0] sm:$0xff]  ;;  %1426 = vrot.lane.b32.xlu1 %v14501_v4, %s16729_s27  ;;  %vm16940_vm9 = vmmov %vm16939_vm5 }
 0x547   : > { %6575 = vst.msk [vmem:[#allocation4 + $0xf8] sm:$0xff] %vm16935_vm0, %v6543_v55  ;;  %1424 = vrot.lane.b32.xlu0 %v14504_v27, %s16729_s27  ;;  %vm16941_vm0 = vmmov %vm16939_vm5 }
 0x548   : > { %5934 = vst.msk [vmem:[#allocation4 + $0x110] sm:$0xff] %vm16936_vm13, %v14771_v13  ;;  %v1037_v12 = vpop.permute.xlu1 %1036  ;;  %vm16942_vm13 = vmmov %vm16941_vm0 }
 0x549   : > { %6573 = vst.msk [vmem:[#allocation4 + $0xd8] sm:$0xff] %vm16937_vm4, %v14776_v14  ;;  %v1035_v39 = vpop.permute.xlu0 %1034  ;;  %vm16943_vm4 = vcmask 851712  }
 0x54a   : > { %4061 = vst.msk [vmem:[#allocation2 + $0x1b8] sm:$0xff] %vm1074_vm2, %v3993_v57  ;;  %4060 = vst.msk [vmem:[#allocation2 + $0x1a8] sm:$0xff] %vm1074_vm2, %v3991_v3  ;;  %2967 = vrot.lane.b32.xlu1 %v14525_v43, %s16730_s21 }
 0x54b   : > { %5932 = vst.msk [vmem:[#allocation4 + $0xf0] sm:$0xff] %vm16938_vm12, %v14778_v54  ;;  %2965 = vrot.lane.b32.xlu0 %v14529_v34, %s16730_s21  ;;  %vm16944_vm12 = vmmov %vm16943_vm4 }
 0x54c   : > { %1104 = vst.msk [vmem:[#allocation2 + $0x1d0] sm:$0xff] %vm1074_vm2, %v1037_v12  ;;  %1103 = vst.msk [vmem:[#allocation2 + $0x1c0] sm:$0xff] %vm1074_vm2, %v1035_v39  ;;  %v2578_v63 = vpop.permute.xlu1 %2577 }
 0x54d   : > { %2647 = vst.msk [vmem:[#allocation2 + $0x1b0] sm:$0xff] %vm2619_vm10, %v2578_v63  ;;  %v2576_v4 = vpop.permute.xlu0 %2575 }
 0x54e   : > { %2646 = vst.msk [vmem:[#allocation2 + $0x1a0] sm:$0xff] %vm2619_vm10, %v2576_v4  ;;  %4573 = vrot.lane.b32.xlu1 %v14799_v59, %s16719_s23 }
 0x54f   : > { %4571 = vrot.lane.b32.xlu0 %v14802_v41, %s16719_s23 }
 0x550   : > { %v4185_v27 = vpop.permute.xlu1 %4184 }
 0x551   : > { %4253 = vst.msk [vmem:[#allocation2 + $0x1b8] sm:$0xff] %vm1267_vm3, %v4185_v27  ;;  %v4183_v22 = vpop.permute.xlu0 %4182 }
 0x552   : > { %4252 = vst.msk [vmem:[#allocation2 + $0x1a8] sm:$0xff] %vm1267_vm3, %v4183_v22  ;;  %1619 = vrot.lane.b32.xlu1 %v14525_v43, %s16719_s23 }
 0x553   : > { %1617 = vrot.lane.b32.xlu0 %v14529_v34, %s16719_s23 }
 0x554   : > { %v1230_v60 = vpop.permute.xlu1 %1229 }
 0x555   : > { %1297 = vst.msk [vmem:[#allocation2 + $0x1d0] sm:$0xff] %vm1267_vm3, %v1230_v60  ;;  %v1228_v46 = vpop.permute.xlu0 %1227 }
 0x556   : > { %1296 = vst.msk [vmem:[#allocation2 + $0x1c0] sm:$0xff] %vm1267_vm3, %v1228_v46  ;;  %3160 = vrot.lane.b32.xlu1 %v14556_v15, %s16731_s5  ;;  %v10552_v46 = vld [vmem:[%s11843_s4 + $0x19b] sm:$0xff] }
 0x557   : > { %3158 = vrot.lane.b32.xlu0 %v14563_v17, %s16731_s5 }
 0x558   : > { %v2771_v8 = vpop.permute.xlu1 %2770 }
 0x559   : > { %2840 = vst.msk [vmem:[#allocation2 + $0x1b0] sm:$0xff] %vm2812_vm11, %v2771_v8  ;;  %v2769_v43 = vpop.permute.xlu0 %2768 }
 0x55a   : > { %2839 = vst.msk [vmem:[#allocation2 + $0x1a0] sm:$0xff] %vm2812_vm11, %v2769_v43  ;;  %4765 = vrot.lane.b32.xlu1 %v14823_v25, %s16720_s26 }
 0x55b   : > { %4763 = vrot.lane.b32.xlu0 %v14826_v23, %s16720_s26 }
 0x55c   : > { %v4377_v34 = vpop.permute.xlu1 %4376 }
 0x55d   : > { %4445 = vst.msk [vmem:[#allocation2 + $0x1b8] sm:$0xff] %vm16939_vm5, %v4377_v34  ;;  %v4375_v32 = vpop.permute.xlu0 %4374  ;;  %vm16945_vm5 = vcmask 392512  }
 0x55e   : > { %4444 = vst.msk [vmem:[#allocation2 + $0x1a8] sm:$0xff] %vm16940_vm9, %v4375_v32  ;;  %1812 = vrot.lane.b32.xlu1 %v14556_v15, %s16720_s26  ;;  %vm16946_vm9 = vmmov %vm16945_vm5  ;;  %v10584_v32 = vld [vmem:[%s11843_s4 + $0x19c] sm:$0xff] }
 0x55f   : > { %1810 = vrot.lane.b32.xlu0 %v14563_v17, %s16720_s26  ;;  %v5389_v50 = vpop.f32.mrb[40].mxu0 }
 0x560   : > { %v5390_v11 = vadd.f32 %v14628_v0, %v5389_v50  ;;  %v5391_v61 = vpop.f32.mrb[41].mxu0  ;;  %v1423_v40 = vpop.permute.xlu1 %1422 }
 0x561   : > { %1490 = vst.msk [vmem:[#allocation2 + $0x1d0] sm:$0xff] %vm16941_vm0, %v1423_v40  ;;  %v1421_v51 = vpop.permute.xlu0 %1420  ;;  %v5392_v24 = vpop.f32.mrb[42].mxu0  ;;  %vm16947_vm0 = vmmov %vm16945_vm5  ;;  %v10616_v40 = vld [vmem:[%s11843_s4 + $0x19d] sm:$0xff] }
 0x562   : > { %v5456_v58 = vmax.f32 %v5390_v11, 0.0  ;;  %1489 = vst.msk [vmem:[#allocation2 + $0x1c0] sm:$0xff] %vm16942_vm13, %v1421_v51  ;;  %v5393_v55 = vadd.f32 %v14628_v0, %v5392_v24  ;;  %v5394_v57 = vpop.f32.mrb[43].mxu0  ;;  %3354 = vrot.lane.b32.xlu1 %v14584_v31, %s16732_s3  ;;  %vm16948_vm13 = vmmov %vm16947_vm0 }
 0x563   : > { %3352 = vrot.lane.b32.xlu0 %v14587_v56, %s16732_s3  ;;  %v10649_v57 = vld [vmem:[%s11843_s4 + $0x1a6] sm:$0xff] }
 0x564   : > { %v5457_v15 = vmax.f32 %v5393_v55, 0.0  ;;  %v2964_v17 = vpop.permute.xlu1 %2963  ;;  %v5544_v12 = vmax.f32 %v5456_v58, 0.0 }
 0x565   : > { %3033 = vst.msk [vmem:[#allocation2 + $0x1b0] sm:$0xff] %vm16943_vm4, %v2964_v17  ;;  %v2962_v3 = vpop.permute.xlu0 %2961  ;;  %vm16949_vm4 = vcmask 917312   ;;  %v10648_v17 = vld [vmem:[%s11843_s4 + $0x19e] sm:$0xff] }
 0x566   : > { %v5545_v39 = vmax.f32 %v5457_v15, 0.0  ;;  %3032 = vst.msk [vmem:[#allocation2 + $0x1a0] sm:$0xff] %vm16944_vm12, %v2962_v3  ;;  %4957 = vrot.lane.b32.xlu1 %v14548_v9, %s16721_s28  ;;  %vm16950_vm12 = vmmov %vm16949_vm4 }
 0x567   : > { %4955 = vrot.lane.b32.xlu0 %v14551_v48, %s16721_s28 }
 0x568   : > { %v5566_v63 = vpack.c.bf16 %v5545_v39, %v5544_v12  ;;  %v4570_v4 = vpop.permute.xlu1 %4569 }
 0x569   : > { %4638 = vst.msk [vmem:[#allocation2 + $0x1b8] sm:$0xff] %vm16945_vm5, %v4570_v4  ;;  %v4568_v27 = vpop.permute.xlu0 %4567  ;;  %vm16951_vm5 = vcmask 982912   ;;  %v10681_v4 = vld [vmem:[%s11843_s4 + $0x1b8] sm:$0xff] }
 0x56a   : > { %4637 = vst.msk [vmem:[#allocation2 + $0x1a8] sm:$0xff] %vm16946_vm9, %v4568_v27  ;;  %11183 = vmatprep.mubr.msk.bf16.mxu1 %vm5226_vm14, %v5566_v63  ;;  %2006 = vrot.lane.b32.xlu1 %v14584_v31, %s16721_s28  ;;  %vm16952_vm9 = vmmov %vm16951_vm5 }
 0x56b   : > { %2004 = vrot.lane.b32.xlu0 %v14587_v56, %s16721_s28  ;;  %v10553_v56 = vld [vmem:[%s11843_s4 + $0x1a3] sm:$0xff] }
 0x56c   : > { %v1616_v9 = vpop.permute.xlu1 %1615 }
 0x56d   : > { %1683 = vst.msk [vmem:[#allocation2 + $0x1d0] sm:$0xff] %vm16947_vm0, %v1616_v9  ;;  %v1614_v48 = vpop.permute.xlu0 %1613  ;;  %v10680_v9 = vld [vmem:[%s11843_s4 + $0x1b0] sm:$0xff]  ;;  %vm16953_vm0 = vcmask 654912  }
 0x56e   : > { %1682 = vst.msk [vmem:[#allocation2 + $0x1c0] sm:$0xff] %vm16948_vm13, %v1614_v48  ;;  %3547 = vrot.lane.b32.xlu1 %v14608_v26, %s16733_s20  ;;  %vm16954_vm13 = vmmov %vm16953_vm0 }
 0x56f   : > { %3545 = vrot.lane.b32.xlu0 %v14611_v30, %s16733_s20 }
 0x570   : > { %v3157_v22 = vpop.permute.xlu1 %3156 }
 0x571   : > { %3226 = vst.msk [vmem:[#allocation2 + $0x1b0] sm:$0xff] %vm16949_vm4, %v3157_v22  ;;  %v3155_v31 = vpop.permute.xlu0 %3154  ;;  %vm16955_vm4 = vcmask 261120  }
 0x572   : > { %3225 = vst.msk [vmem:[#allocation2 + $0x1a0] sm:$0xff] %vm16950_vm12, %v3155_v31  ;;  %2199 = vrot.lane.b32.xlu1 %v14608_v26, %s16722_s22  ;;  %vm16956_vm12 = vmmov %vm16955_vm4 }
 0x573   : > { %2197 = vrot.lane.b32.xlu0 %v14611_v30, %s16722_s22  ;;  %v10585_v30 = vld [vmem:[%s11843_s4 + $0x1a4] sm:$0xff] }
 0x574   : > { %v4762_v60 = vpop.permute.xlu1 %4761 }
 0x575   : > { %4830 = vst.msk [vmem:[#allocation2 + $0x1b8] sm:$0xff] %vm1846_vm6, %v4762_v60  ;;  %v4760_v8 = vpop.permute.xlu0 %4759 }
 0x576   : > { %4829 = vst.msk [vmem:[#allocation2 + $0x1a8] sm:$0xff] %vm1846_vm6, %v4760_v8  ;;  %3808 = vrot.lane.b32.xlu1 %v10553_v56, %s16723_s30  ;;  %v10712_v56 = vld [vmem:[%s11843_s4 + $0x1b1] sm:$0xff] }
 0x577   : > { %3806 = vrot.lane.b32.xlu0 %v10552_v46, %s16723_s30  ;;  %v5886_v46 = vld [vmem:[#allocation3 + $0x8] sm:$0xff]  ;;  %s17175_s30 = sld [smem:[#allocation23_spill]] }
 0x578   : > { %v1809_v43 = vpop.permute.xlu1 %1808  ;;  %5918 = vst.msk [vmem:[#allocation4 + $0x10] sm:$0xff] %vm16955_vm4, %v5886_v46  ;;  %vm16961_vm4 = vcmask 851712  }
 0x579   : > { %1876 = vst.msk [vmem:[#allocation2 + $0x1d0] sm:$0xff] %vm1846_vm6, %v1809_v43  ;;  %v1807_v26 = vpop.permute.xlu0 %1806  ;;  %v10745_v43 = vld [vmem:[%s11843_s4 + $0x1ba] sm:$0xff] }
 0x57a   : > { %1875 = vst.msk [vmem:[#allocation2 + $0x1c0] sm:$0xff] %vm1846_vm6, %v1807_v26  ;;  %2392 = vrot.lane.b32.xlu1 %v14342_v2, %s16724_s0 }
 0x57b   : > { %2390 = vrot.lane.b32.xlu0 %v14345_v33, %s16724_s0  ;;  %v10617_v33 = vld [vmem:[%s11843_s4 + $0x1a5] sm:$0xff]  ;;  %s17180_s0 = sld [smem:[#allocation12_spill]] }
 0x57c   : > { %v3351_v34 = vpop.permute.xlu1 %3350 }
 0x57d   : > { %3420 = vst.msk [vmem:[#allocation2 + $0x1b0] sm:$0xff] %vm16951_vm5, %v3351_v34  ;;  %v3349_v50 = vpop.permute.xlu0 %3348  ;;  %vm16957_vm5 = vcmask 326912  }
 0x57e   : > { %3419 = vst.msk [vmem:[#allocation2 + $0x1a0] sm:$0xff] %vm16952_vm9, %v3349_v50  ;;  %4000 = vrot.lane.b32.xlu1 %v10585_v30, %s16725_s29  ;;  %v10744_v30 = vld [vmem:[%s11843_s4 + $0x1b2] sm:$0xff]  ;;  %vm16958_vm9 = vmmov %vm16957_vm5 }
 0x57f   : > { %3998 = vrot.lane.b32.xlu0 %v10584_v32, %s16725_s29 }
 0x580   : > { %v4954_v11 = vpop.permute.xlu1 %4953 }
 0x581   : > { %5022 = vst.msk [vmem:[#allocation2 + $0x1b8] sm:$0xff] %vm2040_vm7, %v4954_v11  ;;  %v4952_v2 = vpop.permute.xlu0 %4951  ;;  %v5949_v11 = vld [vmem:[#allocation3 + $0x1] sm:$0xff]  ;;  %s10998_s25 = sshll.u32 %s17180_s0, 13  ;;  %s11678_s0 = smov [#allocation5]  }
 0x582   : > { %5021 = vst.msk [vmem:[#allocation2 + $0x1a8] sm:$0xff] %vm2040_vm7, %v4952_v2  ;;  %2585 = vrot.lane.b32.xlu1 %v14668_v35, %s16726_s1 }
 0x583   : > { %2583 = vrot.lane.b32.xlu0 %v14671_v5, %s16726_s1 }
 0x584   : > { %v2003_v61 = vpop.permute.xlu1 %2002 }
 0x585   : > { %2070 = vst.msk [vmem:[#allocation2 + $0x1d0] sm:$0xff] %vm2040_vm7, %v2003_v61  ;;  %v2001_v51 = vpop.permute.xlu0 %2000 }
 0x586   : > { %2069 = vst.msk [vmem:[#allocation2 + $0x1c0] sm:$0xff] %vm2040_vm7, %v2001_v51  ;;  %4192 = vrot.lane.b32.xlu1 %v10617_v33, %s16727_s24  ;;  %v6143_v33 = vld [vmem:[#allocation3 + $0xa] sm:$0xff] }
 0x587   : > { %4190 = vrot.lane.b32.xlu0 %v10616_v40, %s16727_s24  ;;  %v6142_v40 = vld [vmem:[#allocation3 + $0x2] sm:$0xff]  ;;  %s16994_s24 = sld [smem:[#allocation22_spill]] }
 0x588   : > { %v3544_v24 = vpop.permute.xlu1 %3543  ;;  %v5082_v58 = vld [vmem:[#allocation2 + $0x1b8] sm:$0xff] }
 0x589   : > { %3613 = vst.msk [vmem:[#allocation2 + $0x1b0] sm:$0xff] %vm3585_vm15, %v3544_v24  ;;  %v3542_v35 = vpop.permute.xlu0 %3541  ;;  %v5080_v5 = vld [vmem:[#allocation2 + $0x1a8] sm:$0xff] }
 0x58a   : > { %3612 = vst.msk [vmem:[#allocation2 + $0x1a0] sm:$0xff] %vm3585_vm15, %v3542_v35  ;;  %2778 = vrot.lane.b32.xlu1 %v14692_v6, %s16728_s2  ;;  %v5118_v55 = vpack.c.bf16 %v5082_v58, %v5080_v5 }
 0x58b   : > { %2776 = vrot.lane.b32.xlu0 %v14695_v28, %s16728_s2  ;;  %s17177_s2 = sld [smem:[#allocation25_spill]] }
 0x58c   : > { %10772 = vmatprep.mubr.msk.bf16.mxu0 %vm5226_vm14, %v5118_v55  ;;  %v2196_v15 = vpop.permute.xlu1 %2195 }
 0x58d   : > { %2263 = vst.msk [vmem:[#allocation2 + $0x1d0] sm:$0xff] %vm2233_vm8, %v2196_v15  ;;  %v2194_v3 = vpop.permute.xlu0 %2193  ;;  %v5952_v15 = vld [vmem:[#allocation3 + $0x21] sm:$0xff] }
 0x58e   : > { %2262 = vst.msk [vmem:[#allocation2 + $0x1c0] sm:$0xff] %vm2233_vm8, %v2194_v3  ;;  %4384 = vrot.lane.b32.xlu1 %v10649_v57, %s16729_s27 }
 0x58f   : > { %4382 = vrot.lane.b32.xlu0 %v10648_v17, %s16729_s27 }
 0x590   : > { %v3805_v6 = vpop.permute.xlu1 %3804  ;;  %v5081_v12 = vld [vmem:[#allocation2 + $0x1b0] sm:$0xff] }
 0x591   : > { %3871 = vst.msk [vmem:[#allocation2 + $0x1d8] sm:$0xff] %vm881_vm1, %v3805_v6  ;;  %v3803_v28 = vpop.permute.xlu0 %3802  ;;  %v5079_v39 = vld [vmem:[#allocation2 + $0x1a0] sm:$0xff] }
 0x592   : > { %3870 = vst.msk [vmem:[#allocation2 + $0x1c8] sm:$0xff] %vm881_vm1, %v3803_v28  ;;  %2971 = vrot.lane.b32.xlu1 %v14716_v19, %s16730_s21  ;;  %v5117_v63 = vpack.c.bf16 %v5081_v12, %v5079_v39  ;;  %v6145_v39 = vld [vmem:[#allocation3 + $0x22] sm:$0xff] }
 0x593   : > { %2969 = vrot.lane.b32.xlu0 %v14720_v38, %s16730_s21  ;;  %v10713_v38 = vld [vmem:[%s11843_s4 + $0x1b9] sm:$0xff]  ;;  %s17182_s4 = sld [smem:[#allocation28_spill]] }
 0x594   : > { %5412 = vmatmul.mubr.bf16.gmra.mrb[52].mxu0 %v5117_v63  ;;  %v848_v27 = vpop.permute.xlu1 %847 }
 0x595   : > { %913 = vst.msk [vmem:[#allocation2 + $0x1f0] sm:$0xff] %vm881_vm1, %v848_v27  ;;  %v846_v48 = vpop.permute.xlu0 %845  ;;  %v6144_v27 = vld [vmem:[#allocation3 + $0x1a] sm:$0xff] }
 0x596   : > { %912 = vst.msk [vmem:[#allocation2 + $0x1e0] sm:$0xff] %vm881_vm1, %v846_v48  ;;  %4577 = vrot.lane.b32.xlu1 %v10681_v4, %s16719_s23 }
 0x597   : > { %4575 = vrot.lane.b32.xlu0 %v10680_v9, %s16719_s23  ;;  %s17179_s23 = sld [smem:[#allocation27_spill]] }
 0x598   : > { %v2389_v19 = vpop.permute.xlu1 %2388 }
 0x599   : > { %2456 = vst.msk [vmem:[#allocation2 + $0x1d0] sm:$0xff] %vm16953_vm0, %v2389_v19  ;;  %v2387_v22 = vpop.permute.xlu0 %2386  ;;  %vm16959_vm0 = vmmov %vm16957_vm5  ;;  %s16558_s1 = scalar_lea.hbm %s17182_s4, %s10998_s25  ;;  %s11601_s25 = sshll.u32 %s11678_s0, 4  ;;  %s11602_s25 = int_to_ptr.vmem [resolvable:$false] %s11601_s25 }
 0x59a   : > { %2455 = vst.msk [vmem:[#allocation2 + $0x1c0] sm:$0xff] %vm16954_vm13, %v2387_v22  ;;  %3164 = vrot.lane.b32.xlu1 %v14749_v29, %s16731_s5  ;;  %vm16960_vm13 = vmmov %vm16959_vm0 }
 0x59b   : > { %3162 = vrot.lane.b32.xlu0 %v14752_v62, %s16731_s5  ;;  %v5885_v62 = vld [vmem:[#allocation3] sm:$0xff] }
 0x59c   : > { %v3997_v31 = vpop.permute.xlu1 %3996  ;;  %5917 = vst.msk [vmem:[#allocation4] sm:$0xff] %vm16956_vm12, %v5885_v62  ;;  %vm16962_vm12 = vmmov %vm16961_vm4 }
 0x59d   : > { %4063 = vst.msk [vmem:[#allocation2 + $0x1d8] sm:$0xff] %vm1074_vm2, %v3997_v31  ;;  %v3995_v60 = vpop.permute.xlu0 %3994  ;;  %v5953_v31 = vld [vmem:[#allocation3 + $0x31] sm:$0xff] }
 0x59e   : > { %4062 = vst.msk [vmem:[#allocation2 + $0x1c8] sm:$0xff] %vm1074_vm2, %v3995_v60  ;;  %4769 = vrot.lane.b32.xlu1 %v10713_v38, %s16720_s26  ;;  %v5954_v38 = vld [vmem:[#allocation3 + $0x39] sm:$0xff] }
 0x59f   : > { %4767 = vrot.lane.b32.xlu0 %v10712_v56, %s16720_s26 }
 0x5a0   : > { %v1041_v8 = vpop.permute.xlu1 %1040 }
 0x5a1   : > { %1106 = vst.msk [vmem:[#allocation2 + $0x1f0] sm:$0xff] %vm1074_vm2, %v1041_v8  ;;  %v1039_v29 = vpop.permute.xlu0 %1038 }
 0x5a2   : > { %1105 = vst.msk [vmem:[#allocation2 + $0x1e0] sm:$0xff] %vm1074_vm2, %v1039_v29  ;;  %3358 = vrot.lane.b32.xlu1 %v14799_v59, %s16732_s3 }
 0x5a3   : > { %3356 = vrot.lane.b32.xlu0 %v14802_v41, %s16732_s3  ;;  %v5950_v41 = vld [vmem:[#allocation3 + $0x9] sm:$0xff]  ;;  %s17178_s3 = sld [smem:[#allocation9_spill]] }
 0x5a4   : > { %v2582_v26 = vpop.permute.xlu1 %2581 }
 0x5a5   : > { %2649 = vst.msk [vmem:[#allocation2 + $0x1d0] sm:$0xff] %vm2619_vm10, %v2582_v26  ;;  %v2580_v34 = vpop.permute.xlu0 %2579  ;;  %v5955_v26 = vld [vmem:[#allocation3 + $0x49] sm:$0xff] }
 0x5a6   : > { %2648 = vst.msk [vmem:[#allocation2 + $0x1c0] sm:$0xff] %vm2619_vm10, %v2580_v34  ;;  %4961 = vrot.lane.b32.xlu1 %v10745_v43, %s16721_s28  ;;  %v5956_v43 = vld [vmem:[#allocation3 + $0x51] sm:$0xff] }
 0x5a7   : > { %4959 = vrot.lane.b32.xlu0 %v10744_v30, %s16721_s28 }
 0x5a8   : > { %v4189_v32 = vpop.permute.xlu1 %4188 }
 0x5a9   : > { %4255 = vst.msk [vmem:[#allocation2 + $0x1d8] sm:$0xff] %vm1267_vm3, %v4189_v32  ;;  %v4187_v59 = vpop.permute.xlu0 %4186 }
 0x5aa   : > { %4254 = vst.msk [vmem:[#allocation2 + $0x1c8] sm:$0xff] %vm1267_vm3, %v4187_v59  ;;  %3551 = vrot.lane.b32.xlu1 %v14823_v25, %s16733_s20 }
 0x5ab   : > { %3549 = vrot.lane.b32.xlu0 %v14826_v23, %s16733_s20 }
 0x5ac   : > { %v1234_v50 = vpop.permute.xlu1 %1233 }
 0x5ad   : > { %1299 = vst.msk [vmem:[#allocation2 + $0x1f0] sm:$0xff] %vm1267_vm3, %v1234_v50  ;;  %v1232_v2 = vpop.permute.xlu0 %1231 }
 0x5ae   : > { %1298 = vst.msk [vmem:[#allocation2 + $0x1e0] sm:$0xff] %vm1267_vm3, %v1232_v2  ;;  %6015 = vrot.lane.b32.xlu1 %v5950_v41, %s16729_s27  ;;  %v5957_v2 = vld [vmem:[#allocation3 + $0x61] sm:$0xff] }
 0x5af   : > { %6013 = vrot.lane.b32.xlu0 %v5949_v11, %s16729_s27  ;;  %v5958_v11 = vld [vmem:[#allocation3 + $0x69] sm:$0xff] }
 0x5b0   : > { %v2775_v61 = vpop.permute.xlu1 %2774 }
 0x5b1   : > { %2842 = vst.msk [vmem:[#allocation2 + $0x1d0] sm:$0xff] %vm2812_vm11, %v2775_v61  ;;  %v2773_v25 = vpop.permute.xlu0 %2772 }
 0x5b2   : > { %2841 = vst.msk [vmem:[#allocation2 + $0x1c0] sm:$0xff] %vm2812_vm11, %v2773_v25  ;;  %6208 = vrot.lane.b32.xlu1 %v6143_v33, %s16722_s22 }
 0x5b3   : > { %6206 = vrot.lane.b32.xlu0 %v6142_v40, %s16722_s22  ;;  %v6151_v40 = vld [vmem:[#allocation3 + $0x6a] sm:$0xff] }
 0x5b4   : > { %v4381_v23 = vpop.permute.xlu1 %4380 }
 0x5b5   : > { %4447 = vst.msk [vmem:[#allocation2 + $0x1d8] sm:$0xff] %vm16957_vm5, %v4381_v23  ;;  %v4379_v51 = vpop.permute.xlu0 %4378  ;;  %vm16963_vm5 = vcmask 392512  }
 0x5b6   : > { %4446 = vst.msk [vmem:[#allocation2 + $0x1c8] sm:$0xff] %vm16958_vm9, %v4379_v51  ;;  %6401 = vrot.lane.b32.xlu1 %v13568_v52, %s16730_s21  ;;  %v5951_v52 = vld [vmem:[#allocation3 + $0x19] sm:$0xff]  ;;  %vm16964_vm9 = vmmov %vm16963_vm5 }
 0x5b7   : > { %v5397_v24 = vpop.f32.mrb[44].mxu0  ;;  %6399 = vrot.lane.b32.xlu0 %v13556_v21, %s16730_s21 }
 0x5b8   : > { %v5398_v58 = vadd.f32 %v14628_v0, %v5397_v24  ;;  %v5399_v35 = vpop.f32.mrb[45].mxu0  ;;  %v1427_v5 = vpop.permute.xlu1 %1426 }
 0x5b9   : > { %1492 = vst.msk [vmem:[#allocation2 + $0x1f0] sm:$0xff] %vm16959_vm0, %v1427_v5  ;;  %v1425_v55 = vpop.permute.xlu0 %1424  ;;  %v5400_v57 = vpop.f32.mrb[46].mxu0  ;;  %vm16965_vm0 = vmmov %vm16963_vm5  ;;  %v15033_v35 = vld [vmem:[%s16801_s18] ss:$0 sm:$0xff] }
 0x5ba   : > { %v5458_v17 = vmax.f32 %v5398_v58, 0.0  ;;  %1491 = vst.msk [vmem:[#allocation2 + $0x1e0] sm:$0xff] %vm16960_vm13, %v1425_v55  ;;  %v5401_v3 = vadd.f32 %v14628_v0, %v5400_v57  ;;  %v5402_v6 = vpop.f32.mrb[47].mxu0  ;;  %6019 = vrot.lane.b32.xlu1 %v5952_v15, %s16729_s27  ;;  %vm16966_vm13 = vmmov %vm16965_vm0 }
 0x5bb   : > { %6017 = vrot.lane.b32.xlu0 %v5951_v52, %s16729_s27 }
 0x5bc   : > { %v5459_v21 = vmax.f32 %v5401_v3, 0.0  ;;  %v2968_v12 = vpop.permute.xlu1 %2967  ;;  %v5546_v63 = vmax.f32 %v5458_v17, 0.0 }
 0x5bd   : > { %3035 = vst.msk [vmem:[#allocation2 + $0x1d0] sm:$0xff] %vm16961_vm4, %v2968_v12  ;;  %v2966_v28 = vpop.permute.xlu0 %2965  ;;  %vm16967_vm4 = vcmask 917312  }
 0x5be   : > { %v5547_v4 = vmax.f32 %v5459_v21, 0.0  ;;  %3034 = vst.msk [vmem:[#allocation2 + $0x1c0] sm:$0xff] %vm16962_vm12, %v2966_v28  ;;  %6212 = vrot.lane.b32.xlu1 %v6145_v39, %s16722_s22  ;;  %vm16968_vm12 = vmmov %vm16967_vm4 }
 0x5bf   : > { %6210 = vrot.lane.b32.xlu0 %v6144_v27, %s16722_s22 }
 0x5c0   : > { %v5567_v0 = vpack.c.bf16 %v5547_v4, %v5546_v63  ;;  %v4574_v9 = vpop.permute.xlu1 %4573  ;;  %v5960_v63 = vld [vmem:[#allocation3 + $0x81] sm:$0xff] }
 0x5c1   : > { %4640 = vst.msk [vmem:[#allocation2 + $0x1d8] sm:$0xff] %vm16963_vm5, %v4574_v9  ;;  %v4572_v48 = vpop.permute.xlu0 %4571  ;;  %vm16969_vm5 = vcmask 982912  }
 0x5c2   : > { %4639 = vst.msk [vmem:[#allocation2 + $0x1c8] sm:$0xff] %vm16964_vm9, %v4572_v48  ;;  %11184 = vmatmul.mubr.msk.bf16.gmra.mrb[20].mxu1 %vm5226_vm14, %v5567_v0  ;;  %6405 = vrot.lane.b32.xlu1 %v13563_v20, %s16730_s21  ;;  %v6147_v20 = vld [vmem:[#allocation3 + $0x3a] sm:$0xff]  ;;  %vm16970_vm9 = vmmov %vm16969_vm5 }
 0x5c3   : > { %6403 = vrot.lane.b32.xlu0 %v13550_v7, %s16730_s21  ;;  %v6146_v7 = vld [vmem:[#allocation3 + $0x32] sm:$0xff] }
 0x5c4   : > { %v1620_v19 = vpop.permute.xlu1 %1619 }
 0x5c5   : > { %1685 = vst.msk [vmem:[#allocation2 + $0x1f0] sm:$0xff] %vm16965_vm0, %v1620_v19  ;;  %v1618_v22 = vpop.permute.xlu0 %1617  ;;  %v6153_v19 = vld [vmem:[#allocation3 + $0x82] sm:$0xff] }
 0x5c6   : > { %1684 = vst.msk [vmem:[#allocation2 + $0x1e0] sm:$0xff] %vm16966_vm13, %v1618_v22  ;;  %6023 = vrot.lane.b32.xlu1 %v5954_v38, %s16729_s27  ;;  %v6152_v22 = vld [vmem:[#allocation3 + $0x7a] sm:$0xff] }
 0x5c7   : > { %6021 = vrot.lane.b32.xlu0 %v5953_v31, %s16729_s27 }
 0x5c8   : > { %v3161_v56 = vpop.permute.xlu1 %3160 }
 0x5c9   : > { %3228 = vst.msk [vmem:[#allocation2 + $0x1d0] sm:$0xff] %vm16967_vm4, %v3161_v56  ;;  %v3159_v60 = vpop.permute.xlu0 %3158 }
 0x5ca   : > { %3227 = vst.msk [vmem:[#allocation2 + $0x1c0] sm:$0xff] %vm16968_vm12, %v3159_v60  ;;  %6216 = vrot.lane.b32.xlu1 %v6147_v20, %s16722_s22  ;;  %vm16975_vm12 = vcmask 654912  }
 0x5cb   : > { %6214 = vrot.lane.b32.xlu0 %v6146_v7, %s16722_s22 }
 0x5cc   : > { %v4766_v46 = vpop.permute.xlu1 %4765 }
 0x5cd   : > { %4832 = vst.msk [vmem:[#allocation2 + $0x1d8] sm:$0xff] %vm1846_vm6, %v4766_v46  ;;  %v4764_v8 = vpop.permute.xlu0 %4763 }
 0x5ce   : > { %4831 = vst.msk [vmem:[#allocation2 + $0x1c8] sm:$0xff] %vm1846_vm6, %v4764_v8  ;;  %6409 = vrot.lane.b32.xlu1 %v13968_v18, %s16730_s21  ;;  %v6149_v18 = vld [vmem:[#allocation3 + $0x52] sm:$0xff] }
 0x5cf   : > { %6407 = vrot.lane.b32.xlu0 %v13953_v36, %s16730_s21  ;;  %v6148_v36 = vld [vmem:[#allocation3 + $0x4a] sm:$0xff] }
 0x5d0   : > { %v1813_v29 = vpop.permute.xlu1 %1812 }
 0x5d1   : > { %1878 = vst.msk [vmem:[#allocation2 + $0x1f0] sm:$0xff] %vm1846_vm6, %v1813_v29  ;;  %v1811_v62 = vpop.permute.xlu0 %1810 }
 0x5d2   : > { %1877 = vst.msk [vmem:[#allocation2 + $0x1e0] sm:$0xff] %vm1846_vm6, %v1811_v62  ;;  %6027 = vrot.lane.b32.xlu1 %v5956_v43, %s16729_s27  ;;  %v5962_v43 = vld [vmem:[#allocation3 + $0x99] sm:$0xff] }
 0x5d3   : > { %6025 = vrot.lane.b32.xlu0 %v5955_v26, %s16729_s27  ;;  %v5961_v26 = vld [vmem:[#allocation3 + $0x91] sm:$0xff] }
 0x5d4   : > { %v3355_v30 = vpop.permute.xlu1 %3354 }
 0x5d5   : > { %3422 = vst.msk [vmem:[#allocation2 + $0x1d0] sm:$0xff] %vm16969_vm5, %v3355_v30  ;;  %v3353_v34 = vpop.permute.xlu0 %3352 }
 0x5d6   : > { %3421 = vst.msk [vmem:[#allocation2 + $0x1c0] sm:$0xff] %vm16970_vm9, %v3353_v34  ;;  %6220 = vrot.lane.b32.xlu1 %v6149_v18, %s16722_s22  ;;  %v6155_v18 = vld [vmem:[#allocation3 + $0x9a] sm:$0xff] }
 0x5d7   : > { %6218 = vrot.lane.b32.xlu0 %v6148_v36, %s16722_s22  ;;  %v6154_v36 = vld [vmem:[#allocation3 + $0x92] sm:$0xff] }
 0x5d8   : > { %v4958_v32 = vpop.permute.xlu1 %4957 }
 0x5d9   : > { %5024 = vst.msk [vmem:[#allocation2 + $0x1d8] sm:$0xff] %vm2040_vm7, %v4958_v32  ;;  %v4956_v59 = vpop.permute.xlu0 %4955 }
 0x5da   : > { %5023 = vst.msk [vmem:[#allocation2 + $0x1c8] sm:$0xff] %vm2040_vm7, %v4956_v59  ;;  %6413 = vrot.lane.b32.xlu1 %v13961_v16, %s16730_s21 }
 0x5db   : > { %6411 = vrot.lane.b32.xlu0 %v13949_v47, %s16730_s21  ;;  %v6150_v47 = vld [vmem:[#allocation3 + $0x62] sm:$0xff] }
 0x5dc   : > { %v2007_v41 = vpop.permute.xlu1 %2006 }
 0x5dd   : > { %2072 = vst.msk [vmem:[#allocation2 + $0x1f0] sm:$0xff] %vm2040_vm7, %v2007_v41  ;;  %v2005_v50 = vpop.permute.xlu0 %2004 }
 0x5de   : > { %2071 = vst.msk [vmem:[#allocation2 + $0x1e0] sm:$0xff] %vm2040_vm7, %v2005_v50  ;;  %6031 = vrot.lane.b32.xlu1 %v5958_v11, %s16729_s27 }
 0x5df   : > { %6029 = vrot.lane.b32.xlu0 %v5957_v2, %s16729_s27 }
 0x5e0   : > { %v3548_v33 = vpop.permute.xlu1 %3547  ;;  %v5086_v61 = vld [vmem:[#allocation2 + $0x1d8] sm:$0xff] }
 0x5e1   : > { %3615 = vst.msk [vmem:[#allocation2 + $0x1d0] sm:$0xff] %vm3585_vm15, %v3548_v33  ;;  %v3546_v16 = vpop.permute.xlu0 %3545  ;;  %v5084_v25 = vld [vmem:[#allocation2 + $0x1c8] sm:$0xff] }
 0x5e2   : > { %3614 = vst.msk [vmem:[#allocation2 + $0x1c0] sm:$0xff] %vm3585_vm15, %v3546_v16  ;;  %6224 = vrot.lane.b32.xlu1 %v6151_v40, %s16722_s22  ;;  %v5120_v23 = vpack.c.bf16 %v5086_v61, %v5084_v25  ;;  %v5966_v16 = vld [vmem:[#allocation3 + $0xc9] sm:$0xff]  ;;  %v5965_v40 = vld [vmem:[#allocation3 + $0xc1] sm:$0xff] }
 0x5e3   : > { %6222 = vrot.lane.b32.xlu0 %v6150_v47, %s16722_s22 }
 0x5e4   : > { %10773 = vmatprep.mubr.msk.bf16.mxu0 %vm5226_vm14, %v5120_v23  ;;  %v2200_v51 = vpop.permute.xlu1 %2199 }
 0x5e5   : > { %2265 = vst.msk [vmem:[#allocation2 + $0x1f0] sm:$0xff] %vm2233_vm8, %v2200_v51  ;;  %v2198_v24 = vpop.permute.xlu0 %2197  ;;  %v11181_v58 = vpop.f32.mrb[16].mxu1 }
 0x5e6   : > { %2264 = vst.msk [vmem:[#allocation2 + $0x1e0] sm:$0xff] %vm2233_vm8, %v2198_v24  ;;  %v5766_v5 = vadd.f32 %v15033_v35, %v11181_v58  ;;  %v5757_v55 = vpop.f32.mrb[17].mxu1  ;;  %6417 = vrot.lane.b32.xlu1 %v14378_v49, %s16730_s21  ;;  %vm16971_vm8 = vcmask 261120   ;;  %v6159_v58 = vld [vmem:[#allocation3 + $0xca] sm:$0xff] }
 0x5e7   : > { %v5758_v57 = vadd.f32 %v15033_v35, %v5757_v55  ;;  %v11182_v15 = vpop.f32.mrb[18].mxu1  ;;  %6415 = vrot.lane.b32.xlu0 %v14366_v10, %s16730_s21  ;;  %v5959_v10 = vld [vmem:[#allocation3 + $0x79] sm:$0xff]  ;;  %vm16972_vm0 = vmmov %vm16971_vm8 }
 0x5e8   : > { %v5838_v17 = vmax.f32 %v5766_v5, 0.0  ;;  %v5769_v3 = vadd.f32 %v15033_v35, %v11182_v15  ;;  %v5760_v6 = vpop.f32.mrb[19].mxu1  ;;  %v3809_v52 = vpop.permute.xlu1 %3808  ;;  %v5085_v21 = vld [vmem:[#allocation2 + $0x1d0] sm:$0xff]  ;;  %vm16973_vm13 = vmmov %vm16972_vm0  ;;  %v6158_v15 = vld [vmem:[#allocation3 + $0xc2] sm:$0xff] }
 0x5e9   : > { %v5836_v12 = vmax.f32 %v5758_v57, 0.0  ;;  %v5761_v28 = vadd.f32 %v15033_v35, %v5760_v6  ;;  %3873 = vst.msk [vmem:[#allocation2 + $0x1f8] sm:$0xff] %vm881_vm1, %v3809_v52  ;;  %v3807_v39 = vpop.permute.xlu0 %3806  ;;  %v5083_v49 = vld [vmem:[#allocation2 + $0x1c0] sm:$0xff]  ;;  %vm16974_vm4 = vmmov %vm16972_vm0 }
 0x5ea   : > { %5871 = vst.msk [vmem:[#allocation3 + $0xf1] sm:$0xff] %vm16971_vm8, %v5838_v17  ;;  %v5839_v4 = vmax.f32 %v5769_v3, 0.0  ;;  %6035 = vrot.lane.b32.xlu1 %v5960_v63, %s16729_s27  ;;  %v5119_v27 = vpack.c.bf16 %v5085_v21, %v5083_v49  ;;  %vm16977_vm5 = vmmov %vm16972_vm0 }
 0x5eb   : > { %3872 = vst.msk [vmem:[#allocation2 + $0x1e8] sm:$0xff] %vm881_vm1, %v3807_v39  ;;  %v5837_v0 = vmax.f32 %v5761_v28, 0.0  ;;  %6033 = vrot.lane.b32.xlu0 %v5959_v10, %s16729_s27  ;;  %vm16976_vm1 = vmmov %vm16975_vm12 }
 0x5ec   : > { %5869 = vst.msk [vmem:[#allocation3 + $0xd9] sm:$0xff] %vm16972_vm0, %v5836_v12  ;;  %5420 = vmatmul.mubr.bf16.gmra.mrb[56].mxu0 %v5119_v27  ;;  %v2393_v9 = vpop.permute.xlu1 %2392  ;;  %vm16978_vm9 = vmmov %vm16972_vm0 }
 0x5ed   : > { %5872 = vst.msk [vmem:[#allocation3 + $0xf9] sm:$0xff] %vm16973_vm13, %v5839_v4  ;;  %v2391_v48 = vpop.permute.xlu0 %2390  ;;  %vm16979_vm8 = vmmov %vm16972_vm0 }
 0x5ee   : > { %5870 = vst.msk [vmem:[#allocation3 + $0xe1] sm:$0xff] %vm16974_vm4, %v5837_v0  ;;  %6228 = vrot.lane.b32.xlu1 %v6153_v19, %s16722_s22  ;;  %vm16981_vm13 = vmmov %vm16972_vm0 }
 0x5ef   : > { %2458 = vst.msk [vmem:[#allocation2 + $0x1f0] sm:$0xff] %vm16975_vm12, %v2393_v9  ;;  %6226 = vrot.lane.b32.xlu0 %v6152_v22, %s16722_s22  ;;  %vm16982_vm4 = vmmov %vm16972_vm0 }
 0x5f0   : > { %2457 = vst.msk [vmem:[#allocation2 + $0x1e0] sm:$0xff] %vm16976_vm1, %v2391_v48  ;;  %v4001_v38 = vpop.permute.xlu1 %4000  ;;  %vm16983_vm12 = vmmov %vm16972_vm0 }
 0x5f1   : > { %v15055_v31 = vld [vmem:[#allocation3 + $0xf1] sm:$0xff]  ;;  %4065 = vst.msk [vmem:[#allocation2 + $0x1f8] sm:$0xff] %vm1074_vm2, %v4001_v38  ;;  %v3999_v56 = vpop.permute.xlu0 %3998 }
 0x5f2   : > { %v15058_v60 = vld [vmem:[#allocation3 + $0xf0] sm:$0xff]  ;;  %6578 = vst.msk [vmem:[#allocation4 + $0x128] sm:$0xff] %vm16977_vm5, %v15055_v31  ;;  %6421 = vrot.lane.b32.xlu1 %v14373_v44, %s16730_s21  ;;  %vm16988_vm5 = vcmask 392512  }
 0x5f3   : > { %v15062_v20 = vld [vmem:[#allocation3 + $0xd9] sm:$0xff]  ;;  %4064 = vst.msk [vmem:[#allocation2 + $0x1e8] sm:$0xff] %vm1074_vm2, %v3999_v56  ;;  %6419 = vrot.lane.b32.xlu0 %v14360_v53, %s16730_s21  ;;  %vm16980_vm2 = vmmov %vm16972_vm0 }
 0x5f4   : > { %v15067_v7 = vld [vmem:[#allocation3 + $0xd8] sm:$0xff]  ;;  %5937 = vst.msk [vmem:[#allocation4 + $0x140] sm:$0xff] %vm16978_vm9, %v15058_v60  ;;  %v2586_v29 = vpop.permute.xlu1 %2585  ;;  %vm16989_vm9 = vmmov %vm16988_vm5 }
 0x5f5   : > { %6576 = vst.msk [vmem:[#allocation4 + $0x108] sm:$0xff] %vm16979_vm8, %v15062_v20  ;;  %v15073_v46 = vld [vmem:[#allocation3 + $0xf9] sm:$0xff]  ;;  %v15083_v44 = vld [vmem:[#allocation3 + $0xe1] sm:$0xff]  ;;  %v2584_v53 = vpop.permute.xlu0 %2583  ;;  %vm16990_vm8 = vcmask 917312  }
 0x5f6   : > { %v15077_v8 = vld [vmem:[#allocation3 + $0xf8] sm:$0xff]  ;;  %5935 = vst.msk [vmem:[#allocation4 + $0x120] sm:$0xff] %vm16980_vm2, %v15067_v7  ;;  %v15085_v62 = vld [vmem:[#allocation3 + $0xe0] sm:$0xff]  ;;  %6039 = vrot.lane.b32.xlu1 %v5962_v43, %s16729_s27  ;;  %vm16991_vm2 = vmmov %vm16990_vm8 }
 0x5f7   : > { %6579 = vst.msk [vmem:[#allocation4 + $0x138] sm:$0xff] %vm16972_vm0, %v15073_v46  ;;  %6037 = vrot.lane.b32.xlu0 %v5961_v26, %s16729_s27  ;;  %vm16992_vm0 = vcmask 982912   ;;  %v6161_v4 = vld [vmem:[#allocation3 + $0xe2] sm:$0xff]  ;;  %v6160_v10 = vld [vmem:[#allocation3 + $0xda] sm:$0xff] }
 0x5f8   : > { %5938 = vst.msk [vmem:[#allocation4 + $0x150] sm:$0xff] %vm16981_vm13, %v15077_v8  ;;  %v4193_v30 = vpop.permute.xlu1 %4192  ;;  %vm16993_vm13 = vmmov %vm16992_vm0 }
 0x5f9   : > { %6577 = vst.msk [vmem:[#allocation4 + $0x118] sm:$0xff] %vm16982_vm4, %v15083_v44  ;;  %v4191_v34 = vpop.permute.xlu0 %4190 }
 0x5fa   : > { %2651 = vst.msk [vmem:[#allocation2 + $0x1f0] sm:$0xff] %vm2619_vm10, %v2586_v29  ;;  %2650 = vst.msk [vmem:[#allocation2 + $0x1e0] sm:$0xff] %vm2619_vm10, %v2584_v53  ;;  %6232 = vrot.lane.b32.xlu1 %v6155_v18, %s16722_s22  ;;  %vm16984_vm10 = vcmask 326912   ;;  %v6162_v29 = vld [vmem:[#allocation3 + $0xf2] sm:$0xff] }
 0x5fb   : > { %5936 = vst.msk [vmem:[#allocation4 + $0x130] sm:$0xff] %vm16983_vm12, %v15085_v62  ;;  %6230 = vrot.lane.b32.xlu0 %v6154_v36, %s16722_s22  ;;  %vm16995_vm12 = vmmov %vm16982_vm4 }
 0x5fc   : > { %4257 = vst.msk [vmem:[#allocation2 + $0x1f8] sm:$0xff] %vm1267_vm3, %v4193_v30  ;;  %4256 = vst.msk [vmem:[#allocation2 + $0x1e8] sm:$0xff] %vm1267_vm3, %v4191_v34  ;;  %v2779_v32 = vpop.permute.xlu1 %2778 }
 0x5fd   : > { %2844 = vst.msk [vmem:[#allocation2 + $0x1f0] sm:$0xff] %vm2812_vm11, %v2779_v32  ;;  %v2777_v59 = vpop.permute.xlu0 %2776  ;;  %vm16985_vm3 = vmmov %vm16984_vm10 }
 0x5fe   : > { %2843 = vst.msk [vmem:[#allocation2 + $0x1e0] sm:$0xff] %vm2812_vm11, %v2777_v59  ;;  %6425 = vrot.lane.b32.xlu1 %v14778_v54, %s16730_s21  ;;  %vm16986_vm11 = vcmask 851712   ;;  %v6157_v54 = vld [vmem:[#allocation3 + $0xb2] sm:$0xff] }
 0x5ff   : > { %6423 = vrot.lane.b32.xlu0 %v14763_v1, %s16730_s21  ;;  %vm16987_vm1 = vmmov %vm16986_vm11  ;;  %v6156_v1 = vld [vmem:[#allocation3 + $0xaa] sm:$0xff] }
 0x600   : > { %v4385_v41 = vpop.permute.xlu1 %4384 }
 0x601   : > { %4449 = vst.msk [vmem:[#allocation2 + $0x1f8] sm:$0xff] %vm16984_vm10, %v4385_v41  ;;  %v4383_v50 = vpop.permute.xlu0 %4382  ;;  %vm16996_vm10 = vmmov %vm16982_vm4 }
 0x602   : > { %4448 = vst.msk [vmem:[#allocation2 + $0x1e8] sm:$0xff] %vm16985_vm3, %v4383_v50  ;;  %6043 = vrot.lane.b32.xlu1 %v14776_v14, %s16729_s27  ;;  %vm16997_vm3 = vmmov %vm16982_vm4 }
 0x603   : > { %6041 = vrot.lane.b32.xlu0 %v14758_v45, %s16729_s27 }
 0x604   : > { %v2972_v11 = vpop.permute.xlu1 %2971 }
 0x605   : > { %3037 = vst.msk [vmem:[#allocation2 + $0x1f0] sm:$0xff] %vm16986_vm11, %v2972_v11  ;;  %v2970_v2 = vpop.permute.xlu0 %2969  ;;  %vm16998_vm11 = vmmov %vm16997_vm3 }
 0x606   : > { %3036 = vst.msk [vmem:[#allocation2 + $0x1e0] sm:$0xff] %vm16987_vm1, %v2970_v2  ;;  %6236 = vrot.lane.b32.xlu1 %v6157_v54, %s16722_s22  ;;  %v11545_v54 = vld [vmem:[%s16994_s24] sm:$0xff]   ;;  %vm16999_vm1 = vmmov %vm16997_vm3 }
 0x607   : > { %6234 = vrot.lane.b32.xlu0 %v6156_v1, %s16722_s22  ;;  %6824 = vmatpush1.bf16.msra.mxu1 %v11545_v54 }
 0x608   : > { %v4578_v33 = vpop.permute.xlu1 %4577  ;;  %6825 = vmatprep.subr.bf16.mxu1 %v11671_v37 }
 0x609   : > { %4642 = vst.msk [vmem:[#allocation2 + $0x1f8] sm:$0xff] %vm16988_vm5, %v4578_v33  ;;  %v4576_v61 = vpop.permute.xlu0 %4575  ;;  %v11546_v33 = vld [vmem:[%s16994_s24 + $0x8] sm:$0xff]   ;;  %vm17000_vm5 = vmmov %vm16999_vm1 }
 0x60a   : > { %4641 = vst.msk [vmem:[#allocation2 + $0x1e8] sm:$0xff] %vm16989_vm9, %v4576_v61  ;;  %6429 = vrot.lane.b32.xlu1 %v14771_v13, %s16730_s21  ;;  %v15130_v13 = vld [vmem:[%s16745_s16] ss:$0 sm:$0xff]  ;;  %vm17001_vm9 = vmmov %vm16999_vm1 }
 0x60b   : > { %6427 = vrot.lane.b32.xlu0 %v14755_v42, %s16730_s21  ;;  %6826 = vmatpush1.bf16.msra.mxu1 %v11546_v33 }
 0x60c   : > { %v3165_v45 = vpop.permute.xlu1 %3164  ;;  %6827 = vmatprep.subr.bf16.mxu1 %v11671_v37 }
 0x60d   : > { %3230 = vst.msk [vmem:[#allocation2 + $0x1f0] sm:$0xff] %vm16990_vm8, %v3165_v45  ;;  %v3163_v14 = vpop.permute.xlu0 %3162  ;;  %vm17002_vm8 = vmmov %vm16999_vm1 }
 0x60e   : > { %3229 = vst.msk [vmem:[#allocation2 + $0x1e0] sm:$0xff] %vm16991_vm2, %v3163_v14  ;;  %6047 = vrot.lane.b32.xlu1 %v5966_v16, %s16729_s27  ;;  %v11547_v14 = vld [vmem:[%s16994_s24 + $0x10] sm:$0xff]   ;;  %vm17003_vm2 = vmmov %vm16999_vm1 }
 0x60f   : > { %v5405_v25 = vpop.f32.mrb[48].mxu0  ;;  %6045 = vrot.lane.b32.xlu0 %v5965_v40, %s16729_s27  ;;  %6828 = vmatpush1.bf16.msra.mxu1 %v11547_v14 }
 0x610   : > { %v5406_v42 = vadd.f32 %v15130_v13, %v5405_v25  ;;  %v5407_v47 = vpop.f32.mrb[49].mxu0  ;;  %v4770_v23 = vpop.permute.xlu1 %4769  ;;  %v11548_v25 = vld [vmem:[%s16994_s24 + $0x18] sm:$0xff]   ;;  %6829 = vmatprep.subr.bf16.mxu1 %v11671_v37 }
 0x611   : > { %4834 = vst.msk [vmem:[#allocation2 + $0x1f8] sm:$0xff] %vm1846_vm6, %v4770_v23  ;;  %v4768_v51 = vpop.permute.xlu0 %4767  ;;  %v5408_v24 = vpop.f32.mrb[50].mxu0  ;;  %v11549_v23 = vld [vmem:[%s16994_s24 + $0x20] sm:$0xff]  }
 0x612   : > { %v5460_v5 = vmax.f32 %v5406_v42, 0.0  ;;  %4833 = vst.msk [vmem:[#allocation2 + $0x1e8] sm:$0xff] %vm1846_vm6, %v4768_v51  ;;  %v5409_v55 = vadd.f32 %v15130_v13, %v5408_v24  ;;  %v5410_v57 = vpop.f32.mrb[51].mxu0  ;;  %6240 = vrot.lane.b32.xlu1 %v6159_v58, %s16722_s22  ;;  %vm6109_vm6 = vcmask 523520  }
 0x613   : > { %6238 = vrot.lane.b32.xlu0 %v6158_v15, %s16722_s22  ;;  %6830 = vmatpush1.bf16.msra.mxu1 %v11548_v25 }
 0x614   : > { %v5461_v17 = vmax.f32 %v5409_v55, 0.0  ;;  %v3359_v3 = vpop.permute.xlu1 %3358  ;;  %v5548_v52 = vmax.f32 %v5460_v5, 0.0  ;;  %6831 = vmatprep.subr.bf16.mxu1 %v11671_v37 }
 0x615   : > { %3424 = vst.msk [vmem:[#allocation2 + $0x1f0] sm:$0xff] %vm16992_vm0, %v3359_v3  ;;  %v3357_v6 = vpop.permute.xlu0 %3356  ;;  %vm17004_vm0 = vmmov %vm16999_vm1 }
 0x616   : > { %v5549_v21 = vmax.f32 %v5461_v17, 0.0  ;;  %3423 = vst.msk [vmem:[#allocation2 + $0x1e0] sm:$0xff] %vm16993_vm13, %v3357_v6  ;;  %6433 = vrot.lane.b32.xlu1 %v15085_v62, %s16730_s21  ;;  %vm17005_vm13 = vmmov %vm17004_vm0 }
 0x617   : > { %6431 = vrot.lane.b32.xlu0 %v15067_v7, %s16730_s21  ;;  %6832 = vmatpush1.bf16.msra.mxu1 %v11549_v23 }
 0x618   : > { %v5568_v12 = vpack.c.bf16 %v5549_v21, %v5548_v52  ;;  %v4962_v28 = vpop.permute.xlu1 %4961  ;;  %6833 = vmatprep.subr.bf16.mxu1 %v11671_v37 }
 0x619   : > { %5026 = vst.msk [vmem:[#allocation2 + $0x1f8] sm:$0xff] %vm2040_vm7, %v4962_v28  ;;  %v4960_v39 = vpop.permute.xlu0 %4959 }
 0x61a   : > { %5025 = vst.msk [vmem:[#allocation2 + $0x1e8] sm:$0xff] %vm2040_vm7, %v4960_v39  ;;  %11187 = vmatprep.mubr.msk.bf16.mxu1 %vm5226_vm14, %v5568_v12  ;;  %6051 = vrot.lane.b32.xlu1 %v15083_v44, %s16729_s27  ;;  %vm6302_vm7 = vcmask 785920   ;;  %v6163_v44 = vld [vmem:[#allocation3 + $0xfa] sm:$0xff] }
 0x61b   : > { %6049 = vrot.lane.b32.xlu0 %v15062_v20, %s16729_s27 }
 0x61c   : > { %v3552_v63 = vpop.permute.xlu1 %3551 }
 0x61d   : > { %3617 = vst.msk [vmem:[#allocation2 + $0x1f0] sm:$0xff] %vm3585_vm15, %v3552_v63  ;;  %v3550_v49 = vpop.permute.xlu0 %3549 }
 0x61e   : > { %3616 = vst.msk [vmem:[#allocation2 + $0x1e0] sm:$0xff] %vm3585_vm15, %v3550_v49  ;;  %6244 = vrot.lane.b32.xlu1 %v6161_v4, %s16722_s22  ;;  %vm6495_vm15 = vcmask 1048320  }
 0x61f   : > { %6242 = vrot.lane.b32.xlu0 %v6160_v10, %s16722_s22 }
 0x620   : > { %v6016_v27 = vpop.permute.xlu1 %6015  ;;  %v5090_v0 = vld [vmem:[#allocation2 + $0x1f8] sm:$0xff] }
 0x621   : > { %6111 = vst.msk [vmem:[#allocation4 + $0x10] sm:$0xff] %vm6109_vm6, %v6016_v27  ;;  %v6014_v9 = vpop.permute.xlu0 %6013  ;;  %v5088_v48 = vld [vmem:[#allocation2 + $0x1e8] sm:$0xff] }
 0x622   : > { %6110 = vst.msk [vmem:[#allocation4] sm:$0xff] %vm6109_vm6, %v6014_v9  ;;  %6437 = vrot.lane.b32.xlu1 %v15077_v8, %s16730_s21  ;;  %v5122_v19 = vpack.c.bf16 %v5090_v0, %v5088_v48 }
 0x623   : > { %6435 = vrot.lane.b32.xlu0 %v15058_v60, %s16730_s21 }
 0x624   : > { %10774 = vmatprep.mubr.msk.bf16.mxu0 %vm5226_vm14, %v5122_v19  ;;  %v6209_v22 = vpop.permute.xlu1 %6208  ;;  %v5089_v38 = vld [vmem:[#allocation2 + $0x1f0] sm:$0xff] }
 0x625   : > { %6304 = vst.msk [vmem:[#allocation4 + $0x10] sm:$0xff] %vm6302_vm7, %v6209_v22  ;;  %v6207_v56 = vpop.permute.xlu0 %6206  ;;  %v5087_v20 = vld [vmem:[#allocation2 + $0x1e0] sm:$0xff] }
 0x626   : > { %6303 = vst.msk [vmem:[#allocation4] sm:$0xff] %vm6302_vm7, %v6207_v56  ;;  %6055 = vrot.lane.b32.xlu1 %v15073_v46, %s16729_s27  ;;  %v5121_v7 = vpack.c.bf16 %v5089_v38, %v5087_v20 }
 0x627   : > { %6053 = vrot.lane.b32.xlu0 %v15055_v31, %s16729_s27 }
 0x628   : > { %5428 = vmatmul.mubr.bf16.gmra.mrb[60].mxu0 %v5121_v7  ;;  %v6402_v60 = vpop.permute.xlu1 %6401 }
 0x629   : > { %6497 = vst.msk [vmem:[#allocation4 + $0x10] sm:$0xff] %vm6495_vm15, %v6402_v60  ;;  %v6400_v8 = vpop.permute.xlu0 %6399  ;;  %v11550_v60 = vld [vmem:[%s16994_s24 + $0x28] sm:$0xff]  }
 0x62a   : > { %6496 = vst.msk [vmem:[#allocation4] sm:$0xff] %vm6495_vm15, %v6400_v8  ;;  %6248 = vrot.lane.b32.xlu1 %v6163_v44, %s16722_s22  ;;  %6834 = vmatpush1.bf16.msra.mxu1 %v11550_v60 }
 0x62b   : > { %6246 = vrot.lane.b32.xlu0 %v6162_v29, %s16722_s22  ;;  %6835 = vmatprep.subr.bf16.mxu1 %v11671_v37  ;;  %v11551_v29 = vld [vmem:[%s16994_s24 + $0x30] sm:$0xff]  }
 0x62c   : > { %v6020_v62 = vpop.permute.xlu1 %6019 }
 0x62d   : > { %6113 = vst.msk [vmem:[#allocation4 + $0x30] sm:$0xff] %vm6109_vm6, %v6020_v62  ;;  %v6018_v46 = vpop.permute.xlu0 %6017 }
 0x62e   : > { %6112 = vst.msk [vmem:[#allocation4 + $0x20] sm:$0xff] %vm6109_vm6, %v6018_v46  ;;  %6836 = vmatpush1.bf16.msra.mxu1 %v11551_v29 }
 0x62f   : > { %6837 = vmatprep.subr.bf16.mxu1 %v11671_v37 }
 0x630   : > { %v6213_v31 = vpop.permute.xlu1 %6212 }
 0x631   : > { %6306 = vst.msk [vmem:[#allocation4 + $0x30] sm:$0xff] %vm6302_vm7, %v6213_v31  ;;  %v6211_v53 = vpop.permute.xlu0 %6210  ;;  %v11552_v31 = vld [vmem:[%s16994_s24 + $0x38] sm:$0xff]  }
 0x632   : > { %6305 = vst.msk [vmem:[#allocation4 + $0x20] sm:$0xff] %vm6302_vm7, %v6211_v53  ;;  %6838 = vmatpush1.bf16.msra.mxu1 %v11552_v31  ;;  %v6595_v31 = vld [vmem:[#allocation4 + $0x18] sm:$0xff] }
 0x633   : > { %6839 = vmatprep.subr.bf16.mxu1 %v11671_v37 }
 0x634   : > { %v6406_v43 = vpop.permute.xlu1 %6405 }
 0x635   : > { %6499 = vst.msk [vmem:[#allocation4 + $0x30] sm:$0xff] %vm6495_vm15, %v6406_v43  ;;  %v6404_v26 = vpop.permute.xlu0 %6403  ;;  %v11553_v43 = vld [vmem:[%s16994_s24 + $0x40] sm:$0xff]  }
 0x636   : > { %6498 = vst.msk [vmem:[#allocation4 + $0x20] sm:$0xff] %vm6495_vm15, %v6404_v26  ;;  %6840 = vmatpush1.bf16.msra.mxu1 %v11553_v43  ;;  %v6593_v43 = vld [vmem:[#allocation4 + $0x8] sm:$0xff] }
 0x637   : > { %6841 = vmatprep.subr.bf16.mxu1 %v11671_v37 }
 0x638   : > { %v6024_v30 = vpop.permute.xlu1 %6023 }
 0x639   : > { %6115 = vst.msk [vmem:[#allocation4 + $0x50] sm:$0xff] %vm6109_vm6, %v6024_v30  ;;  %v6022_v34 = vpop.permute.xlu0 %6021 }
 0x63a   : > { %6114 = vst.msk [vmem:[#allocation4 + $0x40] sm:$0xff] %vm6109_vm6, %v6022_v34  ;;  %v11554_v34 = vld [vmem:[%s16994_s24 + $0x48] sm:$0xff]  }
 0x63b   : > { %6842 = vmatpush1.bf16.msra.mxu1 %v11554_v34  ;;  %v6594_v34 = vld [vmem:[#allocation4 + $0x10] sm:$0xff] }
 0x63c   : > { %v6217_v18 = vpop.permute.xlu1 %6216 }
 0x63d   : > { %6308 = vst.msk [vmem:[#allocation4 + $0x50] sm:$0xff] %vm6302_vm7, %v6217_v18  ;;  %v6215_v36 = vpop.permute.xlu0 %6214 }
 0x63e   : > { %6307 = vst.msk [vmem:[#allocation4 + $0x40] sm:$0xff] %vm6302_vm7, %v6215_v36 }
 0x640   : > { %v6410_v32 = vpop.permute.xlu1 %6409 }
 0x641   : > { %6501 = vst.msk [vmem:[#allocation4 + $0x50] sm:$0xff] %vm6495_vm15, %v6410_v32  ;;  %v6408_v59 = vpop.permute.xlu0 %6407 }
 0x642   : > { %6500 = vst.msk [vmem:[#allocation4 + $0x40] sm:$0xff] %vm6495_vm15, %v6408_v59 }
 0x644   : > { %v6028_v41 = vpop.permute.xlu1 %6027 }
 0x645   : > { %6117 = vst.msk [vmem:[#allocation4 + $0x70] sm:$0xff] %vm6109_vm6, %v6028_v41  ;;  %v6026_v50 = vpop.permute.xlu0 %6025 }
 0x646   : > { %6116 = vst.msk [vmem:[#allocation4 + $0x60] sm:$0xff] %vm6109_vm6, %v6026_v50 }
 0x648   : > { %v6221_v11 = vpop.permute.xlu1 %6220 }
 0x649   : > { %6310 = vst.msk [vmem:[#allocation4 + $0x70] sm:$0xff] %vm6302_vm7, %v6221_v11  ;;  %v6219_v2 = vpop.permute.xlu0 %6218 }
 0x64a   : > { %6309 = vst.msk [vmem:[#allocation4 + $0x60] sm:$0xff] %vm6302_vm7, %v6219_v2 }
 0x64c   : > { %v6414_v1 = vpop.permute.xlu1 %6413 }
 0x64d   : > { %6503 = vst.msk [vmem:[#allocation4 + $0x70] sm:$0xff] %vm6495_vm15, %v6414_v1  ;;  %v6412_v61 = vpop.permute.xlu0 %6411 }
 0x64e   : > { %6502 = vst.msk [vmem:[#allocation4 + $0x60] sm:$0xff] %vm6495_vm15, %v6412_v61 }
 0x650   : > { %v6032_v45 = vpop.permute.xlu1 %6031 }
 0x651   : > { %6119 = vst.msk [vmem:[#allocation4 + $0x90] sm:$0xff] %vm6109_vm6, %v6032_v45  ;;  %v6030_v16 = vpop.permute.xlu0 %6029 }
 0x652   : > { %6118 = vst.msk [vmem:[#allocation4 + $0x80] sm:$0xff] %vm6109_vm6, %v6030_v16 }
 0x654   : > { %v6225_v40 = vpop.permute.xlu1 %6224 }
 0x655   : > { %6312 = vst.msk [vmem:[#allocation4 + $0x90] sm:$0xff] %vm6302_vm7, %v6225_v40  ;;  %v6223_v42 = vpop.permute.xlu0 %6222 }
 0x656   : > { %6311 = vst.msk [vmem:[#allocation4 + $0x80] sm:$0xff] %vm6302_vm7, %v6223_v42 }
 0x658   : > { %v6418_v47 = vpop.permute.xlu1 %6417 }
 0x659   : > { %6505 = vst.msk [vmem:[#allocation4 + $0x90] sm:$0xff] %vm6495_vm15, %v6418_v47  ;;  %v6416_v51 = vpop.permute.xlu0 %6415 }
 0x65a   : > { %6504 = vst.msk [vmem:[#allocation4 + $0x80] sm:$0xff] %vm6495_vm15, %v6416_v51 }
 0x65c   : > { %v6036_v24 = vpop.permute.xlu1 %6035 }
 0x65d   : > { %6121 = vst.msk [vmem:[#allocation4 + $0xb0] sm:$0xff] %vm6109_vm6, %v6036_v24  ;;  %v6034_v58 = vpop.permute.xlu0 %6033 }
 0x65e   : > { %6120 = vst.msk [vmem:[#allocation4 + $0xa0] sm:$0xff] %vm6109_vm6, %v6034_v58 }
 0x660   : > { %v6229_v5 = vpop.permute.xlu1 %6228 }
 0x661   : > { %6314 = vst.msk [vmem:[#allocation4 + $0xb0] sm:$0xff] %vm6302_vm7, %v6229_v5  ;;  %v6227_v55 = vpop.permute.xlu0 %6226 }
 0x662   : > { %6313 = vst.msk [vmem:[#allocation4 + $0xa0] sm:$0xff] %vm6302_vm7, %v6227_v55 }
 0x664   : > { %v6422_v57 = vpop.permute.xlu1 %6421 }
 0x665   : > { %6507 = vst.msk [vmem:[#allocation4 + $0xb0] sm:$0xff] %vm6495_vm15, %v6422_v57  ;;  %v6420_v15 = vpop.permute.xlu0 %6419 }
 0x666   : > { %6506 = vst.msk [vmem:[#allocation4 + $0xa0] sm:$0xff] %vm6495_vm15, %v6420_v15 }
 0x667   : > { %v5413_v17 = vpop.f32.mrb[52].mxu0 }
 0x668   : > { %v5414_v3 = vadd.f32 %v15130_v13, %v5413_v17  ;;  %v5415_v6 = vpop.f32.mrb[53].mxu0  ;;  %v6040_v52 = vpop.permute.xlu1 %6039 }
 0x669   : > { %v5416_v21 = vpop.f32.mrb[54].mxu0  ;;  %6123 = vst.msk [vmem:[#allocation4 + $0xd0] sm:$0xff] %vm6109_vm6, %v6040_v52  ;;  %v6038_v12 = vpop.permute.xlu0 %6037 }
 0x66a   : > { %v5462_v28 = vmax.f32 %v5414_v3, 0.0  ;;  %v5417_v39 = vadd.f32 %v15130_v13, %v5416_v21  ;;  %6122 = vst.msk [vmem:[#allocation4 + $0xc0] sm:$0xff] %vm6109_vm6, %v6038_v12  ;;  %v5418_v63 = vpop.f32.mrb[55].mxu0 }
 0x66c   : > { %v5463_v49 = vmax.f32 %v5417_v39, 0.0  ;;  %v6233_v4 = vpop.permute.xlu1 %6232  ;;  %v5550_v27 = vmax.f32 %v5462_v28, 0.0 }
 0x66d   : > { %6316 = vst.msk [vmem:[#allocation4 + $0xd0] sm:$0xff] %vm6302_vm7, %v6233_v4  ;;  %v6231_v10 = vpop.permute.xlu0 %6230 }
 0x66e   : > { %v5551_v0 = vmax.f32 %v5463_v49, 0.0  ;;  %6315 = vst.msk [vmem:[#allocation4 + $0xc0] sm:$0xff] %vm6302_vm7, %v6231_v10 }
 0x670   : > { %v5569_v9 = vpack.c.bf16 %v5551_v0, %v5550_v27  ;;  %v6426_v48 = vpop.permute.xlu1 %6425 }
 0x671   : > { %6509 = vst.msk [vmem:[#allocation4 + $0xd0] sm:$0xff] %vm6495_vm15, %v6426_v48  ;;  %v6424_v19 = vpop.permute.xlu0 %6423 }
 0x672   : > { %6508 = vst.msk [vmem:[#allocation4 + $0xc0] sm:$0xff] %vm6495_vm15, %v6424_v19  ;;  %11188 = vmatmul.mubr.msk.bf16.gmra.mrb[24].mxu1 %vm5226_vm14, %v5569_v9 }
 0x674   : > { %v6044_v22 = vpop.permute.xlu1 %6043 }
 0x675   : > { %6125 = vst.msk [vmem:[#allocation4 + $0xf0] sm:$0xff] %vm6109_vm6, %v6044_v22  ;;  %v6042_v38 = vpop.permute.xlu0 %6041 }
 0x676   : > { %6124 = vst.msk [vmem:[#allocation4 + $0xe0] sm:$0xff] %vm6109_vm6, %v6042_v38 }
 0x678   : > { %v6237_v56 = vpop.permute.xlu1 %6236 }
 0x679   : > { %6318 = vst.msk [vmem:[#allocation4 + $0xf0] sm:$0xff] %vm6302_vm7, %v6237_v56  ;;  %v6235_v20 = vpop.permute.xlu0 %6234 }
 0x67a   : > { %6317 = vst.msk [vmem:[#allocation4 + $0xe0] sm:$0xff] %vm6302_vm7, %v6235_v20 }
 0x67c   : > { %v6430_v7 = vpop.permute.xlu1 %6429 }
 0x67d   : > { %6511 = vst.msk [vmem:[#allocation4 + $0xf0] sm:$0xff] %vm6495_vm15, %v6430_v7  ;;  %v6428_v8 = vpop.permute.xlu0 %6427 }
 0x67e   : > { %6510 = vst.msk [vmem:[#allocation4 + $0xe0] sm:$0xff] %vm6495_vm15, %v6428_v8 }
 0x680   : > { %v6048_v44 = vpop.permute.xlu1 %6047 }
 0x681   : > { %6127 = vst.msk [vmem:[#allocation4 + $0x110] sm:$0xff] %vm6109_vm6, %v6048_v44  ;;  %v6046_v62 = vpop.permute.xlu0 %6045 }
 0x682   : > { %6126 = vst.msk [vmem:[#allocation4 + $0x100] sm:$0xff] %vm6109_vm6, %v6046_v62 }
 0x684   : > { %v6241_v46 = vpop.permute.xlu1 %6240 }
 0x685   : > { %6320 = vst.msk [vmem:[#allocation4 + $0x110] sm:$0xff] %vm6302_vm7, %v6241_v46  ;;  %v6239_v53 = vpop.permute.xlu0 %6238 }
 0x686   : > { %6319 = vst.msk [vmem:[#allocation4 + $0x100] sm:$0xff] %vm6302_vm7, %v6239_v53 }
 0x688   : > { %v6434_v26 = vpop.permute.xlu1 %6433 }
 0x689   : > { %6513 = vst.msk [vmem:[#allocation4 + $0x110] sm:$0xff] %vm6495_vm15, %v6434_v26  ;;  %v6432_v30 = vpop.permute.xlu0 %6431  ;;  %v6657_v26 = vpack.c.bf16 %v6595_v31, %v6593_v43  ;;  %v6625_v31 = vld [vmem:[#allocation4 + $0x108] sm:$0xff] }
 0x68a   : > { %6512 = vst.msk [vmem:[#allocation4 + $0x100] sm:$0xff] %vm6495_vm15, %v6432_v30  ;;  %v6592_v30 = vld [vmem:[#allocation4] sm:$0xff] }
 0x68c   : > { %v6052_v18 = vpop.permute.xlu1 %6051 }
 0x68d   : > { %6129 = vst.msk [vmem:[#allocation4 + $0x130] sm:$0xff] %vm6109_vm6, %v6052_v18  ;;  %v6050_v36 = vpop.permute.xlu0 %6049  ;;  %v6599_v18 = vld [vmem:[#allocation4 + $0x38] sm:$0xff] }
 0x68e   : > { %6128 = vst.msk [vmem:[#allocation4 + $0x120] sm:$0xff] %vm6109_vm6, %v6050_v36  ;;  %v6656_v36 = vpack.c.bf16 %v6594_v34, %v6592_v30 }
 0x690   : > { %v6245_v32 = vpop.permute.xlu1 %6244 }
 0x691   : > { %6322 = vst.msk [vmem:[#allocation4 + $0x130] sm:$0xff] %vm6302_vm7, %v6245_v32  ;;  %v6243_v59 = vpop.permute.xlu0 %6242  ;;  %v6597_v32 = vld [vmem:[#allocation4 + $0x28] sm:$0xff] }
 0x692   : > { %6321 = vst.msk [vmem:[#allocation4 + $0x120] sm:$0xff] %vm6302_vm7, %v6243_v59  ;;  %v6659_v59 = vpack.c.bf16 %v6599_v18, %v6597_v32 }
 0x694   : > { %v6438_v41 = vpop.permute.xlu1 %6437 }
 0x695   : > { %v11185_v50 = vpop.f32.mrb[20].mxu1  ;;  %6515 = vst.msk [vmem:[#allocation4 + $0x130] sm:$0xff] %vm6495_vm15, %v6438_v41  ;;  %v6436_v11 = vpop.permute.xlu0 %6435  ;;  %v6598_v41 = vld [vmem:[#allocation4 + $0x30] sm:$0xff] }
 0x696   : > { %v5782_v2 = vadd.f32 %v15033_v35, %v11185_v50  ;;  %6514 = vst.msk [vmem:[#allocation4 + $0x120] sm:$0xff] %vm6495_vm15, %v6436_v11  ;;  %v5773_v54 = vpop.f32.mrb[21].mxu1  ;;  %v6603_v50 = vld [vmem:[#allocation4 + $0x58] sm:$0xff] }
 0x697   : > { %v5774_v1 = vadd.f32 %v15033_v35, %v5773_v54  ;;  %v11186_v33 = vpop.f32.mrb[22].mxu1 }
 0x698   : > { %v5842_v61 = vmax.f32 %v5782_v2, 0.0  ;;  %v5785_v45 = vadd.f32 %v15033_v35, %v11186_v33  ;;  %v5776_v14 = vpop.f32.mrb[23].mxu1  ;;  %v6056_v16 = vpop.permute.xlu1 %6055  ;;  %v6601_v2 = vld [vmem:[#allocation4 + $0x48] sm:$0xff] }
 0x699   : > { %v5840_v40 = vmax.f32 %v5774_v1, 0.0  ;;  %v5777_v25 = vadd.f32 %v15033_v35, %v5776_v14  ;;  %6131 = vst.msk [vmem:[#allocation4 + $0x150] sm:$0xff] %vm6109_vm6, %v6056_v16  ;;  %v6054_v42 = vpop.permute.xlu0 %6053  ;;  %v6661_v1 = vpack.c.bf16 %v6603_v50, %v6601_v2  ;;  %v6602_v14 = vld [vmem:[#allocation4 + $0x50] sm:$0xff]  ;;  %v6607_v16 = vld [vmem:[#allocation4 + $0x78] sm:$0xff]  ;;  %v6624_v50 = vld [vmem:[#allocation4 + $0x100] sm:$0xff] }
 0x69a   : > { %5875 = vst.msk [vmem:[#allocation3 + $0x121] sm:$0xff] %vm16982_vm4, %v5842_v61  ;;  %v5843_v47 = vmax.f32 %v5785_v45, 0.0  ;;  %vm17006_vm4 = vmmov %vm17004_vm0  ;;  %v6600_v45 = vld [vmem:[#allocation4 + $0x40] sm:$0xff] }
 0x69b   : > { %6130 = vst.msk [vmem:[#allocation4 + $0x140] sm:$0xff] %vm6109_vm6, %v6054_v42  ;;  %v5841_v23 = vmax.f32 %v5777_v25, 0.0  ;;  %v6660_v25 = vpack.c.bf16 %v6602_v14, %v6600_v45  ;;  %v6605_v42 = vld [vmem:[#allocation4 + $0x68] sm:$0xff] }
 0x69c   : > { %5873 = vst.msk [vmem:[#allocation3 + $0x109] sm:$0xff] %vm16995_vm12, %v5840_v40  ;;  %v6249_v51 = vpop.permute.xlu1 %6248  ;;  %vm17007_vm12 = vmmov %vm17004_vm0 }
 0x69d   : > { %5876 = vst.msk [vmem:[#allocation3 + $0x129] sm:$0xff] %vm16996_vm10, %v5843_v47  ;;  %v6247_v24 = vpop.permute.xlu0 %6246  ;;  %vm17008_vm10 = vmmov %vm17004_vm0 }
 0x69e   : > { %5874 = vst.msk [vmem:[#allocation3 + $0x111] sm:$0xff] %vm16997_vm3, %v5841_v23  ;;  %v6663_v23 = vpack.c.bf16 %v6607_v16, %v6605_v42  ;;  %vm17009_vm3 = vmmov %vm17004_vm0  ;;  %v6628_v16 = vld [vmem:[#allocation4 + $0x120] sm:$0xff] }
 0x69f   : > { %6324 = vst.msk [vmem:[#allocation4 + $0x150] sm:$0xff] %vm6302_vm7, %v6249_v51  ;;  %6323 = vst.msk [vmem:[#allocation4 + $0x140] sm:$0xff] %vm6302_vm7, %v6247_v24 }
 0x6a1   : > { %v6550_v58 = vld [vmem:[#allocation3 + $0x121] sm:$0xff] }
 0x6a2   : > { %v6357_v5 = vld [vmem:[#allocation3 + $0x120] sm:$0xff]  ;;  %6582 = vst.msk [vmem:[#allocation4 + $0x168] sm:$0xff] %vm16998_vm11, %v6550_v58  ;;  %vm17010_vm11 = vmmov %vm17004_vm0 }
 0x6a3   : > { %v6548_v55 = vld [vmem:[#allocation3 + $0x109] sm:$0xff]  ;;  %5941 = vst.msk [vmem:[#allocation4 + $0x180] sm:$0xff] %vm16999_vm1, %v6357_v5  ;;  %vm17011_vm1 = vmmov %vm17004_vm0 }
 0x6a4   : > { %v6355_v57 = vld [vmem:[#allocation3 + $0x108] sm:$0xff]  ;;  %6580 = vst.msk [vmem:[#allocation4 + $0x148] sm:$0xff] %vm17000_vm5, %v6548_v55  ;;  %vm17012_vm5 = vmmov %vm17004_vm0 }
 0x6a5   : > { %v6551_v15 = vld [vmem:[#allocation3 + $0x129] sm:$0xff]  ;;  %6439 = vrot.lane.b32.xlu0 %v6355_v57, %s16730_s21  ;;  %5939 = vst.msk [vmem:[#allocation4 + $0x160] sm:$0xff] %vm17001_vm9, %v6355_v57  ;;  %v6549_v3 = vld [vmem:[#allocation3 + $0x111] sm:$0xff]  ;;  %vm17013_vm9 = vmmov %vm17004_vm0 }
 0x6a6   : > { %v6358_v17 = vld [vmem:[#allocation3 + $0x128] sm:$0xff]  ;;  %6583 = vst.msk [vmem:[#allocation4 + $0x178] sm:$0xff] %vm17002_vm8, %v6551_v15  ;;  %v6356_v6 = vld [vmem:[#allocation3 + $0x110] sm:$0xff]  ;;  %vm17014_vm8 = vmmov %vm17004_vm0 }
 0x6a7   : > { %5942 = vst.msk [vmem:[#allocation4 + $0x190] sm:$0xff] %vm17003_vm2, %v6358_v17  ;;  %6441 = vrot.lane.b32.xlu1 %v6356_v6, %s16730_s21  ;;  %v6164_v52 = vld [vmem:[#allocation3 + $0x10a] sm:$0xff]  ;;  %v6165_v21 = vld [vmem:[#allocation3 + $0x112] sm:$0xff]  ;;  %v6166_v12 = vld [vmem:[#allocation3 + $0x122] sm:$0xff] }
 0x6a8   : > { %6581 = vst.msk [vmem:[#allocation4 + $0x158] sm:$0xff] %vm17004_vm0, %v6549_v3  ;;  %v6167_v28 = vld [vmem:[#allocation3 + $0x12a] sm:$0xff]  ;;  %vm17015_vm2 = vmmov %vm17004_vm0 }
 0x6a9   : > { %5940 = vst.msk [vmem:[#allocation4 + $0x170] sm:$0xff] %vm17005_vm13, %v6356_v6  ;;  %6057 = vrot.lane.b32.xlu0 %v6548_v55, %s16729_s27  ;;  %v6611_v55 = vld [vmem:[#allocation4 + $0x98] sm:$0xff]  ;;  %vm17016_vm13 = vmmov %vm17004_vm0 }
 0x6ab   : > { %6059 = vrot.lane.b32.xlu1 %v6549_v3, %s16729_s27 }
 0x6ad   : > { %6250 = vrot.lane.b32.xlu0 %v6164_v52, %s16722_s22 }
 0x6af   : > { %6252 = vrot.lane.b32.xlu1 %v6165_v21, %s16722_s22 }
 0x6b1   : > { %6443 = vrot.lane.b32.xlu0 %v6357_v5, %s16730_s21  ;;  %v6606_v5 = vld [vmem:[#allocation4 + $0x70] sm:$0xff] }
 0x6b3   : > { %6445 = vrot.lane.b32.xlu1 %v6358_v17, %s16730_s21  ;;  %v6609_v17 = vld [vmem:[#allocation4 + $0x88] sm:$0xff] }
 0x6b4   : > { %v6665_v6 = vpack.c.bf16 %v6611_v55, %v6609_v17  ;;  %v6633_v55 = vld [vmem:[#allocation4 + $0x148] sm:$0xff] }
 0x6b5   : > { %6061 = vrot.lane.b32.xlu0 %v6550_v58, %s16729_s27  ;;  %v6604_v58 = vld [vmem:[#allocation4 + $0x60] sm:$0xff] }
 0x6b7   : > { %6063 = vrot.lane.b32.xlu1 %v6551_v15, %s16729_s27  ;;  %v6662_v15 = vpack.c.bf16 %v6606_v5, %v6604_v58 }
 0x6b9   : > { %6254 = vrot.lane.b32.xlu0 %v6166_v12, %s16722_s22  ;;  %v6608_v12 = vld [vmem:[#allocation4 + $0x80] sm:$0xff] }
 0x6bb   : > { %6256 = vrot.lane.b32.xlu1 %v6167_v28, %s16722_s22  ;;  %v6610_v28 = vld [vmem:[#allocation4 + $0x90] sm:$0xff] }
 0x6bf   : > { %v5421_v39 = vpop.f32.mrb[56].mxu0 }
 0x6c0   : > { %v5422_v63 = vadd.f32 %v15130_v13, %v5421_v39  ;;  %v5423_v49 = vpop.f32.mrb[57].mxu0  ;;  %v6615_v39 = vld [vmem:[#allocation4 + $0xb8] sm:$0xff] }
 0x6c1   : > { %v5424_v4 = vpop.f32.mrb[58].mxu0  ;;  %v6664_v49 = vpack.c.bf16 %v6610_v28, %v6608_v12  ;;  %v6637_v12 = vld [vmem:[#allocation4 + $0x168] sm:$0xff] }
 0x6c2   : > { %v5464_v10 = vmax.f32 %v5422_v63, 0.0  ;;  %v5425_v27 = vadd.f32 %v15130_v13, %v5424_v4  ;;  %v5426_v0 = vpop.f32.mrb[59].mxu0  ;;  %v6613_v4 = vld [vmem:[#allocation4 + $0xa8] sm:$0xff] }
 0x6c3   : > { %v6614_v0 = vld [vmem:[#allocation4 + $0xb0] sm:$0xff] }
 0x6c4   : > { %v5465_v9 = vmax.f32 %v5425_v27, 0.0  ;;  %v5552_v48 = vmax.f32 %v5464_v10, 0.0  ;;  %v6667_v10 = vpack.c.bf16 %v6615_v39, %v6613_v4  ;;  %v6612_v27 = vld [vmem:[#allocation4 + $0xa0] sm:$0xff] }
 0x6c6   : > { %v5553_v19 = vmax.f32 %v5465_v9, 0.0  ;;  %v6619_v9 = vld [vmem:[#allocation4 + $0xd8] sm:$0xff] }
 0x6c8   : > { %v5570_v22 = vpack.c.bf16 %v5553_v19, %v5552_v48  ;;  %v6666_v48 = vpack.c.bf16 %v6614_v0, %v6612_v27  ;;  %v6617_v19 = vld [vmem:[#allocation4 + $0xc8] sm:$0xff] }
 0x6ca   : > { %11191 = vmatprep.mubr.msk.bf16.mxu1 %vm5226_vm14, %v5570_v22  ;;  %v6669_v22 = vpack.c.bf16 %v6619_v9, %v6617_v19  ;;  %v11556_v19 = vld [vmem:[%s16621_s7 + $0x8] sm:$0xff]  }
 0x6fb   : > { %v5429_v38 = vpop.f32.mrb[60].mxu0 }
 0x6fc   : > { %v5430_v56 = vadd.f32 %v15130_v13, %v5429_v38  ;;  %v5431_v20 = vpop.f32.mrb[61].mxu0  ;;  %v6616_v38 = vld [vmem:[#allocation4 + $0xc0] sm:$0xff] }
 0x6fd   : > { %v5432_v7 = vpop.f32.mrb[62].mxu0  ;;  %v6623_v20 = vld [vmem:[#allocation4 + $0xf8] sm:$0xff] }
 0x6fe   : > { %v5466_v60 = vmax.f32 %v5430_v56, 0.0  ;;  %v5433_v8 = vadd.f32 %v15130_v13, %v5432_v7  ;;  %v5434_v44 = vpop.f32.mrb[63].mxu0  ;;  %v6596_v13 = vld [vmem:[#allocation4 + $0x20] sm:$0xff]  ;;  %v6618_v56 = vld [vmem:[#allocation4 + $0xd0] sm:$0xff] }
 0x6ff   : > { %v6658_v11 = vpack.c.bf16 %v6598_v41, %v6596_v13  ;;  %v6668_v7 = vpack.c.bf16 %v6618_v56, %v6616_v38  ;;  %v6620_v44 = vld [vmem:[#allocation4 + $0xe0] sm:$0xff] }
 0x700   : > { %v5467_v29 = vmax.f32 %v5433_v8, 0.0  ;;  %v5554_v62 = vmax.f32 %v5466_v60, 0.0  ;;  %v6621_v60 = vld [vmem:[#allocation4 + $0xe8] sm:$0xff] }
 0x701   : > { %v6671_v8 = vpack.c.bf16 %v6623_v20, %v6621_v60 }
 0x702   : > { %v5555_v46 = vmax.f32 %v5467_v29, 0.0  ;;  %v6622_v29 = vld [vmem:[#allocation4 + $0xf0] sm:$0xff] }
 0x704   : > { %v5571_v53 = vpack.c.bf16 %v5555_v46, %v5554_v62  ;;  %v6627_v62 = vld [vmem:[#allocation4 + $0x118] sm:$0xff]  ;;  %v6670_v46 = vpack.c.bf16 %v6622_v29, %v6620_v44 }
 0x705   : > { %v6673_v43 = vpack.c.bf16 %v6627_v62, %v6625_v31 }
 0x706   : > { %11192 = vmatmul.mubr.msk.bf16.gmra.mrb[28].mxu1 %vm5226_vm14, %v5571_v53 }
 0x707   : > { %10807 = vmatprep.mubr.msk.bf16.mxu1 %vm17006_vm4, %v6657_v26  ;;  %vm17017_vm4 = vmmov %vm17004_vm0 }
 0x70e   : > { %6856 = vmatmul.mubr.bf16.vlgmr.msra.gmra.mrb[32].mxu1 %v6656_v36 }
 0x70f   : > { %10808 = vmatprep.mubr.msk.bf16.mxu1 %vm17007_vm12, %v6659_v59  ;;  %vm17018_vm12 = vmmov %vm17004_vm0 }
 0x716   : > { %6864 = vmatmul.mubr.bf16.gmra.mrb[36].mxu1 %v6658_v11  ;;  %v6626_v11 = vld [vmem:[#allocation4 + $0x110] sm:$0xff] }
 0x717   : > { %v6440_v54 = vpop.permute.xlu0 %6439  ;;  %10809 = vmatprep.mubr.msk.bf16.mxu1 %vm17008_vm10, %v6661_v1  ;;  %vm17019_vm10 = vmmov %vm17004_vm0 }
 0x718   : > { %6516 = vst.msk [vmem:[#allocation4 + $0x140] sm:$0xff] %vm6495_vm15, %v6440_v54  ;;  %v6631_v54 = vld [vmem:[#allocation4 + $0x138] sm:$0xff] }
 0x719   : > { %v6442_v33 = vpop.permute.xlu1 %6441 }
 0x71a   : > { %6517 = vst.msk [vmem:[#allocation4 + $0x150] sm:$0xff] %vm6495_vm15, %v6442_v33  ;;  %v6672_v33 = vpack.c.bf16 %v6626_v11, %v6624_v50 }
 0x71b   : > { %v6058_v61 = vpop.permute.xlu0 %6057 }
 0x71c   : > { %6132 = vst.msk [vmem:[#allocation4 + $0x160] sm:$0xff] %vm6109_vm6, %v6058_v61  ;;  %v6629_v61 = vld [vmem:[#allocation4 + $0x128] sm:$0xff] }
 0x71d   : > { %v6060_v40 = vpop.permute.xlu1 %6059  ;;  %v6675_v45 = vpack.c.bf16 %v6631_v54, %v6629_v61 }
 0x71e   : > { %6133 = vst.msk [vmem:[#allocation4 + $0x170] sm:$0xff] %vm6109_vm6, %v6060_v40  ;;  %6872 = vmatmul.mubr.bf16.gmra.mrb[40].mxu1 %v6660_v25 }
 0x71f   : > { %v6251_v47 = vpop.permute.xlu0 %6250  ;;  %10810 = vmatprep.mubr.msk.bf16.mxu1 %vm17009_vm3, %v6663_v23  ;;  %vm17020_vm3 = vmmov %vm17004_vm0 }
 0x720   : > { %6325 = vst.msk [vmem:[#allocation4 + $0x160] sm:$0xff] %vm6302_vm7, %v6251_v47  ;;  %v6635_v47 = vld [vmem:[#allocation4 + $0x158] sm:$0xff] }
 0x721   : > { %v6253_v51 = vpop.permute.xlu1 %6252 }
 0x722   : > { %6326 = vst.msk [vmem:[#allocation4 + $0x170] sm:$0xff] %vm6302_vm7, %v6253_v51 }
 0x723   : > { %v6444_v24 = vpop.permute.xlu0 %6443 }
 0x724   : > { %6518 = vst.msk [vmem:[#allocation4 + $0x160] sm:$0xff] %vm6495_vm15, %v6444_v24 }
 0x725   : > { %v6446_v57 = vpop.permute.xlu1 %6445 }
 0x726   : > { %6519 = vst.msk [vmem:[#allocation4 + $0x170] sm:$0xff] %vm6495_vm15, %v6446_v57  ;;  %6880 = vmatmul.mubr.bf16.gmra.mrb[44].mxu1 %v6662_v15  ;;  %v6677_v57 = vpack.c.bf16 %v6635_v47, %v6633_v55  ;;  %v6634_v15 = vld [vmem:[#allocation4 + $0x150] sm:$0xff] }
 0x727   : > { %v6062_v3 = vpop.permute.xlu0 %6061  ;;  %10811 = vmatprep.mubr.msk.bf16.mxu1 %vm17010_vm11, %v6665_v6  ;;  %vm17021_vm11 = vmmov %vm17004_vm0  ;;  %v6632_v6 = vld [vmem:[#allocation4 + $0x140] sm:$0xff] }
 0x728   : > { %6134 = vst.msk [vmem:[#allocation4 + $0x180] sm:$0xff] %vm6109_vm6, %v6062_v3  ;;  %v6639_v3 = vld [vmem:[#allocation4 + $0x178] sm:$0xff] }
 0x729   : > { %v6064_v52 = vpop.permute.xlu1 %6063  ;;  %v6679_v28 = vpack.c.bf16 %v6639_v3, %v6637_v12 }
 0x72a   : > { %6135 = vst.msk [vmem:[#allocation4 + $0x190] sm:$0xff] %vm6109_vm6, %v6064_v52 }
 0x72b   : > { %v6255_v21 = vpop.permute.xlu0 %6254 }
 0x72c   : > { %6327 = vst.msk [vmem:[#allocation4 + $0x180] sm:$0xff] %vm6302_vm7, %v6255_v21  ;;  %v6676_v21 = vpack.c.bf16 %v6634_v15, %v6632_v6 }
 0x72d   : > { %v6257_v63 = vpop.permute.xlu1 %6256  ;;  %v6638_v39 = vld [vmem:[#allocation4 + $0x170] sm:$0xff] }
 0x72e   : > { %6328 = vst.msk [vmem:[#allocation4 + $0x190] sm:$0xff] %vm6302_vm7, %v6257_v63  ;;  %6888 = vmatmul.mubr.bf16.gmra.mrb[48].mxu1 %v6664_v49  ;;  %v6636_v49 = vld [vmem:[#allocation4 + $0x160] sm:$0xff] }
 0x72f   : > { %10812 = vmatprep.mubr.msk.bf16.mxu1 %vm17011_vm1, %v6667_v10  ;;  %vm17022_vm1 = vmmov %vm17004_vm0  ;;  %v6678_v4 = vpack.c.bf16 %v6638_v39, %v6636_v49 }
 0x736   : > { %6896 = vmatmul.mubr.bf16.gmra.mrb[52].mxu1 %v6666_v48  ;;  %v11555_v48 = vld [vmem:[%s16621_s7] sm:$0xff]  }
 0x737   : > { %10813 = vmatprep.mubr.msk.bf16.mxu1 %vm17012_vm5, %v6669_v22  ;;  %vm17023_vm5 = vmmov %vm17004_vm0  ;;  %11195 = vmatprep.subr.bf16.mxu0 %v11555_v48 }
 0x738   : > { %11467 = vmatprep.subr.bf16.mxu1 %v11555_v48  ;;  %11196 = vmatpush3.bf16.msra.mxu0 %v11555_v48 }
 0x739   : > { %11469 = vmatpush3.bf16.msra.mxu1 %v11555_v48  ;;  %11197 = vmatprep.subr.bf16.mxu0 %v11556_v19 }
 0x73a   : > { %11468 = vmatprep.subr.bf16.mxu1 %v11556_v19 }
 0x73c   : > { %11198 = vmatpush3.bf16.msra.mxu0 %v11556_v19 }
 0x73d   : > { %11470 = vmatpush3.bf16.msra.mxu1 %v11556_v19  ;;  %8559 = vmatprep.subr.bf16.mxu0 %v11671_v37 }
 0x73e   : > { %6904 = vmatmul.mubr.bf16.gmra.mrb[56].mxu1 %v6668_v7 }
 0x73f   : > { %10814 = vmatprep.mubr.msk.bf16.mxu1 %vm17013_vm9, %v6671_v8  ;;  %vm17024_vm9 = vmmov %vm17004_vm0 }
 0x745   : > { %v11189_v53 = vpop.f32.mrb[24].mxu1 }
 0x746   : > { %v5798_v26 = vadd.f32 %v15033_v35, %v11189_v53  ;;  %v5789_v30 = vpop.f32.mrb[25].mxu1  ;;  %6912 = vmatmul.mubr.bf16.gmra.mrb[60].mxu1 %v6670_v46 }
 0x747   : > { %v5790_v34 = vadd.f32 %v15033_v35, %v5789_v30  ;;  %v11190_v18 = vpop.f32.mrb[26].mxu1  ;;  %10815 = vmatprep.mubr.msk.bf16.mxu1 %vm17014_vm8, %v6673_v43  ;;  %vm17025_vm8 = vmmov %vm17004_vm0 }
 0x748   : > { %v5846_v36 = vmax.f32 %v5798_v26, 0.0  ;;  %v5801_v32 = vadd.f32 %v15033_v35, %v11190_v18  ;;  %v5792_v59 = vpop.f32.mrb[27].mxu1 }
 0x749   : > { %v5844_v13 = vmax.f32 %v5790_v34, 0.0  ;;  %v5793_v41 = vadd.f32 %v15033_v35, %v5792_v59  ;;  %v6630_v35 = vld [vmem:[#allocation4 + $0x130] sm:$0xff] }
 0x74a   : > { %5879 = vst.msk [vmem:[#allocation3 + $0x151] sm:$0xff] %vm17015_vm2, %v5846_v36  ;;  %v5847_v2 = vmax.f32 %v5801_v32, 0.0  ;;  %v6674_v5 = vpack.c.bf16 %v6630_v35, %v6628_v16  ;;  %vm17026_vm2 = vmmov %vm17004_vm0  ;;  %v11595_v36 = vld [vmem:[%s16801_s18] ss:$0 sm:$0xff] }
 0x74b   : > { %5877 = vst.msk [vmem:[#allocation3 + $0x139] sm:$0xff] %vm17004_vm0, %v5844_v13  ;;  %v5845_v1 = vmax.f32 %v5793_v41, 0.0 }
 0x74c   : > { %5880 = vst.msk [vmem:[#allocation3 + $0x159] sm:$0xff] %vm17016_vm13, %v5847_v2  ;;  %vm17027_vm13 = vmmov %vm17004_vm0 }
 0x74d   : > { %5878 = vst.msk [vmem:[#allocation3 + $0x141] sm:$0xff] %vm17017_vm4, %v5845_v1  ;;  %vm17028_vm4 = vmmov %vm17004_vm0 }
 0x74e   : > { %6920 = vmatmul.mubr.bf16.gmra.mrb[64].mxu1 %v6672_v33 }
 0x74f   : > { %10816 = vmatprep.mubr.msk.bf16.mxu1 %vm17018_vm12, %v6675_v45  ;;  %vm17029_vm12 = vmmov %vm17004_vm0 }
 0x751   : > { %v6554_v14 = vld [vmem:[#allocation3 + $0x151] sm:$0xff] }
 0x752   : > { %v6361_v40 = vld [vmem:[#allocation3 + $0x150] sm:$0xff]  ;;  %6586 = vst.msk [vmem:[#allocation4 + $0x1a8] sm:$0xff] %vm17019_vm10, %v6554_v14  ;;  %v6552_v25 = vld [vmem:[#allocation3 + $0x139] sm:$0xff]  ;;  %vm17030_vm10 = vmmov %vm17004_vm0 }
 0x753   : > { %v6359_v42 = vld [vmem:[#allocation3 + $0x138] sm:$0xff]  ;;  %5945 = vst.msk [vmem:[#allocation4 + $0x1c0] sm:$0xff] %vm17020_vm3, %v6361_v40  ;;  %vm17031_vm3 = vmmov %vm17004_vm0 }
 0x754   : > { %6584 = vst.msk [vmem:[#allocation4 + $0x188] sm:$0xff] %vm17021_vm11, %v6552_v25  ;;  %v6555_v23 = vld [vmem:[#allocation3 + $0x159] sm:$0xff]  ;;  %6447 = vrot.lane.b32.xlu0 %v6359_v42, %s16730_s21  ;;  %v6553_v24 = vld [vmem:[#allocation3 + $0x141] sm:$0xff]  ;;  %vm17032_vm11 = vmmov %vm17004_vm0 }
 0x755   : > { %v6362_v51 = vld [vmem:[#allocation3 + $0x158] sm:$0xff]  ;;  %5943 = vst.msk [vmem:[#allocation4 + $0x1a0] sm:$0xff] %vm17022_vm1, %v6359_v42  ;;  %v6360_v58 = vld [vmem:[#allocation3 + $0x140] sm:$0xff]  ;;  %vm17033_vm1 = vmmov %vm17004_vm0 }
 0x756   : > { %6587 = vst.msk [vmem:[#allocation4 + $0x1b8] sm:$0xff] %vm17023_vm5, %v6555_v23  ;;  %6449 = vrot.lane.b32.xlu1 %v6360_v58, %s16730_s21  ;;  %6928 = vmatmul.mubr.bf16.gmra.mrb[68].mxu1 %v6674_v5  ;;  %v6168_v17 = vld [vmem:[#allocation3 + $0x13a] sm:$0xff]  ;;  %v6169_v52 = vld [vmem:[#allocation3 + $0x142] sm:$0xff]  ;;  %v6170_v0 = vld [vmem:[#allocation3 + $0x152] sm:$0xff] }
 0x757   : > { %5946 = vst.msk [vmem:[#allocation4 + $0x1d0] sm:$0xff] %vm17024_vm9, %v6362_v51  ;;  %10817 = vmatprep.mubr.msk.bf16.mxu1 %vm17004_vm0, %v6677_v57  ;;  %v6171_v9 = vld [vmem:[#allocation3 + $0x15a] sm:$0xff]  ;;  %vm17034_vm5 = vmmov %vm17004_vm0 }
 0x758   : > { %6585 = vst.msk [vmem:[#allocation4 + $0x198] sm:$0xff] %vm17025_vm8, %v6553_v24  ;;  %6065 = vrot.lane.b32.xlu0 %v6552_v25, %s16729_s27  ;;  %vm17035_vm9 = vmmov %vm17004_vm0 }
 0x759   : > { %5944 = vst.msk [vmem:[#allocation4 + $0x1b0] sm:$0xff] %vm17026_vm2, %v6360_v58  ;;  %v6645_v46 = vld [vmem:[#allocation4 + $0x1a8] sm:$0xff]  ;;  %vm17036_vm8 = vmmov %vm17004_vm0 }
 0x75a   : > { %6067 = vrot.lane.b32.xlu1 %v6553_v24, %s16729_s27  ;;  %vm17037_vm2 = vmmov %vm17004_vm0 }
 0x75b   : > { %v6641_v10 = vld [vmem:[#allocation4 + $0x188] sm:$0xff] }
 0x75c   : > { %6258 = vrot.lane.b32.xlu0 %v6168_v17, %s16722_s22 }
 0x75d   : > { %v6647_v60 = vld [vmem:[#allocation4 + $0x1b8] sm:$0xff] }
 0x75e   : > { %6260 = vrot.lane.b32.xlu1 %v6169_v52, %s16722_s22  ;;  %6936 = vmatmul.mubr.bf16.gmra.mrb[72].mxu1 %v6676_v21  ;;  %v6683_v53 = vpack.c.bf16 %v6647_v60, %v6645_v46 }
 0x75f   : > { %10818 = vmatprep.mubr.msk.bf16.mxu1 %vm17027_vm13, %v6679_v28  ;;  %v6643_v63 = vld [vmem:[#allocation4 + $0x198] sm:$0xff]  ;;  %vm17038_vm13 = vmmov %vm17004_vm0 }
 0x760   : > { %6451 = vrot.lane.b32.xlu0 %v6361_v40, %s16730_s21  ;;  %v6681_v27 = vpack.c.bf16 %v6643_v63, %v6641_v10  ;;  %v15387_v40 = vld [vmem:[%s16620_s6] ss:$0 sm:$0xff] }
 0x762   : > { %6453 = vrot.lane.b32.xlu1 %v6362_v51, %s16730_s21 }
 0x764   : > { %6069 = vrot.lane.b32.xlu0 %v6554_v14, %s16729_s27 }
 0x766   : > { %6071 = vrot.lane.b32.xlu1 %v6555_v23, %s16729_s27  ;;  %6944 = vmatmul.mubr.bf16.gmra.mrb[76].mxu1 %v6678_v4 }
 0x767   : > { %10819 = vmatprep.mubr.msk.bf16.mxu1 %vm17028_vm4, %v6681_v27  ;;  %vm17039_vm4 = vmmov %vm17004_vm0 }
 0x768   : > { %6262 = vrot.lane.b32.xlu0 %v6170_v0, %s16722_s22 }
 0x76a   : > { %6264 = vrot.lane.b32.xlu1 %v6171_v9, %s16722_s22 }
 0x7c6   : > { %v6448_v22 = vpop.permute.xlu0 %6447 }
 0x7c7   : > { %6520 = vst.msk [vmem:[#allocation4 + $0x180] sm:$0xff] %vm6495_vm15, %v6448_v22 }
 0x7c8   : > { %v6450_v38 = vpop.permute.xlu1 %6449 }
 0x7c9   : > { %6521 = vst.msk [vmem:[#allocation4 + $0x190] sm:$0xff] %vm6495_vm15, %v6450_v38 }
 0x7ca   : > { %v6066_v56 = vpop.permute.xlu0 %6065 }
 0x7cb   : > { %6136 = vst.msk [vmem:[#allocation4 + $0x1a0] sm:$0xff] %vm6109_vm6, %v6066_v56 }
 0x7cc   : > { %v6068_v20 = vpop.permute.xlu1 %6067 }
 0x7cd   : > { %6137 = vst.msk [vmem:[#allocation4 + $0x1b0] sm:$0xff] %vm6109_vm6, %v6068_v20 }
 0x7ce   : > { %v6259_v7 = vpop.permute.xlu0 %6258  ;;  %v6640_v44 = vld [vmem:[#allocation4 + $0x180] sm:$0xff] }
 0x7cf   : > { %6329 = vst.msk [vmem:[#allocation4 + $0x1a0] sm:$0xff] %vm6302_vm7, %v6259_v7 }
 0x7d0   : > { %v6261_v8 = vpop.permute.xlu1 %6260  ;;  %v6642_v29 = vld [vmem:[#allocation4 + $0x190] sm:$0xff] }
 0x7d1   : > { %6330 = vst.msk [vmem:[#allocation4 + $0x1b0] sm:$0xff] %vm6302_vm7, %v6261_v8  ;;  %v6680_v62 = vpack.c.bf16 %v6642_v29, %v6640_v44 }
 0x7d2   : > { %v6452_v31 = vpop.permute.xlu0 %6451 }
 0x7d3   : > { %6522 = vst.msk [vmem:[#allocation4 + $0x1a0] sm:$0xff] %vm6495_vm15, %v6452_v31  ;;  %6952 = vmatmul.mubr.bf16.gmra.mrb[80].mxu1 %v6680_v62 }
 0x7d4   : > { %v6454_v43 = vpop.permute.xlu1 %6453  ;;  %10820 = vmatprep.mubr.msk.bf16.mxu1 %vm17029_vm12, %v6683_v53  ;;  %vm17040_vm12 = vmmov %vm17004_vm0 }
 0x7d5   : > { %6523 = vst.msk [vmem:[#allocation4 + $0x1b0] sm:$0xff] %vm6495_vm15, %v6454_v43 }
 0x7d6   : > { %v6070_v26 = vpop.permute.xlu0 %6069 }
 0x7d7   : > { %6138 = vst.msk [vmem:[#allocation4 + $0x1c0] sm:$0xff] %vm6109_vm6, %v6070_v26 }
 0x7d8   : > { %v6072_v30 = vpop.permute.xlu1 %6071 }
 0x7d9   : > { %6139 = vst.msk [vmem:[#allocation4 + $0x1d0] sm:$0xff] %vm6109_vm6, %v6072_v30  ;;  %v11193_v34 = vpop.f32.mrb[28].mxu1 }
 0x7da   : > { %v6263_v18 = vpop.permute.xlu0 %6262  ;;  %v5814_v32 = vadd.f32 %v11595_v36, %v11193_v34  ;;  %v5805_v59 = vpop.f32.mrb[29].mxu1  ;;  %v6644_v11 = vld [vmem:[#allocation4 + $0x1a0] sm:$0xff] }
 0x7db   : > { %6331 = vst.msk [vmem:[#allocation4 + $0x1c0] sm:$0xff] %vm6302_vm7, %v6263_v18  ;;  %v5806_v13 = vadd.f32 %v11595_v36, %v5805_v59  ;;  %v11194_v41 = vpop.f32.mrb[30].mxu1 }
 0x7dc   : > { %v6265_v50 = vpop.permute.xlu1 %6264  ;;  %v6646_v2 = vld [vmem:[#allocation4 + $0x1b0] sm:$0xff]  ;;  %v5850_v54 = vmax.f32 %v5814_v32, 0.0  ;;  %v5817_v1 = vadd.f32 %v11595_v36, %v11194_v41  ;;  %v5808_v33 = vpop.f32.mrb[31].mxu1 }
 0x7dd   : > { %6332 = vst.msk [vmem:[#allocation4 + $0x1d0] sm:$0xff] %vm6302_vm7, %v6265_v50  ;;  %v6682_v61 = vpack.c.bf16 %v6646_v2, %v6644_v11  ;;  %v5848_v45 = vmax.f32 %v5806_v13, 0.0  ;;  %v5809_v35 = vadd.f32 %v11595_v36, %v5808_v33 }
 0x7de   : > { %5883 = vst.msk [vmem:[#allocation3 + $0x181] sm:$0xff] %vm17030_vm10, %v5850_v54  ;;  %v5851_v14 = vmax.f32 %v5817_v1, 0.0  ;;  %vm17041_vm10 = vmmov %vm17004_vm0 }
 0x7df   : > { %6960 = vmatmul.mubr.bf16.gmra.mrb[84].mxu1 %v6682_v61  ;;  %5881 = vst.msk [vmem:[#allocation3 + $0x169] sm:$0xff] %vm17031_vm3, %v5848_v45  ;;  %v5849_v16 = vmax.f32 %v5809_v35, 0.0  ;;  %vm17042_vm3 = vmmov %vm17004_vm0 }
 0x7e0   : > { %5884 = vst.msk [vmem:[#allocation3 + $0x189] sm:$0xff] %vm17032_vm11, %v5851_v14  ;;  %vm17043_vm11 = vmmov %vm17004_vm0 }
 0x7e1   : > { %5882 = vst.msk [vmem:[#allocation3 + $0x171] sm:$0xff] %vm17033_vm1, %v5849_v16  ;;  %v6857_v25 = vpop.f32.mrb[32].mxu1  ;;  %vm17044_vm1 = vmmov %vm17004_vm0 }
 0x7e2   : > { %v6858_v42 = vadd.f32 %v15387_v40, %v6857_v25  ;;  %v6859_v47 = vpop.f32.mrb[33].mxu1 }
 0x7e3   : > { %v6860_v23 = vpop.f32.mrb[34].mxu1 }
 0x7e4   : > { %v6861_v51 = vadd.f32 %v15387_v40, %v6860_v23  ;;  %v6862_v24 = vpop.f32.mrb[35].mxu1  ;;  %v6984_v55 = vmax.f32 %v6858_v42, 0.0 }
 0x7e5   : > { %v6558_v58 = vld [vmem:[#allocation3 + $0x181] sm:$0xff] }
 0x7e6   : > { %6590 = vst.msk [vmem:[#allocation4 + $0x1e8] sm:$0xff] %vm17034_vm5, %v6558_v58  ;;  %v6556_v5 = vld [vmem:[#allocation3 + $0x169] sm:$0xff]  ;;  %v6985_v57 = vmax.f32 %v6861_v51, 0.0  ;;  %v6365_v7 = vld [vmem:[#allocation3 + $0x180] sm:$0xff]  ;;  %vm17045_vm5 = vmmov %vm17004_vm0 }
 0x7e7   : > { %v6363_v15 = vld [vmem:[#allocation3 + $0x168] sm:$0xff]  ;;  %6588 = vst.msk [vmem:[#allocation4 + $0x1c8] sm:$0xff] %vm17035_vm9, %v6556_v5  ;;  %vm17046_vm9 = vmmov %vm17004_vm0 }
 0x7e8   : > { %v6559_v17 = vld [vmem:[#allocation3 + $0x189] sm:$0xff]  ;;  %6455 = vrot.lane.b32.xlu0 %v6363_v15, %s16730_s21  ;;  %5947 = vst.msk [vmem:[#allocation4 + $0x1e0] sm:$0xff] %vm17036_vm8, %v6363_v15  ;;  %v6557_v3 = vld [vmem:[#allocation3 + $0x171] sm:$0xff]  ;;  %v7016_v6 = vpack.c.bf16 %v6985_v57, %v6984_v55  ;;  %vm17047_vm8 = vmmov %vm17004_vm0 }
 0x7e9   : > { %6591 = vst.msk [vmem:[#allocation4 + $0x1f8] sm:$0xff] %vm17037_vm2, %v6559_v17  ;;  %v6364_v52 = vld [vmem:[#allocation3 + $0x170] sm:$0xff]  ;;  %v6865_v21 = vpop.f32.mrb[36].mxu1  ;;  %v6366_v29 = vld [vmem:[#allocation3 + $0x188] sm:$0xff]  ;;  %vm17048_vm2 = vmmov %vm17004_vm0 }
 0x7ea   : > { %6589 = vst.msk [vmem:[#allocation4 + $0x1d8] sm:$0xff] %vm17004_vm0, %v6557_v3  ;;  %6457 = vrot.lane.b32.xlu1 %v6364_v52, %s16730_s21  ;;  %v6866_v12 = vadd.f32 %v15387_v40, %v6865_v21  ;;  %v6867_v28 = vpop.f32.mrb[37].mxu1  ;;  %11199 = vmatprep.mubr.msk.bf16.mxu0 %vm17039_vm4, %v7016_v6  ;;  %v6172_v27 = vld [vmem:[#allocation3 + $0x16a] sm:$0xff]  ;;  %v6173_v9 = vld [vmem:[#allocation3 + $0x172] sm:$0xff]  ;;  %vm17050_vm4 = vmmov %vm17004_vm0 }
 0x7eb   : > { %5948 = vst.msk [vmem:[#allocation4 + $0x1f0] sm:$0xff] %vm17038_vm13, %v6364_v52  ;;  %v6868_v39 = vpop.f32.mrb[38].mxu1  ;;  %vm17049_vm13 = vmmov %vm17004_vm0 }
 0x7ec   : > { %6073 = vrot.lane.b32.xlu0 %v6556_v5, %s16729_s27  ;;  %v6869_v63 = vadd.f32 %v15387_v40, %v6868_v39  ;;  %v6870_v49 = vpop.f32.mrb[39].mxu1  ;;  %v6986_v4 = vmax.f32 %v6866_v12, 0.0 }
 0x7ee   : > { %6075 = vrot.lane.b32.xlu1 %v6557_v3, %s16729_s27  ;;  %v6987_v10 = vmax.f32 %v6869_v63, 0.0  ;;  %v6649_v48 = vld [vmem:[#allocation4 + $0x1c8] sm:$0xff] }
 0x7f0   : > { %6266 = vrot.lane.b32.xlu0 %v6172_v27, %s16722_s22  ;;  %v7017_v0 = vpack.c.bf16 %v6987_v10, %v6986_v4 }
 0x7f1   : > { %v6651_v19 = vld [vmem:[#allocation4 + $0x1d8] sm:$0xff]  ;;  %v6873_v22 = vpop.f32.mrb[40].mxu1 }
 0x7f2   : > { %6268 = vrot.lane.b32.xlu1 %v6173_v9, %s16722_s22  ;;  %v6685_v38 = vpack.c.bf16 %v6651_v19, %v6649_v48  ;;  %v6874_v56 = vadd.f32 %v15387_v40, %v6873_v22  ;;  %v6875_v20 = vpop.f32.mrb[41].mxu1  ;;  %11200 = vmatmul.mubr.msk.bf16.vlgmr.msra.gmra.mrb[64].mxu0 %vm17040_vm12, %v7017_v0  ;;  %vm17051_vm12 = vmmov %vm17004_vm0 }
 0x7f3   : > { %v6876_v60 = vpop.f32.mrb[42].mxu1 }
 0x7f4   : > { %6459 = vrot.lane.b32.xlu0 %v6365_v7, %s16730_s21  ;;  %10821 = vmatprep.mubr.msk.bf16.mxu1 %vm17041_vm10, %v6685_v38  ;;  %v6877_v8 = vadd.f32 %v15387_v40, %v6876_v60  ;;  %v6878_v44 = vpop.f32.mrb[43].mxu1  ;;  %v6988_v62 = vmax.f32 %v6874_v56, 0.0  ;;  %vm17052_vm10 = vmmov %vm17004_vm0 }
 0x7f6   : > { %6461 = vrot.lane.b32.xlu1 %v6366_v29, %s16730_s21  ;;  %v6989_v46 = vmax.f32 %v6877_v8, 0.0 }
 0x7f8   : > { %v7018_v31 = vpack.c.bf16 %v6989_v46, %v6988_v62 }
 0x7f9   : > { %v6881_v53 = vpop.f32.mrb[44].mxu1 }
 0x7fa   : > { %v6882_v43 = vadd.f32 %v15387_v40, %v6881_v53  ;;  %v6883_v26 = vpop.f32.mrb[45].mxu1  ;;  %11203 = vmatprep.mubr.msk.bf16.mxu0 %vm17042_vm3, %v7018_v31  ;;  %vm17053_vm3 = vmmov %vm17004_vm0 }
 0x7fb   : > { %v6884_v30 = vpop.f32.mrb[46].mxu1 }
 0x7fc   : > { %v6885_v34 = vadd.f32 %v15387_v40, %v6884_v30  ;;  %v6886_v18 = vpop.f32.mrb[47].mxu1  ;;  %v6990_v36 = vmax.f32 %v6882_v43, 0.0 }
 0x7fe   : > { %v6991_v32 = vmax.f32 %v6885_v34, 0.0 }
 0x800   : > { %v7019_v59 = vpack.c.bf16 %v6991_v32, %v6990_v36 }
 0x801   : > { %v6889_v13 = vpop.f32.mrb[48].mxu1 }
 0x802   : > { %v6890_v41 = vadd.f32 %v15387_v40, %v6889_v13  ;;  %v6891_v50 = vpop.f32.mrb[49].mxu1  ;;  %11204 = vmatmul.mubr.msk.bf16.gmra.mrb[68].mxu0 %vm17043_vm11, %v7019_v59  ;;  %vm17054_vm11 = vmmov %vm17004_vm0 }
 0x803   : > { %v6892_v11 = vpop.f32.mrb[50].mxu1 }
 0x804   : > { %v6893_v2 = vadd.f32 %v15387_v40, %v6892_v11  ;;  %v6894_v54 = vpop.f32.mrb[51].mxu1  ;;  %v6992_v1 = vmax.f32 %v6890_v41, 0.0 }
 0x806   : > { %v6993_v33 = vmax.f32 %v6893_v2, 0.0 }
 0x808   : > { %v7020_v61 = vpack.c.bf16 %v6993_v33, %v6992_v1 }
 0x809   : > { %v6897_v45 = vpop.f32.mrb[52].mxu1 }
 0x80a   : > { %v6898_v35 = vadd.f32 %v15387_v40, %v6897_v45  ;;  %v6899_v14 = vpop.f32.mrb[53].mxu1  ;;  %11207 = vmatprep.mubr.msk.bf16.mxu0 %vm17044_vm1, %v7020_v61  ;;  %vm17055_vm1 = vmmov %vm17004_vm0 }
 0x80b   : > { %v6900_v16 = vpop.f32.mrb[54].mxu1 }
 0x80c   : > { %v6901_v25 = vadd.f32 %v15387_v40, %v6900_v16  ;;  %v6902_v42 = vpop.f32.mrb[55].mxu1  ;;  %v6994_v47 = vmax.f32 %v6898_v35, 0.0 }
 0x80e   : > { %v6995_v23 = vmax.f32 %v6901_v25, 0.0 }
 0x810   : > { %v7021_v51 = vpack.c.bf16 %v6995_v23, %v6994_v47  ;;  %v6655_v47 = vld [vmem:[#allocation4 + $0x1f8] sm:$0xff] }
 0x811   : > { %v6905_v24 = vpop.f32.mrb[56].mxu1 }
 0x812   : > { %v6906_v58 = vadd.f32 %v15387_v40, %v6905_v24  ;;  %v6907_v5 = vpop.f32.mrb[57].mxu1  ;;  %11208 = vmatmul.mubr.msk.bf16.gmra.mrb[72].mxu0 %vm17045_vm5, %v7021_v51  ;;  %vm17056_vm5 = vmmov %vm17004_vm0 }
 0x813   : > { %v6908_v55 = vpop.f32.mrb[58].mxu1  ;;  %v6653_v5 = vld [vmem:[#allocation4 + $0x1e8] sm:$0xff] }
 0x814   : > { %v6909_v57 = vadd.f32 %v15387_v40, %v6908_v55  ;;  %v6910_v15 = vpop.f32.mrb[59].mxu1  ;;  %v6996_v17 = vmax.f32 %v6906_v58, 0.0 }
 0x816   : > { %v6997_v3 = vmax.f32 %v6909_v57, 0.0  ;;  %v6687_v57 = vpack.c.bf16 %v6655_v47, %v6653_v5 }
 0x818   : > { %v7022_v6 = vpack.c.bf16 %v6997_v3, %v6996_v17 }
 0x819   : > { %v6913_v52 = vpop.f32.mrb[60].mxu1 }
 0x81a   : > { %v6914_v21 = vadd.f32 %v15387_v40, %v6913_v52  ;;  %v6915_v12 = vpop.f32.mrb[61].mxu1  ;;  %11211 = vmatprep.mubr.msk.bf16.mxu0 %vm17046_vm9, %v7022_v6  ;;  %vm17057_vm9 = vmmov %vm17004_vm0 }
 0x81b   : > { %v6916_v28 = vpop.f32.mrb[62].mxu1 }
 0x81c   : > { %v6917_v39 = vadd.f32 %v15387_v40, %v6916_v28  ;;  %v6918_v63 = vpop.f32.mrb[63].mxu1  ;;  %v6998_v49 = vmax.f32 %v6914_v21, 0.0 }
 0x81e   : > { %v6999_v4 = vmax.f32 %v6917_v39, 0.0 }
 0x820   : > { %v7023_v10 = vpack.c.bf16 %v6999_v4, %v6998_v49 }
 0x821   : > { %v6921_v27 = vpop.f32.mrb[64].mxu1 }
 0x822   : > { %v6922_v0 = vadd.f32 %v15387_v40, %v6921_v27  ;;  %v6923_v9 = vpop.f32.mrb[65].mxu1  ;;  %11212 = vmatmul.mubr.msk.bf16.gmra.mrb[76].mxu0 %vm17047_vm8, %v7023_v10  ;;  %vm17058_vm8 = vmmov %vm17004_vm0 }
 0x823   : > { %v6924_v48 = vpop.f32.mrb[66].mxu1 }
 0x824   : > { %v6925_v19 = vadd.f32 %v15387_v40, %v6924_v48  ;;  %v6926_v22 = vpop.f32.mrb[67].mxu1  ;;  %v7000_v38 = vmax.f32 %v6922_v0, 0.0 }
 0x826   : > { %v7001_v56 = vmax.f32 %v6925_v19, 0.0 }
 0x828   : > { %v7024_v20 = vpack.c.bf16 %v7001_v56, %v7000_v38 }
 0x829   : > { %v6929_v7 = vpop.f32.mrb[68].mxu1 }
 0x82a   : > { %v6930_v60 = vadd.f32 %v15387_v40, %v6929_v7  ;;  %v6931_v8 = vpop.f32.mrb[69].mxu1  ;;  %11215 = vmatprep.mubr.msk.bf16.mxu0 %vm17048_vm2, %v7024_v20  ;;  %v15460_v7 = vld [vmem:[%s16622_s8] ss:$0 sm:$0xff]  ;;  %vm17059_vm2 = vmmov %vm17004_vm0 }
 0x82b   : > { %v6932_v44 = vpop.f32.mrb[70].mxu1 }
 0x82c   : > { %v6933_v29 = vadd.f32 %v15387_v40, %v6932_v44  ;;  %v6934_v62 = vpop.f32.mrb[71].mxu1  ;;  %v7002_v46 = vmax.f32 %v6930_v60, 0.0 }
 0x82e   : > { %v7003_v31 = vmax.f32 %v6933_v29, 0.0 }
 0x830   : > { %v7025_v53 = vpack.c.bf16 %v7003_v31, %v7002_v46  ;;  %v11557_v46 = vld [vmem:[%s16623_s9] sm:$0xff]  }
 0x831   : > { %v6937_v43 = vpop.f32.mrb[72].mxu1  ;;  %11231 = vmatprep.subr.bf16.mxu1 %v11557_v46 }
 0x832   : > { %v6938_v26 = vadd.f32 %v15387_v40, %v6937_v43  ;;  %v6939_v30 = vpop.f32.mrb[73].mxu1  ;;  %11216 = vmatmul.mubr.msk.bf16.gmra.mrb[80].mxu0 %vm17004_vm0, %v7025_v53 }
 0x833   : > { %v6940_v34 = vpop.f32.mrb[74].mxu1 }
 0x834   : > { %v6941_v18 = vadd.f32 %v15387_v40, %v6940_v34  ;;  %v6942_v36 = vpop.f32.mrb[75].mxu1  ;;  %v7004_v32 = vmax.f32 %v6938_v26, 0.0 }
 0x835   : > { %v11558_v36 = vld [vmem:[%s16623_s9 + $0x8] sm:$0xff]  }
 0x836   : > { %v7005_v59 = vmax.f32 %v6941_v18, 0.0 }
 0x838   : > { %v7026_v13 = vpack.c.bf16 %v7005_v59, %v7004_v32 }
 0x839   : > { %v6945_v41 = vpop.f32.mrb[76].mxu1 }
 0x83a   : > { %v6946_v50 = vadd.f32 %v15387_v40, %v6945_v41  ;;  %v6947_v11 = vpop.f32.mrb[77].mxu1  ;;  %11219 = vmatprep.mubr.msk.bf16.mxu0 %vm17049_vm13, %v7026_v13  ;;  %v11559_v13 = vld [vmem:[%s16623_s9 + $0x10] sm:$0xff]   ;;  %v11560_v41 = vld [vmem:[%s16623_s9 + $0x18] sm:$0xff]   ;;  %vm17060_vm13 = vmmov %vm17004_vm0 }
 0x83b   : > { %v6948_v2 = vpop.f32.mrb[78].mxu1 }
 0x83c   : > { %v6949_v54 = vadd.f32 %v15387_v40, %v6948_v2  ;;  %v6950_v1 = vpop.f32.mrb[79].mxu1  ;;  %v7006_v33 = vmax.f32 %v6946_v50, 0.0 }
 0x83e   : > { %v7007_v61 = vmax.f32 %v6949_v54, 0.0 }
 0x840   : > { %v7027_v45 = vpack.c.bf16 %v7007_v61, %v7006_v33 }
 0x842   : > { %11220 = vmatmul.mubr.msk.bf16.gmra.mrb[84].mxu0 %vm17050_vm4, %v7027_v45  ;;  %vm17061_vm4 = vmmov %vm17004_vm0 }
 0x85a   : > { %v6456_v35 = vpop.permute.xlu0 %6455 }
 0x85b   : > { %6524 = vst.msk [vmem:[#allocation4 + $0x1c0] sm:$0xff] %vm6495_vm15, %v6456_v35 }
 0x85c   : > { %v6458_v14 = vpop.permute.xlu1 %6457 }
 0x85d   : > { %6525 = vst.msk [vmem:[#allocation4 + $0x1d0] sm:$0xff] %vm6495_vm15, %v6458_v14 }
 0x85e   : > { %v6074_v16 = vpop.permute.xlu0 %6073 }
 0x85f   : > { %6140 = vst.msk [vmem:[#allocation4 + $0x1e0] sm:$0xff] %vm6109_vm6, %v6074_v16 }
 0x860   : > { %v6076_v25 = vpop.permute.xlu1 %6075 }
 0x861   : > { %6141 = vst.msk [vmem:[#allocation4 + $0x1f0] sm:$0xff] %vm6109_vm6, %v6076_v25 }
 0x862   : > { %v6267_v42 = vpop.permute.xlu0 %6266  ;;  %v6648_v51 = vld [vmem:[#allocation4 + $0x1c0] sm:$0xff] }
 0x863   : > { %6333 = vst.msk [vmem:[#allocation4 + $0x1e0] sm:$0xff] %vm6302_vm7, %v6267_v42 }
 0x864   : > { %v6269_v23 = vpop.permute.xlu1 %6268  ;;  %v6650_v24 = vld [vmem:[#allocation4 + $0x1d0] sm:$0xff] }
 0x865   : > { %6334 = vst.msk [vmem:[#allocation4 + $0x1f0] sm:$0xff] %vm6302_vm7, %v6269_v23  ;;  %v6684_v58 = vpack.c.bf16 %v6650_v24, %v6648_v51 }
 0x866   : > { %v6460_v55 = vpop.permute.xlu0 %6459 }
 0x867   : > { %6526 = vst.msk [vmem:[#allocation4 + $0x1e0] sm:$0xff] %vm6495_vm15, %v6460_v55  ;;  %6968 = vmatmul.mubr.bf16.gmra.mrb[88].mxu1 %v6684_v58 }
 0x868   : > { %v6462_v15 = vpop.permute.xlu1 %6461  ;;  %10822 = vmatprep.mubr.msk.bf16.mxu1 %vm17051_vm12, %v6687_v57  ;;  %vm17062_vm12 = vmmov %vm17004_vm0 }
 0x869   : > { %6527 = vst.msk [vmem:[#allocation4 + $0x1f0] sm:$0xff] %vm6495_vm15, %v6462_v15 }
 0x86e   : > { %v6652_v17 = vld [vmem:[#allocation4 + $0x1e0] sm:$0xff] }
 0x870   : > { %v6654_v3 = vld [vmem:[#allocation4 + $0x1f0] sm:$0xff] }
 0x871   : > { %v6686_v6 = vpack.c.bf16 %v6654_v3, %v6652_v17 }
 0x873   : > { %6976 = vmatmul.mubr.bf16.gmra.mrb[92].mxu1 %v6686_v6 }
 0x8a6   : > { %v6953_v52 = vpop.f32.mrb[80].mxu1 }
 0x8a7   : > { %v6954_v21 = vadd.f32 %v15387_v40, %v6953_v52  ;;  %v6955_v12 = vpop.f32.mrb[81].mxu1 }
 0x8a8   : > { %v6956_v28 = vpop.f32.mrb[82].mxu1 }
 0x8a9   : > { %v6957_v39 = vadd.f32 %v15387_v40, %v6956_v28  ;;  %v6958_v63 = vpop.f32.mrb[83].mxu1  ;;  %v7008_v49 = vmax.f32 %v6954_v21, 0.0 }
 0x8ab   : > { %v7009_v4 = vmax.f32 %v6957_v39, 0.0 }
 0x8ad   : > { %v7028_v10 = vpack.c.bf16 %v7009_v4, %v7008_v49 }
 0x8af   : > { %11223 = vmatprep.mubr.msk.bf16.mxu1 %vm17052_vm10, %v7028_v10  ;;  %vm17063_vm10 = vmmov %vm17004_vm0 }
 0x8b2   : > { %v6961_v27 = vpop.f32.mrb[84].mxu1 }
 0x8b3   : > { %v6962_v0 = vadd.f32 %v15387_v40, %v6961_v27  ;;  %v6963_v9 = vpop.f32.mrb[85].mxu1 }
 0x8b4   : > { %v6964_v48 = vpop.f32.mrb[86].mxu1 }
 0x8b5   : > { %v6965_v19 = vadd.f32 %v15387_v40, %v6964_v48  ;;  %v6966_v22 = vpop.f32.mrb[87].mxu1  ;;  %v7010_v38 = vmax.f32 %v6962_v0, 0.0 }
 0x8b7   : > { %v7011_v56 = vmax.f32 %v6965_v19, 0.0 }
 0x8b9   : > { %v7029_v20 = vpack.c.bf16 %v7011_v56, %v7010_v38 }
 0x8bb   : > { %11224 = vmatmul.mubr.msk.bf16.vlgmr.msra.gmra.mrb[96].mxu1 %vm17053_vm3, %v7029_v20  ;;  %vm17064_vm3 = vmmov %vm17004_vm0 }
 0x8bc   : > { %11232 = vmatpush3.bf16.msra.mxu1 %v11557_v46 }
 0x8bd   : > { %11233 = vmatprep.subr.bf16.mxu1 %v11558_v36 }
 0x8c0   : > { %11234 = vmatpush3.bf16.msra.mxu1 %v11558_v36 }
 0x8c1   : > { %11235 = vmatprep.subr.bf16.mxu1 %v11559_v13 }
 0x8c4   : > { %11236 = vmatpush3.bf16.msra.mxu1 %v11559_v13 }
 0x8c5   : > { %v11201_v60 = vpop.f32.mrb[64].mxu0  ;;  %11237 = vmatprep.subr.bf16.mxu1 %v11560_v41 }
 0x8c6   : > { %v7146_v8 = vadd.f32 %v11201_v60, %v15460_v7  ;;  %v7137_v44 = vpop.f32.mrb[65].mxu0 }
 0x8c7   : > { %v7138_v29 = vadd.f32 %v15460_v7, %v7137_v44  ;;  %v11202_v62 = vpop.f32.mrb[66].mxu0 }
 0x8c8   : > { %v7149_v31 = vadd.f32 %v11202_v62, %v15460_v7  ;;  %v7140_v53 = vpop.f32.mrb[67].mxu0  ;;  %v7266_v26 = vmax.f32 %v7146_v8, 0.0  ;;  %11238 = vmatpush3.bf16.msra.mxu1 %v11560_v41 }
 0x8c9   : > { %v7141_v43 = vadd.f32 %v15460_v7, %v7140_v53  ;;  %v7264_v34 = vmax.f32 %v7138_v29, 0.0 }
 0x8ca   : > { %v7267_v30 = vmax.f32 %v7149_v31, 0.0 }
 0x8cb   : > { %v7265_v18 = vmax.f32 %v7141_v43, 0.0 }
 0x8cc   : > { %v15472_v32 = vpack.c.bf16 %v7267_v30, %v7266_v26 }
 0x8cd   : > { %v15474_v59 = vpack.c.bf16 %v7265_v18, %v7264_v34 }
 0x8d5   : > { %v11205_v50 = vpop.f32.mrb[68].mxu0 }
 0x8d6   : > { %v7162_v11 = vadd.f32 %v11205_v50, %v15460_v7  ;;  %v7153_v2 = vpop.f32.mrb[69].mxu0 }
 0x8d7   : > { %v7154_v54 = vadd.f32 %v15460_v7, %v7153_v2  ;;  %v11206_v1 = vpop.f32.mrb[70].mxu0 }
 0x8d8   : > { %v7165_v33 = vadd.f32 %v11206_v1, %v15460_v7  ;;  %v7156_v61 = vpop.f32.mrb[71].mxu0  ;;  %v7270_v35 = vmax.f32 %v7162_v11, 0.0 }
 0x8d9   : > { %v7157_v45 = vadd.f32 %v15460_v7, %v7156_v61  ;;  %v7268_v16 = vmax.f32 %v7154_v54, 0.0 }
 0x8da   : > { %v7271_v14 = vmax.f32 %v7165_v33, 0.0 }
 0x8db   : > { %v7269_v25 = vmax.f32 %v7157_v45, 0.0 }
 0x8dc   : > { %v15486_v42 = vpack.c.bf16 %v7271_v14, %v7270_v35 }
 0x8dd   : > { %v15488_v47 = vpack.c.bf16 %v7269_v25, %v7268_v16 }
 0x8e5   : > { %v11209_v23 = vpop.f32.mrb[72].mxu0 }
 0x8e6   : > { %v7178_v51 = vadd.f32 %v11209_v23, %v15460_v7  ;;  %v7169_v24 = vpop.f32.mrb[73].mxu0 }
 0x8e7   : > { %v7170_v58 = vadd.f32 %v15460_v7, %v7169_v24  ;;  %v11210_v5 = vpop.f32.mrb[74].mxu0 }
 0x8e8   : > { %v7181_v55 = vadd.f32 %v11210_v5, %v15460_v7  ;;  %v7172_v57 = vpop.f32.mrb[75].mxu0  ;;  %v7274_v17 = vmax.f32 %v7178_v51, 0.0 }
 0x8e9   : > { %v7173_v15 = vadd.f32 %v15460_v7, %v7172_v57  ;;  %v7272_v6 = vmax.f32 %v7170_v58, 0.0 }
 0x8ea   : > { %v7275_v3 = vmax.f32 %v7181_v55, 0.0 }
 0x8eb   : > { %v7273_v52 = vmax.f32 %v7173_v15, 0.0 }
 0x8ec   : > { %v15494_v21 = vpack.c.bf16 %v7275_v3, %v7274_v17 }
 0x8ed   : > { %v15496_v12 = vpack.c.bf16 %v7273_v52, %v7272_v6 }
 0x8f5   : > { %v11213_v28 = vpop.f32.mrb[76].mxu0 }
 0x8f6   : > { %v7194_v39 = vadd.f32 %v11213_v28, %v15460_v7  ;;  %v7185_v63 = vpop.f32.mrb[77].mxu0 }
 0x8f7   : > { %v7186_v49 = vadd.f32 %v15460_v7, %v7185_v63  ;;  %v11214_v4 = vpop.f32.mrb[78].mxu0 }
 0x8f8   : > { %v7197_v10 = vadd.f32 %v11214_v4, %v15460_v7  ;;  %v7188_v27 = vpop.f32.mrb[79].mxu0  ;;  %v7278_v9 = vmax.f32 %v7194_v39, 0.0 }
 0x8f9   : > { %v7189_v0 = vadd.f32 %v15460_v7, %v7188_v27  ;;  %v7276_v19 = vmax.f32 %v7186_v49, 0.0 }
 0x8fa   : > { %v7279_v48 = vmax.f32 %v7197_v10, 0.0 }
 0x8fb   : > { %v7277_v22 = vmax.f32 %v7189_v0, 0.0 }
 0x8fc   : > { %v7303_v38 = vpack.c.bf16 %v7279_v48, %v7278_v9 }
 0x8fd   : > { %v7302_v56 = vpack.c.bf16 %v7277_v22, %v7276_v19 }
 0x905   : > { %v11217_v20 = vpop.f32.mrb[80].mxu0 }
 0x906   : > { %v7210_v60 = vadd.f32 %v11217_v20, %v15460_v7  ;;  %v7201_v8 = vpop.f32.mrb[81].mxu0  ;;  %v7880_v20 = vld [vmem:[#allocation3 + $0x2] sm:$0xff] }
 0x907   : > { %v7202_v44 = vadd.f32 %v15460_v7, %v7201_v8  ;;  %v11218_v29 = vpop.f32.mrb[82].mxu0  ;;  %v11561_v8 = vld [vmem:[%s16625_s11] sm:$0xff]  }
 0x908   : > { %v7213_v62 = vadd.f32 %v11218_v29, %v15460_v7  ;;  %v7204_v46 = vpop.f32.mrb[83].mxu0  ;;  %v7282_v53 = vmax.f32 %v7210_v60, 0.0  ;;  %v7881_v60 = vld [vmem:[#allocation3 + $0xa] sm:$0xff]  ;;  %8560 = vmatpush1.bf16.msra.mxu0 %v11561_v8 }
 0x909   : > { %v7205_v31 = vadd.f32 %v15460_v7, %v7204_v46  ;;  %v7280_v26 = vmax.f32 %v7202_v44, 0.0  ;;  %8561 = vmatprep.subr.bf16.mxu0 %v11671_v37  ;;  %v11562_v44 = vld [vmem:[%s16625_s11 + $0x8] sm:$0xff]   ;;  %v11563_v29 = vld [vmem:[%s16625_s11 + $0x10] sm:$0xff]   ;;  %v11565_v46 = vld [vmem:[%s16625_s11 + $0x20] sm:$0xff]  }
 0x90a   : > { %v7283_v43 = vmax.f32 %v7213_v62, 0.0  ;;  %v11564_v62 = vld [vmem:[%s16625_s11 + $0x18] sm:$0xff]  }
 0x90b   : > { %v7281_v30 = vmax.f32 %v7205_v31, 0.0  ;;  %v7624_v31 = vld [vmem:[#allocation3] sm:$0xff] }
 0x90c   : > { %v7305_v34 = vpack.c.bf16 %v7283_v43, %v7282_v53  ;;  %8562 = vmatpush1.bf16.msra.mxu0 %v11562_v44  ;;  %7656 = vst.msk [vmem:[#allocation4] sm:$0xff] %vm17056_vm5, %v7624_v31  ;;  %v7625_v43 = vld [vmem:[#allocation3 + $0x8] sm:$0xff]  ;;  %vm17067_vm5 = vmmov %vm17004_vm0 }
 0x90d   : > { %v7304_v18 = vpack.c.bf16 %v7281_v30, %v7280_v26  ;;  %8563 = vmatprep.subr.bf16.mxu0 %v11671_v37  ;;  %v11566_v26 = vld [vmem:[%s16625_s11 + $0x28] sm:$0xff]   ;;  %7657 = vst.msk [vmem:[#allocation4 + $0x10] sm:$0xff] %vm17057_vm9, %v7625_v43  ;;  %vm17068_vm9 = vmmov %vm17004_vm0 }
 0x910   : > { %8564 = vmatpush1.bf16.msra.mxu0 %v11563_v29 }
 0x911   : > { %8565 = vmatprep.subr.bf16.mxu0 %v11671_v37 }
 0x914   : > { %8566 = vmatpush1.bf16.msra.mxu0 %v11564_v62 }
 0x915   : > { %v11221_v36 = vpop.f32.mrb[84].mxu0  ;;  %8567 = vmatprep.subr.bf16.mxu0 %v11671_v37 }
 0x916   : > { %v7226_v13 = vadd.f32 %v11221_v36, %v15460_v7  ;;  %v7217_v41 = vpop.f32.mrb[85].mxu0 }
 0x917   : > { %v7218_v50 = vadd.f32 %v15460_v7, %v7217_v41  ;;  %v11222_v11 = vpop.f32.mrb[86].mxu0 }
 0x918   : > { %v7229_v2 = vadd.f32 %v11222_v11, %v15460_v7  ;;  %v7220_v54 = vpop.f32.mrb[87].mxu0  ;;  %v7286_v33 = vmax.f32 %v7226_v13, 0.0  ;;  %8568 = vmatpush1.bf16.msra.mxu0 %v11565_v46 }
 0x919   : > { %v7221_v1 = vadd.f32 %v15460_v7, %v7220_v54  ;;  %v7284_v45 = vmax.f32 %v7218_v50, 0.0  ;;  %8569 = vmatprep.subr.bf16.mxu0 %v11671_v37  ;;  %v11567_v54 = vld [vmem:[%s16625_s11 + $0x30] sm:$0xff]  }
 0x91a   : > { %v7287_v61 = vmax.f32 %v7229_v2, 0.0 }
 0x91b   : > { %v7285_v35 = vmax.f32 %v7221_v1, 0.0 }
 0x91c   : > { %v7307_v14 = vpack.c.bf16 %v7287_v61, %v7286_v33  ;;  %8570 = vmatpush1.bf16.msra.mxu0 %v11566_v26 }
 0x91d   : > { %v7306_v16 = vpack.c.bf16 %v7285_v35, %v7284_v45  ;;  %8571 = vmatprep.subr.bf16.mxu0 %v11671_v37  ;;  %v15582_v35 = vld [vmem:[%s16624_s10] ss:$0 sm:$0xff] }
 0x920   : > { %8572 = vmatpush1.bf16.msra.mxu0 %v11567_v54 }
 0x921   : > { %8573 = vmatprep.subr.bf16.mxu0 %v11671_v37 }
 0x93a   : > { %v6969_v25 = vpop.f32.mrb[88].mxu1 }
 0x93b   : > { %v6970_v23 = vadd.f32 %v15387_v40, %v6969_v25  ;;  %v6971_v51 = vpop.f32.mrb[89].mxu1 }
 0x93c   : > { %v6972_v24 = vpop.f32.mrb[90].mxu1 }
 0x93d   : > { %v6973_v58 = vadd.f32 %v15387_v40, %v6972_v24  ;;  %v6974_v5 = vpop.f32.mrb[91].mxu1  ;;  %v7012_v55 = vmax.f32 %v6970_v23, 0.0 }
 0x93f   : > { %v7013_v57 = vmax.f32 %v6973_v58, 0.0  ;;  %v11568_v58 = vld [vmem:[%s16625_s11 + $0x38] sm:$0xff]  }
 0x940   : > { %8574 = vmatpush1.bf16.msra.mxu0 %v11568_v58 }
 0x941   : > { %v7030_v15 = vpack.c.bf16 %v7013_v57, %v7012_v55  ;;  %8575 = vmatprep.subr.bf16.mxu0 %v11671_v37 }
 0x943   : > { %11227 = vmatprep.mubr.msk.bf16.mxu1 %vm17054_vm11, %v7030_v15  ;;  %vm17065_vm11 = vmmov %vm17004_vm0 }
 0x946   : > { %v6977_v17 = vpop.f32.mrb[92].mxu1 }
 0x947   : > { %v6978_v3 = vadd.f32 %v15387_v40, %v6977_v17  ;;  %v6979_v6 = vpop.f32.mrb[93].mxu1 }
 0x948   : > { %v6980_v52 = vpop.f32.mrb[94].mxu1 }
 0x949   : > { %v6981_v28 = vadd.f32 %v15387_v40, %v6980_v52  ;;  %v6982_v39 = vpop.f32.mrb[95].mxu1  ;;  %v7014_v63 = vmax.f32 %v6978_v3, 0.0 }
 0x94b   : > { %v7015_v49 = vmax.f32 %v6981_v28, 0.0  ;;  %v11569_v28 = vld [vmem:[%s16625_s11 + $0x40] sm:$0xff]  }
 0x94c   : > { %8576 = vmatpush1.bf16.msra.mxu0 %v11569_v28 }
 0x94d   : > { %v7031_v4 = vpack.c.bf16 %v7015_v49, %v7014_v63  ;;  %8577 = vmatprep.subr.bf16.mxu0 %v11671_v37 }
 0x94f   : > { %11228 = vmatmul.mubr.msk.bf16.gmra.mrb[100].mxu1 %vm17055_vm1, %v7031_v4  ;;  %vm17066_vm1 = vmmov %vm17004_vm0 }
 0x950   : > { %11239 = vmatprep.mubr.msk.bf16.mxu1 %vm5226_vm14, %v15474_v59 }
 0x957   : > { %11240 = vmatmul.mubr.msk.bf16.vlgmr.msra.gmra.mrb[104].mxu1 %vm5226_vm14, %v15472_v32 }
 0x958   : > { %11243 = vmatprep.mubr.msk.bf16.mxu1 %vm5226_vm14, %v15488_v47 }
 0x95f   : > { %11244 = vmatmul.mubr.msk.bf16.gmra.mrb[108].mxu1 %vm5226_vm14, %v15486_v42 }
 0x960   : > { %11247 = vmatprep.mubr.msk.bf16.mxu1 %vm5226_vm14, %v15496_v12 }
 0x967   : > { %11248 = vmatmul.mubr.msk.bf16.gmra.mrb[112].mxu1 %vm5226_vm14, %v15494_v21 }
 0x968   : > { %11251 = vmatprep.mubr.msk.bf16.mxu1 %vm5226_vm14, %v7302_v56  ;;  %v7689_v56 = vld [vmem:[#allocation3 + $0x9] sm:$0xff] }
 0x969   : > { %7754 = vrot.lane.b32.xlu1 %v7689_v56, %s16729_s27 }
 0x96d   : > { %7946 = vrot.lane.b32.xlu1 %v7881_v60, %s16722_s22 }
 0x96f   : > { %11252 = vmatmul.mubr.msk.bf16.gmra.mrb[116].mxu1 %vm5226_vm14, %v7303_v38  ;;  %v7688_v38 = vld [vmem:[#allocation3 + $0x1] sm:$0xff] }
 0x970   : > { %11255 = vmatprep.mubr.msk.bf16.mxu1 %vm5226_vm14, %v7304_v18  ;;  %7752 = vrot.lane.b32.xlu0 %v7688_v38, %s16729_s27 }
 0x974   : > { %7944 = vrot.lane.b32.xlu0 %v7880_v20, %s16722_s22 }
 0x977   : > { %11256 = vmatmul.mubr.msk.bf16.gmra.mrb[120].mxu1 %vm5226_vm14, %v7305_v34 }
 0x978   : > { %11259 = vmatprep.mubr.msk.bf16.mxu1 %vm5226_vm14, %v7306_v16 }
 0x97f   : > { %11260 = vmatmul.mubr.msk.bf16.gmra.mrb[124].mxu1 %vm5226_vm14, %v7307_v14 }
 0x98e   : > { %v11225_v40 = vpop.f32.mrb[96].mxu1 }
 0x98f   : > { %v7242_v32 = vadd.f32 %v11225_v40, %v15460_v7  ;;  %v7233_v59 = vpop.f32.mrb[97].mxu1  ;;  %v11570_v40 = vld [vmem:[%s16625_s11 + $0x48] sm:$0xff]  }
 0x990   : > { %v7234_v42 = vadd.f32 %v15460_v7, %v7233_v59  ;;  %v11226_v47 = vpop.f32.mrb[98].mxu1  ;;  %8578 = vmatpush1.bf16.msra.mxu0 %v11570_v40 }
 0x991   : > { %v7245_v21 = vadd.f32 %v11226_v47, %v15460_v7  ;;  %v7236_v12 = vpop.f32.mrb[99].mxu1  ;;  %v7290_v27 = vmax.f32 %v7242_v32, 0.0 }
 0x992   : > { %v7237_v10 = vadd.f32 %v15460_v7, %v7236_v12  ;;  %v7288_v9 = vmax.f32 %v7234_v42, 0.0 }
 0x993   : > { %v7291_v0 = vmax.f32 %v7245_v21, 0.0 }
 0x994   : > { %v7289_v48 = vmax.f32 %v7237_v10, 0.0 }
 0x995   : > { %v7309_v19 = vpack.c.bf16 %v7291_v0, %v7290_v27 }
 0x996   : > { %v7308_v22 = vpack.c.bf16 %v7289_v48, %v7288_v9 }
 0x998   : > { %11263 = vmatprep.mubr.msk.bf16.mxu1 %vm5226_vm14, %v7308_v22 }
 0x999   : > { %11264 = vmatmul.mubr.msk.bf16.gmra.mrb[128].mxu1 %vm5226_vm14, %v7309_v19 }
 0x9db   : > { %v7755_v2 = vpop.permute.xlu1 %7754 }
 0x9dc   : > { %7849 = vst.msk [vmem:[#allocation4 + $0x10] sm:$0xff] %vm6109_vm6, %v7755_v2 }
 0x9df   : > { %v7947_v24 = vpop.permute.xlu1 %7946 }
 0x9e0   : > { %8041 = vst.msk [vmem:[#allocation4 + $0x10] sm:$0xff] %vm6302_vm7, %v7947_v24 }
 0x9e2   : > { %v7753_v50 = vpop.permute.xlu0 %7752 }
 0x9e3   : > { %7848 = vst.msk [vmem:[#allocation4] sm:$0xff] %vm6109_vm6, %v7753_v50 }
 0x9e6   : > { %v7945_v14 = vpop.permute.xlu0 %7944 }
 0x9e7   : > { %8040 = vst.msk [vmem:[#allocation4] sm:$0xff] %vm6302_vm7, %v7945_v14 }
 0xa22   : > { %v11229_v53 = vpop.f32.mrb[100].mxu1 }
 0xa23   : > { %v7258_v30 = vadd.f32 %v11229_v53, %v15460_v7  ;;  %v7249_v34 = vpop.f32.mrb[101].mxu1 }
 0xa24   : > { %v7250_v18 = vadd.f32 %v15460_v7, %v7249_v34  ;;  %v11230_v36 = vpop.f32.mrb[102].mxu1 }
 0xa25   : > { %v7261_v13 = vadd.f32 %v11230_v36, %v15460_v7  ;;  %v7252_v41 = vpop.f32.mrb[103].mxu1  ;;  %v7294_v1 = vmax.f32 %v7258_v30, 0.0 }
 0xa26   : > { %v7253_v11 = vadd.f32 %v15460_v7, %v7252_v41  ;;  %v7292_v61 = vmax.f32 %v7250_v18, 0.0 }
 0xa27   : > { %v7295_v33 = vmax.f32 %v7261_v13, 0.0 }
 0xa28   : > { %v7293_v45 = vmax.f32 %v7253_v11, 0.0 }
 0xa29   : > { %v7311_v7 = vpack.c.bf16 %v7295_v33, %v7294_v1 }
 0xa2a   : > { %v7310_v16 = vpack.c.bf16 %v7293_v45, %v7292_v61  ;;  %v11241_v25 = vpop.f32.mrb[104].mxu1 }
 0xa2b   : > { %v7442_v23 = vadd.f32 %v11241_v25, %v15582_v35  ;;  %v7433_v51 = vpop.f32.mrb[105].mxu1 }
 0xa2c   : > { %v7434_v5 = vadd.f32 %v15582_v35, %v7433_v51  ;;  %v11242_v55 = vpop.f32.mrb[106].mxu1  ;;  %11267 = vmatprep.mubr.msk.bf16.mxu1 %vm5226_vm14, %v7310_v16 }
 0xa2d   : > { %v7562_v57 = vmax.f32 %v7442_v23, 0.0  ;;  %v7445_v15 = vadd.f32 %v11242_v55, %v15582_v35  ;;  %v7436_v17 = vpop.f32.mrb[107].mxu1  ;;  %11268 = vmatmul.mubr.msk.bf16.gmra.mrb[132].mxu1 %vm5226_vm14, %v7311_v7 }
 0xa2e   : > { %v7560_v3 = vmax.f32 %v7434_v5, 0.0  ;;  %v7437_v6 = vadd.f32 %v15582_v35, %v7436_v17 }
 0xa2f   : > { %7594 = vst.msk [vmem:[#allocation3 + $0x31] sm:$0xff] %vm17058_vm8, %v7562_v57  ;;  %v7563_v52 = vmax.f32 %v7445_v15, 0.0  ;;  %vm17069_vm8 = vmmov %vm17004_vm0 }
 0xa30   : > { %7592 = vst.msk [vmem:[#allocation3 + $0x19] sm:$0xff] %vm17059_vm2, %v7560_v3  ;;  %v7561_v39 = vmax.f32 %v7437_v6, 0.0  ;;  %vm17070_vm2 = vmmov %vm17004_vm0 }
 0xa31   : > { %7595 = vst.msk [vmem:[#allocation3 + $0x39] sm:$0xff] %vm17004_vm0, %v7563_v52 }
 0xa32   : > { %7593 = vst.msk [vmem:[#allocation3 + $0x21] sm:$0xff] %vm17060_vm13, %v7561_v39  ;;  %v11245_v63 = vpop.f32.mrb[108].mxu1  ;;  %vm17071_vm13 = vmmov %vm17004_vm0 }
 0xa33   : > { %v7458_v49 = vadd.f32 %v11245_v63, %v15582_v35  ;;  %v7449_v4 = vpop.f32.mrb[109].mxu1 }
 0xa34   : > { %v7450_v32 = vadd.f32 %v15582_v35, %v7449_v4  ;;  %v11246_v59 = vpop.f32.mrb[110].mxu1 }
 0xa35   : > { %v7566_v42 = vmax.f32 %v7458_v49, 0.0  ;;  %v7461_v47 = vadd.f32 %v11246_v59, %v15582_v35  ;;  %v7452_v21 = vpop.f32.mrb[111].mxu1 }
 0xa36   : > { %v7564_v12 = vmax.f32 %v7450_v32, 0.0  ;;  %v7453_v10 = vadd.f32 %v15582_v35, %v7452_v21  ;;  %v15612_v27 = vld [vmem:[#allocation3 + $0x30] sm:$0xff] }
 0xa37   : > { %v15614_v37 = vld [vmem:[#allocation3 + $0x31] sm:$0xff]  ;;  %7598 = vst.msk [vmem:[#allocation3 + $0x61] sm:$0xff] %vm17061_vm4, %v7566_v42  ;;  %v7567_v0 = vmax.f32 %v7461_v47, 0.0  ;;  %v7690_v48 = vld [vmem:[#allocation3 + $0x19] sm:$0xff]  ;;  %vm17072_vm4 = vmmov %vm17004_vm0 }
 0xa38   : > { %v8072_v9 = vld [vmem:[#allocation3 + $0x18] sm:$0xff]  ;;  %8298 = vst.msk [vmem:[#allocation4 + $0x28] sm:$0xff] %vm17062_vm12, %v15614_v37  ;;  %v7565_v19 = vmax.f32 %v7453_v10, 0.0  ;;  %vm17073_vm12 = vmmov %vm17004_vm0 }
 0xa39   : > { %7660 = vst.msk [vmem:[#allocation4 + $0x40] sm:$0xff] %vm17063_vm10, %v15612_v27  ;;  %8136 = vrot.lane.b32.xlu0 %v8072_v9, %s16730_s21  ;;  %v15624_v22 = vld [vmem:[#allocation3 + $0x38] sm:$0xff]  ;;  %v8073_v56 = vld [vmem:[#allocation3 + $0x20] sm:$0xff]  ;;  %vm17074_vm10 = vmmov %vm17004_vm0 }
 0xa3a   : > { %7596 = vst.msk [vmem:[#allocation3 + $0x49] sm:$0xff] %vm17064_vm3, %v7564_v12  ;;  %v15626_v38 = vld [vmem:[#allocation3 + $0x39] sm:$0xff]  ;;  %v7691_v20 = vld [vmem:[#allocation3 + $0x21] sm:$0xff]  ;;  %v11249_v60 = vpop.f32.mrb[112].mxu1  ;;  %8138 = vrot.lane.b32.xlu1 %v8073_v56, %s16730_s21  ;;  %vm17075_vm3 = vmmov %vm17004_vm0 }
 0xa3b   : > { %8296 = vst.msk [vmem:[#allocation4 + $0x8] sm:$0xff] %vm17065_vm11, %v7690_v48  ;;  %v7474_v8 = vadd.f32 %v11249_v60, %v15582_v35  ;;  %v7465_v44 = vpop.f32.mrb[113].mxu1  ;;  %v7882_v30 = vld [vmem:[#allocation3 + $0x1a] sm:$0xff]  ;;  %v7883_v13 = vld [vmem:[#allocation3 + $0x22] sm:$0xff]  ;;  %vm17076_vm11 = vmmov %vm17004_vm0 }
 0xa3c   : > { %7658 = vst.msk [vmem:[#allocation4 + $0x20] sm:$0xff] %vm17066_vm1, %v8072_v9  ;;  %v7466_v29 = vadd.f32 %v15582_v35, %v7465_v44  ;;  %v11250_v62 = vpop.f32.mrb[114].mxu1  ;;  %vm17077_vm1 = vmmov %vm17004_vm0  ;;  %v7884_v42 = vld [vmem:[#allocation3 + $0x32] sm:$0xff] }
 0xa3d   : > { %7599 = vst.msk [vmem:[#allocation3 + $0x69] sm:$0xff] %vm17067_vm5, %v7567_v0  ;;  %7756 = vrot.lane.b32.xlu0 %v7690_v48, %s16729_s27  ;;  %v7570_v46 = vmax.f32 %v7474_v8, 0.0  ;;  %v7477_v31 = vadd.f32 %v11250_v62, %v15582_v35  ;;  %v7468_v53 = vpop.f32.mrb[115].mxu1  ;;  %vm17078_vm5 = vmmov %vm17004_vm0 }
 0xa3e   : > { %8299 = vst.msk [vmem:[#allocation4 + $0x38] sm:$0xff] %vm17068_vm9, %v15626_v38  ;;  %v7568_v43 = vmax.f32 %v7466_v29, 0.0  ;;  %v7469_v26 = vadd.f32 %v15582_v35, %v7468_v53  ;;  %7758 = vrot.lane.b32.xlu1 %v7691_v20, %s16729_s27  ;;  %v15644_v34 = vld [vmem:[#allocation3 + $0x60] sm:$0xff]  ;;  %vm17079_vm9 = vmmov %vm17004_vm0 }
 0xa3f   : > { %7661 = vst.msk [vmem:[#allocation4 + $0x50] sm:$0xff] %vm17069_vm8, %v15624_v22  ;;  %v15646_v18 = vld [vmem:[#allocation3 + $0x61] sm:$0xff]  ;;  %v7571_v36 = vmax.f32 %v7477_v31, 0.0  ;;  %vm17080_vm8 = vmmov %vm17004_vm0 }
 0xa40   : > { %7597 = vst.msk [vmem:[#allocation3 + $0x51] sm:$0xff] %vm17070_vm2, %v7565_v19  ;;  %v7569_v11 = vmax.f32 %v7469_v26, 0.0  ;;  %vm17081_vm2 = vmmov %vm17004_vm0 }
 0xa41   : > { %8297 = vst.msk [vmem:[#allocation4 + $0x18] sm:$0xff] %vm17004_vm0, %v7691_v20  ;;  %v15649_v41 = vld [vmem:[#allocation3 + $0x48] sm:$0xff]  ;;  %7948 = vrot.lane.b32.xlu0 %v7882_v30, %s16722_s22 }
 0xa42   : > { %7659 = vst.msk [vmem:[#allocation4 + $0x30] sm:$0xff] %vm17071_vm13, %v8073_v56  ;;  %v15651_v50 = vld [vmem:[#allocation3 + $0x49] sm:$0xff]  ;;  %v8329_v2 = vld [vmem:[#allocation4 + $0x8] sm:$0xff]  ;;  %v11253_v7 = vpop.f32.mrb[116].mxu1  ;;  %7950 = vrot.lane.b32.xlu1 %v7883_v13, %s16722_s22  ;;  %vm17082_vm13 = vmmov %vm17004_vm0 }
 0xa43   : > { %7602 = vst.msk [vmem:[#allocation3 + $0x91] sm:$0xff] %vm17072_vm4, %v7570_v46  ;;  %v7490_v16 = vadd.f32 %v11253_v7, %v15582_v35  ;;  %v7481_v25 = vpop.f32.mrb[117].mxu1  ;;  %vm17083_vm4 = vmmov %vm17004_vm0 }
 0xa44   : > { %8302 = vst.msk [vmem:[#allocation4 + $0x68] sm:$0xff] %vm17073_vm12, %v15646_v18  ;;  %v15659_v54 = vld [vmem:[#allocation3 + $0x68] sm:$0xff]  ;;  %v7482_v23 = vadd.f32 %v15582_v35, %v7481_v25  ;;  %v11254_v51 = vpop.f32.mrb[118].mxu1  ;;  %vm17084_vm12 = vmmov %vm17004_vm0 }
 0xa45   : > { %7664 = vst.msk [vmem:[#allocation4 + $0x80] sm:$0xff] %vm17074_vm10, %v15644_v34  ;;  %v15661_v1 = vld [vmem:[#allocation3 + $0x69] sm:$0xff]  ;;  %8140 = vrot.lane.b32.xlu0 %v15612_v27, %s16730_s21  ;;  %v7574_v24 = vmax.f32 %v7490_v16, 0.0  ;;  %v7493_v58 = vadd.f32 %v11254_v51, %v15582_v35  ;;  %v7484_v5 = vpop.f32.mrb[119].mxu1  ;;  %vm17085_vm10 = vmmov %vm17004_vm0 }
 0xa46   : > { %7600 = vst.msk [vmem:[#allocation3 + $0x79] sm:$0xff] %vm17075_vm3, %v7568_v43  ;;  %v7572_v55 = vmax.f32 %v7482_v23, 0.0  ;;  %v7485_v57 = vadd.f32 %v15582_v35, %v7484_v5  ;;  %8142 = vrot.lane.b32.xlu1 %v15624_v22, %s16730_s21  ;;  %vm17086_vm3 = vmmov %vm17004_vm0 }
 0xa47   : > { %8300 = vst.msk [vmem:[#allocation4 + $0x48] sm:$0xff] %vm17076_vm11, %v15651_v50  ;;  %v15668_v61 = vld [vmem:[#allocation3 + $0x50] sm:$0xff]  ;;  %v7575_v3 = vmax.f32 %v7493_v58, 0.0  ;;  %vm17087_vm11 = vmmov %vm17004_vm0 }
 0xa48   : > { %7662 = vst.msk [vmem:[#allocation4 + $0x60] sm:$0xff] %vm17077_vm1, %v15649_v41  ;;  %v8331_v33 = vld [vmem:[#allocation4 + $0x18] sm:$0xff]  ;;  %v15670_v45 = vld [vmem:[#allocation3 + $0x51] sm:$0xff]  ;;  %v7573_v28 = vmax.f32 %v7485_v57, 0.0  ;;  %vm17088_vm1 = vmmov %vm17004_vm0 }
 0xa49   : > { %7603 = vst.msk [vmem:[#allocation3 + $0x99] sm:$0xff] %vm17078_vm5, %v7571_v36  ;;  %v8393_v14 = vpack.c.bf16 %v8331_v33, %v8329_v2  ;;  %7760 = vrot.lane.b32.xlu0 %v15614_v37, %s16729_s27  ;;  %vm17089_vm5 = vmmov %vm17004_vm0  ;;  %v7885_v37 = vld [vmem:[#allocation3 + $0x3a] sm:$0xff]  ;;  %v7887_v25 = vld [vmem:[#allocation3 + $0x52] sm:$0xff] }
 0xa4a   : > { %8303 = vst.msk [vmem:[#allocation4 + $0x78] sm:$0xff] %vm17079_vm9, %v15661_v1  ;;  %v15691_v15 = vld [vmem:[#allocation3 + $0x90] sm:$0xff]  ;;  %vm17090_vm9 = vmmov %vm17004_vm0  ;;  %v11257_v40 = vpop.f32.mrb[120].mxu1  ;;  %7762 = vrot.lane.b32.xlu1 %v15626_v38, %s16729_s27 }
 0xa4b   : > { %7665 = vst.msk [vmem:[#allocation4 + $0x90] sm:$0xff] %vm17080_vm8, %v15659_v54  ;;  %10874 = vmatprep.mubr.msk.bf16.mxu0 %vm17083_vm4, %v8393_v14  ;;  %v15693_v17 = vld [vmem:[#allocation3 + $0x91] sm:$0xff]  ;;  %vm17091_vm8 = vmmov %vm17004_vm0  ;;  %v7506_v32 = vadd.f32 %v11257_v40, %v15582_v35  ;;  %v7497_v59 = vpop.f32.mrb[121].mxu1 }
 0xa4c   : > { %7601 = vst.msk [vmem:[#allocation3 + $0x81] sm:$0xff] %vm17081_vm2, %v7569_v11  ;;  %vm17092_vm2 = vmmov %vm17004_vm0  ;;  %v7498_v47 = vadd.f32 %v15582_v35, %v7497_v59  ;;  %v11258_v21 = vpop.f32.mrb[122].mxu1 }
 0xa4d   : > { %8301 = vst.msk [vmem:[#allocation4 + $0x58] sm:$0xff] %vm17004_vm0, %v15670_v45  ;;  %v15696_v6 = vld [vmem:[#allocation3 + $0x78] sm:$0xff]  ;;  %7605 = vst.msk [vmem:[#allocation3 + $0xb1] sm:$0xff] %vm17004_vm0, %v7573_v28  ;;  %7952 = vrot.lane.b32.xlu0 %v7884_v42, %s16722_s22  ;;  %v7578_v12 = vmax.f32 %v7506_v32, 0.0  ;;  %v7509_v10 = vadd.f32 %v11258_v21, %v15582_v35  ;;  %v7500_v27 = vpop.f32.mrb[123].mxu1  ;;  %v7889_v28 = vld [vmem:[#allocation3 + $0x6a] sm:$0xff] }
 0xa4e   : > { %7663 = vst.msk [vmem:[#allocation4 + $0x70] sm:$0xff] %vm17082_vm13, %v15668_v61  ;;  %v15698_v52 = vld [vmem:[#allocation3 + $0x79] sm:$0xff]  ;;  %vm17093_vm13 = vmmov %vm17004_vm0  ;;  %v7576_v0 = vmax.f32 %v7498_v47, 0.0  ;;  %v7501_v9 = vadd.f32 %v15582_v35, %v7500_v27  ;;  %7954 = vrot.lane.b32.xlu1 %v7885_v37, %s16722_s22 }
 0xa4f   : > { %7606 = vst.msk [vmem:[#allocation3 + $0xc1] sm:$0xff] %vm17084_vm12, %v7574_v24  ;;  %vm17094_vm4 = vmmov %vm17004_vm0  ;;  %v7579_v22 = vmax.f32 %v7509_v10, 0.0 }
 0xa50   : > { %8306 = vst.msk [vmem:[#allocation4 + $0xa8] sm:$0xff] %vm17085_vm10, %v15693_v17  ;;  %v15707_v39 = vld [vmem:[#allocation3 + $0x98] sm:$0xff]  ;;  %vm17095_vm12 = vmmov %vm17004_vm0  ;;  %v7577_v20 = vmax.f32 %v7501_v9, 0.0 }
 0xa51   : > { %7668 = vst.msk [vmem:[#allocation4 + $0xc0] sm:$0xff] %vm17086_vm3, %v15691_v15  ;;  %v15709_v63 = vld [vmem:[#allocation3 + $0x99] sm:$0xff]  ;;  %vm17096_vm10 = vmmov %vm17004_vm0  ;;  %8144 = vrot.lane.b32.xlu0 %v15649_v41, %s16730_s21 }
 0xa52   : > { %7604 = vst.msk [vmem:[#allocation3 + $0xa9] sm:$0xff] %vm17087_vm11, %v7572_v55  ;;  %vm17097_vm3 = vmmov %vm17004_vm0  ;;  %v11261_v62 = vpop.f32.mrb[124].mxu1  ;;  %8146 = vrot.lane.b32.xlu1 %v15668_v61, %s16730_s21  ;;  %v7886_v61 = vld [vmem:[#allocation3 + $0x4a] sm:$0xff] }
 0xa53   : > { %8304 = vst.msk [vmem:[#allocation4 + $0x88] sm:$0xff] %vm17088_vm1, %v15698_v52  ;;  %v15716_v49 = vld [vmem:[#allocation3 + $0x80] sm:$0xff]  ;;  %vm17098_vm11 = vmmov %vm17004_vm0  ;;  %v7522_v46 = vadd.f32 %v11261_v62, %v15582_v35  ;;  %v7513_v31 = vpop.f32.mrb[125].mxu1 }
 0xa54   : > { %7666 = vst.msk [vmem:[#allocation4 + $0xa0] sm:$0xff] %vm17089_vm5, %v15696_v6  ;;  %v15718_v4 = vld [vmem:[#allocation3 + $0x81] sm:$0xff]  ;;  %vm17099_vm1 = vmmov %vm17004_vm0  ;;  %v15764_v29 = vld [vmem:[#allocation3 + $0xb1] sm:$0xff]  ;;  %v7514_v53 = vadd.f32 %v15582_v35, %v7513_v31  ;;  %v11262_v43 = vpop.f32.mrb[126].mxu1 }
 0xa55   : > { %7607 = vst.msk [vmem:[#allocation3 + $0xc9] sm:$0xff] %vm17090_vm9, %v7575_v3  ;;  %vm17100_vm5 = vmmov %vm17004_vm0  ;;  %7764 = vrot.lane.b32.xlu0 %v15651_v50, %s16729_s27  ;;  %v7582_v26 = vmax.f32 %v7522_v46, 0.0  ;;  %v7525_v30 = vadd.f32 %v11262_v43, %v15582_v35  ;;  %v7516_v36 = vpop.f32.mrb[127].mxu1  ;;  %v7891_v27 = vld [vmem:[#allocation3 + $0x82] sm:$0xff]  ;;  %v7895_v31 = vld [vmem:[#allocation3 + $0xb2] sm:$0xff] }
 0xa56   : > { %8307 = vst.msk [vmem:[#allocation4 + $0xb8] sm:$0xff] %vm17091_vm8, %v15709_v63  ;;  %v15737_v48 = vld [vmem:[#allocation3 + $0xc0] sm:$0xff]  ;;  %vm17101_vm9 = vmmov %vm17004_vm0  ;;  %v7580_v13 = vmax.f32 %v7514_v53, 0.0  ;;  %v7517_v41 = vadd.f32 %v15582_v35, %v7516_v36  ;;  %7766 = vrot.lane.b32.xlu1 %v15670_v45, %s16729_s27 }
 0xa57   : > { %7669 = vst.msk [vmem:[#allocation4 + $0xd0] sm:$0xff] %vm17092_vm2, %v15707_v39  ;;  %v15739_v19 = vld [vmem:[#allocation3 + $0xc1] sm:$0xff]  ;;  %vm17102_vm8 = vmmov %vm17004_vm0  ;;  %v7583_v33 = vmax.f32 %v7525_v30, 0.0 }
 0xa58   : > { %8305 = vst.msk [vmem:[#allocation4 + $0x98] sm:$0xff] %vm17093_vm13, %v15718_v4  ;;  %vm17103_vm2 = vmmov %vm17004_vm0  ;;  %v7581_v45 = vmax.f32 %v7517_v41, 0.0  ;;  %v8335_v30 = vld [vmem:[#allocation4 + $0x38] sm:$0xff] }
 0xa59   : > { %7667 = vst.msk [vmem:[#allocation4 + $0xb0] sm:$0xff] %vm17094_vm4, %v15716_v49  ;;  %v15742_v38 = vld [vmem:[#allocation3 + $0xa8] sm:$0xff]  ;;  %v15762_v44 = vld [vmem:[#allocation3 + $0xb0] sm:$0xff]  ;;  %vm17104_vm13 = vmmov %vm17004_vm0  ;;  %7956 = vrot.lane.b32.xlu0 %v7886_v61, %s16722_s22 }
 0xa5a   : > { %7610 = vst.msk [vmem:[#allocation3 + $0xf1] sm:$0xff] %vm17095_vm12, %v7578_v12  ;;  %v15744_v56 = vld [vmem:[#allocation3 + $0xa9] sm:$0xff]  ;;  %vm17105_vm4 = vmmov %vm17004_vm0  ;;  %7958 = vrot.lane.b32.xlu1 %v7887_v25, %s16722_s22  ;;  %v7890_v12 = vld [vmem:[#allocation3 + $0x7a] sm:$0xff] }
 0xa5b   : > { %8310 = vst.msk [vmem:[#allocation4 + $0xe8] sm:$0xff] %vm17096_vm10, %v15739_v19  ;;  %vm17106_vm12 = vmmov %vm17004_vm0  ;;  %v7894_v46 = vld [vmem:[#allocation3 + $0xaa] sm:$0xff] }
 0xa5c   : > { %7672 = vst.msk [vmem:[#allocation4 + $0x100] sm:$0xff] %vm17097_vm3, %v15737_v48  ;;  %v15753_v60 = vld [vmem:[#allocation3 + $0xc8] sm:$0xff]  ;;  %vm17107_vm10 = vmmov %vm17004_vm0 }
 0xa5d   : > { %7608 = vst.msk [vmem:[#allocation3 + $0xd9] sm:$0xff] %vm17098_vm11, %v7576_v0  ;;  %v15755_v8 = vld [vmem:[#allocation3 + $0xc9] sm:$0xff]  ;;  %vm17108_vm3 = vmmov %vm17004_vm0  ;;  %8148 = vrot.lane.b32.xlu0 %v15644_v34, %s16730_s21 }
 0xa5e   : > { %8308 = vst.msk [vmem:[#allocation4 + $0xc8] sm:$0xff] %vm17099_vm1, %v15744_v56  ;;  %vm17109_vm11 = vmmov %vm17004_vm0  ;;  %8150 = vrot.lane.b32.xlu1 %v15659_v54, %s16730_s21 }
 0xa5f   : > { %7670 = vst.msk [vmem:[#allocation4 + $0xe0] sm:$0xff] %vm17100_vm5, %v15742_v38  ;;  %vm17110_vm1 = vmmov %vm17004_vm0 }
 0xa60   : > { %7611 = vst.msk [vmem:[#allocation3 + $0xf9] sm:$0xff] %vm17101_vm9, %v7579_v22  ;;  %vm17111_vm5 = vmmov %vm17004_vm0 }
 0xa61   : > { %8311 = vst.msk [vmem:[#allocation4 + $0xf8] sm:$0xff] %vm17102_vm8, %v15755_v8  ;;  %v15785_v11 = vld [vmem:[#allocation3 + $0xf0] sm:$0xff]  ;;  %vm17112_vm9 = vmmov %vm17004_vm0  ;;  %7768 = vrot.lane.b32.xlu0 %v15646_v18, %s16729_s27  ;;  %v7888_v18 = vld [vmem:[#allocation3 + $0x62] sm:$0xff] }
 0xa62   : > { %7673 = vst.msk [vmem:[#allocation4 + $0x110] sm:$0xff] %vm17103_vm2, %v15753_v60  ;;  %v15787_v2 = vld [vmem:[#allocation3 + $0xf1] sm:$0xff]  ;;  %vm17113_vm8 = vmmov %vm17004_vm0  ;;  %7770 = vrot.lane.b32.xlu1 %v15661_v1, %s16729_s27 }
 0xa63   : > { %7609 = vst.msk [vmem:[#allocation3 + $0xe1] sm:$0xff] %vm17004_vm0, %v7577_v20  ;;  %vm17114_vm2 = vmmov %vm17004_vm0 }
 0xa64   : > { %8309 = vst.msk [vmem:[#allocation4 + $0xd8] sm:$0xff] %vm17104_vm13, %v15764_v29  ;;  %v15790_v7 = vld [vmem:[#allocation3 + $0xd8] sm:$0xff]  ;;  %vm17115_vm13 = vmmov %vm17004_vm0 }
 0xa65   : > { %7671 = vst.msk [vmem:[#allocation4 + $0xf0] sm:$0xff] %vm17105_vm4, %v15762_v44  ;;  %v15792_v50 = vld [vmem:[#allocation3 + $0xd9] sm:$0xff]  ;;  %vm17116_vm4 = vmmov %vm17004_vm0  ;;  %7960 = vrot.lane.b32.xlu0 %v7888_v18, %s16722_s22 }
 0xa66   : > { %7614 = vst.msk [vmem:[#allocation3 + $0x121] sm:$0xff] %vm17106_vm12, %v7582_v26  ;;  %vm17117_vm12 = vmmov %vm17004_vm0  ;;  %7962 = vrot.lane.b32.xlu1 %v7889_v28, %s16722_s22 }
 0xa67   : > { %8314 = vst.msk [vmem:[#allocation4 + $0x128] sm:$0xff] %vm17107_vm10, %v15787_v2  ;;  %v15800_v14 = vld [vmem:[#allocation3 + $0xf8] sm:$0xff]  ;;  %vm17118_vm10 = vmmov %vm17004_vm0 }
 0xa68   : > { %7676 = vst.msk [vmem:[#allocation4 + $0x140] sm:$0xff] %vm17108_vm3, %v15785_v11  ;;  %v15802_v16 = vld [vmem:[#allocation3 + $0xf9] sm:$0xff]  ;;  %vm17119_vm3 = vmmov %vm17004_vm0 }
 0xa69   : > { %7612 = vst.msk [vmem:[#allocation3 + $0x109] sm:$0xff] %vm17109_vm11, %v7580_v13  ;;  %vm17120_vm11 = vmmov %vm17004_vm0  ;;  %8152 = vrot.lane.b32.xlu0 %v15696_v6, %s16730_s21 }
 0xa6a   : > { %8312 = vst.msk [vmem:[#allocation4 + $0x108] sm:$0xff] %vm17110_vm1, %v15792_v50  ;;  %v15809_v23 = vld [vmem:[#allocation3 + $0xe0] sm:$0xff]  ;;  %vm17121_vm1 = vmmov %vm17004_vm0  ;;  %8154 = vrot.lane.b32.xlu1 %v15716_v49, %s16730_s21 }
 0xa6b   : > { %7674 = vst.msk [vmem:[#allocation4 + $0x120] sm:$0xff] %vm17111_vm5, %v15790_v7  ;;  %v15811_v51 = vld [vmem:[#allocation3 + $0xe1] sm:$0xff]  ;;  %vm17122_vm5 = vmmov %vm17004_vm0 }
 0xa6c   : > { %7615 = vst.msk [vmem:[#allocation3 + $0x129] sm:$0xff] %vm17112_vm9, %v7583_v33  ;;  %vm17123_vm9 = vmmov %vm17004_vm0  ;;  %v11265_v40 = vpop.f32.mrb[128].mxu1 }
 0xa6d   : > { %8315 = vst.msk [vmem:[#allocation4 + $0x138] sm:$0xff] %vm17113_vm8, %v15802_v16  ;;  %v15827_v24 = vld [vmem:[#allocation3 + $0x120] sm:$0xff]  ;;  %vm17124_vm8 = vmmov %vm17004_vm0  ;;  %7772 = vrot.lane.b32.xlu0 %v15698_v52, %s16729_s27  ;;  %v7538_v1 = vadd.f32 %v11265_v40, %v15582_v35  ;;  %v7529_v32 = vpop.f32.mrb[129].mxu1 }
 0xa6e   : > { %7677 = vst.msk [vmem:[#allocation4 + $0x150] sm:$0xff] %vm17114_vm2, %v15800_v14  ;;  %v15829_v58 = vld [vmem:[#allocation3 + $0x121] sm:$0xff]  ;;  %v7530_v59 = vadd.f32 %v15582_v35, %v7529_v32  ;;  %v11266_v42 = vpop.f32.mrb[130].mxu1  ;;  %7774 = vrot.lane.b32.xlu1 %v15718_v4, %s16729_s27  ;;  %vm17125_vm2 = vmmov %vm17004_vm0 }
 0xa6f   : > { %7613 = vst.msk [vmem:[#allocation3 + $0x111] sm:$0xff] %vm17004_vm0, %v7581_v45  ;;  %v7586_v47 = vmax.f32 %v7538_v1, 0.0  ;;  %v7541_v21 = vadd.f32 %v11266_v42, %v15582_v35  ;;  %v7532_v6 = vpop.f32.mrb[131].mxu1  ;;  %v8343_v32 = vld [vmem:[#allocation4 + $0x78] sm:$0xff] }
 0xa70   : > { %8313 = vst.msk [vmem:[#allocation4 + $0x118] sm:$0xff] %vm17115_vm13, %v15811_v51  ;;  %v15831_v5 = vld [vmem:[#allocation3 + $0x108] sm:$0xff]  ;;  %v7584_v10 = vmax.f32 %v7530_v59, 0.0  ;;  %v7533_v49 = vadd.f32 %v15582_v35, %v7532_v6  ;;  %vm17126_vm13 = vmmov %vm17004_vm0  ;;  %v8341_v6 = vld [vmem:[#allocation4 + $0x68] sm:$0xff] }
 0xa71   : > { %7675 = vst.msk [vmem:[#allocation4 + $0x130] sm:$0xff] %vm17116_vm4, %v15809_v23  ;;  %v15833_v55 = vld [vmem:[#allocation3 + $0x109] sm:$0xff]  ;;  %7964 = vrot.lane.b32.xlu0 %v7890_v12, %s16722_s22  ;;  %v7587_v52 = vmax.f32 %v7541_v21, 0.0  ;;  %vm17127_vm4 = vmmov %vm17004_vm0 }
 0xa72   : > { %8318 = vst.msk [vmem:[#allocation4 + $0x168] sm:$0xff] %vm17117_vm12, %v15829_v58  ;;  %v7585_v37 = vmax.f32 %v7533_v49, 0.0  ;;  %7966 = vrot.lane.b32.xlu1 %v7891_v27, %s16722_s22  ;;  %vm17128_vm12 = vmmov %vm17004_vm0 }
 0xa73   : > { %7680 = vst.msk [vmem:[#allocation4 + $0x180] sm:$0xff] %vm17118_vm10, %v15827_v24  ;;  %v15841_v34 = vld [vmem:[#allocation3 + $0x128] sm:$0xff]  ;;  %vm17129_vm10 = vmmov %vm17004_vm0 }
 0xa74   : > { %v15843_v54 = vld [vmem:[#allocation3 + $0x129] sm:$0xff]  ;;  %8316 = vst.msk [vmem:[#allocation4 + $0x148] sm:$0xff] %vm17119_vm3, %v15833_v55  ;;  %vm17130_vm3 = vmmov %vm17004_vm0 }
 0xa75   : > { %7678 = vst.msk [vmem:[#allocation4 + $0x160] sm:$0xff] %vm17120_vm11, %v15831_v5  ;;  %8156 = vrot.lane.b32.xlu0 %v15691_v15, %s16730_s21  ;;  %vm17131_vm11 = vmmov %vm17004_vm0 }
 0xa76   : > { %v15849_v57 = vld [vmem:[#allocation3 + $0x110] sm:$0xff]  ;;  %8319 = vst.msk [vmem:[#allocation4 + $0x178] sm:$0xff] %vm17121_vm1, %v15843_v54  ;;  %8158 = vrot.lane.b32.xlu1 %v15707_v39, %s16730_s21  ;;  %vm17132_vm1 = vmmov %vm17004_vm0 }
 0xa77   : > { %v15851_v3 = vld [vmem:[#allocation3 + $0x111] sm:$0xff]  ;;  %7681 = vst.msk [vmem:[#allocation4 + $0x190] sm:$0xff] %vm17122_vm5, %v15841_v34  ;;  %vm17133_vm5 = vmmov %vm17004_vm0 }
 0xa78   : > { %8317 = vst.msk [vmem:[#allocation4 + $0x158] sm:$0xff] %vm17123_vm9, %v15851_v3  ;;  %v7892_v39 = vld [vmem:[#allocation3 + $0x92] sm:$0xff]  ;;  %vm17134_vm9 = vmmov %vm17004_vm0 }
 0xa79   : > { %7679 = vst.msk [vmem:[#allocation4 + $0x170] sm:$0xff] %vm17124_vm8, %v15849_v57  ;;  %7776 = vrot.lane.b32.xlu0 %v15693_v17, %s16729_s27  ;;  %vm17135_vm8 = vmmov %vm17004_vm0  ;;  %v7903_v45 = vld [vmem:[#allocation3 + $0x112] sm:$0xff] }
 0xa7a   : > { %7618 = vst.msk [vmem:[#allocation3 + $0x151] sm:$0xff] %vm17125_vm2, %v7586_v47  ;;  %7778 = vrot.lane.b32.xlu1 %v15709_v63, %s16729_s27  ;;  %v7893_v63 = vld [vmem:[#allocation3 + $0x9a] sm:$0xff]  ;;  %vm17136_vm2 = vmmov %vm17004_vm0 }
 0xa7b   : > { %7616 = vst.msk [vmem:[#allocation3 + $0x139] sm:$0xff] %vm17004_vm0, %v7584_v10  ;;  %v8399_v10 = vpack.c.bf16 %v8343_v32, %v8341_v6 }
 0xa7c   : > { %7619 = vst.msk [vmem:[#allocation3 + $0x159] sm:$0xff] %vm17126_vm13, %v7587_v52  ;;  %vm17137_vm13 = vmmov %vm17004_vm0 }
 0xa7d   : > { %7617 = vst.msk [vmem:[#allocation3 + $0x141] sm:$0xff] %vm17127_vm4, %v7585_v37  ;;  %7968 = vrot.lane.b32.xlu0 %v7892_v39, %s16722_s22  ;;  %v8347_v39 = vld [vmem:[#allocation4 + $0x98] sm:$0xff]  ;;  %vm17138_vm4 = vmmov %vm17004_vm0 }
 0xa7e   : > { %7970 = vrot.lane.b32.xlu1 %v7893_v63, %s16722_s22 }
 0xa81   : > { %v15889_v4 = vld [vmem:[#allocation3 + $0x150] sm:$0xff]  ;;  %8160 = vrot.lane.b32.xlu0 %v15742_v38, %s16730_s21  ;;  %v7896_v38 = vld [vmem:[#allocation3 + $0xc2] sm:$0xff] }
 0xa82   : > { %v15891_v0 = vld [vmem:[#allocation3 + $0x151] sm:$0xff]  ;;  %v15895_v22 = vld [vmem:[#allocation3 + $0x139] sm:$0xff]  ;;  %7684 = vst.msk [vmem:[#allocation4 + $0x1c0] sm:$0xff] %vm17129_vm10, %v15889_v4  ;;  %8162 = vrot.lane.b32.xlu1 %v15762_v44, %s16730_s21  ;;  %vm17140_vm10 = vmmov %vm17004_vm0 }
 0xa83   : > { %v15893_v9 = vld [vmem:[#allocation3 + $0x138] sm:$0xff]  ;;  %8322 = vst.msk [vmem:[#allocation4 + $0x1a8] sm:$0xff] %vm17128_vm12, %v15891_v0  ;;  %vm17139_vm12 = vmmov %vm17004_vm0 }
 0xa84   : > { %v15903_v15 = vld [vmem:[#allocation3 + $0x158] sm:$0xff]  ;;  %8320 = vst.msk [vmem:[#allocation4 + $0x188] sm:$0xff] %vm17130_vm3, %v15895_v22  ;;  %v15911_v20 = vld [vmem:[#allocation3 + $0x140] sm:$0xff]  ;;  %vm17141_vm3 = vmmov %vm17004_vm0 }
 0xa85   : > { %v15905_v17 = vld [vmem:[#allocation3 + $0x159] sm:$0xff]  ;;  %7682 = vst.msk [vmem:[#allocation4 + $0x1a0] sm:$0xff] %vm17131_vm11, %v15893_v9  ;;  %v15913_v62 = vld [vmem:[#allocation3 + $0x141] sm:$0xff]  ;;  %7780 = vrot.lane.b32.xlu0 %v15744_v56, %s16729_s27  ;;  %v7897_v56 = vld [vmem:[#allocation3 + $0xca] sm:$0xff] }
 0xa86   : > { %8323 = vst.msk [vmem:[#allocation4 + $0x1b8] sm:$0xff] %vm17132_vm1, %v15905_v17  ;;  %7782 = vrot.lane.b32.xlu1 %v15764_v29, %s16729_s27  ;;  %v7901_v29 = vld [vmem:[#allocation3 + $0xfa] sm:$0xff]  ;;  %v7907_v27 = vld [vmem:[#allocation3 + $0x142] sm:$0xff]  ;;  %vm17142_vm11 = vmmov %vm17004_vm0 }
 0xa87   : > { %7685 = vst.msk [vmem:[#allocation4 + $0x1d0] sm:$0xff] %vm17133_vm5, %v15903_v15  ;;  %v7906_v49 = vld [vmem:[#allocation3 + $0x13a] sm:$0xff]  ;;  %vm17143_vm1 = vmmov %vm17004_vm0 }
 0xa88   : > { %8321 = vst.msk [vmem:[#allocation4 + $0x198] sm:$0xff] %vm17134_vm9, %v15913_v62  ;;  %vm17144_vm5 = vmmov %vm17004_vm0 }
 0xa89   : > { %7683 = vst.msk [vmem:[#allocation4 + $0x1b0] sm:$0xff] %vm17135_vm8, %v15911_v20  ;;  %7972 = vrot.lane.b32.xlu0 %v7894_v46, %s16722_s22  ;;  %vm17145_vm9 = vmmov %vm17004_vm0 }
 0xa8a   : > { %7974 = vrot.lane.b32.xlu1 %v7895_v31, %s16722_s22  ;;  %v8345_v31 = vld [vmem:[#allocation4 + $0x88] sm:$0xff]  ;;  %vm17146_vm8 = vmmov %vm17004_vm0 }
 0xa8d   : > { %8164 = vrot.lane.b32.xlu0 %v15737_v48, %s16730_s21  ;;  %v7898_v48 = vld [vmem:[#allocation3 + $0xda] sm:$0xff] }
 0xa8e   : > { %8166 = vrot.lane.b32.xlu1 %v15753_v60, %s16730_s21 }
 0xa91   : > { %7784 = vrot.lane.b32.xlu0 %v15739_v19, %s16729_s27  ;;  %v7899_v19 = vld [vmem:[#allocation3 + $0xe2] sm:$0xff] }
 0xa92   : > { %7786 = vrot.lane.b32.xlu1 %v15755_v8, %s16729_s27  ;;  %v7900_v8 = vld [vmem:[#allocation3 + $0xf2] sm:$0xff] }
 0xa95   : > { %7976 = vrot.lane.b32.xlu0 %v7896_v38, %s16722_s22  ;;  %v8401_v38 = vpack.c.bf16 %v8347_v39, %v8345_v31 }
 0xa96   : > { %7978 = vrot.lane.b32.xlu1 %v7897_v56, %s16722_s22 }
 0xa99   : > { %8168 = vrot.lane.b32.xlu0 %v15790_v7, %s16730_s21  ;;  %v7902_v7 = vld [vmem:[#allocation3 + $0x10a] sm:$0xff] }
 0xa9a   : > { %8170 = vrot.lane.b32.xlu1 %v15809_v23, %s16730_s21  ;;  %v8339_v23 = vld [vmem:[#allocation4 + $0x58] sm:$0xff] }
 0xa9d   : > { %7788 = vrot.lane.b32.xlu0 %v15792_v50, %s16729_s27 }
 0xa9e   : > { %7790 = vrot.lane.b32.xlu1 %v15811_v51, %s16729_s27 }
 0xaa1   : > { %7980 = vrot.lane.b32.xlu0 %v7898_v48, %s16722_s22 }
 0xaa2   : > { %7982 = vrot.lane.b32.xlu1 %v7899_v19, %s16722_s22 }
 0xaa5   : > { %8172 = vrot.lane.b32.xlu0 %v15785_v11, %s16730_s21 }
 0xaa6   : > { %8174 = vrot.lane.b32.xlu1 %v15800_v14, %s16730_s21 }
 0xaa9   : > { %7792 = vrot.lane.b32.xlu0 %v15787_v2, %s16729_s27  ;;  %v8333_v2 = vld [vmem:[#allocation4 + $0x28] sm:$0xff] }
 0xaaa   : > { %7794 = vrot.lane.b32.xlu1 %v15802_v16, %s16729_s27  ;;  %v8395_v61 = vpack.c.bf16 %v8335_v30, %v8333_v2  ;;  %v8355_v2 = vld [vmem:[#allocation4 + $0xd8] sm:$0xff] }
 0xaab   : > { %v8137_v60 = vpop.permute.xlu0 %8136 }
 0xaac   : > { %8232 = vst.msk [vmem:[#allocation4] sm:$0xff] %vm6495_vm15, %v8137_v60  ;;  %v8139_v44 = vpop.permute.xlu1 %8138  ;;  %v8351_v60 = vld [vmem:[#allocation4 + $0xb8] sm:$0xff] }
 0xaad   : > { %7984 = vrot.lane.b32.xlu0 %v7900_v8, %s16722_s22  ;;  %8233 = vst.msk [vmem:[#allocation4 + $0x10] sm:$0xff] %vm6495_vm15, %v8139_v44 }
 0xaae   : > { %7986 = vrot.lane.b32.xlu1 %v7901_v29, %s16722_s22 }
 0xaaf   : > { %v7757_v53 = vpop.permute.xlu0 %7756 }
 0xab0   : > { %7850 = vst.msk [vmem:[#allocation4 + $0x20] sm:$0xff] %vm6109_vm6, %v7757_v53  ;;  %v7759_v43 = vpop.permute.xlu1 %7758 }
 0xab1   : > { %8176 = vrot.lane.b32.xlu0 %v15831_v5, %s16730_s21  ;;  %7851 = vst.msk [vmem:[#allocation4 + $0x30] sm:$0xff] %vm6109_vm6, %v7759_v43  ;;  %v8349_v43 = vld [vmem:[#allocation4 + $0xa8] sm:$0xff] }
 0xab2   : > { %8178 = vrot.lane.b32.xlu1 %v15849_v57, %s16730_s21  ;;  %v8403_v30 = vpack.c.bf16 %v8351_v60, %v8349_v43 }
 0xab3   : > { %v7949_v26 = vpop.permute.xlu0 %7948  ;;  %v8328_v13 = vld [vmem:[#allocation4] sm:$0xff] }
 0xab4   : > { %8042 = vst.msk [vmem:[#allocation4 + $0x20] sm:$0xff] %vm6302_vm7, %v7949_v26  ;;  %v7951_v36 = vpop.permute.xlu1 %7950  ;;  %v8330_v41 = vld [vmem:[#allocation4 + $0x10] sm:$0xff] }
 0xab5   : > { %7796 = vrot.lane.b32.xlu0 %v15833_v55, %s16729_s27  ;;  %8043 = vst.msk [vmem:[#allocation4 + $0x30] sm:$0xff] %vm6302_vm7, %v7951_v36  ;;  %v8392_v11 = vpack.c.bf16 %v8330_v41, %v8328_v13 }
 0xab6   : > { %7798 = vrot.lane.b32.xlu1 %v15851_v3, %s16729_s27  ;;  %v8337_v3 = vld [vmem:[#allocation4 + $0x48] sm:$0xff] }
 0xab7   : > { %v8141_v33 = vpop.permute.xlu0 %8140  ;;  %8592 = vmatmul.mubr.bf16.vlgmr.msra.gmra.mrb[88].mxu0 %v8392_v11  ;;  %v8397_v18 = vpack.c.bf16 %v8339_v23, %v8337_v3 }
 0xab8   : > { %8234 = vst.msk [vmem:[#allocation4 + $0x20] sm:$0xff] %vm6495_vm15, %v8141_v33  ;;  %v8143_v50 = vpop.permute.xlu1 %8142  ;;  %10875 = vmatprep.mubr.msk.bf16.mxu0 %vm17136_vm2, %v8395_v61  ;;  %vm17147_vm2 = vmmov %vm17004_vm0 }
 0xab9   : > { %7988 = vrot.lane.b32.xlu0 %v7902_v7, %s16722_s22  ;;  %8235 = vst.msk [vmem:[#allocation4 + $0x30] sm:$0xff] %vm6495_vm15, %v8143_v50 }
 0xaba   : > { %7990 = vrot.lane.b32.xlu1 %v7903_v45, %s16722_s22  ;;  %v8353_v45 = vld [vmem:[#allocation4 + $0xc8] sm:$0xff] }
 0xabb   : > { %v7761_v14 = vpop.permute.xlu0 %7760 }
 0xabc   : > { %7852 = vst.msk [vmem:[#allocation4 + $0x40] sm:$0xff] %vm6109_vm6, %v7761_v14  ;;  %v7763_v16 = vpop.permute.xlu1 %7762 }
 0xabd   : > { %8180 = vrot.lane.b32.xlu0 %v15827_v24, %s16730_s21  ;;  %7853 = vst.msk [vmem:[#allocation4 + $0x50] sm:$0xff] %vm6109_vm6, %v7763_v16  ;;  %v8405_v16 = vpack.c.bf16 %v8355_v2, %v8353_v45 }
 0xabe   : > { %8182 = vrot.lane.b32.xlu1 %v15841_v34, %s16730_s21  ;;  %v7904_v34 = vld [vmem:[#allocation3 + $0x122] sm:$0xff] }
 0xabf   : > { %v7953_v25 = vpop.permute.xlu0 %7952  ;;  %v8332_v5 = vld [vmem:[#allocation4 + $0x20] sm:$0xff] }
 0xac0   : > { %8044 = vst.msk [vmem:[#allocation4 + $0x40] sm:$0xff] %vm6302_vm7, %v7953_v25  ;;  %v7955_v51 = vpop.permute.xlu1 %7954  ;;  %v8334_v55 = vld [vmem:[#allocation4 + $0x30] sm:$0xff] }
 0xac1   : > { %7800 = vrot.lane.b32.xlu0 %v15829_v58, %s16729_s27  ;;  %8045 = vst.msk [vmem:[#allocation4 + $0x50] sm:$0xff] %vm6302_vm7, %v7955_v51  ;;  %v8394_v57 = vpack.c.bf16 %v8334_v55, %v8332_v5  ;;  %v7905_v58 = vld [vmem:[#allocation3 + $0x12a] sm:$0xff] }
 0xac2   : > { %7802 = vrot.lane.b32.xlu1 %v15843_v54, %s16729_s27  ;;  %v8359_v55 = vld [vmem:[#allocation4 + $0xf8] sm:$0xff] }
 0xac3   : > { %v8145_v24 = vpop.permute.xlu0 %8144  ;;  %8600 = vmatmul.mubr.bf16.gmra.mrb[92].mxu0 %v8394_v57 }
 0xac4   : > { %8236 = vst.msk [vmem:[#allocation4 + $0x40] sm:$0xff] %vm6495_vm15, %v8145_v24  ;;  %v8147_v28 = vpop.permute.xlu1 %8146  ;;  %10876 = vmatprep.mubr.msk.bf16.mxu0 %vm17004_vm0, %v8397_v18 }
 0xac5   : > { %7992 = vrot.lane.b32.xlu0 %v7904_v34, %s16722_s22  ;;  %8237 = vst.msk [vmem:[#allocation4 + $0x50] sm:$0xff] %vm6495_vm15, %v8147_v28  ;;  %v8357_v34 = vld [vmem:[#allocation4 + $0xe8] sm:$0xff] }
 0xac6   : > { %7994 = vrot.lane.b32.xlu1 %v7905_v58, %s16722_s22  ;;  %v8407_v58 = vpack.c.bf16 %v8359_v55, %v8357_v34 }
 0xac7   : > { %v7765_v40 = vpop.permute.xlu0 %7764 }
 0xac8   : > { %7854 = vst.msk [vmem:[#allocation4 + $0x60] sm:$0xff] %vm6109_vm6, %v7765_v40  ;;  %v7767_v54 = vpop.permute.xlu1 %7766 }
 0xac9   : > { %8184 = vrot.lane.b32.xlu0 %v15893_v9, %s16730_s21  ;;  %7855 = vst.msk [vmem:[#allocation4 + $0x70] sm:$0xff] %vm6109_vm6, %v7767_v54 }
 0xaca   : > { %8186 = vrot.lane.b32.xlu1 %v15911_v20, %s16730_s21 }
 0xacb   : > { %v7957_v1 = vpop.permute.xlu0 %7956  ;;  %v8336_v42 = vld [vmem:[#allocation4 + $0x40] sm:$0xff] }
 0xacc   : > { %8046 = vst.msk [vmem:[#allocation4 + $0x60] sm:$0xff] %vm6302_vm7, %v7957_v1  ;;  %v7959_v59 = vpop.permute.xlu1 %7958  ;;  %v8338_v47 = vld [vmem:[#allocation4 + $0x50] sm:$0xff] }
 0xacd   : > { %7804 = vrot.lane.b32.xlu0 %v15895_v22, %s16729_s27  ;;  %8047 = vst.msk [vmem:[#allocation4 + $0x70] sm:$0xff] %vm6302_vm7, %v7959_v59  ;;  %v8396_v21 = vpack.c.bf16 %v8338_v47, %v8336_v42 }
 0xace   : > { %7806 = vrot.lane.b32.xlu1 %v15913_v62, %s16729_s27 }
 0xacf   : > { %v8149_v12 = vpop.permute.xlu0 %8148  ;;  %8608 = vmatmul.mubr.bf16.gmra.mrb[96].mxu0 %v8396_v21 }
 0xad0   : > { %8238 = vst.msk [vmem:[#allocation4 + $0x60] sm:$0xff] %vm6495_vm15, %v8149_v12  ;;  %v8151_v52 = vpop.permute.xlu1 %8150  ;;  %10877 = vmatprep.mubr.msk.bf16.mxu0 %vm17137_vm13, %v8399_v10  ;;  %vm17148_vm13 = vmmov %vm17004_vm0 }
 0xad1   : > { %7996 = vrot.lane.b32.xlu0 %v7906_v49, %s16722_s22  ;;  %8239 = vst.msk [vmem:[#allocation4 + $0x70] sm:$0xff] %vm6495_vm15, %v8151_v52  ;;  %v11596_v49 = vld [vmem:[%s16624_s10] ss:$0 sm:$0xff] }
 0xad2   : > { %7998 = vrot.lane.b32.xlu1 %v7907_v27, %s16722_s22 }
 0xad3   : > { %v7769_v37 = vpop.permute.xlu0 %7768 }
 0xad4   : > { %7856 = vst.msk [vmem:[#allocation4 + $0x80] sm:$0xff] %vm6109_vm6, %v7769_v37  ;;  %v7771_v9 = vpop.permute.xlu1 %7770 }
 0xad5   : > { %8188 = vrot.lane.b32.xlu0 %v15889_v4, %s16730_s21  ;;  %7857 = vst.msk [vmem:[#allocation4 + $0x90] sm:$0xff] %vm6109_vm6, %v7771_v9 }
 0xad6   : > { %8190 = vrot.lane.b32.xlu1 %v15903_v15, %s16730_s21  ;;  %v7908_v15 = vld [vmem:[#allocation3 + $0x152] sm:$0xff] }
 0xad7   : > { %v7961_v22 = vpop.permute.xlu0 %7960  ;;  %v8340_v62 = vld [vmem:[#allocation4 + $0x60] sm:$0xff] }
 0xad8   : > { %8048 = vst.msk [vmem:[#allocation4 + $0x80] sm:$0xff] %vm6302_vm7, %v7961_v22  ;;  %v7963_v20 = vpop.permute.xlu1 %7962  ;;  %v8342_v63 = vld [vmem:[#allocation4 + $0x70] sm:$0xff] }
 0xad9   : > { %7808 = vrot.lane.b32.xlu0 %v15891_v0, %s16729_s27  ;;  %8049 = vst.msk [vmem:[#allocation4 + $0x90] sm:$0xff] %vm6302_vm7, %v7963_v20  ;;  %v8398_v46 = vpack.c.bf16 %v8342_v63, %v8340_v62  ;;  %v7909_v0 = vld [vmem:[#allocation3 + $0x15a] sm:$0xff] }
 0xada   : > { %7810 = vrot.lane.b32.xlu1 %v15905_v17, %s16729_s27 }
 0xadb   : > { %v8153_v4 = vpop.permute.xlu0 %8152  ;;  %8616 = vmatmul.mubr.bf16.gmra.mrb[100].mxu0 %v8398_v46  ;;  %v8361_v46 = vld [vmem:[#allocation4 + $0x108] sm:$0xff] }
 0xadc   : > { %8240 = vst.msk [vmem:[#allocation4 + $0x80] sm:$0xff] %vm6495_vm15, %v8153_v4  ;;  %v8155_v56 = vpop.permute.xlu1 %8154  ;;  %10878 = vmatprep.mubr.msk.bf16.mxu0 %vm17138_vm4, %v8401_v38  ;;  %vm17149_vm4 = vmmov %vm17004_vm0 }
 0xadd   : > { %8000 = vrot.lane.b32.xlu0 %v7908_v15, %s16722_s22  ;;  %8241 = vst.msk [vmem:[#allocation4 + $0x90] sm:$0xff] %vm6495_vm15, %v8155_v56 }
 0xade   : > { %8002 = vrot.lane.b32.xlu1 %v7909_v0, %s16722_s22 }
 0xadf   : > { %v7773_v48 = vpop.permute.xlu0 %7772 }
 0xae0   : > { %7858 = vst.msk [vmem:[#allocation4 + $0xa0] sm:$0xff] %vm6109_vm6, %v7773_v48  ;;  %v7775_v17 = vpop.permute.xlu1 %7774 }
 0xae1   : > { %7859 = vst.msk [vmem:[#allocation4 + $0xb0] sm:$0xff] %vm6109_vm6, %v7775_v17 }
 0xae3   : > { %v7965_v19 = vpop.permute.xlu0 %7964  ;;  %v8344_v44 = vld [vmem:[#allocation4 + $0x80] sm:$0xff] }
 0xae4   : > { %8050 = vst.msk [vmem:[#allocation4 + $0xa0] sm:$0xff] %vm6302_vm7, %v7965_v19  ;;  %v7967_v8 = vpop.permute.xlu1 %7966  ;;  %v8346_v29 = vld [vmem:[#allocation4 + $0x90] sm:$0xff] }
 0xae5   : > { %8051 = vst.msk [vmem:[#allocation4 + $0xb0] sm:$0xff] %vm6302_vm7, %v7967_v8  ;;  %v8400_v53 = vpack.c.bf16 %v8346_v29, %v8344_v44  ;;  %v8367_v29 = vld [vmem:[#allocation4 + $0x138] sm:$0xff] }
 0xae7   : > { %v8157_v26 = vpop.permute.xlu0 %8156  ;;  %8624 = vmatmul.mubr.bf16.gmra.mrb[104].mxu0 %v8400_v53 }
 0xae8   : > { %8242 = vst.msk [vmem:[#allocation4 + $0xa0] sm:$0xff] %vm6495_vm15, %v8157_v26  ;;  %v8159_v36 = vpop.permute.xlu1 %8158  ;;  %10879 = vmatprep.mubr.msk.bf16.mxu0 %vm17139_vm12, %v8403_v30  ;;  %vm17150_vm12 = vmmov %vm17004_vm0 }
 0xae9   : > { %8243 = vst.msk [vmem:[#allocation4 + $0xb0] sm:$0xff] %vm6495_vm15, %v8159_v36 }
 0xaeb   : > { %v7777_v13 = vpop.permute.xlu0 %7776 }
 0xaec   : > { %7860 = vst.msk [vmem:[#allocation4 + $0xc0] sm:$0xff] %vm6109_vm6, %v7777_v13  ;;  %v7779_v41 = vpop.permute.xlu1 %7778  ;;  %v8365_v13 = vld [vmem:[#allocation4 + $0x128] sm:$0xff] }
 0xaed   : > { %7861 = vst.msk [vmem:[#allocation4 + $0xd0] sm:$0xff] %vm6109_vm6, %v7779_v41 }
 0xaef   : > { %v7969_v11 = vpop.permute.xlu0 %7968  ;;  %v8348_v61 = vld [vmem:[#allocation4 + $0xa0] sm:$0xff] }
 0xaf0   : > { %8052 = vst.msk [vmem:[#allocation4 + $0xc0] sm:$0xff] %vm6302_vm7, %v7969_v11  ;;  %v7971_v33 = vpop.permute.xlu1 %7970  ;;  %v8350_v7 = vld [vmem:[#allocation4 + $0xb0] sm:$0xff]  ;;  %v8411_v11 = vpack.c.bf16 %v8367_v29, %v8365_v13 }
 0xaf1   : > { %8053 = vst.msk [vmem:[#allocation4 + $0xd0] sm:$0xff] %vm6302_vm7, %v7971_v33  ;;  %v8402_v50 = vpack.c.bf16 %v8350_v7, %v8348_v61  ;;  %v11571_v61 = vld [vmem:[%s16627_s13] sm:$0xff]  }
 0xaf2   : > { %11271 = vmatprep.subr.bf16.mxu1 %v11571_v61 }
 0xaf3   : > { %v8161_v14 = vpop.permute.xlu0 %8160  ;;  %8632 = vmatmul.mubr.bf16.gmra.mrb[108].mxu0 %v8402_v50  ;;  %11272 = vmatpush3.bf16.msra.mxu1 %v11571_v61 }
 0xaf4   : > { %8244 = vst.msk [vmem:[#allocation4 + $0xc0] sm:$0xff] %vm6495_vm15, %v8161_v14  ;;  %v8163_v25 = vpop.permute.xlu1 %8162  ;;  %10880 = vmatprep.mubr.msk.bf16.mxu0 %vm17140_vm10, %v8405_v16  ;;  %vm17151_vm10 = vmmov %vm17004_vm0  ;;  %v11572_v16 = vld [vmem:[%s16627_s13 + $0x8] sm:$0xff]  }
 0xaf5   : > { %8245 = vst.msk [vmem:[#allocation4 + $0xd0] sm:$0xff] %vm6495_vm15, %v8163_v25  ;;  %11273 = vmatprep.subr.bf16.mxu1 %v11572_v16 }
 0xaf7   : > { %v7781_v23 = vpop.permute.xlu0 %7780  ;;  %11274 = vmatpush3.bf16.msra.mxu1 %v11572_v16 }
 0xaf8   : > { %7862 = vst.msk [vmem:[#allocation4 + $0xe0] sm:$0xff] %vm6109_vm6, %v7781_v23  ;;  %v7783_v51 = vpop.permute.xlu1 %7782  ;;  %v8371_v23 = vld [vmem:[#allocation4 + $0x158] sm:$0xff] }
 0xaf9   : > { %7863 = vst.msk [vmem:[#allocation4 + $0xf0] sm:$0xff] %vm6109_vm6, %v7783_v51 }
 0xafb   : > { %v7973_v5 = vpop.permute.xlu0 %7972  ;;  %v8352_v3 = vld [vmem:[#allocation4 + $0xc0] sm:$0xff] }
 0xafc   : > { %8054 = vst.msk [vmem:[#allocation4 + $0xe0] sm:$0xff] %vm6302_vm7, %v7973_v5  ;;  %v7975_v57 = vpop.permute.xlu1 %7974  ;;  %v8354_v24 = vld [vmem:[#allocation4 + $0xd0] sm:$0xff] }
 0xafd   : > { %8055 = vst.msk [vmem:[#allocation4 + $0xf0] sm:$0xff] %vm6302_vm7, %v7975_v57  ;;  %v8404_v18 = vpack.c.bf16 %v8354_v24, %v8352_v3  ;;  %v8369_v3 = vld [vmem:[#allocation4 + $0x148] sm:$0xff] }
 0xaff   : > { %v8165_v28 = vpop.permute.xlu0 %8164  ;;  %8640 = vmatmul.mubr.bf16.gmra.mrb[112].mxu0 %v8404_v18  ;;  %v8413_v18 = vpack.c.bf16 %v8371_v23, %v8369_v3 }
 0xb00   : > { %8246 = vst.msk [vmem:[#allocation4 + $0xe0] sm:$0xff] %vm6495_vm15, %v8165_v28  ;;  %v11269_v40 = vpop.f32.mrb[132].mxu1  ;;  %v8167_v54 = vpop.permute.xlu1 %8166  ;;  %10881 = vmatprep.mubr.msk.bf16.mxu0 %vm17141_vm3, %v8407_v58  ;;  %vm17152_vm3 = vmmov %vm17004_vm0 }
 0xb01   : > { %v7554_v1 = vadd.f32 %v11269_v40, %v15582_v35  ;;  %8247 = vst.msk [vmem:[#allocation4 + $0xf0] sm:$0xff] %vm6495_vm15, %v8167_v54  ;;  %v7545_v32 = vpop.f32.mrb[133].mxu1  ;;  %v8375_v54 = vld [vmem:[#allocation4 + $0x178] sm:$0xff] }
 0xb02   : > { %v7546_v59 = vadd.f32 %v15582_v35, %v7545_v32  ;;  %v11270_v42 = vpop.f32.mrb[134].mxu1 }
 0xb03   : > { %v7785_v47 = vpop.permute.xlu0 %7784  ;;  %v7590_v21 = vmax.f32 %v7554_v1, 0.0  ;;  %v7557_v6 = vadd.f32 %v11270_v42, %v15582_v35  ;;  %v7548_v12 = vpop.f32.mrb[135].mxu1  ;;  %v8363_v35 = vld [vmem:[#allocation4 + $0x118] sm:$0xff] }
 0xb04   : > { %7864 = vst.msk [vmem:[#allocation4 + $0x100] sm:$0xff] %vm6109_vm6, %v7785_v47  ;;  %v7588_v10 = vmax.f32 %v7546_v59, 0.0  ;;  %v7549_v52 = vadd.f32 %v11596_v49, %v7548_v12  ;;  %v7787_v27 = vpop.permute.xlu1 %7786  ;;  %v8409_v4 = vpack.c.bf16 %v8363_v35, %v8361_v46  ;;  %v8373_v47 = vld [vmem:[#allocation4 + $0x168] sm:$0xff] }
 0xb05   : > { %7622 = vst.msk [vmem:[#allocation3 + $0x181] sm:$0xff] %vm17142_vm11, %v7590_v21  ;;  %v7591_v37 = vmax.f32 %v7557_v6, 0.0  ;;  %vm17153_vm11 = vmmov %vm17004_vm0  ;;  %v8415_v6 = vpack.c.bf16 %v8375_v54, %v8373_v47 }
 0xb06   : > { %7865 = vst.msk [vmem:[#allocation4 + $0x110] sm:$0xff] %vm6109_vm6, %v7787_v27  ;;  %v7589_v9 = vmax.f32 %v7549_v52, 0.0  ;;  %v8379_v27 = vld [vmem:[#allocation4 + $0x198] sm:$0xff] }
 0xb07   : > { %7620 = vst.msk [vmem:[#allocation3 + $0x169] sm:$0xff] %vm17143_vm1, %v7588_v10  ;;  %v7977_v22 = vpop.permute.xlu0 %7976  ;;  %v8356_v20 = vld [vmem:[#allocation4 + $0xe0] sm:$0xff]  ;;  %vm17154_vm1 = vmmov %vm17004_vm0 }
 0xb08   : > { %7623 = vst.msk [vmem:[#allocation3 + $0x189] sm:$0xff] %vm17144_vm5, %v7591_v37  ;;  %v7979_v39 = vpop.permute.xlu1 %7978  ;;  %v8358_v62 = vld [vmem:[#allocation4 + $0xf0] sm:$0xff]  ;;  %vm17155_vm5 = vmmov %vm17004_vm0 }
 0xb09   : > { %8056 = vst.msk [vmem:[#allocation4 + $0x100] sm:$0xff] %vm6302_vm7, %v7977_v22  ;;  %8057 = vst.msk [vmem:[#allocation4 + $0x110] sm:$0xff] %vm6302_vm7, %v7979_v39  ;;  %v8406_v63 = vpack.c.bf16 %v8358_v62, %v8356_v20  ;;  %v8377_v39 = vld [vmem:[#allocation4 + $0x188] sm:$0xff] }
 0xb0a   : > { %7621 = vst.msk [vmem:[#allocation3 + $0x171] sm:$0xff] %vm17145_vm9, %v7589_v9  ;;  %v8417_v62 = vpack.c.bf16 %v8379_v27, %v8377_v39  ;;  %vm17156_vm9 = vmmov %vm17004_vm0 }
 0xb0b   : > { %v8169_v31 = vpop.permute.xlu0 %8168  ;;  %8648 = vmatmul.mubr.bf16.gmra.mrb[116].mxu0 %v8406_v63 }
 0xb0c   : > { %8248 = vst.msk [vmem:[#allocation4 + $0x100] sm:$0xff] %vm6495_vm15, %v8169_v31  ;;  %v8171_v38 = vpop.permute.xlu1 %8170  ;;  %10882 = vmatprep.mubr.msk.bf16.mxu0 %vm17146_vm8, %v8409_v4  ;;  %v8294_v15 = vld [vmem:[#allocation3 + $0x181] sm:$0xff]  ;;  %vm17157_vm8 = vmmov %vm17004_vm0 }
 0xb0d   : > { %8249 = vst.msk [vmem:[#allocation4 + $0x110] sm:$0xff] %vm6495_vm15, %v8171_v38  ;;  %v8102_v7 = vld [vmem:[#allocation3 + $0x180] sm:$0xff]  ;;  %v8383_v38 = vld [vmem:[#allocation4 + $0x1b8] sm:$0xff] }
 0xb0e   : > { %v8100_v56 = vld [vmem:[#allocation3 + $0x168] sm:$0xff]  ;;  %8326 = vst.msk [vmem:[#allocation4 + $0x1e8] sm:$0xff] %vm17147_vm2, %v8294_v15  ;;  %vm17160_vm2 = vmmov %vm17004_vm0 }
 0xb0f   : > { %v7718_v0 = vld [vmem:[#allocation3 + $0x169] sm:$0xff]  ;;  %8192 = vrot.lane.b32.xlu0 %v8100_v56, %s16730_s21  ;;  %v7789_v48 = vpop.permute.xlu0 %7788  ;;  %7686 = vst.msk [vmem:[#allocation4 + $0x1e0] sm:$0xff] %vm17148_vm13, %v8100_v56  ;;  %vm17162_vm13 = vmmov %vm17004_vm0 }
 0xb10   : > { %8324 = vst.msk [vmem:[#allocation4 + $0x1c8] sm:$0xff] %vm17004_vm0, %v7718_v0  ;;  %v8295_v17 = vld [vmem:[#allocation3 + $0x189] sm:$0xff]  ;;  %v7791_v8 = vpop.permute.xlu1 %7790 }
 0xb11   : > { %7866 = vst.msk [vmem:[#allocation4 + $0x120] sm:$0xff] %vm6109_vm6, %v7789_v48  ;;  %v8101_v19 = vld [vmem:[#allocation3 + $0x170] sm:$0xff]  ;;  %7867 = vst.msk [vmem:[#allocation4 + $0x130] sm:$0xff] %vm6109_vm6, %v7791_v8  ;;  %v8103_v45 = vld [vmem:[#allocation3 + $0x188] sm:$0xff] }
 0xb12   : > { %v7719_v60 = vld [vmem:[#allocation3 + $0x171] sm:$0xff]  ;;  %8327 = vst.msk [vmem:[#allocation4 + $0x1f8] sm:$0xff] %vm17149_vm4, %v8295_v17  ;;  %8194 = vrot.lane.b32.xlu1 %v8101_v19, %s16730_s21  ;;  %vm17163_vm4 = vmmov %vm17004_vm0 }
 0xb13   : > { %8325 = vst.msk [vmem:[#allocation4 + $0x1d8] sm:$0xff] %vm17150_vm12, %v7719_v60  ;;  %7812 = vrot.lane.b32.xlu0 %v7718_v0, %s16729_s27  ;;  %v7981_v44 = vpop.permute.xlu0 %7980  ;;  %v8360_v43 = vld [vmem:[#allocation4 + $0x100] sm:$0xff]  ;;  %v8381_v17 = vld [vmem:[#allocation4 + $0x1a8] sm:$0xff]  ;;  %vm17164_vm12 = vmmov %vm17004_vm0 }
 0xb14   : > { %7687 = vst.msk [vmem:[#allocation4 + $0x1f0] sm:$0xff] %vm17151_vm10, %v8101_v19  ;;  %v7983_v53 = vpop.permute.xlu1 %7982  ;;  %v8362_v26 = vld [vmem:[#allocation4 + $0x110] sm:$0xff]  ;;  %v7910_v30 = vld [vmem:[#allocation3 + $0x16a] sm:$0xff]  ;;  %v7911_v2 = vld [vmem:[#allocation3 + $0x172] sm:$0xff] }
 0xb15   : > { %8058 = vst.msk [vmem:[#allocation4 + $0x120] sm:$0xff] %vm6302_vm7, %v7981_v44  ;;  %8059 = vst.msk [vmem:[#allocation4 + $0x130] sm:$0xff] %vm6302_vm7, %v7983_v53  ;;  %v8408_v36 = vpack.c.bf16 %v8362_v26, %v8360_v43  ;;  %v8389_v3 = vld [vmem:[#allocation4 + $0x1e8] sm:$0xff] }
 0xb16   : > { %7814 = vrot.lane.b32.xlu1 %v7719_v60, %s16729_s27  ;;  %v8419_v60 = vpack.c.bf16 %v8383_v38, %v8381_v17  ;;  %vm17165_vm10 = vmmov %vm17004_vm0 }
 0xb17   : > { %8004 = vrot.lane.b32.xlu0 %v7910_v30, %s16722_s22  ;;  %v8173_v41 = vpop.permute.xlu0 %8172  ;;  %8656 = vmatmul.mubr.bf16.gmra.mrb[120].mxu0 %v8408_v36 }
 0xb18   : > { %8250 = vst.msk [vmem:[#allocation4 + $0x120] sm:$0xff] %vm6495_vm15, %v8173_v41  ;;  %v8175_v33 = vpop.permute.xlu1 %8174  ;;  %10883 = vmatprep.mubr.msk.bf16.mxu0 %vm17152_vm3, %v8411_v11  ;;  %v8385_v41 = vld [vmem:[#allocation4 + $0x1c8] sm:$0xff]  ;;  %vm17166_vm3 = vmmov %vm17004_vm0 }
 0xb19   : > { %8251 = vst.msk [vmem:[#allocation4 + $0x130] sm:$0xff] %vm6495_vm15, %v8175_v33 }
 0xb1a   : > { %8006 = vrot.lane.b32.xlu1 %v7911_v2, %s16722_s22  ;;  %v8387_v43 = vld [vmem:[#allocation4 + $0x1d8] sm:$0xff]  ;;  %s17174_s22 = sld [smem:[#allocation24_spill]] }
 0xb1b   : > { %8196 = vrot.lane.b32.xlu0 %v8102_v7, %s16730_s21  ;;  %v7793_v50 = vpop.permute.xlu0 %7792  ;;  %v8421_v11 = vpack.c.bf16 %v8387_v43, %v8385_v41 }
 0xb1c   : > { %7868 = vst.msk [vmem:[#allocation4 + $0x140] sm:$0xff] %vm6109_vm6, %v7793_v50  ;;  %v7795_v14 = vpop.permute.xlu1 %7794 }
 0xb1d   : > { %7869 = vst.msk [vmem:[#allocation4 + $0x150] sm:$0xff] %vm6109_vm6, %v7795_v14  ;;  %v8391_v14 = vld [vmem:[#allocation4 + $0x1f8] sm:$0xff] }
 0xb1e   : > { %8198 = vrot.lane.b32.xlu1 %v8103_v45, %s16730_s21  ;;  %v16140_v45 = vld [vmem:[%s16626_s12] ss:$0 sm:$0xff]  ;;  %s647_s21 = sand.u32 1, %s17178_s3  }
 0xb1f   : > { %v7985_v25 = vpop.permute.xlu0 %7984  ;;  %v8364_v5 = vld [vmem:[#allocation4 + $0x120] sm:$0xff]  ;;  %s10200_s5 = sshll.u32 %s647_s21, 9  ;;  %s16572_s26 = scalar_lea.sflag [#allocation6], %s647_s21 }
 0xb20   : > { %8060 = vst.msk [vmem:[#allocation4 + $0x140] sm:$0xff] %vm6302_vm7, %v7985_v25  ;;  %v7987_v51 = vpop.permute.xlu1 %7986  ;;  %v8366_v55 = vld [vmem:[#allocation4 + $0x130] sm:$0xff] }
 0xb21   : > { %8061 = vst.msk [vmem:[#allocation4 + $0x150] sm:$0xff] %vm6302_vm7, %v7987_v51  ;;  %v8410_v57 = vpack.c.bf16 %v8366_v55, %v8364_v5 }
 0xb23   : > { %v8177_v24 = vpop.permute.xlu0 %8176  ;;  %8664 = vmatmul.mubr.bf16.gmra.mrb[124].mxu0 %v8410_v57 }
 0xb24   : > { %8252 = vst.msk [vmem:[#allocation4 + $0x140] sm:$0xff] %vm6495_vm15, %v8177_v24  ;;  %v8179_v34 = vpop.permute.xlu1 %8178  ;;  %10884 = vmatprep.mubr.msk.bf16.mxu0 %vm17153_vm11, %v8413_v18  ;;  %vm17167_vm11 = vmmov %vm17004_vm0 }
 0xb25   : > { %8253 = vst.msk [vmem:[#allocation4 + $0x150] sm:$0xff] %vm6495_vm15, %v8179_v34  ;;  %v8423_v34 = vpack.c.bf16 %v8391_v14, %v8389_v3 }
 0xb27   : > { %v7797_v28 = vpop.permute.xlu0 %7796 }
 0xb28   : > { %7870 = vst.msk [vmem:[#allocation4 + $0x160] sm:$0xff] %vm6109_vm6, %v7797_v28  ;;  %v7799_v58 = vpop.permute.xlu1 %7798 }
 0xb29   : > { %7871 = vst.msk [vmem:[#allocation4 + $0x170] sm:$0xff] %vm6109_vm6, %v7799_v58 }
 0xb2b   : > { %v7989_v40 = vpop.permute.xlu0 %7988  ;;  %v8368_v32 = vld [vmem:[#allocation4 + $0x140] sm:$0xff] }
 0xb2c   : > { %8062 = vst.msk [vmem:[#allocation4 + $0x160] sm:$0xff] %vm6302_vm7, %v7989_v40  ;;  %v7991_v1 = vpop.permute.xlu1 %7990  ;;  %v8370_v59 = vld [vmem:[#allocation4 + $0x150] sm:$0xff] }
 0xb2d   : > { %8063 = vst.msk [vmem:[#allocation4 + $0x170] sm:$0xff] %vm6302_vm7, %v7991_v1  ;;  %v8412_v42 = vpack.c.bf16 %v8370_v59, %v8368_v32 }
 0xb2f   : > { %v8181_v21 = vpop.permute.xlu0 %8180  ;;  %8672 = vmatmul.mubr.bf16.gmra.mrb[128].mxu0 %v8412_v42 }
 0xb30   : > { %8254 = vst.msk [vmem:[#allocation4 + $0x160] sm:$0xff] %vm6495_vm15, %v8181_v21  ;;  %v8183_v12 = vpop.permute.xlu1 %8182  ;;  %10885 = vmatprep.mubr.msk.bf16.mxu0 %vm17154_vm1, %v8415_v6  ;;  %vm17168_vm1 = vmmov %vm17004_vm0 }
 0xb31   : > { %8255 = vst.msk [vmem:[#allocation4 + $0x170] sm:$0xff] %vm6495_vm15, %v8183_v12 }
 0xb33   : > { %v7801_v10 = vpop.permute.xlu0 %7800 }
 0xb34   : > { %7872 = vst.msk [vmem:[#allocation4 + $0x180] sm:$0xff] %vm6109_vm6, %v7801_v10  ;;  %v7803_v49 = vpop.permute.xlu1 %7802 }
 0xb35   : > { %7873 = vst.msk [vmem:[#allocation4 + $0x190] sm:$0xff] %vm6109_vm6, %v7803_v49 }
 0xb37   : > { %v7993_v52 = vpop.permute.xlu0 %7992  ;;  %v8372_v9 = vld [vmem:[#allocation4 + $0x160] sm:$0xff] }
 0xb38   : > { %8064 = vst.msk [vmem:[#allocation4 + $0x180] sm:$0xff] %vm6302_vm7, %v7993_v52  ;;  %v7995_v37 = vpop.permute.xlu1 %7994  ;;  %v8374_v22 = vld [vmem:[#allocation4 + $0x170] sm:$0xff] }
 0xb39   : > { %8065 = vst.msk [vmem:[#allocation4 + $0x190] sm:$0xff] %vm6302_vm7, %v7995_v37  ;;  %v8414_v35 = vpack.c.bf16 %v8374_v22, %v8372_v9 }
 0xb3b   : > { %v8185_v20 = vpop.permute.xlu0 %8184  ;;  %8680 = vmatmul.mubr.bf16.gmra.mrb[132].mxu0 %v8414_v35 }
 0xb3c   : > { %8256 = vst.msk [vmem:[#allocation4 + $0x180] sm:$0xff] %vm6495_vm15, %v8185_v20  ;;  %v8187_v63 = vpop.permute.xlu1 %8186  ;;  %10886 = vmatprep.mubr.msk.bf16.mxu0 %vm17155_vm5, %v8417_v62  ;;  %vm17169_vm5 = vmmov %vm17004_vm0 }
 0xb3d   : > { %8257 = vst.msk [vmem:[#allocation4 + $0x190] sm:$0xff] %vm6495_vm15, %v8187_v63 }
 0xb3f   : > { %v7805_v46 = vpop.permute.xlu0 %7804 }
 0xb40   : > { %7874 = vst.msk [vmem:[#allocation4 + $0x1a0] sm:$0xff] %vm6109_vm6, %v7805_v46  ;;  %v7807_v31 = vpop.permute.xlu1 %7806 }
 0xb41   : > { %7875 = vst.msk [vmem:[#allocation4 + $0x1b0] sm:$0xff] %vm6109_vm6, %v7807_v31 }
 0xb43   : > { %v7997_v4 = vpop.permute.xlu0 %7996  ;;  %v8376_v56 = vld [vmem:[#allocation4 + $0x180] sm:$0xff] }
 0xb44   : > { %8066 = vst.msk [vmem:[#allocation4 + $0x1a0] sm:$0xff] %vm6302_vm7, %v7997_v4  ;;  %v7999_v15 = vpop.permute.xlu1 %7998  ;;  %v8378_v0 = vld [vmem:[#allocation4 + $0x190] sm:$0xff] }
 0xb45   : > { %8067 = vst.msk [vmem:[#allocation4 + $0x1b0] sm:$0xff] %vm6302_vm7, %v7999_v15  ;;  %v8416_v48 = vpack.c.bf16 %v8378_v0, %v8376_v56 }
 0xb47   : > { %v8189_v19 = vpop.permute.xlu0 %8188  ;;  %8688 = vmatmul.mubr.bf16.gmra.mrb[136].mxu0 %v8416_v48 }
 0xb48   : > { %8258 = vst.msk [vmem:[#allocation4 + $0x1a0] sm:$0xff] %vm6495_vm15, %v8189_v19  ;;  %v8191_v8 = vpop.permute.xlu1 %8190  ;;  %10887 = vmatprep.mubr.msk.bf16.mxu0 %vm17156_vm9, %v8419_v60  ;;  %vm17170_vm9 = vmmov %vm17004_vm0 }
 0xb49   : > { %8259 = vst.msk [vmem:[#allocation4 + $0x1b0] sm:$0xff] %vm6495_vm15, %v8191_v8 }
 0xb4b   : > { %v7809_v44 = vpop.permute.xlu0 %7808 }
 0xb4c   : > { %7876 = vst.msk [vmem:[#allocation4 + $0x1c0] sm:$0xff] %vm6109_vm6, %v7809_v44  ;;  %v7811_v29 = vpop.permute.xlu1 %7810 }
 0xb4d   : > { %7877 = vst.msk [vmem:[#allocation4 + $0x1d0] sm:$0xff] %vm6109_vm6, %v7811_v29 }
 0xb4f   : > { %v8001_v53 = vpop.permute.xlu0 %8000  ;;  %v8380_v30 = vld [vmem:[#allocation4 + $0x1a0] sm:$0xff] }
 0xb50   : > { %8068 = vst.msk [vmem:[#allocation4 + $0x1c0] sm:$0xff] %vm6302_vm7, %v8001_v53  ;;  %v8003_v26 = vpop.permute.xlu1 %8002  ;;  %v8382_v36 = vld [vmem:[#allocation4 + $0x1b0] sm:$0xff] }
 0xb51   : > { %8069 = vst.msk [vmem:[#allocation4 + $0x1d0] sm:$0xff] %vm6302_vm7, %v8003_v26  ;;  %v8418_v13 = vpack.c.bf16 %v8382_v36, %v8380_v30 }
 0xb53   : > { %8696 = vmatmul.mubr.bf16.gmra.mrb[140].mxu0 %v8418_v13 }
 0xb54   : > { %10888 = vmatprep.mubr.msk.bf16.mxu0 %vm17157_vm8, %v8421_v11  ;;  %vm17171_vm8 = vmmov %vm17004_vm0 }
 0xb81   : > { %v8193_v2 = vpop.permute.xlu0 %8192 }
 0xb82   : > { %8260 = vst.msk [vmem:[#allocation4 + $0x1c0] sm:$0xff] %vm6495_vm15, %v8193_v2 }
 0xb84   : > { %v8195_v33 = vpop.permute.xlu1 %8194 }
 0xb85   : > { %8261 = vst.msk [vmem:[#allocation4 + $0x1d0] sm:$0xff] %vm6495_vm15, %v8195_v33  ;;  %v7813_v61 = vpop.permute.xlu0 %7812 }
 0xb86   : > { %7878 = vst.msk [vmem:[#allocation4 + $0x1e0] sm:$0xff] %vm6109_vm6, %v7813_v61 }
 0xb88   : > { %v7815_v7 = vpop.permute.xlu1 %7814 }
 0xb89   : > { %7879 = vst.msk [vmem:[#allocation4 + $0x1f0] sm:$0xff] %vm6109_vm6, %v7815_v7  ;;  %v8005_v50 = vpop.permute.xlu0 %8004  ;;  %v8384_v23 = vld [vmem:[#allocation4 + $0x1c0] sm:$0xff]  ;;  %vm17158_vm6 = vmmov %vm17004_vm0 }
 0xb8a   : > { %8070 = vst.msk [vmem:[#allocation4 + $0x1e0] sm:$0xff] %vm6302_vm7, %v8005_v50  ;;  %v8593_v25 = vpop.f32.mrb[88].mxu0 }
 0xb8b   : > { %v8594_v5 = vadd.f32 %v16140_v45, %v8593_v25  ;;  %v8595_v55 = vpop.f32.mrb[89].mxu0 }
 0xb8c   : > { %v8007_v16 = vpop.permute.xlu1 %8006  ;;  %v8386_v51 = vld [vmem:[#allocation4 + $0x1d0] sm:$0xff]  ;;  %v8596_v24 = vpop.f32.mrb[90].mxu0 }
 0xb8d   : > { %8071 = vst.msk [vmem:[#allocation4 + $0x1f0] sm:$0xff] %vm6302_vm7, %v8007_v16  ;;  %v8420_v57 = vpack.c.bf16 %v8386_v51, %v8384_v23  ;;  %v8197_v18 = vpop.permute.xlu0 %8196  ;;  %v8597_v28 = vadd.f32 %v16140_v45, %v8596_v24  ;;  %v8598_v58 = vpop.f32.mrb[91].mxu0  ;;  %v8720_v54 = vmax.f32 %v8594_v5, 0.0  ;;  %vm17159_vm7 = vmmov %vm17004_vm0 }
 0xb8e   : > { %8262 = vst.msk [vmem:[#allocation4 + $0x1e0] sm:$0xff] %vm6495_vm15, %v8197_v18 }
 0xb8f   : > { %8704 = vmatmul.mubr.bf16.gmra.mrb[144].mxu0 %v8420_v57  ;;  %v8721_v1 = vmax.f32 %v8597_v28, 0.0 }
 0xb90   : > { %v8199_v40 = vpop.permute.xlu1 %8198  ;;  %10889 = vmatprep.mubr.msk.bf16.mxu0 %vm17158_vm6, %v8423_v34  ;;  %vm17172_vm6 = vmmov %vm17004_vm0 }
 0xb91   : > { %8263 = vst.msk [vmem:[#allocation4 + $0x1f0] sm:$0xff] %vm6495_vm15, %v8199_v40  ;;  %v8752_v32 = vpack.c.bf16 %v8721_v1, %v8720_v54  ;;  %vm17161_vm15 = vmmov %vm17004_vm0 }
 0xb93   : > { %11275 = vmatprep.mubr.msk.bf16.mxu1 %vm17159_vm7, %v8752_v32  ;;  %vm17173_vm7 = vmmov %vm17004_vm0 }
 0xb95   : > { %v8388_v42 = vld [vmem:[#allocation4 + $0x1e0] sm:$0xff] }
 0xb96   : > { %v8601_v59 = vpop.f32.mrb[92].mxu0 }
 0xb97   : > { %v8602_v21 = vadd.f32 %v16140_v45, %v8601_v59  ;;  %v8603_v6 = vpop.f32.mrb[93].mxu0 }
 0xb98   : > { %v8390_v47 = vld [vmem:[#allocation4 + $0x1f0] sm:$0xff]  ;;  %v8604_v10 = vpop.f32.mrb[94].mxu0 }
 0xb99   : > { %v8422_v12 = vpack.c.bf16 %v8390_v47, %v8388_v42  ;;  %v8605_v49 = vadd.f32 %v16140_v45, %v8604_v10  ;;  %v8606_v52 = vpop.f32.mrb[95].mxu0  ;;  %v8722_v27 = vmax.f32 %v8602_v21, 0.0 }
 0xb9b   : > { %8712 = vmatmul.mubr.bf16.gmra.mrb[148].mxu0 %v8422_v12  ;;  %v8723_v37 = vmax.f32 %v8605_v49, 0.0 }
 0xb9d   : > { %v8753_v9 = vpack.c.bf16 %v8723_v37, %v8722_v27  ;;  %v11573_v27 = vld [vmem:[%s16629_s15] sm:$0xff]  }
 0xb9e   : > { %11307 = vmatprep.subr.bf16.mxu1 %v11573_v27 }
 0xb9f   : > { %11276 = vmatmul.mubr.msk.bf16.vlgmr.msra.gmra.mrb[136].mxu1 %vm17160_vm2, %v8753_v9 }
 0xba0   : > { %11308 = vmatpush3.bf16.msra.mxu1 %v11573_v27 }
 0xba2   : > { %v8609_v22 = vpop.f32.mrb[96].mxu0 }
 0xba3   : > { %v8610_v35 = vadd.f32 %v16140_v45, %v8609_v22  ;;  %v8611_v39 = vpop.f32.mrb[97].mxu0 }
 0xba4   : > { %v8612_v20 = vpop.f32.mrb[98].mxu0 }
 0xba5   : > { %v8613_v62 = vadd.f32 %v16140_v45, %v8612_v20  ;;  %v8614_v63 = vpop.f32.mrb[99].mxu0  ;;  %v8724_v46 = vmax.f32 %v8610_v35, 0.0  ;;  %v11574_v35 = vld [vmem:[%s16629_s15 + $0x8] sm:$0xff]   ;;  %v11575_v20 = vld [vmem:[%s16629_s15 + $0x10] sm:$0xff]  }
 0xba6   : > { %11309 = vmatprep.subr.bf16.mxu1 %v11574_v35 }
 0xba7   : > { %v8725_v31 = vmax.f32 %v8613_v62, 0.0  ;;  %11310 = vmatpush3.bf16.msra.mxu1 %v11574_v35 }
 0xba8   : > { %11311 = vmatprep.subr.bf16.mxu1 %v11575_v20 }
 0xba9   : > { %v8754_v4 = vpack.c.bf16 %v8725_v31, %v8724_v46  ;;  %v11576_v31 = vld [vmem:[%s16629_s15 + $0x18] sm:$0xff]  }
 0xbab   : > { %11279 = vmatprep.mubr.msk.bf16.mxu1 %vm17161_vm15, %v8754_v4  ;;  %11312 = vmatpush3.bf16.msra.mxu1 %v11575_v20 }
 0xbac   : > { %11313 = vmatprep.subr.bf16.mxu1 %v11576_v31 }
 0xbae   : > { %v8617_v38 = vpop.f32.mrb[100].mxu0 }
 0xbaf   : > { %v8618_v15 = vadd.f32 %v16140_v45, %v8617_v38  ;;  %v8619_v56 = vpop.f32.mrb[101].mxu0  ;;  %11314 = vmatpush3.bf16.msra.mxu1 %v11576_v31 }
 0xbb0   : > { %v8620_v0 = vpop.f32.mrb[102].mxu0 }
 0xbb1   : > { %v8621_v48 = vadd.f32 %v16140_v45, %v8620_v0  ;;  %v8622_v17 = vpop.f32.mrb[103].mxu0  ;;  %v8726_v19 = vmax.f32 %v8618_v15, 0.0 }
 0xbb3   : > { %v8727_v60 = vmax.f32 %v8621_v48, 0.0 }
 0xbb5   : > { %v8755_v8 = vpack.c.bf16 %v8727_v60, %v8726_v19 }
 0xbb7   : > { %11280 = vmatmul.mubr.msk.bf16.gmra.mrb[140].mxu1 %vm17004_vm0, %v8755_v8 }
 0xbba   : > { %v8625_v44 = vpop.f32.mrb[104].mxu0 }
 0xbbb   : > { %v8626_v29 = vadd.f32 %v16140_v45, %v8625_v44  ;;  %v8627_v53 = vpop.f32.mrb[105].mxu0 }
 0xbbc   : > { %v8628_v43 = vpop.f32.mrb[106].mxu0 }
 0xbbd   : > { %v8629_v26 = vadd.f32 %v16140_v45, %v8628_v43  ;;  %v8630_v30 = vpop.f32.mrb[107].mxu0  ;;  %v8728_v36 = vmax.f32 %v8626_v29, 0.0 }
 0xbbf   : > { %v8729_v13 = vmax.f32 %v8629_v26, 0.0 }
 0xbc1   : > { %v8756_v41 = vpack.c.bf16 %v8729_v13, %v8728_v36 }
 0xbc3   : > { %11283 = vmatprep.mubr.msk.bf16.mxu1 %vm17162_vm13, %v8756_v41 }
 0xbc6   : > { %v8633_v11 = vpop.f32.mrb[108].mxu0 }
 0xbc7   : > { %v8634_v2 = vadd.f32 %v16140_v45, %v8633_v11  ;;  %v8635_v33 = vpop.f32.mrb[109].mxu0 }
 0xbc8   : > { %v8636_v61 = vpop.f32.mrb[110].mxu0 }
 0xbc9   : > { %v8637_v7 = vadd.f32 %v16140_v45, %v8636_v61  ;;  %v8638_v50 = vpop.f32.mrb[111].mxu0  ;;  %v8730_v14 = vmax.f32 %v8634_v2, 0.0 }
 0xbcb   : > { %v8731_v16 = vmax.f32 %v8637_v7, 0.0 }
 0xbcd   : > { %v8757_v25 = vpack.c.bf16 %v8731_v16, %v8730_v14 }
 0xbcf   : > { %11284 = vmatmul.mubr.msk.bf16.gmra.mrb[144].mxu1 %vm17163_vm4, %v8757_v25 }
 0xbd2   : > { %v8641_v23 = vpop.f32.mrb[112].mxu0 }
 0xbd3   : > { %v8642_v51 = vadd.f32 %v16140_v45, %v8641_v23  ;;  %v8643_v5 = vpop.f32.mrb[113].mxu0 }
 0xbd4   : > { %v8644_v55 = vpop.f32.mrb[114].mxu0 }
 0xbd5   : > { %v8645_v57 = vadd.f32 %v16140_v45, %v8644_v55  ;;  %v8646_v3 = vpop.f32.mrb[115].mxu0  ;;  %v8732_v24 = vmax.f32 %v8642_v51, 0.0 }
 0xbd7   : > { %v8733_v18 = vmax.f32 %v8645_v57, 0.0 }
 0xbd9   : > { %v8758_v34 = vpack.c.bf16 %v8733_v18, %v8732_v24 }
 0xbdb   : > { %11287 = vmatprep.mubr.msk.bf16.mxu1 %vm17164_vm12, %v8758_v34 }
 0xbde   : > { %v8649_v28 = vpop.f32.mrb[116].mxu0 }
 0xbdf   : > { %v8650_v58 = vadd.f32 %v16140_v45, %v8649_v28  ;;  %v8651_v40 = vpop.f32.mrb[117].mxu0 }
 0xbe0   : > { %v8652_v54 = vpop.f32.mrb[118].mxu0 }
 0xbe1   : > { %v8653_v1 = vadd.f32 %v16140_v45, %v8652_v54  ;;  %v8654_v32 = vpop.f32.mrb[119].mxu0  ;;  %v8734_v59 = vmax.f32 %v8650_v58, 0.0 }
 0xbe3   : > { %v8735_v42 = vmax.f32 %v8653_v1, 0.0 }
 0xbe5   : > { %v8759_v47 = vpack.c.bf16 %v8735_v42, %v8734_v59 }
 0xbe7   : > { %11288 = vmatmul.mubr.msk.bf16.gmra.mrb[148].mxu1 %vm17165_vm10, %v8759_v47 }
 0xbea   : > { %v8657_v21 = vpop.f32.mrb[120].mxu0 }
 0xbeb   : > { %v8658_v6 = vadd.f32 %v16140_v45, %v8657_v21  ;;  %v8659_v12 = vpop.f32.mrb[121].mxu0 }
 0xbec   : > { %v8660_v10 = vpop.f32.mrb[122].mxu0 }
 0xbed   : > { %v8661_v49 = vadd.f32 %v16140_v45, %v8660_v10  ;;  %v8662_v52 = vpop.f32.mrb[123].mxu0  ;;  %v8736_v37 = vmax.f32 %v8658_v6, 0.0 }
 0xbef   : > { %v8737_v9 = vmax.f32 %v8661_v49, 0.0 }
 0xbf1   : > { %v8760_v22 = vpack.c.bf16 %v8737_v9, %v8736_v37 }
 0xbf3   : > { %11291 = vmatprep.mubr.msk.bf16.mxu1 %vm17166_vm3, %v8760_v22 }
 0xbf6   : > { %v8665_v39 = vpop.f32.mrb[124].mxu0 }
 0xbf7   : > { %v8666_v62 = vadd.f32 %v16140_v45, %v8665_v39  ;;  %v8667_v63 = vpop.f32.mrb[125].mxu0 }
 0xbf8   : > { %v8668_v46 = vpop.f32.mrb[126].mxu0 }
 0xbf9   : > { %v8669_v4 = vadd.f32 %v16140_v45, %v8668_v46  ;;  %v8670_v38 = vpop.f32.mrb[127].mxu0  ;;  %v8738_v15 = vmax.f32 %v8666_v62, 0.0  ;;  %v16209_v62 = vld [vmem:[%s16628_s14] ss:$0 sm:$0xff] }
 0xbfb   : > { %v8739_v56 = vmax.f32 %v8669_v4, 0.0 }
 0xbfd   : > { %v8761_v0 = vpack.c.bf16 %v8739_v56, %v8738_v15 }
 0xbff   : > { %11292 = vmatmul.mubr.msk.bf16.gmra.mrb[152].mxu1 %vm17167_vm11, %v8761_v0 }
 0xc02   : > { %v8673_v48 = vpop.f32.mrb[128].mxu0 }
 0xc03   : > { %v8674_v17 = vadd.f32 %v16140_v45, %v8673_v48  ;;  %v8675_v19 = vpop.f32.mrb[129].mxu0 }
 0xc04   : > { %v8676_v60 = vpop.f32.mrb[130].mxu0 }
 0xc05   : > { %v8677_v8 = vadd.f32 %v16140_v45, %v8676_v60  ;;  %v8678_v44 = vpop.f32.mrb[131].mxu0  ;;  %v8740_v29 = vmax.f32 %v8674_v17, 0.0 }
 0xc07   : > { %v8741_v53 = vmax.f32 %v8677_v8, 0.0 }
 0xc09   : > { %v8762_v43 = vpack.c.bf16 %v8741_v53, %v8740_v29 }
 0xc0b   : > { %11295 = vmatprep.mubr.msk.bf16.mxu1 %vm17168_vm1, %v8762_v43 }
 0xc0e   : > { %v8681_v26 = vpop.f32.mrb[132].mxu0 }
 0xc0f   : > { %v8682_v30 = vadd.f32 %v16140_v45, %v8681_v26  ;;  %v8683_v36 = vpop.f32.mrb[133].mxu0 }
 0xc10   : > { %v8684_v13 = vpop.f32.mrb[134].mxu0 }
 0xc11   : > { %v8685_v41 = vadd.f32 %v16140_v45, %v8684_v13  ;;  %v8686_v11 = vpop.f32.mrb[135].mxu0  ;;  %v8742_v2 = vmax.f32 %v8682_v30, 0.0 }
 0xc13   : > { %v8743_v33 = vmax.f32 %v8685_v41, 0.0 }
 0xc15   : > { %v8763_v61 = vpack.c.bf16 %v8743_v33, %v8742_v2 }
 0xc17   : > { %11296 = vmatmul.mubr.msk.bf16.gmra.mrb[156].mxu1 %vm17169_vm5, %v8763_v61 }
 0xc1a   : > { %v8689_v7 = vpop.f32.mrb[136].mxu0 }
 0xc1b   : > { %v8690_v50 = vadd.f32 %v16140_v45, %v8689_v7  ;;  %v8691_v14 = vpop.f32.mrb[137].mxu0 }
 0xc1c   : > { %v8692_v16 = vpop.f32.mrb[138].mxu0 }
 0xc1d   : > { %v8693_v25 = vadd.f32 %v16140_v45, %v8692_v16  ;;  %v8694_v23 = vpop.f32.mrb[139].mxu0  ;;  %v8744_v51 = vmax.f32 %v8690_v50, 0.0 }
 0xc1f   : > { %v8745_v5 = vmax.f32 %v8693_v25, 0.0 }
 0xc21   : > { %v8764_v55 = vpack.c.bf16 %v8745_v5, %v8744_v51 }
 0xc23   : > { %11299 = vmatprep.mubr.msk.bf16.mxu1 %vm17170_vm9, %v8764_v55 }
 0xc26   : > { %v8697_v57 = vpop.f32.mrb[140].mxu0 }
 0xc27   : > { %v8698_v3 = vadd.f32 %v16140_v45, %v8697_v57  ;;  %v8699_v24 = vpop.f32.mrb[141].mxu0 }
 0xc28   : > { %v8700_v18 = vpop.f32.mrb[142].mxu0 }
 0xc29   : > { %v8701_v34 = vadd.f32 %v16140_v45, %v8700_v18  ;;  %v8702_v28 = vpop.f32.mrb[143].mxu0  ;;  %v8746_v58 = vmax.f32 %v8698_v3, 0.0 }
 0xc2a   : > { %v11578_v28 = vld [vmem:[%s17174_s22 + $0x8] sm:$0xff]  }
 0xc2b   : > { %v8747_v40 = vmax.f32 %v8701_v34, 0.0  ;;  %v11577_v34 = vld [vmem:[%s17174_s22] sm:$0xff]  }
 0xc2c   : > { %11347 = vmatprep.subr.bf16.mxu0 %v11577_v34 }
 0xc2d   : > { %v8765_v54 = vpack.c.bf16 %v8747_v40, %v8746_v58  ;;  %11348 = vmatpush3.bf16.msra.mxu0 %v11577_v34 }
 0xc2e   : > { %11349 = vmatprep.subr.bf16.mxu0 %v11578_v28 }
 0xc2f   : > { %11300 = vmatmul.mubr.msk.bf16.gmra.mrb[160].mxu1 %vm17171_vm8, %v8765_v54 }
 0xc31   : > { %11350 = vmatpush3.bf16.msra.mxu0 %v11578_v28 }
 0xc62   : > { %v8705_v1 = vpop.f32.mrb[144].mxu0 }
 0xc63   : > { %v8706_v32 = vadd.f32 %v16140_v45, %v8705_v1  ;;  %v8707_v59 = vpop.f32.mrb[145].mxu0  ;;  %v11579_v1 = vld [vmem:[%s17174_s22 + $0x10] sm:$0xff]  }
 0xc64   : > { %v8708_v42 = vpop.f32.mrb[146].mxu0  ;;  %11351 = vmatprep.subr.bf16.mxu0 %v11579_v1 }
 0xc65   : > { %v8709_v47 = vadd.f32 %v16140_v45, %v8708_v42  ;;  %v8710_v21 = vpop.f32.mrb[147].mxu0  ;;  %v8748_v6 = vmax.f32 %v8706_v32, 0.0  ;;  %11352 = vmatpush3.bf16.msra.mxu0 %v11579_v1 }
 0xc67   : > { %v8749_v12 = vmax.f32 %v8709_v47, 0.0 }
 0xc69   : > { %v8766_v10 = vpack.c.bf16 %v8749_v12, %v8748_v6 }
 0xc6b   : > { %11303 = vmatprep.mubr.msk.bf16.mxu1 %vm17172_vm6, %v8766_v10  ;;  %v11580_v10 = vld [vmem:[%s17174_s22 + $0x18] sm:$0xff]  }
 0xc6c   : > { %11353 = vmatprep.subr.bf16.mxu0 %v11580_v10 }
 0xc6d   : > { %11354 = vmatpush3.bf16.msra.mxu0 %v11580_v10 }
 0xc6e   : > { %v8713_v49 = vpop.f32.mrb[148].mxu0 }
 0xc6f   : > { %v8714_v52 = vadd.f32 %v16140_v45, %v8713_v49  ;;  %v8715_v27 = vpop.f32.mrb[149].mxu0 }
 0xc70   : > { %v8716_v37 = vpop.f32.mrb[150].mxu0 }
 0xc71   : > { %v8717_v9 = vadd.f32 %v16140_v45, %v8716_v37  ;;  %v8718_v22 = vpop.f32.mrb[151].mxu0  ;;  %v8750_v35 = vmax.f32 %v8714_v52, 0.0 }
 0xc72   : > { %v11277_v20 = vpop.f32.mrb[136].mxu1 }
 0xc73   : > { %v8751_v39 = vmax.f32 %v8717_v9, 0.0  ;;  %v8873_v46 = vpop.f32.mrb[137].mxu1  ;;  %v8882_v4 = vadd.f32 %v11277_v20, %v16209_v62 }
 0xc74   : > { %v11278_v31 = vpop.f32.mrb[138].mxu1  ;;  %v8874_v45 = vadd.f32 %v16209_v62, %v8873_v46 }
 0xc75   : > { %v8767_v63 = vpack.c.bf16 %v8751_v39, %v8750_v35  ;;  %v8885_v38 = vadd.f32 %v11278_v31, %v16209_v62  ;;  %v8876_v15 = vpop.f32.mrb[139].mxu1 }
 0xc76   : > { %v8877_v56 = vadd.f32 %v16209_v62, %v8876_v15 }
 0xc77   : > { %11304 = vmatmul.mubr.msk.bf16.gmra.mrb[164].mxu1 %vm17173_vm7, %v8767_v63  ;;  %v9001_v0 = vpack.c.bf16 %v8885_v38, %v8882_v4 }
 0xc78   : > { %v9000_v48 = vpack.c.bf16 %v8877_v56, %v8874_v45 }
 0xc7a   : > { %11315 = vmatprep.mubr.msk.bf16.mxu1 %vm5226_vm14, %v9000_v48 }
 0xc7f   : > { %11316 = vmatmul.mubr.msk.bf16.vlgmr.msra.gmra.mrb[168].mxu1 %vm5226_vm14, %v9001_v0 }
 0xc8a   : > { %v11281_v17 = vpop.f32.mrb[140].mxu1 }
 0xc8b   : > { %v8889_v19 = vpop.f32.mrb[141].mxu1  ;;  %v8898_v8 = vadd.f32 %v11281_v17, %v16209_v62 }
 0xc8c   : > { %v11282_v60 = vpop.f32.mrb[142].mxu1  ;;  %v8890_v53 = vadd.f32 %v16209_v62, %v8889_v19 }
 0xc8d   : > { %v8901_v44 = vadd.f32 %v11282_v60, %v16209_v62  ;;  %v8892_v29 = vpop.f32.mrb[143].mxu1 }
 0xc8e   : > { %v8893_v43 = vadd.f32 %v16209_v62, %v8892_v29 }
 0xc8f   : > { %v9003_v26 = vpack.c.bf16 %v8901_v44, %v8898_v8 }
 0xc90   : > { %v9002_v30 = vpack.c.bf16 %v8893_v43, %v8890_v53 }
 0xc92   : > { %11319 = vmatprep.mubr.msk.bf16.mxu1 %vm5226_vm14, %v9002_v30 }
 0xc93   : > { %11320 = vmatmul.mubr.msk.bf16.gmra.mrb[172].mxu1 %vm5226_vm14, %v9003_v26 }
 0xca2   : > { %v11285_v36 = vpop.f32.mrb[144].mxu1 }
 0xca3   : > { %v8905_v13 = vpop.f32.mrb[145].mxu1  ;;  %v8914_v11 = vadd.f32 %v11285_v36, %v16209_v62 }
 0xca4   : > { %v11286_v41 = vpop.f32.mrb[146].mxu1  ;;  %v8906_v61 = vadd.f32 %v16209_v62, %v8905_v13  ;;  %v16273_v13 = vld [vmem:[%s17175_s30] ss:$0 sm:$0xff]  ;;  %s16435_s30 = scalar_lea.vmem [#allocation5], %s10200_s5 }
 0xca5   : > { %v8917_v2 = vadd.f32 %v11286_v41, %v16209_v62  ;;  %v8908_v33 = vpop.f32.mrb[147].mxu1  ;;  %s10134_s20 = sshll.u32 %s16435_s30, 4  ;;  %s16564_s20 = int_to_ptr.vmem [resolvable:$true] %s10134_s20 }
 0xca6   : > { %v8909_v7 = vadd.f32 %v16209_v62, %v8908_v33  ;;  %s11597_s28 = scalar_lea.vmem %s16564_s20, 8192  ;;  %p11604_p0 = scmp.lt.s32.totalorder %s16564_s20, %s11602_s25 }
 0xca7   : > { %v9005_v50 = vpack.c.bf16 %v8917_v2, %v8914_v11  ;;  %p11598_p11 = scmp.ne.s32.totalorder %s16564_s20, %s11597_s28 }
 0xca8   : > { %v9004_v14 = vpack.c.bf16 %v8909_v7, %v8906_v61 }
 0xca9   : > { %p11599_p12 = pnand %p11598_p11, %p11828_p5 }
 0xcaa   : > { %11323 = vmatprep.mubr.msk.bf16.mxu1 %vm5226_vm14, %v9004_v14 }
 0xcab   : > { %11324 = vmatmul.mubr.msk.bf16.gmra.mrb[176].mxu1 %vm5226_vm14, %v9005_v50  ;;  %p11600_p13 = pneg %p11599_p12 }
 0xcba   : > { %v11289_v16 = vpop.f32.mrb[148].mxu1 }
 0xcbb   : > { %v8921_v25 = vpop.f32.mrb[149].mxu1  ;;  %v8930_v51 = vadd.f32 %v11289_v16, %v16209_v62 }
 0xcbc   : > { %v11290_v23 = vpop.f32.mrb[150].mxu1  ;;  %v8922_v57 = vadd.f32 %v16209_v62, %v8921_v25 }
 0xcbd   : > { %v8933_v5 = vadd.f32 %v11290_v23, %v16209_v62  ;;  %v8924_v55 = vpop.f32.mrb[151].mxu1 }
 0xcbe   : > { %v8925_v3 = vadd.f32 %v16209_v62, %v8924_v55 }
 0xcbf   : > { %v9007_v24 = vpack.c.bf16 %v8933_v5, %v8930_v51 }
 0xcc0   : > { %v9006_v18 = vpack.c.bf16 %v8925_v3, %v8922_v57 }
 0xcc2   : > { %11327 = vmatprep.mubr.msk.bf16.mxu1 %vm5226_vm14, %v9006_v18 }
 0xcc3   : > { %11328 = vmatmul.mubr.msk.bf16.gmra.mrb[180].mxu1 %vm5226_vm14, %v9007_v24 }
 0xcd2   : > { %v11293_v58 = vpop.f32.mrb[152].mxu1 }
 0xcd3   : > { %v8937_v40 = vpop.f32.mrb[153].mxu1  ;;  %v8946_v32 = vadd.f32 %v11293_v58, %v16209_v62 }
 0xcd4   : > { %v11294_v54 = vpop.f32.mrb[154].mxu1  ;;  %v8938_v47 = vadd.f32 %v16209_v62, %v8937_v40 }
 0xcd5   : > { %v8949_v59 = vadd.f32 %v11294_v54, %v16209_v62  ;;  %v8940_v42 = vpop.f32.mrb[155].mxu1 }
 0xcd6   : > { %v8941_v21 = vadd.f32 %v16209_v62, %v8940_v42 }
 0xcd7   : > { %v9009_v6 = vpack.c.bf16 %v8949_v59, %v8946_v32 }
 0xcd8   : > { %v9008_v12 = vpack.c.bf16 %v8941_v21, %v8938_v47 }
 0xcda   : > { %11331 = vmatprep.mubr.msk.bf16.mxu1 %vm5226_vm14, %v9008_v12 }
 0xcdb   : > { %11332 = vmatmul.mubr.msk.bf16.gmra.mrb[184].mxu1 %vm5226_vm14, %v9009_v6 }
 0xcea   : > { %v11297_v49 = vpop.f32.mrb[156].mxu1 }
 0xceb   : > { %v8953_v52 = vpop.f32.mrb[157].mxu1  ;;  %v8962_v37 = vadd.f32 %v11297_v49, %v16209_v62 }
 0xcec   : > { %v11298_v27 = vpop.f32.mrb[158].mxu1  ;;  %v8954_v35 = vadd.f32 %v16209_v62, %v8953_v52 }
 0xced   : > { %v8965_v9 = vadd.f32 %v11298_v27, %v16209_v62  ;;  %v8956_v22 = vpop.f32.mrb[159].mxu1 }
 0xcee   : > { %v8957_v39 = vadd.f32 %v16209_v62, %v8956_v22 }
 0xcef   : > { %v9011_v20 = vpack.c.bf16 %v8965_v9, %v8962_v37 }
 0xcf0   : > { %v9010_v63 = vpack.c.bf16 %v8957_v39, %v8954_v35 }
 0xcf2   : > { %11335 = vmatprep.mubr.msk.bf16.mxu1 %vm5226_vm14, %v9010_v63 }
 0xcf3   : > { %11336 = vmatmul.mubr.msk.bf16.gmra.mrb[188].mxu1 %vm5226_vm14, %v9011_v20 }
 0xd02   : > { %v11301_v46 = vpop.f32.mrb[160].mxu1 }
 0xd03   : > { %v8969_v31 = vpop.f32.mrb[161].mxu1  ;;  %v8978_v38 = vadd.f32 %v11301_v46, %v16209_v62 }
 0xd04   : > { %v11302_v4 = vpop.f32.mrb[162].mxu1  ;;  %v8970_v56 = vadd.f32 %v16209_v62, %v8969_v31 }
 0xd05   : > { %v8981_v15 = vadd.f32 %v11302_v4, %v16209_v62  ;;  %v8972_v45 = vpop.f32.mrb[163].mxu1 }
 0xd06   : > { %v8973_v0 = vadd.f32 %v16209_v62, %v8972_v45 }
 0xd07   : > { %v9013_v48 = vpack.c.bf16 %v8981_v15, %v8978_v38 }
 0xd08   : > { %v9012_v17 = vpack.c.bf16 %v8973_v0, %v8970_v56 }
 0xd0a   : > { %11339 = vmatprep.mubr.msk.bf16.mxu1 %vm5226_vm14, %v9012_v17 }
 0xd0b   : > { %11340 = vmatmul.mubr.msk.bf16.gmra.mrb[192].mxu1 %vm5226_vm14, %v9013_v48 }
 0xd4a   : > { %v11305_v19 = vpop.f32.mrb[164].mxu1 }
 0xd4b   : > { %v8985_v60 = vpop.f32.mrb[165].mxu1  ;;  %v8994_v44 = vadd.f32 %v11305_v19, %v16209_v62 }
 0xd4c   : > { %v11306_v8 = vpop.f32.mrb[166].mxu1  ;;  %v8986_v43 = vadd.f32 %v16209_v62, %v8985_v60 }
 0xd4d   : > { %v8997_v29 = vadd.f32 %v11306_v8, %v16209_v62  ;;  %v8988_v53 = vpop.f32.mrb[167].mxu1 }
 0xd4e   : > { %v8989_v26 = vadd.f32 %v16209_v62, %v8988_v53  ;;  %v11583_v53 = vld [vmem:[%s17176_s17 + $0x10] ss:$8 sps:$4 sm:$0xff]  }
 0xd4f   : > { %v9015_v30 = vpack.c.bf16 %v8997_v29, %v8994_v44  ;;  %v11581_v44 = vld [vmem:[%s17176_s17] ss:$8 sps:$4 sm:$0xff]   ;;  %v11582_v29 = vld [vmem:[%s17176_s17 + $0x4] ss:$8 sps:$4 sm:$0xff]  }
 0xd50   : > { %v9014_v36 = vpack.c.bf16 %v8989_v26, %v8986_v43  ;;  %11387 = vmatprep.subr.bf16.mxu1 %v11581_v44  ;;  %11427 = vmatprep.subr.bf16.mxu0 %v11582_v29  ;;  %v11584_v43 = vld [vmem:[%s17176_s17 + $0x14] ss:$8 sps:$4 sm:$0xff]  }
 0xd51   : > { %11388 = vmatpush3.bf16.msra.mxu1 %v11581_v44 }
 0xd52   : > { %v11317_v41 = vpop.f32.mrb[168].mxu1  ;;  %11343 = vmatprep.mubr.msk.bf16.mxu1 %vm5226_vm14, %v9014_v36  ;;  %11389 = vmatprep.subr.bf16.mxu1 %v11583_v53 }
 0xd53   : > { %v9146_v11 = vadd.f32 %v11317_v41, %v16273_v13  ;;  %v9137_v2 = vpop.f32.mrb[169].mxu1  ;;  %11344 = vmatmul.mubr.msk.bf16.gmra.mrb[196].mxu1 %vm5226_vm14, %v9015_v30 }
 0xd54   : > { %v9138_v33 = vadd.f32 %v16273_v13, %v9137_v2  ;;  %v11318_v61 = vpop.f32.mrb[170].mxu1 }
 0xd55   : > { %v9149_v62 = vadd.f32 %v11318_v61, %v16273_v13  ;;  %v9140_v7 = vpop.f32.mrb[171].mxu1  ;;  %v9266_v14 = vmax.f32 %v9146_v11, 0.0  ;;  %11390 = vmatpush3.bf16.msra.mxu1 %v11583_v53 }
 0xd56   : > { %v9141_v50 = vadd.f32 %v16273_v13, %v9140_v7  ;;  %v9264_v25 = vmax.f32 %v9138_v33, 0.0  ;;  %v11586_v7 = vld [vmem:[%s17176_s17 + $0x24] ss:$8 sps:$4 sm:$0xff]  }
 0xd57   : > { %v9267_v16 = vmax.f32 %v9149_v62, 0.0  ;;  %v11585_v62 = vld [vmem:[%s17176_s17 + $0x20] ss:$8 sps:$4 sm:$0xff]  }
 0xd58   : > { %v9265_v23 = vmax.f32 %v9141_v50, 0.0  ;;  %11391 = vmatprep.subr.bf16.mxu1 %v11585_v62 }
 0xd59   : > { %v9297_v51 = vpack.c.bf16 %v9267_v16, %v9266_v14  ;;  %11392 = vmatpush3.bf16.msra.mxu1 %v11585_v62 }
 0xd5a   : > { %v9296_v5 = vpack.c.bf16 %v9265_v23, %v9264_v25 }
 0xd5c   : > { %11355 = vmatprep.mubr.msk.bf16.mxu0 %vm5226_vm14, %v9296_v5  ;;  %v11587_v5 = vld [vmem:[%s17176_s17 + $0x30] ss:$8 sps:$4 sm:$0xff]  }
 0xd5d   : > { %11356 = vmatmul.mubr.msk.bf16.vlgmr.msra.gmra.mrb[152].mxu0 %vm5226_vm14, %v9297_v51  ;;  %11393 = vmatprep.subr.bf16.mxu1 %v11587_v5 }
 0xd5e   : > { %11428 = vmatpush3.bf16.msra.mxu0 %v11582_v29  ;;  %11394 = vmatpush3.bf16.msra.mxu1 %v11587_v5  ;;  %v16350_v29 = vld [vmem:[%s17177_s2] ss:$0 sm:$0xff]  ;;  %s11603_s2 = scalar_lea.vmem %s11602_s25, 16384 }
 0xd5f   : > { %11429 = vmatprep.subr.bf16.mxu0 %v11584_v43  ;;  %p11605_p1 = scmp.lt.s32.totalorder %s11603_s2, %s11597_s28 }
 0xd61   : > { %p11606_p2 = por %p11605_p1, %p11604_p0 }
 0xd62   : > { %11430 = vmatpush3.bf16.msra.mxu0 %v11584_v43 }
 0xd63   : > { %11431 = vmatprep.subr.bf16.mxu0 %v11586_v7  ;;  %p11607_p3 = pnand %p11606_p2, %p11600_p13 }
 0xd66   : > { %v11321_v55 = vpop.f32.mrb[172].mxu1  ;;  %11432 = vmatpush3.bf16.msra.mxu0 %v11586_v7 }
 0xd67   : > { %v9162_v57 = vadd.f32 %v11321_v55, %v16273_v13  ;;  %v9153_v3 = vpop.f32.mrb[173].mxu1  ;;  %v11588_v55 = vld [vmem:[%s17176_s17 + $0x34] ss:$8 sps:$4 sm:$0xff]  }
 0xd68   : > { %v9154_v24 = vadd.f32 %v16273_v13, %v9153_v3  ;;  %v11322_v18 = vpop.f32.mrb[174].mxu1  ;;  %11433 = vmatprep.subr.bf16.mxu0 %v11588_v55 }
 0xd69   : > { %v9165_v34 = vadd.f32 %v11322_v18, %v16273_v13  ;;  %v9156_v28 = vpop.f32.mrb[175].mxu1  ;;  %v9270_v40 = vmax.f32 %v9162_v57, 0.0 }
 0xd6a   : > { %v9157_v58 = vadd.f32 %v16273_v13, %v9156_v28  ;;  %v9268_v1 = vmax.f32 %v9154_v24, 0.0  ;;  %11434 = vmatpush3.bf16.msra.mxu0 %v11588_v55 }
 0xd6b   : > { %v9271_v54 = vmax.f32 %v9165_v34, 0.0 }
 0xd6c   : > { %v9269_v32 = vmax.f32 %v9157_v58, 0.0 }
 0xd6d   : > { %v9299_v59 = vpack.c.bf16 %v9271_v54, %v9270_v40 }
 0xd6e   : > { %v9298_v42 = vpack.c.bf16 %v9269_v32, %v9268_v1 }
 0xd70   : > { %11359 = vmatprep.mubr.msk.bf16.mxu0 %vm5226_vm14, %v9298_v42 }
 0xd71   : > { %11360 = vmatmul.mubr.msk.bf16.gmra.mrb[156].mxu0 %vm5226_vm14, %v9299_v59 }
 0xd7e   : > { %v11325_v47 = vpop.f32.mrb[176].mxu1 }
 0xd7f   : > { %v9178_v21 = vadd.f32 %v11325_v47, %v16273_v13  ;;  %v9169_v6 = vpop.f32.mrb[177].mxu1 }
 0xd80   : > { %v9170_v12 = vadd.f32 %v16273_v13, %v9169_v6  ;;  %v11326_v10 = vpop.f32.mrb[178].mxu1 }
 0xd81   : > { %v9181_v49 = vadd.f32 %v11326_v10, %v16273_v13  ;;  %v9172_v52 = vpop.f32.mrb[179].mxu1  ;;  %v9274_v37 = vmax.f32 %v9178_v21, 0.0 }
 0xd82   : > { %v9173_v27 = vadd.f32 %v16273_v13, %v9172_v52  ;;  %v9272_v22 = vmax.f32 %v9170_v12, 0.0 }
 0xd83   : > { %v9275_v9 = vmax.f32 %v9181_v49, 0.0 }
 0xd84   : > { %v9273_v35 = vmax.f32 %v9173_v27, 0.0 }
 0xd85   : > { %v9301_v39 = vpack.c.bf16 %v9275_v9, %v9274_v37 }
 0xd86   : > { %v9300_v20 = vpack.c.bf16 %v9273_v35, %v9272_v22 }
 0xd88   : > { %11363 = vmatprep.mubr.msk.bf16.mxu0 %vm5226_vm14, %v9300_v20 }
 0xd89   : > { %11364 = vmatmul.mubr.msk.bf16.gmra.mrb[160].mxu0 %vm5226_vm14, %v9301_v39 }
 0xd96   : > { %v11329_v63 = vpop.f32.mrb[180].mxu1 }
 0xd97   : > { %v9194_v46 = vadd.f32 %v11329_v63, %v16273_v13  ;;  %v9185_v31 = vpop.f32.mrb[181].mxu1 }
 0xd98   : > { %v9186_v4 = vadd.f32 %v16273_v13, %v9185_v31  ;;  %v11330_v38 = vpop.f32.mrb[182].mxu1 }
 0xd99   : > { %v9197_v15 = vadd.f32 %v11330_v38, %v16273_v13  ;;  %v9188_v45 = vpop.f32.mrb[183].mxu1  ;;  %v9278_v0 = vmax.f32 %v9194_v46, 0.0 }
 0xd9a   : > { %v9189_v56 = vadd.f32 %v16273_v13, %v9188_v45  ;;  %v9276_v17 = vmax.f32 %v9186_v4, 0.0 }
 0xd9b   : > { %v9279_v48 = vmax.f32 %v9197_v15, 0.0 }
 0xd9c   : > { %v9277_v19 = vmax.f32 %v9189_v56, 0.0 }
 0xd9d   : > { %v9303_v60 = vpack.c.bf16 %v9279_v48, %v9278_v0 }
 0xd9e   : > { %v9302_v8 = vpack.c.bf16 %v9277_v19, %v9276_v17 }
 0xda0   : > { %11367 = vmatprep.mubr.msk.bf16.mxu0 %vm5226_vm14, %v9302_v8 }
 0xda1   : > { %11368 = vmatmul.mubr.msk.bf16.gmra.mrb[164].mxu0 %vm5226_vm14, %v9303_v60 }
 0xdae   : > { %v11333_v26 = vpop.f32.mrb[184].mxu1 }
 0xdaf   : > { %v9210_v30 = vadd.f32 %v11333_v26, %v16273_v13  ;;  %v9201_v36 = vpop.f32.mrb[185].mxu1 }
 0xdb0   : > { %v9202_v41 = vadd.f32 %v16273_v13, %v9201_v36  ;;  %v11334_v11 = vpop.f32.mrb[186].mxu1 }
 0xdb1   : > { %v9213_v2 = vadd.f32 %v11334_v11, %v16273_v13  ;;  %v9204_v33 = vpop.f32.mrb[187].mxu1  ;;  %v9282_v50 = vmax.f32 %v9210_v30, 0.0 }
 0xdb2   : > { %v9205_v61 = vadd.f32 %v16273_v13, %v9204_v33  ;;  %v9280_v16 = vmax.f32 %v9202_v41, 0.0 }
 0xdb3   : > { %v9283_v14 = vmax.f32 %v9213_v2, 0.0 }
 0xdb4   : > { %v9281_v25 = vmax.f32 %v9205_v61, 0.0 }
 0xdb5   : > { %v9305_v23 = vpack.c.bf16 %v9283_v14, %v9282_v50 }
 0xdb6   : > { %v9304_v51 = vpack.c.bf16 %v9281_v25, %v9280_v16 }
 0xdb8   : > { %11371 = vmatprep.mubr.msk.bf16.mxu0 %vm5226_vm14, %v9304_v51 }
 0xdb9   : > { %11372 = vmatmul.mubr.msk.bf16.gmra.mrb[168].mxu0 %vm5226_vm14, %v9305_v23 }
 0xdc6   : > { %v11337_v57 = vpop.f32.mrb[188].mxu1 }
 0xdc7   : > { %v9226_v3 = vadd.f32 %v11337_v57, %v16273_v13  ;;  %v9217_v24 = vpop.f32.mrb[189].mxu1 }
 0xdc8   : > { %v9218_v18 = vadd.f32 %v16273_v13, %v9217_v24  ;;  %v11338_v34 = vpop.f32.mrb[190].mxu1 }
 0xdc9   : > { %v9229_v28 = vadd.f32 %v11338_v34, %v16273_v13  ;;  %v9220_v58 = vpop.f32.mrb[191].mxu1  ;;  %v9286_v54 = vmax.f32 %v9226_v3, 0.0 }
 0xdca   : > { %v9221_v40 = vadd.f32 %v16273_v13, %v9220_v58  ;;  %v9284_v32 = vmax.f32 %v9218_v18, 0.0 }
 0xdcb   : > { %v9287_v1 = vmax.f32 %v9229_v28, 0.0 }
 0xdcc   : > { %v9285_v59 = vmax.f32 %v9221_v40, 0.0 }
 0xdcd   : > { %v9307_v42 = vpack.c.bf16 %v9287_v1, %v9286_v54 }
 0xdce   : > { %v9306_v47 = vpack.c.bf16 %v9285_v59, %v9284_v32 }
 0xdd0   : > { %11375 = vmatprep.mubr.msk.bf16.mxu0 %vm5226_vm14, %v9306_v47 }
 0xdd1   : > { %11376 = vmatmul.mubr.msk.bf16.gmra.mrb[172].mxu0 %vm5226_vm14, %v9307_v42 }
 0xdde   : > { %v11341_v21 = vpop.f32.mrb[192].mxu1 }
 0xddf   : > { %v9242_v6 = vadd.f32 %v11341_v21, %v16273_v13  ;;  %v9233_v12 = vpop.f32.mrb[193].mxu1 }
 0xde0   : > { %v9234_v10 = vadd.f32 %v16273_v13, %v9233_v12  ;;  %v11342_v49 = vpop.f32.mrb[194].mxu1 }
 0xde1   : > { %v9245_v52 = vadd.f32 %v11342_v49, %v16273_v13  ;;  %v9236_v27 = vpop.f32.mrb[195].mxu1  ;;  %v9290_v9 = vmax.f32 %v9242_v6, 0.0 }
 0xde2   : > { %v9237_v37 = vadd.f32 %v16273_v13, %v9236_v27  ;;  %v9288_v35 = vmax.f32 %v9234_v10, 0.0 }
 0xde3   : > { %v9291_v22 = vmax.f32 %v9245_v52, 0.0 }
 0xde4   : > { %v9289_v39 = vmax.f32 %v9237_v37, 0.0 }
 0xde5   : > { %v9309_v20 = vpack.c.bf16 %v9291_v22, %v9290_v9 }
 0xde6   : > { %v9308_v63 = vpack.c.bf16 %v9289_v39, %v9288_v35 }
 0xde8   : > { %11379 = vmatprep.mubr.msk.bf16.mxu0 %vm5226_vm14, %v9308_v63 }
 0xde9   : > { %11380 = vmatmul.mubr.msk.bf16.gmra.mrb[176].mxu0 %vm5226_vm14, %v9309_v20 }
 0xe26   : > { %v11345_v46 = vpop.f32.mrb[196].mxu1 }
 0xe27   : > { %v9258_v31 = vadd.f32 %v11345_v46, %v16273_v13  ;;  %v9249_v4 = vpop.f32.mrb[197].mxu1 }
 0xe28   : > { %v9250_v38 = vadd.f32 %v16273_v13, %v9249_v4  ;;  %v11346_v15 = vpop.f32.mrb[198].mxu1 }
 0xe29   : > { %v9261_v45 = vadd.f32 %v11346_v15, %v16273_v13  ;;  %v9252_v56 = vpop.f32.mrb[199].mxu1  ;;  %v9294_v48 = vmax.f32 %v9258_v31, 0.0 }
 0xe2a   : > { %v9253_v0 = vadd.f32 %v16273_v13, %v9252_v56  ;;  %v9292_v19 = vmax.f32 %v9250_v38, 0.0 }
 0xe2b   : > { %v9295_v17 = vmax.f32 %v9261_v45, 0.0 }
 0xe2c   : > { %v9293_v60 = vmax.f32 %v9253_v0, 0.0 }
 0xe2d   : > { %v9311_v8 = vpack.c.bf16 %v9295_v17, %v9294_v48 }
 0xe2e   : > { %v9310_v44 = vpack.c.bf16 %v9293_v60, %v9292_v19 }
 0xe30   : > { %v11357_v53 = vpop.f32.mrb[152].mxu0  ;;  %11383 = vmatprep.mubr.msk.bf16.mxu0 %vm5226_vm14, %v9310_v44 }
 0xe31   : > { %v9442_v43 = vadd.f32 %v11357_v53, %v16350_v29  ;;  %v9433_v26 = vpop.f32.mrb[153].mxu0  ;;  %11384 = vmatmul.mubr.msk.bf16.gmra.mrb[180].mxu0 %vm5226_vm14, %v9311_v8 }
 0xe32   : > { %v9434_v13 = vadd.f32 %v16350_v29, %v9433_v26  ;;  %v11358_v30 = vpop.f32.mrb[154].mxu0 }
 0xe33   : > { %v9445_v36 = vadd.f32 %v11358_v30, %v16350_v29  ;;  %v9436_v41 = vpop.f32.mrb[155].mxu0  ;;  %v9562_v2 = vmax.f32 %v9442_v43, 0.0 }
 0xe34   : > { %v9437_v11 = vadd.f32 %v16350_v29, %v9436_v41  ;;  %v9560_v61 = vmax.f32 %v9434_v13, 0.0 }
 0xe35   : > { %v9563_v33 = vmax.f32 %v9445_v36, 0.0 }
 0xe36   : > { %v9561_v62 = vmax.f32 %v9437_v11, 0.0 }
 0xe37   : > { %v9593_v7 = vpack.c.bf16 %v9563_v33, %v9562_v2 }
 0xe38   : > { %v9592_v50 = vpack.c.bf16 %v9561_v62, %v9560_v61 }
 0xe3a   : > { %11395 = vmatprep.mubr.msk.bf16.mxu1 %vm5226_vm14, %v9592_v50  ;;  %11435 = vmatprep.mubr.msk.bf16.mxu0 %vm5226_vm14, %v9592_v50 }
 0xe3b   : > { %11396 = vmatmul.mubr.msk.bf16.vlgmr.msra.gmra.mrb[200].mxu1 %vm5226_vm14, %v9593_v7  ;;  %11436 = vmatmul.mubr.msk.bf16.vlgmr.msra.gmra.mrb[184].mxu0 %vm5226_vm14, %v9593_v7 }
 0xe44   : > { %v11361_v14 = vpop.f32.mrb[156].mxu0 }
 0xe45   : > { %v9458_v16 = vadd.f32 %v11361_v14, %v16350_v29  ;;  %v9449_v25 = vpop.f32.mrb[157].mxu0 }
 0xe46   : > { %v9450_v23 = vadd.f32 %v16350_v29, %v9449_v25  ;;  %v11362_v51 = vpop.f32.mrb[158].mxu0 }
 0xe47   : > { %v9461_v5 = vadd.f32 %v11362_v51, %v16350_v29  ;;  %v9452_v55 = vpop.f32.mrb[159].mxu0  ;;  %v9566_v3 = vmax.f32 %v9458_v16, 0.0 }
 0xe48   : > { %v9453_v57 = vadd.f32 %v16350_v29, %v9452_v55  ;;  %v9564_v18 = vmax.f32 %v9450_v23, 0.0 }
 0xe49   : > { %v9567_v24 = vmax.f32 %v9461_v5, 0.0 }
 0xe4a   : > { %v9565_v34 = vmax.f32 %v9453_v57, 0.0 }
 0xe4b   : > { %v9595_v28 = vpack.c.bf16 %v9567_v24, %v9566_v3 }
 0xe4c   : > { %v9594_v58 = vpack.c.bf16 %v9565_v34, %v9564_v18 }
 0xe4e   : > { %11399 = vmatprep.mubr.msk.bf16.mxu1 %vm5226_vm14, %v9594_v58  ;;  %11439 = vmatprep.mubr.msk.bf16.mxu0 %vm5226_vm14, %v9594_v58 }
 0xe4f   : > { %11400 = vmatmul.mubr.msk.bf16.gmra.mrb[204].mxu1 %vm5226_vm14, %v9595_v28  ;;  %11440 = vmatmul.mubr.msk.bf16.gmra.mrb[188].mxu0 %vm5226_vm14, %v9595_v28 }
 0xe5c   : > { %v11365_v40 = vpop.f32.mrb[160].mxu0 }
 0xe5d   : > { %v9474_v54 = vadd.f32 %v11365_v40, %v16350_v29  ;;  %v9465_v1 = vpop.f32.mrb[161].mxu0 }
 0xe5e   : > { %v9466_v32 = vadd.f32 %v16350_v29, %v9465_v1  ;;  %v11366_v59 = vpop.f32.mrb[162].mxu0 }
 0xe5f   : > { %v9477_v42 = vadd.f32 %v11366_v59, %v16350_v29  ;;  %v9468_v47 = vpop.f32.mrb[163].mxu0  ;;  %v9570_v6 = vmax.f32 %v9474_v54, 0.0 }
 0xe60   : > { %v9469_v21 = vadd.f32 %v16350_v29, %v9468_v47  ;;  %v9568_v10 = vmax.f32 %v9466_v32, 0.0 }
 0xe61   : > { %v9571_v12 = vmax.f32 %v9477_v42, 0.0 }
 0xe62   : > { %v9569_v49 = vmax.f32 %v9469_v21, 0.0 }
 0xe63   : > { %v9597_v52 = vpack.c.bf16 %v9571_v12, %v9570_v6 }
 0xe64   : > { %v9596_v27 = vpack.c.bf16 %v9569_v49, %v9568_v10 }
 0xe66   : > { %11403 = vmatprep.mubr.msk.bf16.mxu1 %vm5226_vm14, %v9596_v27  ;;  %11443 = vmatprep.mubr.msk.bf16.mxu0 %vm5226_vm14, %v9596_v27 }
 0xe67   : > { %11404 = vmatmul.mubr.msk.bf16.gmra.mrb[208].mxu1 %vm5226_vm14, %v9597_v52  ;;  %11444 = vmatmul.mubr.msk.bf16.gmra.mrb[192].mxu0 %vm5226_vm14, %v9597_v52 }
 0xe74   : > { %v11369_v37 = vpop.f32.mrb[164].mxu0 }
 0xe75   : > { %v9490_v9 = vadd.f32 %v11369_v37, %v16350_v29  ;;  %v9481_v22 = vpop.f32.mrb[165].mxu0 }
 0xe76   : > { %v9482_v35 = vadd.f32 %v16350_v29, %v9481_v22  ;;  %v11370_v39 = vpop.f32.mrb[166].mxu0 }
 0xe77   : > { %v9493_v20 = vadd.f32 %v11370_v39, %v16350_v29  ;;  %v9484_v63 = vpop.f32.mrb[167].mxu0  ;;  %v9574_v31 = vmax.f32 %v9490_v9, 0.0 }
 0xe78   : > { %v9485_v46 = vadd.f32 %v16350_v29, %v9484_v63  ;;  %v9572_v38 = vmax.f32 %v9482_v35, 0.0 }
 0xe79   : > { %v9575_v4 = vmax.f32 %v9493_v20, 0.0 }
 0xe7a   : > { %v9573_v15 = vmax.f32 %v9485_v46, 0.0  ;;  %v16420_v46 = vld [vmem:[%s17179_s23] ss:$0 sm:$0xff] }
 0xe7b   : > { %v9599_v45 = vpack.c.bf16 %v9575_v4, %v9574_v31  ;;  %v16425_v31 = vld [vmem:[%s17179_s23 + $0x1] ss:$0 sm:$0xff] }
 0xe7c   : > { %v9598_v56 = vpack.c.bf16 %v9573_v15, %v9572_v38 }
 0xe7e   : > { %11407 = vmatprep.mubr.msk.bf16.mxu1 %vm5226_vm14, %v9598_v56  ;;  %11447 = vmatprep.mubr.msk.bf16.mxu0 %vm5226_vm14, %v9598_v56 }
 0xe7f   : > { %11408 = vmatmul.mubr.msk.bf16.gmra.mrb[212].mxu1 %vm5226_vm14, %v9599_v45  ;;  %11448 = vmatmul.mubr.msk.bf16.gmra.mrb[196].mxu0 %vm5226_vm14, %v9599_v45 }
 0xe8c   : > { %v11373_v0 = vpop.f32.mrb[168].mxu0 }
 0xe8d   : > { %v9506_v48 = vadd.f32 %v11373_v0, %v16350_v29  ;;  %v9497_v17 = vpop.f32.mrb[169].mxu0 }
 0xe8e   : > { %v9498_v19 = vadd.f32 %v16350_v29, %v9497_v17  ;;  %v11374_v60 = vpop.f32.mrb[170].mxu0 }
 0xe8f   : > { %v9509_v8 = vadd.f32 %v11374_v60, %v16350_v29  ;;  %v9500_v44 = vpop.f32.mrb[171].mxu0  ;;  %v9578_v43 = vmax.f32 %v9506_v48, 0.0 }
 0xe90   : > { %v9501_v53 = vadd.f32 %v16350_v29, %v9500_v44  ;;  %v9576_v13 = vmax.f32 %v9498_v19, 0.0 }
 0xe91   : > { %v9579_v26 = vmax.f32 %v9509_v8, 0.0 }
 0xe92   : > { %v9577_v30 = vmax.f32 %v9501_v53, 0.0 }
 0xe93   : > { %v9601_v36 = vpack.c.bf16 %v9579_v26, %v9578_v43 }
 0xe94   : > { %v9600_v41 = vpack.c.bf16 %v9577_v30, %v9576_v13 }
 0xe96   : > { %11411 = vmatprep.mubr.msk.bf16.mxu1 %vm5226_vm14, %v9600_v41  ;;  %11451 = vmatprep.mubr.msk.bf16.mxu0 %vm5226_vm14, %v9600_v41 }
 0xe97   : > { %11412 = vmatmul.mubr.msk.bf16.gmra.mrb[216].mxu1 %vm5226_vm14, %v9601_v36  ;;  %11452 = vmatmul.mubr.msk.bf16.gmra.mrb[200].mxu0 %vm5226_vm14, %v9601_v36 }
 0xea4   : > { %v11377_v11 = vpop.f32.mrb[172].mxu0 }
 0xea5   : > { %v9522_v2 = vadd.f32 %v11377_v11, %v16350_v29  ;;  %v9513_v33 = vpop.f32.mrb[173].mxu0 }
 0xea6   : > { %v9514_v61 = vadd.f32 %v16350_v29, %v9513_v33  ;;  %v11378_v62 = vpop.f32.mrb[174].mxu0 }
 0xea7   : > { %v9525_v7 = vadd.f32 %v11378_v62, %v16350_v29  ;;  %v9516_v50 = vpop.f32.mrb[175].mxu0  ;;  %v9582_v16 = vmax.f32 %v9522_v2, 0.0 }
 0xea8   : > { %v9517_v14 = vadd.f32 %v16350_v29, %v9516_v50  ;;  %v9580_v23 = vmax.f32 %v9514_v61, 0.0 }
 0xea9   : > { %v9583_v25 = vmax.f32 %v9525_v7, 0.0 }
 0xeaa   : > { %v9581_v51 = vmax.f32 %v9517_v14, 0.0 }
 0xeab   : > { %v9603_v5 = vpack.c.bf16 %v9583_v25, %v9582_v16 }
 0xeac   : > { %v9602_v55 = vpack.c.bf16 %v9581_v51, %v9580_v23 }
 0xeae   : > { %11415 = vmatprep.mubr.msk.bf16.mxu1 %vm5226_vm14, %v9602_v55  ;;  %11455 = vmatprep.mubr.msk.bf16.mxu0 %vm5226_vm14, %v9602_v55 }
 0xeaf   : > { %11416 = vmatmul.mubr.msk.bf16.gmra.mrb[220].mxu1 %vm5226_vm14, %v9603_v5  ;;  %11456 = vmatmul.mubr.msk.bf16.gmra.mrb[204].mxu0 %vm5226_vm14, %v9603_v5 }
 0xebc   : > { %v11381_v57 = vpop.f32.mrb[176].mxu0 }
 0xebd   : > { %v9538_v3 = vadd.f32 %v11381_v57, %v16350_v29  ;;  %v9529_v24 = vpop.f32.mrb[177].mxu0 }
 0xebe   : > { %v9530_v18 = vadd.f32 %v16350_v29, %v9529_v24  ;;  %v11382_v34 = vpop.f32.mrb[178].mxu0 }
 0xebf   : > { %v9541_v28 = vadd.f32 %v11382_v34, %v16350_v29  ;;  %v9532_v58 = vpop.f32.mrb[179].mxu0  ;;  %v9586_v54 = vmax.f32 %v9538_v3, 0.0 }
 0xec0   : > { %v9533_v40 = vadd.f32 %v16350_v29, %v9532_v58  ;;  %v9584_v32 = vmax.f32 %v9530_v18, 0.0 }
 0xec1   : > { %v9587_v1 = vmax.f32 %v9541_v28, 0.0 }
 0xec2   : > { %v9585_v59 = vmax.f32 %v9533_v40, 0.0 }
 0xec3   : > { %v9605_v42 = vpack.c.bf16 %v9587_v1, %v9586_v54 }
 0xec4   : > { %v9604_v47 = vpack.c.bf16 %v9585_v59, %v9584_v32 }
 0xec6   : > { %11419 = vmatprep.mubr.msk.bf16.mxu1 %vm5226_vm14, %v9604_v47  ;;  %11459 = vmatprep.mubr.msk.bf16.mxu0 %vm5226_vm14, %v9604_v47 }
 0xec7   : > { %11420 = vmatmul.mubr.msk.bf16.gmra.mrb[224].mxu1 %vm5226_vm14, %v9605_v42  ;;  %11460 = vmatmul.mubr.msk.bf16.gmra.mrb[208].mxu0 %vm5226_vm14, %v9605_v42 }
 0xf04   : > { %v11385_v21 = vpop.f32.mrb[180].mxu0 }
 0xf05   : > { %v9554_v6 = vadd.f32 %v11385_v21, %v16350_v29  ;;  %v9545_v12 = vpop.f32.mrb[181].mxu0 }
 0xf06   : > { %v9546_v10 = vadd.f32 %v16350_v29, %v9545_v12  ;;  %v11386_v49 = vpop.f32.mrb[182].mxu0 }
 0xf07   : > { %v9557_v52 = vadd.f32 %v11386_v49, %v16350_v29  ;;  %v9548_v27 = vpop.f32.mrb[183].mxu0  ;;  %v9590_v9 = vmax.f32 %v9554_v6, 0.0 }
 0xf08   : > { %v9549_v37 = vadd.f32 %v16350_v29, %v9548_v27  ;;  %v9588_v35 = vmax.f32 %v9546_v10, 0.0 }
 0xf09   : > { %v9591_v22 = vmax.f32 %v9557_v52, 0.0 }
 0xf0a   : > { %v9589_v39 = vmax.f32 %v9549_v37, 0.0 }
 0xf0b   : > { %v9607_v20 = vpack.c.bf16 %v9591_v22, %v9590_v9 }
 0xf0c   : > { %v9606_v63 = vpack.c.bf16 %v9589_v39, %v9588_v35 }
 0xf0e   : > { %v11397_v29 = vpop.f32.mrb[200].mxu1  ;;  %11423 = vmatprep.mubr.msk.bf16.mxu1 %vm5226_vm14, %v9606_v63  ;;  %v11437_v4 = vpop.f32.mrb[184].mxu0  ;;  %11463 = vmatprep.mubr.msk.bf16.mxu0 %vm5226_vm14, %v9606_v63 }
 0xf0f   : > { %v9738_v38 = vadd.f32 %v11397_v29, %v16420_v46  ;;  %v9970_v15 = vadd.f32 %v11437_v4, %v16425_v31  ;;  %v9729_v45 = vpop.f32.mrb[201].mxu1  ;;  %11424 = vmatmul.mubr.msk.bf16.gmra.mrb[228].mxu1 %vm5226_vm14, %v9607_v20  ;;  %v9961_v56 = vpop.f32.mrb[185].mxu0  ;;  %11464 = vmatmul.mubr.msk.bf16.gmra.mrb[212].mxu0 %vm5226_vm14, %v9607_v20 }
 0xf10   : > { %v9730_v0 = vadd.f32 %v16420_v46, %v9729_v45  ;;  %v9962_v48 = vadd.f32 %v16425_v31, %v9961_v56  ;;  %v11398_v17 = vpop.f32.mrb[202].mxu1  ;;  %v11438_v19 = vpop.f32.mrb[186].mxu0 }
 0xf11   : > { %9858 = vst [vmem:[%s16435_s30 + $0x20] sm:$0xff] %v9738_v38  ;;  %10090 = vst [vmem:[%s16435_s30 + $0x28] sm:$0xff] %v9970_v15  ;;  %v9741_v60 = vadd.f32 %v11398_v17, %v16420_v46  ;;  %v9973_v8 = vadd.f32 %v11438_v19, %v16425_v31  ;;  %v9732_v44 = vpop.f32.mrb[203].mxu1  ;;  %v9964_v53 = vpop.f32.mrb[187].mxu0 }
 0xf12   : > { %9856 = vst [vmem:[%s16435_s30] sm:$0xff] %v9730_v0  ;;  %10088 = vst [vmem:[%s16435_s30 + $0x8] sm:$0xff] %v9962_v48  ;;  %v9733_v43 = vadd.f32 %v16420_v46, %v9732_v44  ;;  %v9965_v26 = vadd.f32 %v16425_v31, %v9964_v53 }
 0xf13   : > { %9859 = vst [vmem:[%s16435_s30 + $0x30] sm:$0xff] %v9741_v60  ;;  %10091 = vst [vmem:[%s16435_s30 + $0x38] sm:$0xff] %v9973_v8 }
 0xf14   : > { %9857 = vst [vmem:[%s16435_s30 + $0x10] sm:$0xff] %v9733_v43  ;;  %10089 = vst [vmem:[%s16435_s30 + $0x18] sm:$0xff] %v9965_v26 }
 0xf22   : > { %v11401_v13 = vpop.f32.mrb[204].mxu1  ;;  %v11441_v30 = vpop.f32.mrb[188].mxu0 }
 0xf23   : > { %v9754_v36 = vadd.f32 %v11401_v13, %v16420_v46  ;;  %v9986_v41 = vadd.f32 %v11441_v30, %v16425_v31  ;;  %v9745_v11 = vpop.f32.mrb[205].mxu1  ;;  %v9977_v2 = vpop.f32.mrb[189].mxu0 }
 0xf24   : > { %v9746_v33 = vadd.f32 %v16420_v46, %v9745_v11  ;;  %v9978_v61 = vadd.f32 %v16425_v31, %v9977_v2  ;;  %v11402_v62 = vpop.f32.mrb[206].mxu1  ;;  %v11442_v7 = vpop.f32.mrb[190].mxu0 }
 0xf25   : > { %9862 = vst [vmem:[%s16435_s30 + $0x60] sm:$0xff] %v9754_v36  ;;  %10094 = vst [vmem:[%s16435_s30 + $0x68] sm:$0xff] %v9986_v41  ;;  %v9757_v50 = vadd.f32 %v11402_v62, %v16420_v46  ;;  %v9989_v14 = vadd.f32 %v11442_v7, %v16425_v31  ;;  %v9748_v16 = vpop.f32.mrb[207].mxu1  ;;  %v9980_v25 = vpop.f32.mrb[191].mxu0 }
 0xf26   : > { %9860 = vst [vmem:[%s16435_s30 + $0x40] sm:$0xff] %v9746_v33  ;;  %10092 = vst [vmem:[%s16435_s30 + $0x48] sm:$0xff] %v9978_v61  ;;  %v9749_v23 = vadd.f32 %v16420_v46, %v9748_v16  ;;  %v9981_v51 = vadd.f32 %v16425_v31, %v9980_v25 }
 0xf27   : > { %9863 = vst [vmem:[%s16435_s30 + $0x70] sm:$0xff] %v9757_v50  ;;  %10095 = vst [vmem:[%s16435_s30 + $0x78] sm:$0xff] %v9989_v14 }
 0xf28   : > { %9861 = vst [vmem:[%s16435_s30 + $0x50] sm:$0xff] %v9749_v23  ;;  %10093 = vst [vmem:[%s16435_s30 + $0x58] sm:$0xff] %v9981_v51 }
 0xf3a   : > { %v11405_v5 = vpop.f32.mrb[208].mxu1  ;;  %v11445_v55 = vpop.f32.mrb[192].mxu0 }
 0xf3b   : > { %v9770_v57 = vadd.f32 %v11405_v5, %v16420_v46  ;;  %v10002_v3 = vadd.f32 %v11445_v55, %v16425_v31  ;;  %v9761_v24 = vpop.f32.mrb[209].mxu1  ;;  %v9993_v18 = vpop.f32.mrb[193].mxu0 }
 0xf3c   : > { %v9762_v34 = vadd.f32 %v16420_v46, %v9761_v24  ;;  %v9994_v28 = vadd.f32 %v16425_v31, %v9993_v18  ;;  %v11406_v58 = vpop.f32.mrb[210].mxu1  ;;  %v11446_v40 = vpop.f32.mrb[194].mxu0 }
 0xf3d   : > { %9866 = vst [vmem:[%s16435_s30 + $0xa0] sm:$0xff] %v9770_v57  ;;  %10098 = vst [vmem:[%s16435_s30 + $0xa8] sm:$0xff] %v10002_v3  ;;  %v9773_v54 = vadd.f32 %v11406_v58, %v16420_v46  ;;  %v10005_v1 = vadd.f32 %v11446_v40, %v16425_v31  ;;  %v9764_v32 = vpop.f32.mrb[211].mxu1  ;;  %v9996_v59 = vpop.f32.mrb[195].mxu0 }
 0xf3e   : > { %9864 = vst [vmem:[%s16435_s30 + $0x80] sm:$0xff] %v9762_v34  ;;  %10096 = vst [vmem:[%s16435_s30 + $0x88] sm:$0xff] %v9994_v28  ;;  %v9765_v42 = vadd.f32 %v16420_v46, %v9764_v32  ;;  %v9997_v47 = vadd.f32 %v16425_v31, %v9996_v59 }
 0xf3f   : > { %9867 = vst [vmem:[%s16435_s30 + $0xb0] sm:$0xff] %v9773_v54  ;;  %10099 = vst [vmem:[%s16435_s30 + $0xb8] sm:$0xff] %v10005_v1 }
 0xf40   : > { %9865 = vst [vmem:[%s16435_s30 + $0x90] sm:$0xff] %v9765_v42  ;;  %10097 = vst [vmem:[%s16435_s30 + $0x98] sm:$0xff] %v9997_v47 }
 0xf52   : > { %v11409_v21 = vpop.f32.mrb[212].mxu1  ;;  %v11449_v6 = vpop.f32.mrb[196].mxu0 }
 0xf53   : > { %v9786_v12 = vadd.f32 %v11409_v21, %v16420_v46  ;;  %v10018_v10 = vadd.f32 %v11449_v6, %v16425_v31  ;;  %v9777_v49 = vpop.f32.mrb[213].mxu1  ;;  %v10009_v52 = vpop.f32.mrb[197].mxu0 }
 0xf54   : > { %v9778_v27 = vadd.f32 %v16420_v46, %v9777_v49  ;;  %v10010_v37 = vadd.f32 %v16425_v31, %v10009_v52  ;;  %v11410_v9 = vpop.f32.mrb[214].mxu1  ;;  %v11450_v22 = vpop.f32.mrb[198].mxu0 }
 0xf55   : > { %9870 = vst [vmem:[%s16435_s30 + $0xe0] sm:$0xff] %v9786_v12  ;;  %10102 = vst [vmem:[%s16435_s30 + $0xe8] sm:$0xff] %v10018_v10  ;;  %v9789_v35 = vadd.f32 %v11410_v9, %v16420_v46  ;;  %v10021_v39 = vadd.f32 %v11450_v22, %v16425_v31  ;;  %v9780_v20 = vpop.f32.mrb[215].mxu1  ;;  %v10012_v63 = vpop.f32.mrb[199].mxu0 }
 0xf56   : > { %9868 = vst [vmem:[%s16435_s30 + $0xc0] sm:$0xff] %v9778_v27  ;;  %10100 = vst [vmem:[%s16435_s30 + $0xc8] sm:$0xff] %v10010_v37  ;;  %v9781_v29 = vadd.f32 %v16420_v46, %v9780_v20  ;;  %v10013_v4 = vadd.f32 %v16425_v31, %v10012_v63 }
 0xf57   : > { %9871 = vst [vmem:[%s16435_s30 + $0xf0] sm:$0xff] %v9789_v35  ;;  %10103 = vst [vmem:[%s16435_s30 + $0xf8] sm:$0xff] %v10021_v39 }
 0xf58   : > { %9869 = vst [vmem:[%s16435_s30 + $0xd0] sm:$0xff] %v9781_v29  ;;  %10101 = vst [vmem:[%s16435_s30 + $0xd8] sm:$0xff] %v10013_v4 }
 0xf6a   : > { %v11413_v38 = vpop.f32.mrb[216].mxu1  ;;  %v11453_v15 = vpop.f32.mrb[200].mxu0 }
 0xf6b   : > { %v9802_v45 = vadd.f32 %v11413_v38, %v16420_v46  ;;  %v10034_v56 = vadd.f32 %v11453_v15, %v16425_v31  ;;  %v9793_v0 = vpop.f32.mrb[217].mxu1  ;;  %v10025_v48 = vpop.f32.mrb[201].mxu0 }
 0xf6c   : > { %v9794_v17 = vadd.f32 %v16420_v46, %v9793_v0  ;;  %v10026_v19 = vadd.f32 %v16425_v31, %v10025_v48  ;;  %v11414_v60 = vpop.f32.mrb[218].mxu1  ;;  %v11454_v8 = vpop.f32.mrb[202].mxu0 }
 0xf6d   : > { %9874 = vst [vmem:[%s16435_s30 + $0x120] sm:$0xff] %v9802_v45  ;;  %10106 = vst [vmem:[%s16435_s30 + $0x128] sm:$0xff] %v10034_v56  ;;  %v9805_v44 = vadd.f32 %v11414_v60, %v16420_v46  ;;  %v10037_v53 = vadd.f32 %v11454_v8, %v16425_v31  ;;  %v9796_v43 = vpop.f32.mrb[219].mxu1  ;;  %v10028_v26 = vpop.f32.mrb[203].mxu0 }
 0xf6e   : > { %9872 = vst [vmem:[%s16435_s30 + $0x100] sm:$0xff] %v9794_v17  ;;  %10104 = vst [vmem:[%s16435_s30 + $0x108] sm:$0xff] %v10026_v19  ;;  %v9797_v13 = vadd.f32 %v16420_v46, %v9796_v43  ;;  %v10029_v30 = vadd.f32 %v16425_v31, %v10028_v26 }
 0xf6f   : > { %9875 = vst [vmem:[%s16435_s30 + $0x130] sm:$0xff] %v9805_v44  ;;  %10107 = vst [vmem:[%s16435_s30 + $0x138] sm:$0xff] %v10037_v53 }
 0xf70   : > { %9873 = vst [vmem:[%s16435_s30 + $0x110] sm:$0xff] %v9797_v13  ;;  %10105 = vst [vmem:[%s16435_s30 + $0x118] sm:$0xff] %v10029_v30 }
 0xf82   : > { %v11417_v36 = vpop.f32.mrb[220].mxu1  ;;  %v11457_v41 = vpop.f32.mrb[204].mxu0 }
 0xf83   : > { %v9818_v11 = vadd.f32 %v11417_v36, %v16420_v46  ;;  %v10050_v2 = vadd.f32 %v11457_v41, %v16425_v31  ;;  %v9809_v33 = vpop.f32.mrb[221].mxu1  ;;  %v10041_v61 = vpop.f32.mrb[205].mxu0 }
 0xf84   : > { %v9810_v62 = vadd.f32 %v16420_v46, %v9809_v33  ;;  %v10042_v7 = vadd.f32 %v16425_v31, %v10041_v61  ;;  %v11418_v50 = vpop.f32.mrb[222].mxu1  ;;  %v11458_v14 = vpop.f32.mrb[206].mxu0 }
 0xf85   : > { %9878 = vst [vmem:[%s16435_s30 + $0x160] sm:$0xff] %v9818_v11  ;;  %10110 = vst [vmem:[%s16435_s30 + $0x168] sm:$0xff] %v10050_v2  ;;  %v9821_v16 = vadd.f32 %v11418_v50, %v16420_v46  ;;  %v10053_v25 = vadd.f32 %v11458_v14, %v16425_v31  ;;  %v9812_v23 = vpop.f32.mrb[223].mxu1  ;;  %v10044_v51 = vpop.f32.mrb[207].mxu0 }
 0xf86   : > { %9876 = vst [vmem:[%s16435_s30 + $0x140] sm:$0xff] %v9810_v62  ;;  %10108 = vst [vmem:[%s16435_s30 + $0x148] sm:$0xff] %v10042_v7  ;;  %v9813_v5 = vadd.f32 %v16420_v46, %v9812_v23  ;;  %v10045_v55 = vadd.f32 %v16425_v31, %v10044_v51 }
 0xf87   : > { %9879 = vst [vmem:[%s16435_s30 + $0x170] sm:$0xff] %v9821_v16  ;;  %10111 = vst [vmem:[%s16435_s30 + $0x178] sm:$0xff] %v10053_v25 }
 0xf88   : > { %9877 = vst [vmem:[%s16435_s30 + $0x150] sm:$0xff] %v9813_v5  ;;  %10109 = vst [vmem:[%s16435_s30 + $0x158] sm:$0xff] %v10045_v55 }
 0xf9a   : > { %v11421_v57 = vpop.f32.mrb[224].mxu1  ;;  %v11461_v3 = vpop.f32.mrb[208].mxu0 }
 0xf9b   : > { %v9834_v24 = vadd.f32 %v11421_v57, %v16420_v46  ;;  %v10066_v18 = vadd.f32 %v11461_v3, %v16425_v31  ;;  %v9825_v34 = vpop.f32.mrb[225].mxu1  ;;  %v10057_v28 = vpop.f32.mrb[209].mxu0 }
 0xf9c   : > { %v9826_v58 = vadd.f32 %v16420_v46, %v9825_v34  ;;  %v10058_v40 = vadd.f32 %v16425_v31, %v10057_v28  ;;  %v11422_v54 = vpop.f32.mrb[226].mxu1  ;;  %v11462_v1 = vpop.f32.mrb[210].mxu0 }
 0xf9d   : > { %9882 = vst [vmem:[%s16435_s30 + $0x1a0] sm:$0xff] %v9834_v24  ;;  %10114 = vst [vmem:[%s16435_s30 + $0x1a8] sm:$0xff] %v10066_v18  ;;  %v9837_v32 = vadd.f32 %v11422_v54, %v16420_v46  ;;  %v10069_v59 = vadd.f32 %v11462_v1, %v16425_v31  ;;  %v9828_v42 = vpop.f32.mrb[227].mxu1  ;;  %v10060_v47 = vpop.f32.mrb[211].mxu0 }
 0xf9e   : > { %9880 = vst [vmem:[%s16435_s30 + $0x180] sm:$0xff] %v9826_v58  ;;  %10112 = vst [vmem:[%s16435_s30 + $0x188] sm:$0xff] %v10058_v40  ;;  %v9829_v21 = vadd.f32 %v16420_v46, %v9828_v42  ;;  %v10061_v6 = vadd.f32 %v16425_v31, %v10060_v47 }
 0xf9f   : > { %9883 = vst [vmem:[%s16435_s30 + $0x1b0] sm:$0xff] %v9837_v32  ;;  %10115 = vst [vmem:[%s16435_s30 + $0x1b8] sm:$0xff] %v10069_v59 }
 0xfa0   : > { %9881 = vst [vmem:[%s16435_s30 + $0x190] sm:$0xff] %v9829_v21  ;;  %10113 = vst [vmem:[%s16435_s30 + $0x198] sm:$0xff] %v10061_v6 }
 0xfe2   : > { %v11425_v12 = vpop.f32.mrb[228].mxu1  ;;  %v11465_v10 = vpop.f32.mrb[212].mxu0 }
 0xfe3   : > { %v9850_v49 = vadd.f32 %v11425_v12, %v16420_v46  ;;  %v10082_v52 = vadd.f32 %v11465_v10, %v16425_v31  ;;  %v9841_v27 = vpop.f32.mrb[229].mxu1  ;;  %v10073_v37 = vpop.f32.mrb[213].mxu0 }
 0xfe4   : > { %v9842_v9 = vadd.f32 %v16420_v46, %v9841_v27  ;;  %v10074_v22 = vadd.f32 %v16425_v31, %v10073_v37  ;;  %v11426_v35 = vpop.f32.mrb[230].mxu1  ;;  %v11466_v39 = vpop.f32.mrb[214].mxu0 }
 0xfe5   : > { %9886 = vst [vmem:[%s16435_s30 + $0x1e0] sm:$0xff] %v9850_v49  ;;  %10118 = vst [vmem:[%s16435_s30 + $0x1e8] sm:$0xff] %v10082_v52  ;;  %v9853_v20 = vadd.f32 %v11426_v35, %v16420_v46  ;;  %v10085_v63 = vadd.f32 %v11466_v39, %v16425_v31  ;;  %v9844_v29 = vpop.f32.mrb[231].mxu1  ;;  %v10076_v4 = vpop.f32.mrb[215].mxu0 }
 0xfe6   : > { %9884 = vst [vmem:[%s16435_s30 + $0x1c0] sm:$0xff] %v9842_v9  ;;  %10116 = vst [vmem:[%s16435_s30 + $0x1c8] sm:$0xff] %v10074_v22  ;;  %v9845_v38 = vadd.f32 %v16420_v46, %v9844_v29  ;;  %v10077_v15 = vadd.f32 %v16425_v31, %v10076_v4 }
 0xfe7   : > { %9887 = vst [vmem:[%s16435_s30 + $0x1f0] sm:$0xff] %v9853_v20  ;;  %10119 = vst [vmem:[%s16435_s30 + $0x1f8] sm:$0xff] %v10085_v63 }
 0xfe8   : > { %9885 = vst [vmem:[%s16435_s30 + $0x1d0] sm:$0xff] %v9845_v38  ;;  %10117 = vst [vmem:[%s16435_s30 + $0x1d8] sm:$0xff] %v10077_v15 }
 0xfe9   : > { %11610 = shalt.err (!%p11607_p3)
}
 0xfea   : > { %s11611_s3 = scalar_lea.hbm %s16558_s1, 8192  ;;  %s11615_s5 = scalar_lea.hbm %s17182_s4, 16384 }
 0xfeb   : > { %p11612_p4 = scmp.ne.s32.totalorder %s16558_s1, %s11611_s3  ;;  %p11616_p9 = scmp.lt.u32.totalorder %s16558_s1, %s17182_s4 }
 0xfec   : > { %p11617_p10 = scmp.lt.u32.totalorder %s11615_s5, %s11611_s3  ;;  %p11619_p12 = scmp.lt.u32.totalorder %s11611_s3, %s16558_s1 }
 0xfed   : > { %p11613_p7 = pnand %p11612_p4, %p11828_p5 }
 0xfee   : > { %p11618_p11 = por %p11617_p10, %p11616_p9 }
 0xfef   : > { %p11614_p8 = pneg %p11613_p7 }
 0xff0   : > { %p11620_p13 = por %p11619_p12, %p11618_p11 }
 0xff2   : > { %p11621_p0 = pnand %p11620_p13, %p11614_p8 }
 0xff4   : > { %11624 = shalt.err (!%p11621_p0)
}
 0xff5   : > { %s11679_s28 = smov 256  }
 0xff6   : > { %11472 = dma.vmem_to_hbm [thread:$0]  (%p11828_p5), %s16564_s20, 8192, %s16558_s1, %s16572_s26, %s11679_s28, %s11679_s28, %s16725_s29  }
 0xff7 PF: > { %s17183_s2 = sld [smem:[#allocation11_spill]]  ;;  %s17184_s21 = sld [smem:[#allocation8_spill]] }
 0xffd   : > { %p11478_p1 = scmp.ge.s32.totalorder %s17183_s2, 2  ;;  %s10149_s0 = sand.u32 1, %s17184_s21  }
 0xffe   : > { %s10150_s3 = scalar_lea.sflag [#allocation6], %s10149_s0 }
 0xfff   : > { %p11475_p2 = pnand %p11478_p1, %p11832_p6 }
0x1001   : > { %11642 = dma.done.wait (!%p11475_p2), %s10150_s3, 8192  }
0x1002   : > { %11644 = vsyncadd (!%p11475_p2), %s10150_s3, 4294959104  ;;  %s17186_s27 = sld [smem:[#allocation13_spill]]  ;;  %s17187_s2 = sld [smem:[#allocation9_spill]] }
0x1003   : > { %s17188_s25 = sld [smem:[#allocation10_spill]]  ;;  %s17189_s26 = sld [smem:[#allocation14_spill]] }
0x1008   : > { %p31_p3 = scmp.ge.s32.totalorder %s17186_s27, 4  }
0x100a   :  { %33 = sbr.rel (!%p31_p3) target bundleno = 16 (0x10), region = 143 }
0x1011   :  { %10155 = vsyncpa [#allocation6], 1 }
0x1012   :  { %10157 = vsyncpa [#allocation6 + $0x1], 1 }

</bundles_post_ra>
